<compile_context>
chip_gen: v7x
topology: tpu7x:2x2x1
jax: 0.10.0
libtpu: 0.0.40
codegen_flags: <defaults>
</compile_context>

<pallas_src>
import jax
import jax.numpy as jnp
from jax.experimental import pallas as pl
from jax.experimental.pallas import tpu as pltpu

Z_DIM = 100
Z_PAD = 128            # pad K of first layer to a lane multiple
H1, H2, H3 = 256, 512, 1024
OUT = 28 * 28          # 784
OUT_PAD = 896          # 7 * 128  -> lane-dense, unmasked output stores


def _round_up(x, m):
    return (x + m - 1) // m * m


def generator_kernel(z_ref,
                     w1_ref, b1_ref,
                     w2_ref, b2_ref,
                     w3_ref, b3_ref,
                     w4_ref, b4_ref,
                     img_ref):
    """Fused 4-layer MLP on one batch tile: (Linear+ReLU) x3 -> Linear -> Tanh.

    z tile and weights arrive as bf16 (weights resident in VMEM across the
    whole batch grid via constant-index BlockSpecs); every dot accumulates in
    f32 on the MXU.  ReLU on the VPU, tanh on the EUP.  No HBM round trips
    between layers; the only store is the bf16 image tile.
    """
    h = jnp.dot(z_ref[...], w1_ref[...], preferred_element_type=jnp.float32)
    h = jnp.maximum(h + b1_ref[...], 0.0)

    h = jnp.dot(h.astype(jnp.bfloat16), w2_ref[...],
                preferred_element_type=jnp.float32)
    h = jnp.maximum(h + b2_ref[...], 0.0)

    h = jnp.dot(h.astype(jnp.bfloat16), w3_ref[...],
                preferred_element_type=jnp.float32)
    h = jnp.maximum(h + b3_ref[...], 0.0)

    h = jnp.dot(h.astype(jnp.bfloat16), w4_ref[...],
                preferred_element_type=jnp.float32)
    img_ref[...] = jnp.tanh(h + b4_ref[...]).astype(img_ref.dtype)


def init_generator_params(key):
    """PyTorch nn.Linear-style init, weights stored (in_features, out_features)."""
    dims = [(Z_DIM, H1), (H1, H2), (H2, H3), (H3, OUT)]
    params = []
    keys = jax.random.split(key, 2 * len(dims))
    for i, (fan_in, fan_out) in enumerate(dims):
        bound = 1.0 / jnp.sqrt(jnp.float32(fan_in))
        w = jax.random.uniform(keys[2 * i], (fan_in, fan_out),
                               dtype=jnp.float32, minval=-bound, maxval=bound)
        b = jax.random.uniform(keys[2 * i + 1], (1, fan_out),
                               dtype=jnp.float32, minval=-bound, maxval=bound)
        params.append((w, b))
    return params


def pack_generator_params(params):
    """One-time packing: pad to aligned shapes and cast weights to bf16.

    Call this once when the parameters are created/updated and reuse the
    packed tuple for every forward -- the pad/convert over ~3.4M weight
    elements must NOT run on the per-call path.
    """
    (w1, b1), (w2, b2), (w3, b3), (w4, b4) = params
    w1p = jnp.pad(w1, ((0, Z_PAD - Z_DIM), (0, 0))).astype(jnp.bfloat16)
    w2p = w2.astype(jnp.bfloat16)
    w3p = w3.astype(jnp.bfloat16)
    w4p = jnp.pad(w4, ((0, 0), (0, OUT_PAD - OUT))).astype(jnp.bfloat16)
    b4p = jnp.pad(b4, ((0, 0), (0, OUT_PAD - OUT)))  # biases stay f32
    return (w1p, b1, w2p, b2, w3p, b3, w4p, b4p)


def generator_forward(z, packed_params, batch_tile=None):
    """Runs the Pallas kernel over a batch grid and reshapes to NCHW (B,1,28,28).

    `packed_params` comes from `pack_generator_params`.  Output is bf16.
    Run this under jit together with the consumer so the final slice/reshape
    fuses instead of materializing an extra HBM copy.
    """
    B = z.shape[0]
    w1p, b1, w2p, b2, w3p, b3, w4p, b4p = packed_params

    # Batch tile: >= 256 to fill the 256-row MXU on v6e/v7x (128x128 on v5e is
    # trivially filled too); 512 for large batches.  Must be a multiple of 8.
    if batch_tile is None:
        batch_tile = 512 if B >= 512 else 256
    TB = _round_up(batch_tile, 8)
    B_pad = _round_up(B, TB)
    num_tiles = B_pad // TB

    # Pad z rows (batch) and cols (K 100 -> 128) with zeros; ship as bf16.
    z_p = jnp.pad(z, ((0, B_pad - B), (0, Z_PAD - Z_DIM))).astype(jnp.bfloat16)

    # Weights/biases: constant block index -> DMA'd once, resident in VMEM
    # while the z/img batch tiles pipeline underneath.
    def const_spec(shape):
        return pl.BlockSpec(shape, lambda i: (0, 0))

    # For tiny grids, "parallel" on v7x would make both TensorCores fetch
    # their own copy of the ~3 MiB resident weights for no extra throughput.
    dim_sem = ("arbitrary",) if num_tiles <= 2 else ("parallel",)

    img_flat = pl.pallas_call(
        generator_kernel,
        out_shape=jax.ShapeDtypeStruct((B_pad, OUT_PAD), jnp.bfloat16),
        grid=(num_tiles,),
        in_specs=[
            pl.BlockSpec((TB, Z_PAD), lambda i: (i, 0)),   # z batch tile
            const_spec((Z_PAD, H1)), const_spec((1, H1)),
            const_spec((H1, H2)),    const_spec((1, H2)),
            const_spec((H2, H3)),    const_spec((1, H3)),
            const_spec((H3, OUT_PAD)), const_spec((1, OUT_PAD)),
        ],
        out_specs=pl.BlockSpec((TB, OUT_PAD), lambda i: (i, 0)),
        compiler_params=pltpu.CompilerParams(
            dimension_semantics=dim_sem,
            vmem_limit_bytes=24 * 1024 * 1024,
        ),
    )(z_p, w1p, b1, w2p, b2, w3p, b3, w4p, b4p)

    # Drop batch/lane padding, then img.view(-1, 1, 28, 28) equivalent (NCHW).
    # Under jit this slice fuses with whatever consumes the images.
    return img_flat[:B, :OUT].reshape(B, 1, 28, 28)


def generator_ref(z, params):
    """Pure-JAX f32 reference for correctness checking."""
    (w1, b1), (w2, b2), (w3, b3), (w4, b4) = params
    h = jnp.maximum(z @ w1 + b1, 0.0)
    h = jnp.maximum(h @ w2 + b2, 0.0)
    h = jnp.maximum(h @ w3 + b3, 0.0)
    out = jnp.tanh(h @ w4 + b4)
    return out.reshape(z.shape[0], 1, 28, 28)


if __name__ == "__main__":
    key = jax.random.PRNGKey(0)
    k_params, k_z = jax.random.split(key)

    params = init_generator_params(k_params)
    packed = pack_generator_params(params)          # one-time weight packing

    B = 8  # small batch
    z = jax.random.normal(k_z, (B, Z_DIM), dtype=jnp.float32)

    fwd = jax.jit(generator_forward)
    img = fwd(z, packed)
    img = jax.block_until_ready(img)

    ref = generator_ref(z, params)
    assert img.shape == (B, 1, 28, 28), img.shape
    assert img.dtype == jnp.bfloat16, img.dtype
    # bf16 weights/activations/output vs f32 reference: tanh output is in
    # [-1, 1]; observed error is well under 1e-2 -> 3e-2 is a safe margin.
    assert jnp.allclose(img.astype(jnp.float32), ref, atol=3e-2, rtol=3e-2), \
        "mismatch vs reference"

    print("KERNEL_OK")
</pallas_src>

<mosaic_0001>
module attributes {stable_mosaic.version = 11 : i64} {
  func.func @generator_kernel(%arg0: i32, %arg1: memref<256x128xbf16, #tpu.memory_space<vmem>>, %arg2: memref<128x256xbf16, #tpu.memory_space<vmem>>, %arg3: memref<1x256xf32, #tpu.memory_space<vmem>>, %arg4: memref<256x512xbf16, #tpu.memory_space<vmem>>, %arg5: memref<1x512xf32, #tpu.memory_space<vmem>>, %arg6: memref<512x1024xbf16, #tpu.memory_space<vmem>>, %arg7: memref<1x1024xf32, #tpu.memory_space<vmem>>, %arg8: memref<1024x896xbf16, #tpu.memory_space<vmem>>, %arg9: memref<1x896xf32, #tpu.memory_space<vmem>>, %arg10: memref<256x896xbf16, #tpu.memory_space<vmem>>) attributes {dimension_semantics = [#tpu.dimension_semantics<arbitrary>], iteration_bounds = array<i64: 1>, scalar_prefetch = 0 : i64, scratch_operands = 0 : i64, tpu.core_type = #tpu.core_type<tc>, window_params = [{transform_indices = @transform_0, window_bounds = array<i64: 256, 128>}, {pipeline_mode = #tpu.pipeline_mode<synchronous>, transform_indices = @transform_1, window_bounds = array<i64: 128, 256>}, {pipeline_mode = #tpu.pipeline_mode<synchronous>, transform_indices = @transform_2, window_bounds = array<i64: 1, 256>}, {pipeline_mode = #tpu.pipeline_mode<synchronous>, transform_indices = @transform_3, window_bounds = array<i64: 256, 512>}, {pipeline_mode = #tpu.pipeline_mode<synchronous>, transform_indices = @transform_4, window_bounds = array<i64: 1, 512>}, {pipeline_mode = #tpu.pipeline_mode<synchronous>, transform_indices = @transform_5, window_bounds = array<i64: 512, 1024>}, {pipeline_mode = #tpu.pipeline_mode<synchronous>, transform_indices = @transform_6, window_bounds = array<i64: 1, 1024>}, {pipeline_mode = #tpu.pipeline_mode<synchronous>, transform_indices = @transform_7, window_bounds = array<i64: 1024, 896>}, {pipeline_mode = #tpu.pipeline_mode<synchronous>, transform_indices = @transform_8, window_bounds = array<i64: 1, 896>}, {transform_indices = @transform_9, window_bounds = array<i64: 256, 896>}]} {
    %c0 = arith.constant 0 : index
    %c0_0 = arith.constant 0 : index
    %0 = vector.load %arg1[%c0, %c0_0] : memref<256x128xbf16, #tpu.memory_space<vmem>>, vector<256x128xbf16>
    %c0_1 = arith.constant 0 : index
    %c0_2 = arith.constant 0 : index
    %1 = vector.load %arg2[%c0_1, %c0_2] : memref<128x256xbf16, #tpu.memory_space<vmem>>, vector<128x256xbf16>
    %cst = arith.constant dense<0.000000e+00> : vector<256x256xf32>
    %2 = tpu.matmul %0, %1, %cst {dimension_numbers = #tpu.dot_dimension_numbers<[1], [0], [0], [1], [0, 0, 1, 1], [], []>} : vector<256x128xbf16>, vector<128x256xbf16>, vector<256x256xf32> -> vector<256x256xf32>
    %c0_3 = arith.constant 0 : index
    %c0_4 = arith.constant 0 : index
    %3 = vector.load %arg3[%c0_3, %c0_4] : memref<1x256xf32, #tpu.memory_space<vmem>>, vector<1x256xf32>
    %4 = vector.broadcast %3 : vector<1x256xf32> to vector<256x256xf32>
    %5 = arith.addf %2, %4 : vector<256x256xf32>
    %cst_5 = arith.constant 0.000000e+00 : f32
    %6 = vector.broadcast %cst_5 : f32 to vector<256x256xf32>
    %7 = arith.maximumf %5, %6 : vector<256x256xf32>
    %8 = arith.truncf %7 : vector<256x256xf32> to vector<256x256xbf16>
    %c0_6 = arith.constant 0 : index
    %c0_7 = arith.constant 0 : index
    %9 = vector.load %arg4[%c0_6, %c0_7] : memref<256x512xbf16, #tpu.memory_space<vmem>>, vector<256x512xbf16>
    %cst_8 = arith.constant dense<0.000000e+00> : vector<256x512xf32>
    %10 = tpu.matmul %8, %9, %cst_8 {dimension_numbers = #tpu.dot_dimension_numbers<[1], [0], [0], [1], [0, 0, 1, 1], [], []>} : vector<256x256xbf16>, vector<256x512xbf16>, vector<256x512xf32> -> vector<256x512xf32>
    %c0_9 = arith.constant 0 : index
    %c0_10 = arith.constant 0 : index
    %11 = vector.load %arg5[%c0_9, %c0_10] : memref<1x512xf32, #tpu.memory_space<vmem>>, vector<1x512xf32>
    %12 = vector.broadcast %11 : vector<1x512xf32> to vector<256x512xf32>
    %13 = arith.addf %10, %12 : vector<256x512xf32>
    %cst_11 = arith.constant 0.000000e+00 : f32
    %14 = vector.broadcast %cst_11 : f32 to vector<256x512xf32>
    %15 = arith.maximumf %13, %14 : vector<256x512xf32>
    %16 = arith.truncf %15 : vector<256x512xf32> to vector<256x512xbf16>
    %c0_12 = arith.constant 0 : index
    %c0_13 = arith.constant 0 : index
    %17 = vector.load %arg6[%c0_12, %c0_13] : memref<512x1024xbf16, #tpu.memory_space<vmem>>, vector<512x1024xbf16>
    %cst_14 = arith.constant dense<0.000000e+00> : vector<256x1024xf32>
    %18 = tpu.matmul %16, %17, %cst_14 {dimension_numbers = #tpu.dot_dimension_numbers<[1], [0], [0], [1], [0, 0, 1, 1], [], []>} : vector<256x512xbf16>, vector<512x1024xbf16>, vector<256x1024xf32> -> vector<256x1024xf32>
    %c0_15 = arith.constant 0 : index
    %c0_16 = arith.constant 0 : index
    %19 = vector.load %arg7[%c0_15, %c0_16] : memref<1x1024xf32, #tpu.memory_space<vmem>>, vector<1x1024xf32>
    %20 = vector.broadcast %19 : vector<1x1024xf32> to vector<256x1024xf32>
    %21 = arith.addf %18, %20 : vector<256x1024xf32>
    %cst_17 = arith.constant 0.000000e+00 : f32
    %22 = vector.broadcast %cst_17 : f32 to vector<256x1024xf32>
    %23 = arith.maximumf %21, %22 : vector<256x1024xf32>
    %24 = arith.truncf %23 : vector<256x1024xf32> to vector<256x1024xbf16>
    %c0_18 = arith.constant 0 : index
    %c0_19 = arith.constant 0 : index
    %25 = vector.load %arg8[%c0_18, %c0_19] : memref<1024x896xbf16, #tpu.memory_space<vmem>>, vector<1024x896xbf16>
    %cst_20 = arith.constant dense<0.000000e+00> : vector<256x896xf32>
    %26 = tpu.matmul %24, %25, %cst_20 {dimension_numbers = #tpu.dot_dimension_numbers<[1], [0], [0], [1], [0, 0, 1, 1], [], []>} : vector<256x1024xbf16>, vector<1024x896xbf16>, vector<256x896xf32> -> vector<256x896xf32>
    %c0_21 = arith.constant 0 : index
    %c0_22 = arith.constant 0 : index
    %27 = vector.load %arg9[%c0_21, %c0_22] : memref<1x896xf32, #tpu.memory_space<vmem>>, vector<1x896xf32>
    %28 = vector.broadcast %27 : vector<1x896xf32> to vector<256x896xf32>
    %29 = arith.addf %26, %28 : vector<256x896xf32>
    %30 = math.tanh %29 : vector<256x896xf32>
    %31 = arith.truncf %30 : vector<256x896xf32> to vector<256x896xbf16>
    %c0_23 = arith.constant 0 : index
    %c0_24 = arith.constant 0 : index
    %32 = vector.load %arg10[%c0_23, %c0_24] : memref<256x896xbf16, #tpu.memory_space<vmem>>, vector<256x896xbf16>
    tpu.vector_store %arg10[%c0_23, %c0_24], %31 {strides = array<i32>} : memref<256x896xbf16, #tpu.memory_space<vmem>>, vector<256x896xbf16>,
    return
  }
  func.func @transform_0(%arg0: i32) -> (i32, i32) {
    %c0_i32 = arith.constant 0 : i32
    %c0_i32_0 = arith.constant 0 : i32
    return %arg0, %c0_i32 : i32, i32
  }
  func.func @transform_1(%arg0: i32) -> (i32, i32) {
    %c0_i32 = arith.constant 0 : i32
    %c0_i32_0 = arith.constant 0 : i32
    %c0_i32_1 = arith.constant 0 : i32
    return %c0_i32, %c0_i32_0 : i32, i32
  }
  func.func @transform_2(%arg0: i32) -> (i32, i32) {
    %c0_i32 = arith.constant 0 : i32
    %c0_i32_0 = arith.constant 0 : i32
    %c0_i32_1 = arith.constant 0 : i32
    return %c0_i32, %c0_i32_0 : i32, i32
  }
  func.func @transform_3(%arg0: i32) -> (i32, i32) {
    %c0_i32 = arith.constant 0 : i32
    %c0_i32_0 = arith.constant 0 : i32
    %c0_i32_1 = arith.constant 0 : i32
    return %c0_i32, %c0_i32_0 : i32, i32
  }
  func.func @transform_4(%arg0: i32) -> (i32, i32) {
    %c0_i32 = arith.constant 0 : i32
    %c0_i32_0 = arith.constant 0 : i32
    %c0_i32_1 = arith.constant 0 : i32
    return %c0_i32, %c0_i32_0 : i32, i32
  }
  func.func @transform_5(%arg0: i32) -> (i32, i32) {
    %c0_i32 = arith.constant 0 : i32
    %c0_i32_0 = arith.constant 0 : i32
    %c0_i32_1 = arith.constant 0 : i32
    return %c0_i32, %c0_i32_0 : i32, i32
  }
  func.func @transform_6(%arg0: i32) -> (i32, i32) {
    %c0_i32 = arith.constant 0 : i32
    %c0_i32_0 = arith.constant 0 : i32
    %c0_i32_1 = arith.constant 0 : i32
    return %c0_i32, %c0_i32_0 : i32, i32
  }
  func.func @transform_7(%arg0: i32) -> (i32, i32) {
    %c0_i32 = arith.constant 0 : i32
    %c0_i32_0 = arith.constant 0 : i32
    %c0_i32_1 = arith.constant 0 : i32
    return %c0_i32, %c0_i32_0 : i32, i32
  }
  func.func @transform_8(%arg0: i32) -> (i32, i32) {
    %c0_i32 = arith.constant 0 : i32
    %c0_i32_0 = arith.constant 0 : i32
    %c0_i32_1 = arith.constant 0 : i32
    return %c0_i32, %c0_i32_0 : i32, i32
  }
  func.func @transform_9(%arg0: i32) -> (i32, i32) {
    %c0_i32 = arith.constant 0 : i32
    %c0_i32_0 = arith.constant 0 : i32
    return %arg0, %c0_i32 : i32, i32
  }
}

</mosaic_0001>

<bundles_post_ra>
// kernel: generator_forward.1
= control target key start
LH: loop header
LB: loop body
LE: loop exit
PB: predicated region body
PF: predicated region fallthrough
CT: control target
= control target key end

     0   :  { %14 = vsyncpa [#allocation3], 0  ;;  %s19737_s0 = inlined_call_operand.vmem [shape: bf16[256,128], index: 0, kind: input, shape index: {}]   ;;  %s19738_s1 = inlined_call_operand.hbm [shape: bf16[128,256], index: 1, kind: input, shape index: {}]   ;;  %s19739_s2 = inlined_call_operand.hbm [shape: f32[1,256], index: 2, kind: input, shape index: {}]   ;;  %s19740_s3 = inlined_call_operand.hbm [shape: bf16[256,512], index: 3, kind: input, shape index: {}]   ;;  %s19741_s4 = inlined_call_operand.hbm [shape: f32[1,512], index: 4, kind: input, shape index: {}]   ;;  %s19742_s5 = inlined_call_operand.hbm [shape: bf16[512,1024], index: 5, kind: input, shape index: {}]   ;;  %s19743_s6 = inlined_call_operand.hbm [shape: f32[1,1024], index: 6, kind: input, shape index: {}]   ;;  %s19744_s7 = inlined_call_operand.hbm [shape: bf16[1024,896], index: 7, kind: input, shape index: {}]   ;;  %s19745_s8 = inlined_call_operand.hbm [shape: f32[1,896], index: 8, kind: input, shape index: {}]   ;;  %s19746_s9 = inlined_call_operand.vmem [shape: bf16[256,896], index: 9, kind: output, shape index: {}]  }
   0x1   :  { %15 = vsyncpa [#allocation5], 0 }
   0x2   :  { %16 = vsyncpa [#allocation8], 0 }
   0x3   :  { %17 = vsyncpa [#allocation11], 0 }
   0x4   :  { %18 = vsyncpa [#allocation14], 0  ;;  %s16256_s30 = smov [#allocation4]   ;;  %s16257_s11 = smov [#allocation7]  }
   0x5   :  { %s39_s10 = sshll.u32 %s16256_s30, 4  ;;  %s61_s12 = sshll.u32 %s16257_s11, 4  ;;  %s40_s10 = int_to_ptr.vmem [resolvable:$true] %s39_s10  ;;  %s62_s12 = int_to_ptr.vmem [resolvable:$true] %s61_s12 }
   0x6   :  { %s16070_s15 = scalar_lea.hbm %s19739_s2, 32 }
   0x7   :  { %p16071_p0 = scmp.ne.s32.totalorder %s19739_s2, %s16070_s15  ;;  %p16074_p1 = scmp.lt.u32.totalorder %s16070_s15, %s19739_s2 }
   0x9   :  { %p16076_p2 = pnand %p16074_p1, %p16071_p0 }
   0xb   :  { %16079 = shalt.err (!%p16076_p2)
}
   0xc   :  { %s16080_s20 = scalar_lea.vmem %s40_s10, 32  ;;  %p16085_p4 = scmp.lt.s32.totalorder %s40_s10, %s40_s10 }
   0xd   :  { %p16081_p3 = scmp.ne.s32.totalorder %s40_s10, %s16080_s20  ;;  %p16086_p5 = scmp.lt.s32.totalorder %s16080_s20, %s16080_s20 }
   0xf   :  { %p16087_p6 = por %p16086_p5, %p16085_p4 }
  0x11   :  { %p16088_p7 = pnand %p16087_p6, %p16081_p3 }
  0x13   :  { %16091 = shalt.err (!%p16088_p7)
}
  0x14   :  { %42 = dma.hbm_to_vmem [thread:$0]  %s19739_s2, 32, %s40_s10, [#allocation5]  }
  0x15   :  { %s16092_s25 = scalar_lea.hbm %s19741_s4, 64 }
  0x16   :  { %p16093_p8 = scmp.ne.s32.totalorder %s19741_s4, %s16092_s25  ;;  %p16096_p9 = scmp.lt.u32.totalorder %s16092_s25, %s19741_s4 }
  0x18   :  { %p16098_p10 = pnand %p16096_p9, %p16093_p8 }
  0x1a   :  { %16101 = shalt.err (!%p16098_p10)
}
  0x1b   :  { %s16102_s30 = scalar_lea.vmem %s62_s12, 64  ;;  %p16107_p12 = scmp.lt.s32.totalorder %s62_s12, %s62_s12 }
  0x1c   :  { %p16103_p11 = scmp.ne.s32.totalorder %s62_s12, %s16102_s30  ;;  %p16108_p13 = scmp.lt.s32.totalorder %s16102_s30, %s16102_s30 }
  0x1e   :  { %p16109_p0 = por %p16108_p13, %p16107_p12 }
  0x20   :  { %p16110_p1 = pnand %p16109_p0, %p16103_p11 }
  0x22   :  { %16113 = shalt.err (!%p16110_p1)
}
  0x23   :  { %64 = dma.hbm_to_vmem [thread:$0]  %s19741_s4, 64, %s62_s12, [#allocation8]  }
  0x24   :  { %s16258_s11 = smov [#allocation10]   ;;  %s16259_s14 = smov [#allocation2]  }
  0x25   :  { %s83_s13 = sshll.u32 %s16258_s11, 4  ;;  %s26_s15 = sshll.u32 %s16259_s14, 4  ;;  %s84_s13 = int_to_ptr.vmem [resolvable:$true] %s83_s13  ;;  %s16347_s15 = int_to_ptr.vmem [resolvable:$true] %s26_s15 }
  0x26   :  { %s16114_s18 = scalar_lea.hbm %s19743_s6, 128 }
  0x27   :  { %p16115_p2 = scmp.ne.s32.totalorder %s19743_s6, %s16114_s18  ;;  %p16118_p3 = scmp.lt.u32.totalorder %s16114_s18, %s19743_s6 }
  0x29   :  { %p16120_p4 = pnand %p16118_p3, %p16115_p2 }
  0x2b   :  { %16123 = shalt.err (!%p16120_p4)
}
  0x2c   :  { %s16124_s4 = scalar_lea.vmem %s84_s13, 128  ;;  %p16129_p6 = scmp.lt.s32.totalorder %s84_s13, %s84_s13 }
  0x2d   :  { %p16125_p5 = scmp.ne.s32.totalorder %s84_s13, %s16124_s4  ;;  %p16130_p7 = scmp.lt.s32.totalorder %s16124_s4, %s16124_s4 }
  0x2f   :  { %p16131_p8 = por %p16130_p7, %p16129_p6 }
  0x31   :  { %p16132_p9 = pnand %p16131_p8, %p16125_p5 }
  0x33   :  { %16135 = shalt.err (!%p16132_p9)
}
  0x34   :  { %86 = dma.hbm_to_vmem [thread:$0]  %s19743_s6, 128, %s84_s13, [#allocation11]  }
  0x35   :  { %s16136_s26 = scalar_lea.hbm %s19738_s1, 2048 }
  0x36   :  { %p16137_p10 = scmp.ne.s32.totalorder %s19738_s1, %s16136_s26  ;;  %p16140_p11 = scmp.lt.u32.totalorder %s16136_s26, %s19738_s1 }
  0x38   :  { %p16142_p12 = pnand %p16140_p11, %p16137_p10 }
  0x3a   :  { %16145 = shalt.err (!%p16142_p12)
}
  0x3b   :  { %s16146_s2 = scalar_lea.vmem %s16347_s15, 2048  ;;  %p16151_p0 = scmp.lt.s32.totalorder %s16347_s15, %s16347_s15 }
  0x3c   :  { %p16147_p13 = scmp.ne.s32.totalorder %s16347_s15, %s16146_s2  ;;  %p16152_p1 = scmp.lt.s32.totalorder %s16146_s2, %s16146_s2 }
  0x3e   :  { %p16153_p2 = por %p16152_p1, %p16151_p0 }
  0x40   :  { %p16154_p3 = pnand %p16153_p2, %p16147_p13 }
  0x42   :  { %16157 = shalt.err (!%p16154_p3)
}
  0x43   :  { %s16260_s6 = smov 128   ;;  %s16261_s10 = smov 8  }
  0x44   :  { %32 = dma.hbm_to_vmem [thread:$0]  %s19738_s1, 2048, %s16347_s15, [#allocation3], %s16260_s6, %s16260_s6, %s16261_s10  }
  0x45   :  { %s16262_s14 = smov [#allocation6]   ;;  %s16158_s19 = scalar_lea.hbm %s19740_s3, 8192 }
  0x46   :  { %s48_s16 = sshll.u32 %s16262_s14, 4  ;;  %p16159_p4 = scmp.ne.s32.totalorder %s19740_s3, %s16158_s19  ;;  %s49_s16 = int_to_ptr.vmem [resolvable:$true] %s48_s16 }
  0x47   :  { %p16162_p5 = scmp.lt.u32.totalorder %s16158_s19, %s19740_s3 }
  0x49   :  { %p16164_p6 = pnand %p16162_p5, %p16159_p4 }
  0x4b   :  { %16167 = shalt.err (!%p16164_p6)
}
  0x4c   :  { %s16168_s12 = scalar_lea.vmem %s49_s16, 8192  ;;  %p16173_p8 = scmp.lt.s32.totalorder %s49_s16, %s49_s16 }
  0x4d   :  { %p16169_p7 = scmp.ne.s32.totalorder %s49_s16, %s16168_s12  ;;  %p16174_p9 = scmp.lt.s32.totalorder %s16168_s12, %s16168_s12 }
  0x4f   :  { %p16175_p10 = por %p16174_p9, %p16173_p8 }
  0x51   :  { %p16176_p11 = pnand %p16175_p10, %p16169_p7 }
  0x53   :  { %16179 = shalt.err (!%p16176_p11)
}
  0x54   :  { %s16263_s1 = smov 256   ;;  %s16264_s15 = smov 16  }
  0x55   :  { %54 = dma.hbm_to_vmem [thread:$0]  %s19740_s3, 8192, %s49_s16, [#allocation5], %s16263_s1, %s16263_s1, %s16264_s15  }
  0x56   :  { %s16265_s25 = smov [#allocation9]   ;;  %s16180_s29 = scalar_lea.hbm %s19742_s5, 32768 }
  0x57   :  { %s70_s26 = sshll.u32 %s16265_s25, 4  ;;  %p16181_p12 = scmp.ne.s32.totalorder %s19742_s5, %s16180_s29  ;;  %s71_s26 = int_to_ptr.vmem [resolvable:$true] %s70_s26 }
  0x58   :  { %p16184_p13 = scmp.lt.u32.totalorder %s16180_s29, %s19742_s5 }
  0x5a   :  { %p16186_p0 = pnand %p16184_p13, %p16181_p12 }
  0x5c   :  { %16189 = shalt.err (!%p16186_p0)
}
  0x5d   :  { %s16190_s11 = scalar_lea.vmem %s71_s26, 32768  ;;  %p16195_p2 = scmp.lt.s32.totalorder %s71_s26, %s71_s26 }
  0x5e   :  { %p16191_p1 = scmp.ne.s32.totalorder %s71_s26, %s16190_s11  ;;  %p16196_p3 = scmp.lt.s32.totalorder %s16190_s11, %s16190_s11 }
  0x60   :  { %p16197_p4 = por %p16196_p3, %p16195_p2 }
  0x62   :  { %p16198_p5 = pnand %p16197_p4, %p16191_p1 }
  0x64   :  { %16201 = shalt.err (!%p16198_p5)
}
  0x65   :  { %s16266_s3 = smov 512   ;;  %s16267_s13 = smov 32  }
  0x66   :  { %76 = dma.hbm_to_vmem [thread:$0]  %s19742_s5, 32768, %s71_s26, [#allocation8], %s16266_s3, %s16266_s3, %s16267_s13  }
  0x67   :  { %s16268_s17 = smov [#allocation12]   ;;  %s16202_s21 = scalar_lea.hbm %s19744_s7, 57344 }
  0x68   :  { %s92_s18 = sshll.u32 %s16268_s17, 4  ;;  %p16203_p6 = scmp.ne.s32.totalorder %s19744_s7, %s16202_s21  ;;  %s93_s18 = int_to_ptr.vmem [resolvable:$true] %s92_s18 }
  0x69   :  { %p16206_p7 = scmp.lt.u32.totalorder %s16202_s21, %s19744_s7 }
  0x6b   :  { %p16208_p8 = pnand %p16206_p7, %p16203_p6 }
  0x6d   :  { %16211 = shalt.err (!%p16208_p8)
}
  0x6e   :  { %s16212_s15 = scalar_lea.vmem %s93_s18, 57344  ;;  %p16217_p10 = scmp.lt.s32.totalorder %s93_s18, %s93_s18 }
  0x6f   :  { %p16213_p9 = scmp.ne.s32.totalorder %s93_s18, %s16212_s15  ;;  %p16218_p11 = scmp.lt.s32.totalorder %s16212_s15, %s16212_s15 }
  0x71   :  { %p16219_p12 = por %p16218_p11, %p16217_p10 }
  0x73   :  { %p16220_p13 = pnand %p16219_p12, %p16213_p9 }
  0x75   :  { %16223 = shalt.err (!%p16220_p13)
}
  0x76   :  { %s16269_s5 = smov 448   ;;  %s16270_s23 = smov 28  }
  0x77   :  { %98 = dma.hbm_to_vmem [thread:$0]  %s19744_s7, 57344, %s93_s18, [#allocation11], %s16269_s5, %s16269_s5, %s16270_s23  }
  0x78   :  { %s16271_s26 = smov [#allocation13]   ;;  %s16224_s30 = scalar_lea.hbm %s19745_s8, 112 }
  0x79   :  { %s105_s27 = sshll.u32 %s16271_s26, 4  ;;  %p16225_p0 = scmp.ne.s32.totalorder %s19745_s8, %s16224_s30  ;;  %s106_s27 = int_to_ptr.vmem [resolvable:$true] %s105_s27 }
  0x7a   :  { %p16228_p1 = scmp.lt.u32.totalorder %s16224_s30, %s19745_s8 }
  0x7c   :  { %p16230_p2 = pnand %p16228_p1, %p16225_p0 }
  0x7e   :  { %16233 = shalt.err (!%p16230_p2)
}
  0x7f   :  { %s16234_s3 = scalar_lea.vmem %s106_s27, 112  ;;  %s16238_s7 = scalar_lea.vmem %s106_s27, 128 }
  0x80   :  { %p16235_p3 = scmp.ne.s32.totalorder %s106_s27, %s16234_s3  ;;  %p16239_p4 = scmp.lt.s32.totalorder %s106_s27, %s106_s27 }
  0x81   :  { %p16240_p5 = scmp.lt.s32.totalorder %s16238_s7, %s16234_s3 }
  0x83   :  { %p16241_p6 = por %p16240_p5, %p16239_p4 }
  0x85   :  { %p16242_p7 = pnand %p16241_p6, %p16235_p3 }
  0x87   :  { %16245 = shalt.err (!%p16242_p7)
}
  0x88   :  { %108 = dma.hbm_to_vmem [thread:$0]  %s19745_s8, 112, %s106_s27, [#allocation14]  }
  0x89   :  { %16246 = dma.done.wait [#allocation3], 2048  }
  0x8a   :  { %16247 = vsyncadd [#allocation3], 4294965248 }
  0x8b   :  { %16248 = dma.done.wait [#allocation5], 8224  }
  0x8c   :  { %16249 = vsyncadd [#allocation5], 4294959072 }
  0x8d   :  { %16250 = dma.done.wait [#allocation8], 32832  }
  0x8e   :  { %16251 = vsyncadd [#allocation8], 4294934464 }
  0x8f   :  { %16252 = dma.done.wait [#allocation11], 57472  }
  0x90   :  { %16253 = vsyncadd [#allocation11], 4294909824 }
  0x91   :  { %16254 = dma.done.wait [#allocation14], 112  }
  0x92   :  { %16255 = vsyncadd [#allocation14], 4294967184  ;;  %v16272_v0 = vmov 0   ;;  %v14844_v1 = vld [vmem:[#allocation2 + $0x4] ss:$8 sps:$4 sm:$0xff]   ;;  %v14870_v39 = vld [vmem:[%s19737_s0 + $0x10] sm:$0xff]  }
  0x93   :  { %402 = vmatprep.mubr.bf16.mxu0 %v16272_v0  ;;  %482 = vmatprep.mubr.bf16.mxu1 %v16272_v0  ;;  %v14846_v2 = vld [vmem:[#allocation2] ss:$8 sps:$4 sm:$0xff]   ;;  %v14847_v3 = vld [vmem:[#allocation2 + $0x14] ss:$8 sps:$4 sm:$0xff]   ;;  %v14849_v4 = vld [vmem:[#allocation2 + $0x10] ss:$8 sps:$4 sm:$0xff]  }
  0x94   :  { %370 = vmatprep.subr.bf16.mxu0 %v14844_v1  ;;  %13531 = vmatprep.subr.bf16.mxu1 %v14844_v1  ;;  %v14850_v5 = vld [vmem:[#allocation2 + $0x24] ss:$8 sps:$4 sm:$0xff]   ;;  %v14852_v6 = vld [vmem:[#allocation2 + $0x20] ss:$8 sps:$4 sm:$0xff]   ;;  %v14853_v7 = vld [vmem:[#allocation2 + $0x34] ss:$8 sps:$4 sm:$0xff]  }
  0x95   :  { %371 = vmatpush1.bf16.msra.mxu0 %v14846_v2  ;;  %13539 = vmatpush1.bf16.msra.mxu1 %v14846_v2  ;;  %v14855_v8 = vld [vmem:[#allocation2 + $0x30] ss:$8 sps:$4 sm:$0xff]   ;;  %v14856_v9 = vld [vmem:[#allocation2 + $0x44] ss:$8 sps:$4 sm:$0xff]   ;;  %v14858_v10 = vld [vmem:[#allocation2 + $0x40] ss:$8 sps:$4 sm:$0xff]  }
  0x96   :  { %372 = vmatprep.subr.bf16.mxu0 %v14847_v3  ;;  %13532 = vmatprep.subr.bf16.mxu1 %v14847_v3  ;;  %v14859_v11 = vld [vmem:[#allocation2 + $0x54] ss:$8 sps:$4 sm:$0xff]   ;;  %v14861_v12 = vld [vmem:[#allocation2 + $0x50] ss:$8 sps:$4 sm:$0xff]   ;;  %v14862_v13 = vld [vmem:[#allocation2 + $0x64] ss:$8 sps:$4 sm:$0xff]  }
  0x97   :  { %v14864_v14 = vld [vmem:[#allocation2 + $0x60] ss:$8 sps:$4 sm:$0xff]   ;;  %v14865_v15 = vld [vmem:[#allocation2 + $0x74] ss:$8 sps:$4 sm:$0xff]   ;;  %v14867_v16 = vld [vmem:[#allocation2 + $0x70] ss:$8 sps:$4 sm:$0xff]  }
  0x98   :  { %v14886_v17 = vld [vmem:[#allocation6 + $0x4] ss:$16 sps:$4 sm:$0xff]   ;;  %v14889_v18 = vld [vmem:[#allocation6 + $0xc] ss:$16 sps:$4 sm:$0xff]   ;;  %v14884_v21 = vld [vmem:[#allocation6] ss:$16 sps:$4 sm:$0xff]  }
  0x99   :  { %373 = vmatpush1.bf16.msra.mxu0 %v14849_v4  ;;  %13540 = vmatpush1.bf16.msra.mxu1 %v14849_v4  ;;  %v14868_v19 = vld [vmem:[%s19737_s0] sm:$0xff]   ;;  %v14887_v22 = vld [vmem:[#allocation6 + $0x8] ss:$16 sps:$4 sm:$0xff]   ;;  %v14878_v40 = vld [vmem:[%s19737_s0 + $0x50] sm:$0xff]  }
  0x9a   :  { %374 = vmatprep.subr.bf16.mxu0 %v14850_v5  ;;  %13533 = vmatprep.subr.bf16.mxu1 %v14850_v5  ;;  %v14876_v20 = vld [vmem:[%s19737_s0 + $0x40] sm:$0xff]   ;;  %v14893_v26 = vld [vmem:[#allocation6 + $0x28] ss:$16 sps:$4 sm:$0xff]  }
  0x9b   :  { %v14892_v23 = vld [vmem:[#allocation6 + $0x24] ss:$16 sps:$4 sm:$0xff]   ;;  %v14895_v24 = vld [vmem:[#allocation6 + $0x2c] ss:$16 sps:$4 sm:$0xff]   ;;  %v14890_v25 = vld [vmem:[#allocation6 + $0x20] ss:$16 sps:$4 sm:$0xff]  }
  0x9c   :  { %v14898_v27 = vld [vmem:[#allocation6 + $0x44] ss:$16 sps:$4 sm:$0xff]   ;;  %v14901_v28 = vld [vmem:[#allocation6 + $0x4c] ss:$16 sps:$4 sm:$0xff]   ;;  %v14896_v31 = vld [vmem:[#allocation6 + $0x40] ss:$16 sps:$4 sm:$0xff]  }
  0x9d   :  { %375 = vmatpush1.bf16.msra.mxu0 %v14852_v6  ;;  %13541 = vmatpush1.bf16.msra.mxu1 %v14852_v6  ;;  %v14869_v29 = vld [vmem:[%s19737_s0 + $0x8] sm:$0xff]   ;;  %v14902_v35 = vld [vmem:[#allocation6 + $0x60] ss:$16 sps:$4 sm:$0xff]   ;;  %v14871_v49 = vld [vmem:[%s19737_s0 + $0x18] sm:$0xff]  }
  0x9e   :  { %376 = vmatprep.subr.bf16.mxu0 %v14853_v7  ;;  %13534 = vmatprep.subr.bf16.mxu1 %v14853_v7  ;;  %v14877_v30 = vld [vmem:[%s19737_s0 + $0x48] sm:$0xff]   ;;  %v14908_v41 = vld [vmem:[#allocation6 + $0x80] ss:$16 sps:$4 sm:$0xff]   ;;  %v14879_v50 = vld [vmem:[%s19737_s0 + $0x58] sm:$0xff]  }
  0x9f   :  { %v14899_v32 = vld [vmem:[#allocation6 + $0x48] ss:$16 sps:$4 sm:$0xff]   ;;  %v14904_v33 = vld [vmem:[#allocation6 + $0x64] ss:$16 sps:$4 sm:$0xff]   ;;  %v14907_v34 = vld [vmem:[#allocation6 + $0x6c] ss:$16 sps:$4 sm:$0xff]  }
  0xa0   :  { %v14905_v36 = vld [vmem:[#allocation6 + $0x68] ss:$16 sps:$4 sm:$0xff]   ;;  %v14910_v37 = vld [vmem:[#allocation6 + $0x84] ss:$16 sps:$4 sm:$0xff]   ;;  %v14913_v38 = vld [vmem:[#allocation6 + $0x8c] ss:$16 sps:$4 sm:$0xff]  }
  0xa1   :  { %377 = vmatpush1.bf16.msra.mxu0 %v14855_v8  ;;  %13542 = vmatpush1.bf16.msra.mxu1 %v14855_v8  ;;  %v14911_v42 = vld [vmem:[#allocation6 + $0x88] ss:$16 sps:$4 sm:$0xff]   ;;  %v14916_v43 = vld [vmem:[#allocation6 + $0xa4] ss:$16 sps:$4 sm:$0xff]   ;;  %v14919_v44 = vld [vmem:[#allocation6 + $0xac] ss:$16 sps:$4 sm:$0xff]  }
  0xa2   :  { %378 = vmatprep.subr.bf16.mxu0 %v14856_v9  ;;  %13535 = vmatprep.subr.bf16.mxu1 %v14856_v9  ;;  %v14914_v45 = vld [vmem:[#allocation6 + $0xa0] ss:$16 sps:$4 sm:$0xff]   ;;  %v14917_v46 = vld [vmem:[#allocation6 + $0xa8] ss:$16 sps:$4 sm:$0xff]   ;;  %v14922_v47 = vld [vmem:[#allocation6 + $0xc4] ss:$16 sps:$4 sm:$0xff]  }
  0xa3   :  { %v14925_v48 = vld [vmem:[#allocation6 + $0xcc] ss:$16 sps:$4 sm:$0xff]   ;;  %v14920_v51 = vld [vmem:[#allocation6 + $0xc0] ss:$16 sps:$4 sm:$0xff]   ;;  %v14923_v52 = vld [vmem:[#allocation6 + $0xc8] ss:$16 sps:$4 sm:$0xff]  }
  0xa4   :  { %v14928_v53 = vld [vmem:[#allocation6 + $0xe4] ss:$16 sps:$4 sm:$0xff]   ;;  %v14931_v54 = vld [vmem:[#allocation6 + $0xec] ss:$16 sps:$4 sm:$0xff]   ;;  %v14926_v55 = vld [vmem:[#allocation6 + $0xe0] ss:$16 sps:$4 sm:$0xff]  }
  0xa5   :  { %379 = vmatpush1.bf16.msra.mxu0 %v14858_v10  ;;  %13543 = vmatpush1.bf16.msra.mxu1 %v14858_v10  ;;  %v14929_v56 = vld [vmem:[#allocation6 + $0xe8] ss:$16 sps:$4 sm:$0xff]   ;;  %v14872_v57 = vld [vmem:[%s19737_s0 + $0x20] sm:$0xff]  }
  0xa6   :  { %380 = vmatprep.subr.bf16.mxu0 %v14859_v11  ;;  %13536 = vmatprep.subr.bf16.mxu1 %v14859_v11  ;;  %v14934_v58 = vld [vmem:[#allocation6 + $0x104] ss:$16 sps:$4 sm:$0xff]   ;;  %v14937_v59 = vld [vmem:[#allocation6 + $0x10c] ss:$16 sps:$4 sm:$0xff]   ;;  %v14932_v61 = vld [vmem:[#allocation6 + $0x100] ss:$16 sps:$4 sm:$0xff]  }
  0xa7   :  { %v14880_v60 = vld [vmem:[%s19737_s0 + $0x60] sm:$0xff]   ;;  %v14935_v62 = vld [vmem:[#allocation6 + $0x108] ss:$16 sps:$4 sm:$0xff]  }
  0xa8   :  { %v14940_v63 = vld [vmem:[#allocation6 + $0x124] ss:$16 sps:$4 sm:$0xff]   ;;  %v14943_v1 = vld [vmem:[#allocation6 + $0x12c] ss:$16 sps:$4 sm:$0xff]   ;;  %v14938_v2 = vld [vmem:[#allocation6 + $0x120] ss:$16 sps:$4 sm:$0xff]  }
  0xa9   :  { %381 = vmatpush1.bf16.msra.mxu0 %v14861_v12  ;;  %13544 = vmatpush1.bf16.msra.mxu1 %v14861_v12  ;;  %v14941_v3 = vld [vmem:[#allocation6 + $0x128] ss:$16 sps:$4 sm:$0xff]   ;;  %v14946_v4 = vld [vmem:[#allocation6 + $0x144] ss:$16 sps:$4 sm:$0xff]   ;;  %v14949_v5 = vld [vmem:[#allocation6 + $0x14c] ss:$16 sps:$4 sm:$0xff]  }
  0xaa   :  { %382 = vmatprep.subr.bf16.mxu0 %v14862_v13  ;;  %13537 = vmatprep.subr.bf16.mxu1 %v14862_v13  ;;  %v14873_v6 = vld [vmem:[%s19737_s0 + $0x28] sm:$0xff]   ;;  %v14944_v8 = vld [vmem:[#allocation6 + $0x140] ss:$16 sps:$4 sm:$0xff]  }
  0xab   :  { %v14881_v7 = vld [vmem:[%s19737_s0 + $0x68] sm:$0xff]   ;;  %v14950_v12 = vld [vmem:[#allocation6 + $0x160] ss:$16 sps:$4 sm:$0xff]  }
  0xac   :  { %v14947_v9 = vld [vmem:[#allocation6 + $0x148] ss:$16 sps:$4 sm:$0xff]   ;;  %v14952_v10 = vld [vmem:[#allocation6 + $0x164] ss:$16 sps:$4 sm:$0xff]   ;;  %v14955_v11 = vld [vmem:[#allocation6 + $0x16c] ss:$16 sps:$4 sm:$0xff]  }
  0xad   :  { %383 = vmatpush1.bf16.msra.mxu0 %v14864_v14  ;;  %13545 = vmatpush1.bf16.msra.mxu1 %v14864_v14  ;;  %v14953_v13 = vld [vmem:[#allocation6 + $0x168] ss:$16 sps:$4 sm:$0xff]   ;;  %v14958_v14 = vld [vmem:[#allocation6 + $0x184] ss:$16 sps:$4 sm:$0xff]  }
  0xae   :  { %384 = vmatprep.subr.bf16.mxu0 %v14865_v15  ;;  %13538 = vmatprep.subr.bf16.mxu1 %v14865_v15  ;;  %v14961_v15 = vld [vmem:[#allocation6 + $0x18c] ss:$16 sps:$4 sm:$0xff]  }
  0xb1   :  { %385 = vmatpush1.bf16.msra.mxu0 %v14867_v16  ;;  %13546 = vmatpush1.bf16.msra.mxu1 %v14867_v16  ;;  %v14874_v16 = vld [vmem:[%s19737_s0 + $0x30] sm:$0xff]  }
  0xb2   :  { %1065 = vmatprep.subr.bf16.mxu1 %v14886_v17  ;;  %1258 = vmatprep.subr.bf16.mxu0 %v14889_v18  ;;  %v14882_v17 = vld [vmem:[%s19737_s0 + $0x70] sm:$0xff]  }
  0xb3   :  { %v14956_v18 = vld [vmem:[#allocation6 + $0x180] ss:$16 sps:$4 sm:$0xff]  }
  0xb4   :  { %403 = vmatmul.mubr.bf16.vlgmr.msra.gmra.mrb[0].mxu0 %v14868_v19  ;;  %483 = vmatmul.mubr.bf16.vlgmr.msra.gmra.mrb[0].mxu1 %v14876_v20  ;;  %v14959_v19 = vld [vmem:[#allocation6 + $0x188] ss:$16 sps:$4 sm:$0xff]   ;;  %v14964_v20 = vld [vmem:[#allocation6 + $0x1a4] ss:$16 sps:$4 sm:$0xff]  }
  0xb5   :  { %412 = vmatprep.mubr.bf16.mxu0 %v16272_v0  ;;  %492 = vmatprep.mubr.bf16.mxu1 %v16272_v0 }
  0xb6   :  { %1066 = vmatpush1.bf16.msra.mxu1 %v14884_v21  ;;  %1259 = vmatpush1.bf16.msra.mxu0 %v14887_v22  ;;  %v14967_v21 = vld [vmem:[#allocation6 + $0x1ac] ss:$16 sps:$4 sm:$0xff]   ;;  %v14962_v22 = vld [vmem:[#allocation6 + $0x1a0] ss:$16 sps:$4 sm:$0xff]  }
  0xb7   :  { %1067 = vmatprep.subr.bf16.mxu1 %v14892_v23  ;;  %1260 = vmatprep.subr.bf16.mxu0 %v14895_v24  ;;  %v14965_v23 = vld [vmem:[#allocation6 + $0x1a8] ss:$16 sps:$4 sm:$0xff]  }
  0xb8   :  { %v14875_v24 = vld [vmem:[%s19737_s0 + $0x38] sm:$0xff]  }
  0xba   :  { %1068 = vmatpush1.bf16.msra.mxu1 %v14890_v25  ;;  %1261 = vmatpush1.bf16.msra.mxu0 %v14893_v26  ;;  %v14883_v25 = vld [vmem:[%s19737_s0 + $0x78] sm:$0xff]  }
  0xbb   :  { %1069 = vmatprep.subr.bf16.mxu1 %v14898_v27  ;;  %1262 = vmatprep.subr.bf16.mxu0 %v14901_v28  ;;  %v14970_v26 = vld [vmem:[#allocation6 + $0x1c4] ss:$16 sps:$4 sm:$0xff]   ;;  %v14973_v27 = vld [vmem:[#allocation6 + $0x1cc] ss:$16 sps:$4 sm:$0xff]   ;;  %v14968_v28 = vld [vmem:[#allocation6 + $0x1c0] ss:$16 sps:$4 sm:$0xff]  }
  0xbc   :  { %413 = vmatmul.mubr.bf16.gmra.mrb[4].mxu0 %v14869_v29  ;;  %493 = vmatmul.mubr.bf16.gmra.mrb[4].mxu1 %v14877_v30  ;;  %v14974_v29 = vld [vmem:[#allocation6 + $0x1e0] ss:$16 sps:$4 sm:$0xff]   ;;  %v14976_v30 = vld [vmem:[#allocation6 + $0x1e4] ss:$16 sps:$4 sm:$0xff]  }
  0xbd   :  { %422 = vmatprep.mubr.bf16.mxu0 %v16272_v0  ;;  %502 = vmatprep.mubr.bf16.mxu1 %v16272_v0 }
  0xbe   :  { %1070 = vmatpush1.bf16.msra.mxu1 %v14896_v31  ;;  %1263 = vmatpush1.bf16.msra.mxu0 %v14899_v32  ;;  %v14977_v31 = vld [vmem:[#allocation6 + $0x1e8] ss:$16 sps:$4 sm:$0xff]   ;;  %v14979_v32 = vld [vmem:[#allocation6 + $0x1ec] ss:$16 sps:$4 sm:$0xff]  }
  0xbf   :  { %1071 = vmatprep.subr.bf16.mxu1 %v14904_v33  ;;  %1264 = vmatprep.subr.bf16.mxu0 %v14907_v34  ;;  %v16490_v33 = vld [vmem:[#allocation9 + $0x8] sm:$0xff] }
  0xc0   :  { %v16492_v34 = vld [vmem:[#allocation9 + $0x28] sm:$0xff] }
  0xc2   :  { %1072 = vmatpush1.bf16.msra.mxu1 %v14902_v35  ;;  %1265 = vmatpush1.bf16.msra.mxu0 %v14905_v36  ;;  %v16494_v35 = vld [vmem:[#allocation9] sm:$0xff]  ;;  %v12126_v36 = vcombine.high %v16490_v33, %v16492_v34 }
  0xc3   :  { %1073 = vmatprep.subr.bf16.mxu1 %v14910_v37  ;;  %1266 = vmatprep.subr.bf16.mxu0 %v14913_v38  ;;  %v16498_v37 = vld [vmem:[#allocation9 + $0x20] sm:$0xff] }
  0xc4   :  { %423 = vmatmul.mubr.bf16.gmra.mrb[8].mxu0 %v14870_v39  ;;  %503 = vmatmul.mubr.bf16.gmra.mrb[8].mxu1 %v14878_v40  ;;  %v12124_v38 = vcombine.high %v16494_v35, %v16498_v37  ;;  %v184_v39 = vlaneseq }
  0xc5   :  { %432 = vmatprep.mubr.bf16.mxu0 %v16272_v0  ;;  %512 = vmatprep.mubr.bf16.mxu1 %v16272_v0 }
  0xc6   :  { %1074 = vmatpush1.bf16.msra.mxu1 %v14908_v41  ;;  %1267 = vmatpush1.bf16.msra.mxu0 %v14911_v42  ;;  %v16502_v40 = vshrl.u32 %v184_v39, 7  ;;  %v182_v41 = vld [vmem:[#allocation4] sm:$0x3] }
  0xc7   :  { %1075 = vmatprep.subr.bf16.mxu1 %v14916_v43  ;;  %1268 = vmatprep.subr.bf16.mxu0 %v14919_v44 }
  0xc8   :  { %20007 = vst [vmem:[#allocation20_spill] sm:$0xff] %v16502_v40  ;;  %v16505_v42 = vsub.s32 0, %v16502_v40  ;;  %v16508_v43 = vsub.s32 1, %v16502_v40 }
  0xca   :  { %1076 = vmatpush1.bf16.msra.mxu1 %v14914_v45  ;;  %1269 = vmatpush1.bf16.msra.mxu0 %v14917_v46  ;;  %20008 = vst [vmem:[#allocation21_spill] sm:$0xff] %v16505_v42  ;;  %20009 = vst [vmem:[#allocation22_spill] sm:$0xff] %v16508_v43  ;;  %v16511_v44 = vrot.slane %v182_v41, %v16505_v42  ;;  %v16514_v45 = vrot.slane %v182_v41, %v16508_v43 }
  0xcb   :  { %1077 = vmatprep.subr.bf16.mxu1 %v14922_v47  ;;  %1270 = vmatprep.subr.bf16.mxu0 %v14925_v48 }
  0xcc   :  { %433 = vmatmul.mubr.bf16.gmra.mrb[12].mxu0 %v14871_v49  ;;  %513 = vmatmul.mubr.bf16.gmra.mrb[12].mxu1 %v14879_v50 }
  0xcd   :  { %442 = vmatprep.mubr.bf16.mxu0 %v16272_v0  ;;  %522 = vmatprep.mubr.bf16.mxu1 %v16272_v0 }
  0xce   :  { %1078 = vmatpush1.bf16.msra.mxu1 %v14920_v51  ;;  %1271 = vmatpush1.bf16.msra.mxu0 %v14923_v52 }
  0xcf   :  { %1079 = vmatprep.subr.bf16.mxu1 %v14928_v53  ;;  %1272 = vmatprep.subr.bf16.mxu0 %v14931_v54 }
  0xd2   :  { %1080 = vmatpush1.bf16.msra.mxu1 %v14926_v55  ;;  %1273 = vmatpush1.bf16.msra.mxu0 %v14929_v56 }
  0xd3   :  { %1081 = vmatprep.subr.bf16.mxu1 %v14934_v58  ;;  %1274 = vmatprep.subr.bf16.mxu0 %v14937_v59 }
  0xd4   :  { %443 = vmatmul.mubr.bf16.gmra.mrb[16].mxu0 %v14872_v57  ;;  %523 = vmatmul.mubr.bf16.gmra.mrb[16].mxu1 %v14880_v60 }
  0xd5   :  { %452 = vmatprep.mubr.bf16.mxu0 %v16272_v0  ;;  %532 = vmatprep.mubr.bf16.mxu1 %v16272_v0 }
  0xd6   :  { %1082 = vmatpush1.bf16.msra.mxu1 %v14932_v61  ;;  %1275 = vmatpush1.bf16.msra.mxu0 %v14935_v62 }
  0xd7   :  { %1083 = vmatprep.subr.bf16.mxu1 %v14940_v63  ;;  %1276 = vmatprep.subr.bf16.mxu0 %v14943_v1 }
  0xda   :  { %1084 = vmatpush1.bf16.msra.mxu1 %v14938_v2  ;;  %1277 = vmatpush1.bf16.msra.mxu0 %v14941_v3 }
  0xdb   :  { %1085 = vmatprep.subr.bf16.mxu1 %v14946_v4  ;;  %1278 = vmatprep.subr.bf16.mxu0 %v14949_v5  ;;  %v16524_v4 = vld [vmem:[#allocation9 + $0x48] sm:$0xff] }
  0xdc   :  { %453 = vmatmul.mubr.bf16.gmra.mrb[20].mxu0 %v14873_v6  ;;  %533 = vmatmul.mubr.bf16.gmra.mrb[20].mxu1 %v14881_v7 }
  0xdd   :  { %462 = vmatprep.mubr.bf16.mxu0 %v16272_v0  ;;  %542 = vmatprep.mubr.bf16.mxu1 %v16272_v0 }
  0xde   :  { %1086 = vmatpush1.bf16.msra.mxu1 %v14944_v8  ;;  %1279 = vmatpush1.bf16.msra.mxu0 %v14947_v9  ;;  %v16526_v8 = vld [vmem:[#allocation9 + $0x68] sm:$0xff]  ;;  %v16528_v9 = vld [vmem:[#allocation9 + $0x40] sm:$0xff] }
  0xdf   :  { %1087 = vmatprep.subr.bf16.mxu1 %v14952_v10  ;;  %1280 = vmatprep.subr.bf16.mxu0 %v14955_v11  ;;  %v1655_v10 = vld [vmem:[#allocation9 + $0x60] sm:$0xff] }
  0xe2   :  { %1088 = vmatpush1.bf16.msra.mxu1 %v14950_v12  ;;  %1281 = vmatpush1.bf16.msra.mxu0 %v14953_v13 }
  0xe3   :  { %1089 = vmatprep.subr.bf16.mxu1 %v14958_v14  ;;  %1282 = vmatprep.subr.bf16.mxu0 %v14961_v15 }
  0xe4   :  { %463 = vmatmul.mubr.bf16.gmra.mrb[24].mxu0 %v14874_v16  ;;  %543 = vmatmul.mubr.bf16.gmra.mrb[24].mxu1 %v14882_v17  ;;  %v12125_v17 = vcombine.low %v16490_v33, %v16492_v34 }
  0xe5   :  { %472 = vmatprep.mubr.bf16.mxu0 %v16272_v0  ;;  %552 = vmatprep.mubr.bf16.mxu1 %v16272_v0  ;;  %v14971_v0 = vld [vmem:[#allocation6 + $0x1c8] ss:$16 sps:$4 sm:$0xff]  }
  0xe6   :  { %1090 = vmatpush1.bf16.msra.mxu1 %v14956_v18  ;;  %1283 = vmatpush1.bf16.msra.mxu0 %v14959_v19  ;;  %v12123_v18 = vcombine.low %v16494_v35, %v16498_v37 }
  0xe7   :  { %1091 = vmatprep.subr.bf16.mxu1 %v14964_v20  ;;  %1284 = vmatprep.subr.bf16.mxu0 %v14967_v21 }
  0xea   :  { %1092 = vmatpush1.bf16.msra.mxu1 %v14962_v22  ;;  %1285 = vmatpush1.bf16.msra.mxu0 %v14965_v23  ;;  %v12134_v23 = vcombine.high %v16524_v4, %v16526_v8 }
  0xeb   :  { %1093 = vmatprep.subr.bf16.mxu1 %v14970_v26  ;;  %1286 = vmatprep.subr.bf16.mxu0 %v14973_v27  ;;  %v16545_v26 = vld [vmem:[#allocation9 + $0xa8] sm:$0xff] }
  0xec   :  { %473 = vmatmul.mubr.bf16.gmra.mrb[28].mxu0 %v14875_v24  ;;  %553 = vmatmul.mubr.bf16.gmra.mrb[28].mxu1 %v14883_v25  ;;  %v12132_v24 = vcombine.high %v16528_v9, %v1655_v10  ;;  %v16543_v25 = vld [vmem:[#allocation9 + $0x88] sm:$0xff] }
  0xee   :  { %1094 = vmatpush1.bf16.msra.mxu1 %v14968_v28  ;;  %1287 = vmatpush1.bf16.msra.mxu0 %v14971_v0 }
  0xef   :  { %1095 = vmatprep.subr.bf16.mxu1 %v14976_v30  ;;  %1288 = vmatprep.subr.bf16.mxu0 %v14979_v32  ;;  %v12133_v30 = vcombine.low %v16524_v4, %v16526_v8  ;;  %v16553_v32 = vld [vmem:[#allocation9 + $0xa0] sm:$0xff] }
  0xf2   :  { %1096 = vmatpush1.bf16.msra.mxu1 %v14974_v29  ;;  %1289 = vmatpush1.bf16.msra.mxu0 %v14977_v31  ;;  %v16551_v31 = vld [vmem:[#allocation9 + $0x80] sm:$0xff] }
  0xf3   :  { %3607 = vmatprep.subr.bf16.mxu0 %v12126_v36  ;;  %3221 = vmatprep.subr.bf16.mxu1 %v12124_v38  ;;  %v12131_v38 = vcombine.low %v16528_v9, %v1655_v10  ;;  %v16586_v10 = vld [vmem:[#allocation9 + $0x108] sm:$0xff] }
 0x187   :  { %v404_v46 = vpop.f32.mrb[0].mxu0  ;;  %v484_v47 = vpop.f32.mrb[0].mxu1 }
 0x188   :  { %v405_v48 = vadd.f32 %v404_v46, %v16511_v44  ;;  %v406_v49 = vpop.f32.mrb[1].mxu0  ;;  %v486_v50 = vpop.f32.mrb[1].mxu1  ;;  %v485_v51 = vadd.f32 %v484_v47, %v16511_v44  ;;  %v12142_v47 = vcombine.high %v16543_v25, %v16545_v26 }
 0x189   :  { %v408_v52 = vpop.f32.mrb[2].mxu0  ;;  %v407_v53 = vadd.f32 %v406_v49, %v16514_v45  ;;  %v488_v54 = vpop.f32.mrb[2].mxu1  ;;  %v487_v55 = vadd.f32 %v486_v50, %v16514_v45 }
 0x18a   :  { %v409_v56 = vadd.f32 %v408_v52, %v16511_v44  ;;  %v410_v57 = vpop.f32.mrb[3].mxu0  ;;  %v490_v58 = vpop.f32.mrb[3].mxu1  ;;  %v489_v59 = vadd.f32 %v488_v54, %v16511_v44  ;;  %v595_v60 = vmax.f32 %v485_v51, 0.0  ;;  %v563_v1 = vmax.f32 %v405_v48, 0.0  ;;  %v16564_v52 = vld [vmem:[#allocation9 + $0xc8] sm:$0xff] }
 0x18b   :  { %v411_v61 = vadd.f32 %v410_v57, %v16514_v45  ;;  %v491_v62 = vadd.f32 %v490_v58, %v16514_v45  ;;  %v596_v63 = vmax.f32 %v487_v55, 0.0  ;;  %v564_v5 = vmax.f32 %v407_v53, 0.0  ;;  %v16566_v53 = vld [vmem:[#allocation9 + $0xe8] sm:$0xff]  ;;  %v16568_v57 = vld [vmem:[#allocation9 + $0xc0] sm:$0xff] }
 0x18c   :  { %v565_v2 = vmax.f32 %v409_v56, 0.0  ;;  %v597_v3 = vmax.f32 %v489_v59, 0.0  ;;  %v12140_v51 = vcombine.high %v16551_v31, %v16553_v32  ;;  %v16570_v58 = vld [vmem:[#allocation9 + $0xe0] sm:$0xff]  ;;  %v12150_v4 = vcombine.high %v16564_v52, %v16566_v53 }
 0x18d   :  { %v566_v6 = vmax.f32 %v411_v61, 0.0  ;;  %v598_v7 = vmax.f32 %v491_v62, 0.0  ;;  %v12141_v61 = vcombine.low %v16543_v25, %v16545_v26  ;;  %v12139_v62 = vcombine.low %v16551_v31, %v16553_v32 }
 0x18e   :  { %v627_v11 = vpack.c.bf16 %v565_v2, %v563_v1  ;;  %v16530_v12 = vpack.c.bf16 %v597_v3, %v595_v60  ;;  %v12148_v9 = vcombine.high %v16568_v57, %v16570_v58  ;;  %v12147_v26 = vcombine.low %v16568_v57, %v16570_v58 }
 0x18f   :  { %v414_v13 = vpop.f32.mrb[4].mxu0  ;;  %v628_v14 = vpack.c.bf16 %v566_v6, %v564_v5  ;;  %v494_v15 = vpop.f32.mrb[4].mxu1  ;;  %v16532_v16 = vpack.c.bf16 %v598_v7, %v596_v63 }
 0x190   :  { %v416_v19 = vpop.f32.mrb[5].mxu0  ;;  %v415_v20 = vadd.f32 %v414_v13, %v16511_v44  ;;  %v496_v21 = vpop.f32.mrb[5].mxu1  ;;  %v495_v22 = vadd.f32 %v494_v15, %v16511_v44 }
 0x191   :  { %v418_v27 = vpop.f32.mrb[6].mxu0  ;;  %1097 = vmatprep.mubr.bf16.mxu1 %v628_v14  ;;  %1290 = vmatprep.mubr.bf16.mxu0 %v628_v14  ;;  %v417_v28 = vadd.f32 %v416_v19, %v16514_v45  ;;  %v498_v0 = vpop.f32.mrb[6].mxu1  ;;  %v497_v29 = vadd.f32 %v496_v21, %v16514_v45  ;;  %v16594_v19 = vld [vmem:[#allocation9 + $0x100] sm:$0xff] }
 0x192   :  { %v420_v33 = vpop.f32.mrb[7].mxu0  ;;  %1098 = vmatmul.mubr.bf16.vlgmr.msra.gmra.mrb[32].mxu1 %v627_v11  ;;  %1291 = vmatmul.mubr.bf16.vlgmr.msra.gmra.mrb[32].mxu0 %v627_v11  ;;  %v419_v34 = vadd.f32 %v418_v27, %v16511_v44  ;;  %v500_v35 = vpop.f32.mrb[7].mxu1  ;;  %v499_v36 = vadd.f32 %v498_v0, %v16511_v44  ;;  %v599_v37 = vmax.f32 %v495_v22, 0.0  ;;  %v567_v48 = vmax.f32 %v415_v20, 0.0  ;;  %v16588_v11 = vld [vmem:[#allocation9 + $0x128] sm:$0xff]  ;;  %v16596_v20 = vld [vmem:[#allocation9 + $0x120] sm:$0xff] }
 0x193   :  { %v421_v39 = vadd.f32 %v420_v33, %v16514_v45  ;;  %v501_v41 = vadd.f32 %v500_v35, %v16514_v45  ;;  %v600_v46 = vmax.f32 %v497_v29, 0.0  ;;  %3608 = vmatpush1.bf16.msra.mxu0 %v12125_v17  ;;  %3222 = vmatpush1.bf16.msra.mxu1 %v12123_v18  ;;  %v568_v54 = vmax.f32 %v417_v28, 0.0  ;;  %v16610_v35 = vld [vmem:[#allocation9 + $0x168] sm:$0xff] }
 0x194   :  { %v569_v49 = vmax.f32 %v419_v34, 0.0  ;;  %v601_v50 = vmax.f32 %v499_v36, 0.0  ;;  %3609 = vmatprep.subr.bf16.mxu0 %v12134_v23  ;;  %3223 = vmatprep.subr.bf16.mxu1 %v12132_v24  ;;  %v12149_v18 = vcombine.low %v16564_v52, %v16566_v53  ;;  %v12158_v29 = vcombine.high %v16586_v10, %v16588_v11  ;;  %v16608_v34 = vld [vmem:[#allocation9 + $0x148] sm:$0xff] }
 0x195   :  { %v570_v55 = vmax.f32 %v421_v39, 0.0  ;;  %v602_v56 = vmax.f32 %v501_v41, 0.0  ;;  %v12156_v33 = vcombine.high %v16594_v19, %v16596_v20  ;;  %v16612_v39 = vld [vmem:[#allocation9 + $0x140] sm:$0xff] }
 0x196   :  { %v629_v59 = vpack.c.bf16 %v569_v49, %v567_v48  ;;  %v16572_v60 = vpack.c.bf16 %v601_v50, %v599_v37  ;;  %v16614_v41 = vld [vmem:[#allocation9 + $0x160] sm:$0xff]  ;;  %v12157_v48 = vcombine.low %v16586_v10, %v16588_v11  ;;  %v12155_v49 = vcombine.low %v16594_v19, %v16596_v20 }
 0x197   :  { %v424_v63 = vpop.f32.mrb[8].mxu0  ;;  %v630_v1 = vpack.c.bf16 %v570_v55, %v568_v54  ;;  %v504_v2 = vpop.f32.mrb[8].mxu1  ;;  %v16578_v3 = vpack.c.bf16 %v602_v56, %v600_v46  ;;  %3610 = vmatpush1.bf16.msra.mxu0 %v12133_v30  ;;  %3224 = vmatpush1.bf16.msra.mxu1 %v12131_v38  ;;  %v12166_v54 = vcombine.high %v16608_v34, %v16610_v35 }
 0x198   :  { %v426_v5 = vpop.f32.mrb[9].mxu0  ;;  %v425_v6 = vadd.f32 %v424_v63, %v16511_v44  ;;  %v506_v7 = vpop.f32.mrb[9].mxu1  ;;  %v505_v8 = vadd.f32 %v504_v2, %v16511_v44  ;;  %3611 = vmatprep.subr.bf16.mxu0 %v12142_v47  ;;  %3225 = vmatprep.subr.bf16.mxu1 %v12140_v51 }
 0x199   :  { %v428_v13 = vpop.f32.mrb[10].mxu0  ;;  %1107 = vmatprep.mubr.bf16.mxu1 %v630_v1  ;;  %1300 = vmatprep.mubr.bf16.mxu0 %v630_v1  ;;  %v427_v14 = vadd.f32 %v426_v5, %v16514_v45  ;;  %v508_v15 = vpop.f32.mrb[10].mxu1  ;;  %v507_v17 = vadd.f32 %v506_v7, %v16514_v45  ;;  %v12165_v5 = vcombine.low %v16608_v34, %v16610_v35  ;;  %v16640_v7 = vld [vmem:[#allocation9 + $0x1a0] sm:$0xff] }
 0x19a   :  { %v430_v21 = vpop.f32.mrb[11].mxu0  ;;  %1108 = vmatmul.mubr.bf16.gmra.mrb[36].mxu1 %v629_v59  ;;  %1301 = vmatmul.mubr.bf16.gmra.mrb[36].mxu0 %v629_v59  ;;  %v429_v22 = vadd.f32 %v428_v13, %v16511_v44  ;;  %v510_v23 = vpop.f32.mrb[11].mxu1  ;;  %v509_v24 = vadd.f32 %v508_v15, %v16511_v44  ;;  %v603_v25 = vmax.f32 %v505_v8, 0.0  ;;  %v571_v30 = vmax.f32 %v425_v6, 0.0  ;;  %v16638_v6 = vld [vmem:[#allocation9 + $0x180] sm:$0xff] }
 0x19b   :  { %v431_v27 = vadd.f32 %v430_v21, %v16514_v45  ;;  %v511_v28 = vadd.f32 %v510_v23, %v16514_v45  ;;  %v604_v0 = vmax.f32 %v507_v17, 0.0  ;;  %3612 = vmatpush1.bf16.msra.mxu0 %v12141_v61  ;;  %3226 = vmatpush1.bf16.msra.mxu1 %v12139_v62  ;;  %v572_v36 = vmax.f32 %v427_v14, 0.0  ;;  %v16630_v61 = vld [vmem:[#allocation9 + $0x188] sm:$0xff] }
 0x19c   :  { %v573_v31 = vmax.f32 %v429_v22, 0.0  ;;  %v605_v32 = vmax.f32 %v509_v24, 0.0  ;;  %3613 = vmatprep.subr.bf16.mxu0 %v12150_v4  ;;  %3227 = vmatprep.subr.bf16.mxu1 %v12148_v9  ;;  %v12164_v59 = vcombine.high %v16612_v39, %v16614_v41  ;;  %v16632_v62 = vld [vmem:[#allocation9 + $0x1a8] sm:$0xff]  ;;  %v12163_v14 = vcombine.low %v16612_v39, %v16614_v41 }
 0x19d   :  { %v574_v37 = vmax.f32 %v431_v27, 0.0  ;;  %v606_v38 = vmax.f32 %v511_v28, 0.0  ;;  %v12174_v19 = vcombine.high %v16630_v61, %v16632_v62  ;;  %v12172_v23 = vcombine.high %v16638_v6, %v16640_v7  ;;  %v16652_v24 = vld [vmem:[#allocation9 + $0x1c8] sm:$0xff] }
 0x19e   :  { %v631_v46 = vpack.c.bf16 %v573_v31, %v571_v30  ;;  %v16616_v47 = vpack.c.bf16 %v605_v32, %v603_v25  ;;  %v16654_v25 = vld [vmem:[#allocation9 + $0x1e8] sm:$0xff]  ;;  %v12173_v32 = vcombine.low %v16630_v61, %v16632_v62 }
 0x19f   :  { %v434_v50 = vpop.f32.mrb[12].mxu0  ;;  %v632_v51 = vpack.c.bf16 %v574_v37, %v572_v36  ;;  %v514_v52 = vpop.f32.mrb[12].mxu1  ;;  %v16622_v53 = vpack.c.bf16 %v606_v38, %v604_v0  ;;  %3614 = vmatpush1.bf16.msra.mxu0 %v12149_v18  ;;  %3228 = vmatpush1.bf16.msra.mxu1 %v12147_v26  ;;  %v16656_v0 = vld [vmem:[#allocation9 + $0x1c0] sm:$0xff]  ;;  %v12182_v38 = vcombine.high %v16652_v24, %v16654_v25 }
 0x1a0   :  { %v436_v55 = vpop.f32.mrb[13].mxu0  ;;  %v435_v56 = vadd.f32 %v434_v50, %v16511_v44  ;;  %v516_v57 = vpop.f32.mrb[13].mxu1  ;;  %v515_v58 = vadd.f32 %v514_v52, %v16511_v44  ;;  %3615 = vmatprep.subr.bf16.mxu0 %v12158_v29  ;;  %3229 = vmatprep.subr.bf16.mxu1 %v12156_v33  ;;  %v16658_v29 = vld [vmem:[#allocation9 + $0x1e0] sm:$0xff]  ;;  %v12171_v33 = vcombine.low %v16638_v6, %v16640_v7  ;;  %v16674_v50 = vld [vmem:[#allocation9 + $0x208] sm:$0xff] }
 0x1a1   :  { %v438_v63 = vpop.f32.mrb[14].mxu0  ;;  %1117 = vmatprep.mubr.bf16.mxu1 %v632_v51  ;;  %1310 = vmatprep.mubr.bf16.mxu0 %v632_v51  ;;  %v437_v1 = vadd.f32 %v436_v55, %v16514_v45  ;;  %v518_v2 = vpop.f32.mrb[14].mxu1  ;;  %v517_v4 = vadd.f32 %v516_v57, %v16514_v45  ;;  %v16676_v51 = vld [vmem:[#allocation9 + $0x228] sm:$0xff]  ;;  %v12181_v57 = vcombine.low %v16652_v24, %v16654_v25 }
 0x1a2   :  { %v440_v8 = vpop.f32.mrb[15].mxu0  ;;  %1118 = vmatmul.mubr.bf16.gmra.mrb[40].mxu1 %v631_v46  ;;  %1311 = vmatmul.mubr.bf16.gmra.mrb[40].mxu0 %v631_v46  ;;  %v439_v9 = vadd.f32 %v438_v63, %v16511_v44  ;;  %v520_v10 = vpop.f32.mrb[15].mxu1  ;;  %v519_v11 = vadd.f32 %v518_v2, %v16511_v44  ;;  %v607_v13 = vmax.f32 %v515_v58, 0.0  ;;  %v575_v20 = vmax.f32 %v435_v56, 0.0  ;;  %v16682_v58 = vld [vmem:[#allocation9 + $0x200] sm:$0xff] }
 0x1a3   :  { %v441_v15 = vadd.f32 %v440_v8, %v16514_v45  ;;  %v521_v17 = vadd.f32 %v520_v10, %v16514_v45  ;;  %v608_v18 = vmax.f32 %v517_v4, 0.0  ;;  %3616 = vmatpush1.bf16.msra.mxu0 %v12157_v48  ;;  %3230 = vmatpush1.bf16.msra.mxu1 %v12155_v49  ;;  %v576_v26 = vmax.f32 %v437_v1, 0.0 }
 0x1a4   :  { %v577_v21 = vmax.f32 %v439_v9, 0.0  ;;  %v609_v22 = vmax.f32 %v519_v11, 0.0  ;;  %3617 = vmatprep.subr.bf16.mxu0 %v12166_v54  ;;  %3231 = vmatprep.subr.bf16.mxu1 %v12164_v59  ;;  %v12180_v49 = vcombine.high %v16656_v0, %v16658_v29  ;;  %v16684_v59 = vld [vmem:[#allocation9 + $0x220] sm:$0xff]  ;;  %v12179_v4 = vcombine.low %v16656_v0, %v16658_v29 }
 0x1a5   :  { %v578_v27 = vmax.f32 %v441_v15, 0.0  ;;  %v610_v28 = vmax.f32 %v521_v17, 0.0  ;;  %v12190_v8 = vcombine.high %v16674_v50, %v16676_v51  ;;  %v16698_v15 = vld [vmem:[#allocation9 + $0x268] sm:$0xff]  ;;  %v12189_v24 = vcombine.low %v16674_v50, %v16676_v51  ;;  %v16726_v50 = vld [vmem:[#allocation9 + $0x280] sm:$0xff] }
 0x1a6   :  { %v633_v30 = vpack.c.bf16 %v577_v21, %v575_v20  ;;  %v16660_v31 = vpack.c.bf16 %v609_v22, %v607_v13  ;;  %v12188_v13 = vcombine.high %v16682_v58, %v16684_v59  ;;  %v16700_v20 = vld [vmem:[#allocation9 + $0x240] sm:$0xff]  ;;  %v12187_v25 = vcombine.low %v16682_v58, %v16684_v59 }
 0x1a7   :  { %v444_v34 = vpop.f32.mrb[16].mxu0  ;;  %v634_v35 = vpack.c.bf16 %v578_v27, %v576_v26  ;;  %v524_v36 = vpop.f32.mrb[16].mxu1  ;;  %v16666_v37 = vpack.c.bf16 %v610_v28, %v608_v18  ;;  %3618 = vmatpush1.bf16.msra.mxu0 %v12165_v5  ;;  %3232 = vmatpush1.bf16.msra.mxu1 %v12163_v14  ;;  %v16696_v14 = vld [vmem:[#allocation9 + $0x248] sm:$0xff]  ;;  %v16702_v21 = vld [vmem:[#allocation9 + $0x260] sm:$0xff] }
 0x1a8   :  { %v446_v39 = vpop.f32.mrb[17].mxu0  ;;  %v445_v41 = vadd.f32 %v444_v34, %v16511_v44  ;;  %v526_v46 = vpop.f32.mrb[17].mxu1  ;;  %v525_v48 = vadd.f32 %v524_v36, %v16511_v44  ;;  %3619 = vmatprep.subr.bf16.mxu0 %v12174_v19  ;;  %3233 = vmatprep.subr.bf16.mxu1 %v12172_v23  ;;  %v12198_v29 = vcombine.high %v16696_v14, %v16698_v15  ;;  %v16718_v36 = vld [vmem:[#allocation9 + $0x288] sm:$0xff]  ;;  %v16728_v51 = vld [vmem:[#allocation9 + $0x2a0] sm:$0xff] }
 0x1a9   :  { %v448_v52 = vpop.f32.mrb[18].mxu0  ;;  %1127 = vmatprep.mubr.bf16.mxu1 %v634_v35  ;;  %1320 = vmatprep.mubr.bf16.mxu0 %v634_v35  ;;  %v447_v54 = vadd.f32 %v446_v39, %v16514_v45  ;;  %v528_v55 = vpop.f32.mrb[18].mxu1  ;;  %v527_v56 = vadd.f32 %v526_v46, %v16514_v45  ;;  %v12196_v35 = vcombine.high %v16700_v20, %v16702_v21 }
 0x1aa   :  { %v450_v61 = vpop.f32.mrb[19].mxu0  ;;  %1128 = vmatmul.mubr.bf16.gmra.mrb[44].mxu1 %v633_v30  ;;  %1321 = vmatmul.mubr.bf16.gmra.mrb[44].mxu0 %v633_v30  ;;  %v449_v62 = vadd.f32 %v448_v52, %v16511_v44  ;;  %v530_v63 = vpop.f32.mrb[19].mxu1  ;;  %v529_v1 = vadd.f32 %v528_v55, %v16511_v44  ;;  %v611_v2 = vmax.f32 %v525_v48, 0.0  ;;  %v579_v9 = vmax.f32 %v445_v41, 0.0 }
 0x1ab   :  { %v451_v5 = vadd.f32 %v450_v61, %v16514_v45  ;;  %v531_v6 = vadd.f32 %v530_v63, %v16514_v45  ;;  %v612_v7 = vmax.f32 %v527_v56, 0.0  ;;  %3620 = vmatpush1.bf16.msra.mxu0 %v12173_v32  ;;  %3234 = vmatpush1.bf16.msra.mxu1 %v12171_v33  ;;  %v580_v17 = vmax.f32 %v447_v54, 0.0 }
 0x1ac   :  { %v581_v10 = vmax.f32 %v449_v62, 0.0  ;;  %v613_v11 = vmax.f32 %v529_v1, 0.0  ;;  %3621 = vmatprep.subr.bf16.mxu0 %v12182_v38  ;;  %3235 = vmatprep.subr.bf16.mxu1 %v12180_v49  ;;  %v16720_v38 = vld [vmem:[#allocation9 + $0x2a8] sm:$0xff]  ;;  %v12197_v49 = vcombine.low %v16696_v14, %v16698_v15  ;;  %v12195_v58 = vcombine.low %v16700_v20, %v16702_v21 }
 0x1ad   :  { %v582_v18 = vmax.f32 %v451_v5, 0.0  ;;  %v614_v19 = vmax.f32 %v531_v6, 0.0  ;;  %v12206_v63 = vcombine.high %v16718_v36, %v16720_v38  ;;  %v12204_v5 = vcombine.high %v16726_v50, %v16728_v51  ;;  %v16740_v6 = vld [vmem:[#allocation9 + $0x2c8] sm:$0xff] }
 0x1ae   :  { %v635_v22 = vpack.c.bf16 %v581_v10, %v579_v9  ;;  %v16704_v23 = vpack.c.bf16 %v613_v11, %v611_v2  ;;  %v16744_v11 = vld [vmem:[#allocation9 + $0x2c0] sm:$0xff] }
 0x1af   :  { %v454_v26 = vpop.f32.mrb[20].mxu0  ;;  %v636_v27 = vpack.c.bf16 %v582_v18, %v580_v17  ;;  %v534_v28 = vpop.f32.mrb[20].mxu1  ;;  %v16710_v0 = vpack.c.bf16 %v614_v19, %v612_v7  ;;  %3622 = vmatpush1.bf16.msra.mxu0 %v12181_v57  ;;  %3236 = vmatpush1.bf16.msra.mxu1 %v12179_v4  ;;  %v16742_v7 = vld [vmem:[#allocation9 + $0x2e8] sm:$0xff]  ;;  %v12205_v17 = vcombine.low %v16718_v36, %v16720_v38 }
 0x1b0   :  { %v456_v30 = vpop.f32.mrb[21].mxu0  ;;  %v455_v32 = vadd.f32 %v454_v26, %v16511_v44  ;;  %v536_v33 = vpop.f32.mrb[21].mxu1  ;;  %v535_v34 = vadd.f32 %v534_v28, %v16511_v44  ;;  %3623 = vmatprep.subr.bf16.mxu0 %v12190_v8  ;;  %3237 = vmatprep.subr.bf16.mxu1 %v12188_v13  ;;  %v16746_v13 = vld [vmem:[#allocation9 + $0x2e0] sm:$0xff]  ;;  %v12203_v18 = vcombine.low %v16726_v50, %v16728_v51 }
 0x1b1   :  { %v458_v39 = vpop.f32.mrb[22].mxu0  ;;  %1137 = vmatprep.mubr.bf16.mxu1 %v636_v27  ;;  %1330 = vmatprep.mubr.bf16.mxu0 %v636_v27  ;;  %v457_v41 = vadd.f32 %v456_v30, %v16514_v45  ;;  %v538_v46 = vpop.f32.mrb[22].mxu1  ;;  %v537_v48 = vadd.f32 %v536_v33, %v16514_v45  ;;  %v16762_v30 = vld [vmem:[#allocation9 + $0x308] sm:$0xff]  ;;  %v12213_v38 = vcombine.low %v16740_v6, %v16742_v7 }
 0x1b2   :  { %v460_v52 = vpop.f32.mrb[23].mxu0  ;;  %1138 = vmatmul.mubr.bf16.gmra.mrb[48].mxu1 %v635_v22  ;;  %1331 = vmatmul.mubr.bf16.gmra.mrb[48].mxu0 %v635_v22  ;;  %v459_v54 = vadd.f32 %v458_v39, %v16511_v44  ;;  %v540_v55 = vpop.f32.mrb[23].mxu1  ;;  %v539_v56 = vadd.f32 %v538_v46, %v16511_v44  ;;  %v615_v57 = vmax.f32 %v535_v34, 0.0  ;;  %v583_v1 = vmax.f32 %v455_v32, 0.0  ;;  %v16764_v32 = vld [vmem:[#allocation9 + $0x328] sm:$0xff]  ;;  %v16770_v39 = vld [vmem:[#allocation9 + $0x300] sm:$0xff] }
 0x1b3   :  { %v461_v59 = vadd.f32 %v460_v52, %v16514_v45  ;;  %v541_v61 = vadd.f32 %v540_v55, %v16514_v45  ;;  %v616_v62 = vmax.f32 %v537_v48, 0.0  ;;  %3624 = vmatpush1.bf16.msra.mxu0 %v12189_v24  ;;  %3238 = vmatpush1.bf16.msra.mxu1 %v12187_v25  ;;  %v584_v8 = vmax.f32 %v457_v41, 0.0  ;;  %v16772_v41 = vld [vmem:[#allocation9 + $0x320] sm:$0xff] }
 0x1b4   :  { %v585_v2 = vmax.f32 %v459_v54, 0.0  ;;  %v617_v4 = vmax.f32 %v539_v56, 0.0  ;;  %3625 = vmatprep.subr.bf16.mxu0 %v12198_v29  ;;  %3239 = vmatprep.subr.bf16.mxu1 %v12196_v35  ;;  %v12214_v24 = vcombine.high %v16740_v6, %v16742_v7  ;;  %v12212_v29 = vcombine.high %v16744_v11, %v16746_v13  ;;  %v1747_v6 = vld [vmem:[#allocation9 + $0x340] sm:$0xff] }
 0x1b5   :  { %v586_v9 = vmax.f32 %v461_v59, 0.0  ;;  %v618_v10 = vmax.f32 %v541_v61, 0.0  ;;  %v12211_v52 = vcombine.low %v16744_v11, %v16746_v13  ;;  %v1751_v7 = vld [vmem:[#allocation9 + $0x360] sm:$0xff]  ;;  %v12219_v11 = vcombine.low %v16770_v39, %v16772_v41 }
 0x1b6   :  { %v637_v14 = vpack.c.bf16 %v585_v2, %v583_v1  ;;  %v16748_v15 = vpack.c.bf16 %v617_v4, %v615_v57  ;;  %v12222_v57 = vcombine.high %v16762_v30, %v16764_v32  ;;  %v1752_v1 = vld [vmem:[#allocation9 + $0x368] sm:$0xff] }
 0x1b7   :  { %v464_v19 = vpop.f32.mrb[24].mxu0  ;;  %v638_v20 = vpack.c.bf16 %v586_v9, %v584_v8  ;;  %v544_v21 = vpop.f32.mrb[24].mxu1  ;;  %v16754_v22 = vpack.c.bf16 %v618_v10, %v616_v62  ;;  %3626 = vmatpush1.bf16.msra.mxu0 %v12197_v49  ;;  %3240 = vmatpush1.bf16.msra.mxu1 %v12195_v58  ;;  %v12220_v62 = vcombine.high %v16770_v39, %v16772_v41 }
 0x1b8   :  { %v466_v25 = vpop.f32.mrb[25].mxu0  ;;  %v465_v26 = vadd.f32 %v464_v19, %v16511_v44  ;;  %v546_v27 = vpop.f32.mrb[25].mxu1  ;;  %v545_v28 = vadd.f32 %v544_v21, %v16511_v44  ;;  %3627 = vmatprep.subr.bf16.mxu0 %v12206_v63  ;;  %3241 = vmatprep.subr.bf16.mxu1 %v12204_v5  ;;  %v16784_v63 = vld [vmem:[#allocation9 + $0x348] sm:$0xff]  ;;  %v12221_v10 = vcombine.low %v16762_v30, %v16764_v32 }
 0x1b9   :  { %v468_v33 = vpop.f32.mrb[26].mxu0  ;;  %1147 = vmatprep.mubr.bf16.mxu1 %v638_v20  ;;  %1340 = vmatprep.mubr.bf16.mxu0 %v638_v20  ;;  %v467_v34 = vadd.f32 %v466_v25, %v16514_v45  ;;  %v548_v35 = vpop.f32.mrb[26].mxu1  ;;  %v547_v36 = vadd.f32 %v546_v27, %v16514_v45  ;;  %v12230_v19 = vcombine.high %v16784_v63, %v1752_v1  ;;  %v1756_v27 = vld [vmem:[#allocation9 + $0x388] sm:$0xff] }
 0x1ba   :  { %v470_v46 = vpop.f32.mrb[27].mxu0  ;;  %1148 = vmatmul.mubr.bf16.gmra.mrb[52].mxu1 %v637_v14  ;;  %1341 = vmatmul.mubr.bf16.gmra.mrb[52].mxu0 %v637_v14  ;;  %v469_v48 = vadd.f32 %v468_v33, %v16511_v44  ;;  %v550_v49 = vpop.f32.mrb[27].mxu1  ;;  %v549_v50 = vadd.f32 %v548_v35, %v16511_v44  ;;  %v619_v51 = vmax.f32 %v545_v28, 0.0  ;;  %v587_v58 = vmax.f32 %v465_v26, 0.0  ;;  %v1760_v28 = vld [vmem:[#allocation9 + $0x3a8] sm:$0xff]  ;;  %v1755_v35 = vld [vmem:[#allocation9 + $0x380] sm:$0xff] }
 0x1bb   :  { %v471_v54 = vadd.f32 %v470_v46, %v16514_v45  ;;  %v551_v55 = vadd.f32 %v550_v49, %v16514_v45  ;;  %v620_v56 = vmax.f32 %v547_v36, 0.0  ;;  %3628 = vmatpush1.bf16.msra.mxu0 %v12205_v17  ;;  %3242 = vmatpush1.bf16.msra.mxu1 %v12203_v18  ;;  %v588_v2 = vmax.f32 %v467_v34, 0.0  ;;  %v1759_v36 = vld [vmem:[#allocation9 + $0x3a0] sm:$0xff] }
 0x1bc   :  { %v589_v59 = vmax.f32 %v469_v48, 0.0  ;;  %v621_v61 = vmax.f32 %v549_v50, 0.0  ;;  %3629 = vmatprep.subr.bf16.mxu0 %v12214_v24  ;;  %3243 = vmatprep.subr.bf16.mxu1 %v12212_v29  ;;  %v12228_v26 = vcombine.high %v1747_v6, %v1751_v7  ;;  %v12229_v34 = vcombine.low %v16784_v63, %v1752_v1 }
 0x1bd   :  { %v590_v4 = vmax.f32 %v471_v54, 0.0  ;;  %v622_v5 = vmax.f32 %v551_v55, 0.0  ;;  %v12227_v49 = vcombine.low %v1747_v6, %v1751_v7  ;;  %v12238_v54 = vcombine.high %v1756_v27, %v1760_v28 }
 0x1be   :  { %v639_v8 = vpack.c.bf16 %v589_v59, %v587_v58  ;;  %v16786_v9 = vpack.c.bf16 %v621_v61, %v619_v51  ;;  %v12236_v58 = vcombine.high %v1755_v35, %v1759_v36 }
 0x1bf   :  { %v474_v13 = vpop.f32.mrb[28].mxu0  ;;  %v640_v14 = vpack.c.bf16 %v590_v4, %v588_v2  ;;  %v554_v17 = vpop.f32.mrb[28].mxu1  ;;  %v16792_v18 = vpack.c.bf16 %v622_v5, %v620_v56  ;;  %3630 = vmatpush1.bf16.msra.mxu0 %v12213_v38  ;;  %3244 = vmatpush1.bf16.msra.mxu1 %v12211_v52  ;;  %v12235_v4 = vcombine.low %v1755_v35, %v1759_v36  ;;  %v1763_v5 = vld [vmem:[#allocation9 + $0x3c0] sm:$0xff] }
 0x1c0   :  { %v476_v20 = vpop.f32.mrb[29].mxu0  ;;  %v475_v21 = vadd.f32 %v474_v13, %v16511_v44  ;;  %v556_v24 = vpop.f32.mrb[29].mxu1  ;;  %v555_v25 = vadd.f32 %v554_v17, %v16511_v44  ;;  %3631 = vmatprep.subr.bf16.mxu0 %v12222_v57  ;;  %3245 = vmatprep.subr.bf16.mxu1 %v12220_v62  ;;  %v16860_v13 = vsub.s32 3, %v16502_v40 }
 0x1c1   :  { %v478_v29 = vpop.f32.mrb[30].mxu0  ;;  %1157 = vmatprep.mubr.bf16.mxu1 %v640_v14  ;;  %1350 = vmatprep.mubr.bf16.mxu0 %v640_v14  ;;  %v477_v30 = vadd.f32 %v476_v20, %v16514_v45  ;;  %v558_v32 = vpop.f32.mrb[30].mxu1  ;;  %v557_v33 = vadd.f32 %v556_v24, %v16514_v45  ;;  %v16876_v20 = vld [vmem:[#allocation9 + $0x468] sm:$0xff] }
 0x1c2   :  { %v480_v38 = vpop.f32.mrb[31].mxu0  ;;  %1158 = vmatmul.mubr.bf16.gmra.mrb[56].mxu1 %v639_v8  ;;  %1351 = vmatmul.mubr.bf16.gmra.mrb[56].mxu0 %v639_v8  ;;  %v479_v39 = vadd.f32 %v478_v29, %v16511_v44  ;;  %v560_v41 = vpop.f32.mrb[31].mxu1  ;;  %v559_v46 = vadd.f32 %v558_v32, %v16511_v44  ;;  %v623_v48 = vmax.f32 %v555_v25, 0.0  ;;  %v591_v55 = vmax.f32 %v475_v21, 0.0  ;;  %v16838_v8 = vld [vmem:[#allocation9 + $0x400] sm:$0xff]  ;;  %20011 = vst [vmem:[#allocation24_spill] sm:$0xff] %v16860_v13 }
 0x1c3   :  { %v481_v50 = vadd.f32 %v480_v38, %v16514_v45  ;;  %v561_v51 = vadd.f32 %v560_v41, %v16514_v45  ;;  %v624_v52 = vmax.f32 %v557_v33, 0.0  ;;  %3632 = vmatpush1.bf16.msra.mxu0 %v12221_v10  ;;  %3246 = vmatpush1.bf16.msra.mxu1 %v12219_v11  ;;  %v592_v59 = vmax.f32 %v477_v30, 0.0  ;;  %v16840_v10 = vld [vmem:[#allocation9 + $0x420] sm:$0xff]  ;;  %v16884_v32 = vld [vmem:[#allocation9 + $0x488] sm:$0xff] }
 0x1c4   :  { %v593_v56 = vmax.f32 %v479_v39, 0.0  ;;  %v625_v57 = vmax.f32 %v559_v46, 0.0  ;;  %3633 = vmatprep.subr.bf16.mxu0 %v12230_v19  ;;  %3247 = vmatprep.subr.bf16.mxu1 %v12228_v26  ;;  %v12237_v45 = vcombine.low %v1756_v27, %v1760_v28  ;;  %v16857_v11 = vsub.s32 2, %v16502_v40  ;;  %v16874_v19 = vld [vmem:[#allocation9 + $0x448] sm:$0xff]  ;;  %v16878_v25 = vld [vmem:[#allocation9 + $0x440] sm:$0xff] }
 0x1c5   :  { %v594_v61 = vmax.f32 %v481_v50, 0.0  ;;  %v626_v62 = vmax.f32 %v561_v51, 0.0  ;;  %v16880_v26 = vld [vmem:[#allocation9 + $0x460] sm:$0xff]  ;;  %v16886_v33 = vld [vmem:[#allocation9 + $0x4a8] sm:$0xff]  ;;  %v12261_v39 = vcombine.low %v16874_v19, %v16876_v20  ;;  %v12262_v50 = vcombine.high %v16874_v19, %v16876_v20 }
 0x1c6   :  { %v641_v44 = vpack.c.bf16 %v593_v56, %v591_v55  ;;  %v16804_v63 = vpack.c.bf16 %v625_v57, %v623_v48  ;;  %20010 = vst [vmem:[#allocation23_spill] sm:$0xff] %v16857_v11  ;;  %v12259_v51 = vcombine.low %v16878_v25, %v16880_v26  ;;  %v12260_v55 = vcombine.high %v16878_v25, %v16880_v26  ;;  %v16904_v57 = vld [vmem:[#allocation9 + $0x18] sm:$0xff] }
 0x1c7   :  { %v642_v1 = vpack.c.bf16 %v594_v61, %v592_v59  ;;  %v16806_v2 = vpack.c.bf16 %v626_v62, %v624_v52  ;;  %3634 = vmatpush1.bf16.msra.mxu0 %v12229_v34  ;;  %3248 = vmatpush1.bf16.msra.mxu1 %v12227_v49  ;;  %v12269_v56 = vcombine.low %v16884_v32, %v16886_v33 }
 0x1c8   :  { %3635 = vmatprep.subr.bf16.mxu0 %v12238_v54  ;;  %3249 = vmatprep.subr.bf16.mxu1 %v12236_v58  ;;  %v16906_v58 = vld [vmem:[#allocation9 + $0x38] sm:$0xff] }
 0x1c9   :  { %1167 = vmatprep.mubr.bf16.mxu1 %v642_v1  ;;  %1360 = vmatprep.mubr.bf16.mxu0 %v642_v1  ;;  %v16910_v1 = vld [vmem:[#allocation9 + $0x4a0] sm:$0xff] }
 0x1ca   :  { %1168 = vmatmul.mubr.bf16.gmra.mrb[60].mxu1 %v641_v44  ;;  %1361 = vmatmul.mubr.bf16.gmra.mrb[60].mxu0 %v641_v44 }
 0x1cb   :  { %1177 = vmatprep.mubr.bf16.mxu1 %v16532_v16  ;;  %1370 = vmatprep.mubr.bf16.mxu0 %v16532_v16  ;;  %v1768_v16 = vld [vmem:[#allocation9 + $0x3e8] sm:$0xff] }
 0x1cc   :  { %3636 = vmatpush1.bf16.msra.mxu0 %v12237_v45  ;;  %3250 = vmatpush1.bf16.msra.mxu1 %v12235_v4 }
 0x1d2   :  { %1178 = vmatmul.mubr.bf16.gmra.mrb[64].mxu1 %v16530_v12  ;;  %1371 = vmatmul.mubr.bf16.gmra.mrb[64].mxu0 %v16530_v12  ;;  %v1764_v12 = vld [vmem:[#allocation9 + $0x3c8] sm:$0xff] }
 0x1d3   :  { %1187 = vmatprep.mubr.bf16.mxu1 %v16578_v3  ;;  %1380 = vmatprep.mubr.bf16.mxu0 %v16578_v3  ;;  %v1767_v3 = vld [vmem:[#allocation9 + $0x3e0] sm:$0xff] }
 0x1d4   :  { %v12243_v6 = vcombine.low %v1763_v5, %v1767_v3 }
 0x1da   :  { %1188 = vmatmul.mubr.bf16.gmra.mrb[68].mxu1 %v16572_v60  ;;  %1381 = vmatmul.mubr.bf16.gmra.mrb[68].mxu0 %v16572_v60  ;;  %v12246_v60 = vcombine.high %v1764_v12, %v1768_v16 }
 0x1db   :  { %1197 = vmatprep.mubr.bf16.mxu1 %v16622_v53  ;;  %1390 = vmatprep.mubr.bf16.mxu0 %v16622_v53  ;;  %v12245_v53 = vcombine.low %v1764_v12, %v1768_v16  ;;  %v16912_v16 = vld [vmem:[#allocation9 + $0x4c8] sm:$0xff] }
 0x1dc   :  { %3637 = vmatprep.subr.bf16.mxu0 %v12246_v60 }
 0x1dd   :  { %3638 = vmatpush1.bf16.msra.mxu0 %v12245_v53  ;;  %v12270_v53 = vcombine.high %v16884_v32, %v16886_v33  ;;  %v17051_v32 = vld [vmem:[#allocation9 + $0x580] sm:$0xff] }
 0x1de   :  { %v17053_v33 = vld [vmem:[#allocation9 + $0x5a0] sm:$0xff] }
 0x1e2   :  { %1198 = vmatmul.mubr.bf16.gmra.mrb[72].mxu1 %v16616_v47  ;;  %1391 = vmatmul.mubr.bf16.gmra.mrb[72].mxu0 %v16616_v47  ;;  %v12244_v47 = vcombine.high %v1763_v5, %v1767_v3  ;;  %v16914_v5 = vld [vmem:[#allocation9 + $0x4e8] sm:$0xff] }
 0x1e3   :  { %1207 = vmatprep.mubr.bf16.mxu1 %v16666_v37  ;;  %1400 = vmatprep.mubr.bf16.mxu0 %v16666_v37  ;;  %v16832_v37 = vld [vmem:[#allocation9 + $0x428] sm:$0xff] }
 0x1e4   :  { %3251 = vmatprep.subr.bf16.mxu1 %v12244_v47  ;;  %v16924_v47 = vld [vmem:[#allocation9 + $0x4e0] sm:$0xff] }
 0x1e5   :  { %3252 = vmatpush1.bf16.msra.mxu1 %v12243_v6  ;;  %v16922_v6 = vld [vmem:[#allocation9 + $0x4c0] sm:$0xff] }
 0x1ea   :  { %1208 = vmatmul.mubr.bf16.gmra.mrb[76].mxu1 %v16660_v31  ;;  %1401 = vmatmul.mubr.bf16.gmra.mrb[76].mxu0 %v16660_v31  ;;  %v16830_v31 = vld [vmem:[#allocation9 + $0x408] sm:$0xff] }
 0x1eb   :  { %1217 = vmatprep.mubr.bf16.mxu1 %v16710_v0  ;;  %1410 = vmatprep.mubr.bf16.mxu0 %v16710_v0  ;;  %v12253_v0 = vcombine.low %v16830_v31, %v16832_v37  ;;  %v12254_v7 = vcombine.high %v16830_v31, %v16832_v37 }
 0x1ed   :  { %3800 = vmatprep.subr.bf16.mxu0 %v12254_v7 }
 0x1f2   :  { %1218 = vmatmul.mubr.bf16.gmra.mrb[80].mxu1 %v16704_v23  ;;  %1411 = vmatmul.mubr.bf16.gmra.mrb[80].mxu0 %v16704_v23  ;;  %v12251_v23 = vcombine.low %v16838_v8, %v16840_v10 }
 0x1f3   :  { %1227 = vmatprep.mubr.bf16.mxu1 %v16754_v22  ;;  %1420 = vmatprep.mubr.bf16.mxu0 %v16754_v22  ;;  %v12252_v22 = vcombine.high %v16838_v8, %v16840_v10  ;;  %v16977_v8 = vld [vmem:[#allocation9 + $0x30] sm:$0xff] }
 0x1f5   :  { %3414 = vmatprep.subr.bf16.mxu1 %v12252_v22 }
 0x1fa   :  { %1228 = vmatmul.mubr.bf16.gmra.mrb[84].mxu1 %v16748_v15  ;;  %1421 = vmatmul.mubr.bf16.gmra.mrb[84].mxu0 %v16748_v15  ;;  %v723_v15 = vld [vmem:[#allocation7] sm:$0xf] }
 0x1fb   :  { %1237 = vmatprep.mubr.bf16.mxu1 %v16792_v18  ;;  %1430 = vmatprep.mubr.bf16.mxu0 %v16792_v18  ;;  %v16863_v14 = vrot.slane %v723_v15, %v16505_v42  ;;  %v16869_v17 = vrot.slane %v723_v15, %v16860_v13  ;;  %v16872_v18 = vrot.slane %v723_v15, %v16508_v43  ;;  %v17245_v42 = vld [vmem:[#allocation9 + $0x708] sm:$0xff] }
 0x202   :  { %1238 = vmatmul.mubr.bf16.gmra.mrb[88].mxu1 %v16786_v9  ;;  %1431 = vmatmul.mubr.bf16.gmra.mrb[88].mxu0 %v16786_v9  ;;  %v16866_v9 = vrot.slane %v723_v15, %v16857_v11 }
 0x203   :  { %1247 = vmatprep.mubr.bf16.mxu1 %v16806_v2  ;;  %1440 = vmatprep.mubr.bf16.mxu0 %v16806_v2 }
 0x20a   :  { %1248 = vmatmul.mubr.bf16.gmra.mrb[92].mxu1 %v16804_v63  ;;  %1441 = vmatmul.mubr.bf16.gmra.mrb[92].mxu0 %v16804_v63  ;;  %v16908_v63 = vld [vmem:[#allocation9 + $0x480] sm:$0xff] }
 0x265   :  { %v1099_v21 = vpop.f32.mrb[32].mxu1  ;;  %v1292_v24 = vpop.f32.mrb[32].mxu0 }
 0x266   :  { %v1100_v27 = vadd.f32 %v1099_v21, %v16863_v14  ;;  %v1293_v28 = vadd.f32 %v1292_v24, %v16866_v9  ;;  %v1101_v29 = vpop.f32.mrb[33].mxu1  ;;  %v1294_v30 = vpop.f32.mrb[33].mxu0 }
 0x267   :  { %v1295_v34 = vadd.f32 %v1294_v30, %v16869_v17  ;;  %v1103_v35 = vpop.f32.mrb[34].mxu1  ;;  %v1296_v36 = vpop.f32.mrb[34].mxu0  ;;  %v1102_v38 = vadd.f32 %v1101_v29, %v16872_v18 }
 0x268   :  { %v1104_v41 = vadd.f32 %v1103_v35, %v16863_v14  ;;  %v1297_v46 = vadd.f32 %v1296_v36, %v16866_v9  ;;  %v1105_v48 = vpop.f32.mrb[35].mxu1  ;;  %v1298_v49 = vpop.f32.mrb[35].mxu0  ;;  %v1451_v59 = vmax.f32 %v1100_v27, 0.0  ;;  %v1453_v61 = vmax.f32 %v1293_v28, 0.0 }
 0x269   :  { %v1299_v52 = vadd.f32 %v1298_v49, %v16869_v17  ;;  %v1106_v54 = vadd.f32 %v1105_v48, %v16872_v18  ;;  %v1454_v2 = vmax.f32 %v1295_v34, 0.0  ;;  %v1452_v4 = vmax.f32 %v1102_v38, 0.0 }
 0x26a   :  { %v1455_v62 = vmax.f32 %v1104_v41, 0.0  ;;  %v1457_v44 = vmax.f32 %v1297_v46, 0.0  ;;  %v12267_v27 = vcombine.low %v16908_v63, %v16910_v1  ;;  %v12268_v28 = vcombine.high %v16908_v63, %v16910_v1  ;;  %v16942_v41 = vld [vmem:[#allocation9 + $0x508] sm:$0xff] }
 0x26b   :  { %v1458_v45 = vmax.f32 %v1299_v52, 0.0  ;;  %v1456_v12 = vmax.f32 %v1106_v54, 0.0  ;;  %v12277_v36 = vcombine.low %v16912_v16, %v16914_v5  ;;  %v12278_v38 = vcombine.high %v16912_v16, %v16914_v5  ;;  %v16944_v46 = vld [vmem:[#allocation9 + $0x528] sm:$0xff]  ;;  %v17086_v5 = vld [vmem:[#allocation9 + $0x5c0] sm:$0xff] }
 0x26c   :  { %v16916_v60 = vpack.c.bf16 %v1457_v44, %v1453_v61  ;;  %v16918_v3 = vpack.c.bf16 %v1455_v62, %v1451_v59  ;;  %v12275_v59 = vcombine.low %v16922_v6, %v16924_v47  ;;  %v12300_v16 = vcombine.high %v17051_v32, %v17053_v33 }
 0x26d   :  { %v16928_v22 = vpack.c.bf16 %v1458_v45, %v1454_v2  ;;  %v1109_v15 = vpop.f32.mrb[36].mxu1  ;;  %v1302_v21 = vpop.f32.mrb[36].mxu0  ;;  %v16930_v24 = vpack.c.bf16 %v1456_v12, %v1452_v4  ;;  %v12276_v45 = vcombine.high %v16922_v6, %v16924_v47  ;;  %v17088_v6 = vld [vmem:[#allocation9 + $0x5e0] sm:$0xff] }
 0x26e   :  { %v1303_v29 = vadd.f32 %v1302_v21, %v16866_v9  ;;  %v1111_v30 = vpop.f32.mrb[37].mxu1  ;;  %v1304_v34 = vpop.f32.mrb[37].mxu0  ;;  %v1110_v35 = vadd.f32 %v1109_v15, %v16863_v14  ;;  %v12285_v21 = vcombine.low %v16942_v41, %v16944_v46 }
 0x26f   :  { %v1305_v48 = vadd.f32 %v1304_v34, %v16869_v17  ;;  %v1113_v49 = vpop.f32.mrb[38].mxu1  ;;  %v1306_v52 = vpop.f32.mrb[38].mxu0  ;;  %3253 = vmatprep.mubr.bf16.mxu1 %v16930_v24  ;;  %3639 = vmatprep.mubr.bf16.mxu0 %v16930_v24  ;;  %v1112_v54 = vadd.f32 %v1111_v30, %v16872_v18  ;;  %v16968_v30 = vld [vmem:[#allocation9 + $0x500] sm:$0xff] }
 0x270   :  { %v1307_v61 = vadd.f32 %v1306_v52, %v16866_v9  ;;  %v1115_v62 = vpop.f32.mrb[39].mxu1  ;;  %v1308_v44 = vpop.f32.mrb[39].mxu0  ;;  %3254 = vmatmul.mubr.bf16.vlgmr.msra.gmra.mrb[96].mxu1 %v16918_v3  ;;  %3640 = vmatmul.mubr.bf16.vlgmr.msra.gmra.mrb[96].mxu0 %v16918_v3  ;;  %v1114_v2 = vadd.f32 %v1113_v49, %v16863_v14  ;;  %v1461_v4 = vmax.f32 %v1303_v29, 0.0  ;;  %v16970_v34 = vld [vmem:[#allocation9 + $0x520] sm:$0xff]  ;;  %v1459_v31 = vmax.f32 %v1110_v35, 0.0 }
 0x271   :  { %v1309_v12 = vadd.f32 %v1308_v44, %v16869_v17  ;;  %3801 = vmatpush1.bf16.msra.mxu0 %v12253_v0  ;;  %3415 = vmatpush1.bf16.msra.mxu1 %v12251_v23  ;;  %v1116_v15 = vadd.f32 %v1115_v62, %v16872_v18  ;;  %v1462_v29 = vmax.f32 %v1305_v48, 0.0  ;;  %v16975_v0 = vld [vmem:[#allocation9 + $0x10] sm:$0xff]  ;;  %v1460_v23 = vmax.f32 %v1112_v54, 0.0  ;;  %v16979_v62 = vld [vmem:[#allocation9 + $0x548] sm:$0xff] }
 0x272   :  { %v1465_v49 = vmax.f32 %v1307_v61, 0.0  ;;  %3802 = vmatprep.subr.bf16.mxu0 %v12262_v50  ;;  %v1463_v37 = vmax.f32 %v1114_v2, 0.0  ;;  %3416 = vmatprep.subr.bf16.mxu1 %v12260_v55  ;;  %v16981_v44 = vld [vmem:[#allocation9 + $0x568] sm:$0xff]  ;;  %v12286_v55 = vcombine.high %v16942_v41, %v16944_v46  ;;  %v12283_v35 = vcombine.low %v16968_v30, %v16970_v34 }
 0x273   :  { %v1466_v10 = vmax.f32 %v1309_v12, 0.0  ;;  %v1464_v52 = vmax.f32 %v1116_v15, 0.0  ;;  %v17041_v48 = vld [vmem:[#allocation9 + $0x588] sm:$0xff] }
 0x274   :  { %v16985_v61 = vpack.c.bf16 %v1465_v49, %v1461_v4  ;;  %v16987_v50 = vpack.c.bf16 %v1463_v37, %v1459_v31  ;;  %v12284_v4 = vcombine.high %v16968_v30, %v16970_v34  ;;  %v17005_v49 = vld [vmem:[#allocation9 + $0x540] sm:$0xff] }
 0x275   :  { %v16993_v2 = vpack.c.bf16 %v1466_v10, %v1462_v29  ;;  %v1119_v54 = vpop.f32.mrb[40].mxu1  ;;  %v1312_v12 = vpop.f32.mrb[40].mxu0  ;;  %v16995_v15 = vpack.c.bf16 %v1464_v52, %v1460_v23  ;;  %3803 = vmatpush1.bf16.msra.mxu0 %v12261_v39  ;;  %3417 = vmatpush1.bf16.msra.mxu1 %v12259_v51  ;;  %v17007_v31 = vld [vmem:[#allocation9 + $0x560] sm:$0xff] }
 0x276   :  { %20012 = vst [vmem:[#allocation25_spill] sm:$0xff] %v16985_v61  ;;  %v1313_v29 = vadd.f32 %v1312_v12, %v16866_v9  ;;  %v1121_v37 = vpop.f32.mrb[41].mxu1  ;;  %v1314_v10 = vpop.f32.mrb[41].mxu0  ;;  %3804 = vmatprep.subr.bf16.mxu0 %v12270_v53  ;;  %v1120_v19 = vadd.f32 %v1119_v54, %v16863_v14  ;;  %3418 = vmatprep.subr.bf16.mxu1 %v12268_v28  ;;  %v17119_v34 = vld [vmem:[#allocation9 + $0x600] sm:$0xff] }
 0x277   :  { %v1315_v25 = vadd.f32 %v1314_v10, %v16869_v17  ;;  %v1123_v26 = vpop.f32.mrb[42].mxu1  ;;  %v1316_v39 = vpop.f32.mrb[42].mxu0  ;;  %3263 = vmatprep.mubr.bf16.mxu1 %v16995_v15  ;;  %3649 = vmatprep.mubr.bf16.mxu0 %v16995_v15  ;;  %v1122_v51 = vadd.f32 %v1121_v37, %v16872_v18  ;;  %v12294_v53 = vcombine.high %v16979_v62, %v16981_v44 }
 0x278   :  { %v1317_v23 = vadd.f32 %v1316_v39, %v16866_v9  ;;  %v1125_v52 = vpop.f32.mrb[43].mxu1  ;;  %v1318_v28 = vpop.f32.mrb[43].mxu0  ;;  %3264 = vmatmul.mubr.bf16.gmra.mrb[100].mxu1 %v16987_v50  ;;  %3650 = vmatmul.mubr.bf16.gmra.mrb[100].mxu0 %v16987_v50  ;;  %v1124_v54 = vadd.f32 %v1123_v26, %v16863_v14  ;;  %v12292_v39 = vcombine.high %v17005_v49, %v17007_v31  ;;  %v17043_v26 = vld [vmem:[#allocation9 + $0x5a8] sm:$0xff]  ;;  %v1469_v7 = vmax.f32 %v1313_v29, 0.0 }
 0x279   :  { %v1319_v10 = vadd.f32 %v1318_v28, %v16869_v17  ;;  %v1126_v37 = vadd.f32 %v1125_v52, %v16872_v18  ;;  %3805 = vmatpush1.bf16.msra.mxu0 %v12269_v56  ;;  %3419 = vmatpush1.bf16.msra.mxu1 %v12267_v27  ;;  %v1467_v28 = vmax.f32 %v1120_v19, 0.0  ;;  %v1470_v56 = vmax.f32 %v1315_v25, 0.0  ;;  %v17063_v52 = vld [vmem:[#allocation9 + $0x5c8] sm:$0xff] }
 0x27a   :  { %v1473_v12 = vmax.f32 %v1317_v23, 0.0  ;;  %v1471_v20 = vmax.f32 %v1124_v54, 0.0  ;;  %3806 = vmatprep.subr.bf16.mxu0 %v12278_v38  ;;  %3420 = vmatprep.subr.bf16.mxu1 %v12276_v45  ;;  %v1468_v1 = vmax.f32 %v1122_v51, 0.0  ;;  %v12301_v23 = vcombine.low %v17041_v48, %v17043_v26  ;;  %v17065_v45 = vld [vmem:[#allocation9 + $0x5e8] sm:$0xff] }
 0x27b   :  { %v1474_v63 = vmax.f32 %v1319_v10, 0.0  ;;  %v1472_v27 = vmax.f32 %v1126_v37, 0.0  ;;  %v12302_v38 = vcombine.high %v17041_v48, %v17043_v26  ;;  %v17183_v48 = vld [vmem:[#allocation9 + $0x688] sm:$0xff] }
 0x27c   :  { %v17055_v29 = vpack.c.bf16 %v1473_v12, %v1469_v7  ;;  %v17057_v19 = vpack.c.bf16 %v1471_v20, %v1467_v28  ;;  %v17185_v26 = vld [vmem:[#allocation9 + $0x6a8] sm:$0xff] }
 0x27d   :  { %v17067_v54 = vpack.c.bf16 %v1474_v63, %v1470_v56  ;;  %v1129_v25 = vpop.f32.mrb[44].mxu1  ;;  %v1322_v10 = vpop.f32.mrb[44].mxu0  ;;  %v17069_v51 = vpack.c.bf16 %v1472_v27, %v1468_v1  ;;  %3807 = vmatpush1.bf16.msra.mxu0 %v12277_v36  ;;  %3421 = vmatpush1.bf16.msra.mxu1 %v12275_v59 }
 0x27e   :  { %20013 = vst [vmem:[#allocation26_spill] sm:$0xff] %v17057_v19  ;;  %v1323_v20 = vadd.f32 %v1322_v10, %v16866_v9  ;;  %v1131_v12 = vpop.f32.mrb[45].mxu1  ;;  %v1324_v37 = vpop.f32.mrb[45].mxu0  ;;  %v1130_v28 = vadd.f32 %v1129_v25, %v16863_v14  ;;  %3808 = vmatprep.subr.bf16.mxu0 %v12286_v55  ;;  %3422 = vmatprep.subr.bf16.mxu1 %v12284_v4 }
 0x27f   :  { %20014 = vst [vmem:[#allocation27_spill] sm:$0xff] %v17067_v54  ;;  %20015 = vst [vmem:[#allocation28_spill] sm:$0xff] %v17069_v51  ;;  %v1325_v47 = vadd.f32 %v1324_v37, %v16869_v17  ;;  %v1133_v36 = vpop.f32.mrb[46].mxu1  ;;  %v1326_v59 = vpop.f32.mrb[46].mxu0  ;;  %3273 = vmatprep.mubr.bf16.mxu1 %v17069_v51  ;;  %3659 = vmatprep.mubr.bf16.mxu0 %v17069_v51  ;;  %v1132_v56 = vadd.f32 %v1131_v12, %v16872_v18 }
 0x280   :  { %v1327_v4 = vadd.f32 %v1326_v59, %v16866_v9  ;;  %v1135_v63 = vpop.f32.mrb[47].mxu1  ;;  %v1328_v1 = vpop.f32.mrb[47].mxu0  ;;  %3274 = vmatmul.mubr.bf16.gmra.mrb[104].mxu1 %v17057_v19  ;;  %3660 = vmatmul.mubr.bf16.gmra.mrb[104].mxu0 %v17057_v19  ;;  %v1134_v27 = vadd.f32 %v1133_v36, %v16863_v14  ;;  %v17112_v59 = vld [vmem:[#allocation9 + $0x608] sm:$0xff]  ;;  %v1477_v55 = vmax.f32 %v1323_v20, 0.0  ;;  %v12308_v20 = vcombine.high %v17086_v5, %v17088_v6 }
 0x281   :  { %v1329_v10 = vadd.f32 %v1328_v1, %v16869_v17  ;;  %v1136_v12 = vadd.f32 %v1135_v63, %v16872_v18  ;;  %3809 = vmatpush1.bf16.msra.mxu0 %v12285_v21  ;;  %3423 = vmatpush1.bf16.msra.mxu1 %v12283_v35  ;;  %v17114_v36 = vld [vmem:[#allocation9 + $0x628] sm:$0xff]  ;;  %v1475_v1 = vmax.f32 %v1130_v28, 0.0  ;;  %v1478_v41 = vmax.f32 %v1325_v47, 0.0  ;;  %v17121_v35 = vld [vmem:[#allocation9 + $0x620] sm:$0xff] }
 0x282   :  { %v1481_v25 = vmax.f32 %v1327_v4, 0.0  ;;  %v1479_v7 = vmax.f32 %v1134_v27, 0.0  ;;  %3810 = vmatprep.subr.bf16.mxu0 %v12294_v53  ;;  %3424 = vmatprep.subr.bf16.mxu1 %v12292_v39  ;;  %v1476_v21 = vmax.f32 %v1132_v56, 0.0  ;;  %v20018_v4 = vcombine.low %v16979_v62, %v16981_v44  ;;  %v17143_v27 = vld [vmem:[#allocation9 + $0x648] sm:$0xff] }
 0x283   :  { %v1482_v46 = vmax.f32 %v1329_v10, 0.0  ;;  %v1480_v30 = vmax.f32 %v1136_v12, 0.0 }
 0x284   :  { %v17123_v63 = vpack.c.bf16 %v1481_v25, %v1477_v55  ;;  %v17125_v37 = vpack.c.bf16 %v1479_v7, %v1475_v1  ;;  %v20019_v7 = vcombine.low %v17005_v49, %v17007_v31  ;;  %v12318_v55 = vcombine.high %v17112_v59, %v17114_v36  ;;  %v17145_v25 = vld [vmem:[#allocation9 + $0x668] sm:$0xff] }
 0x285   :  { %v17131_v53 = vpack.c.bf16 %v1482_v46, %v1478_v41  ;;  %v1139_v39 = vpop.f32.mrb[48].mxu1  ;;  %v1332_v47 = vpop.f32.mrb[48].mxu0  ;;  %v17133_v56 = vpack.c.bf16 %v1480_v30, %v1476_v21  ;;  %3811 = vmatpush1.bf16.msra.mxu0 %v20018_v4  ;;  %v12316_v21 = vcombine.high %v17119_v34, %v17121_v35 }
 0x286   :  { %20016 = vst [vmem:[#allocation29_spill] sm:$0xff] %v17125_v37  ;;  %3425 = vmatpush1.bf16.msra.mxu1 %v20019_v7  ;;  %v1333_v10 = vadd.f32 %v1332_v47, %v16866_v9  ;;  %v1141_v12 = vpop.f32.mrb[49].mxu1  ;;  %v1334_v1 = vpop.f32.mrb[49].mxu0  ;;  %v1140_v41 = vadd.f32 %v1139_v39, %v16863_v14  ;;  %3812 = vmatprep.subr.bf16.mxu0 %v12302_v38 }
 0x287   :  { %20017 = vst [vmem:[#allocation30_spill] sm:$0xff] %v17133_v56  ;;  %3426 = vmatprep.subr.bf16.mxu1 %v12300_v16  ;;  %v1335_v44 = vadd.f32 %v1334_v1, %v16869_v17  ;;  %v1143_v49 = vpop.f32.mrb[50].mxu1  ;;  %v1336_v31 = vpop.f32.mrb[50].mxu0  ;;  %3283 = vmatprep.mubr.bf16.mxu1 %v17133_v56  ;;  %v1142_v46 = vadd.f32 %v1141_v12, %v16872_v18 }
 0x288   :  { %3669 = vmatprep.mubr.bf16.mxu0 %v17133_v56  ;;  %v1337_v30 = vadd.f32 %v1336_v31, %v16866_v9  ;;  %v1145_v38 = vpop.f32.mrb[51].mxu1  ;;  %v1338_v16 = vpop.f32.mrb[51].mxu0  ;;  %3284 = vmatmul.mubr.bf16.gmra.mrb[108].mxu1 %v17125_v37  ;;  %v1144_v39 = vadd.f32 %v1143_v49, %v16863_v14  ;;  %v20020_v12 = vcombine.low %v17051_v32, %v17053_v33  ;;  %v17176_v31 = vld [vmem:[#allocation9 + $0x640] sm:$0xff]  ;;  %v1485_v47 = vmax.f32 %v1333_v10, 0.0 }
 0x289   :  { %3670 = vmatmul.mubr.bf16.gmra.mrb[108].mxu0 %v17125_v37  ;;  %v1339_v4 = vadd.f32 %v1338_v16, %v16869_v17  ;;  %v1146_v7 = vadd.f32 %v1145_v38, %v16872_v18  ;;  %v12326_v1 = vcombine.high %v17143_v27, %v17145_v25  ;;  %v17178_v49 = vld [vmem:[#allocation9 + $0x660] sm:$0xff]  ;;  %v1483_v16 = vmax.f32 %v1140_v41, 0.0 }
 0x28a   :  { %3813 = vmatpush1.bf16.msra.mxu0 %v12301_v23  ;;  %3427 = vmatpush1.bf16.msra.mxu1 %v20020_v12  ;;  %v1489_v62 = vmax.f32 %v1337_v30, 0.0  ;;  %v1487_v28 = vmax.f32 %v1144_v39, 0.0  ;;  %v20021_v38 = vcombine.high %v17063_v52, %v17065_v45  ;;  %v1486_v32 = vmax.f32 %v1335_v44, 0.0  ;;  %v17195_v30 = vld [vmem:[#allocation9 + $0x680] sm:$0xff] }
 0x28b   :  { %3428 = vmatprep.subr.bf16.mxu1 %v12308_v20  ;;  %v1490_v33 = vmax.f32 %v1339_v4, 0.0  ;;  %v1484_v23 = vmax.f32 %v1142_v46, 0.0  ;;  %v1488_v12 = vmax.f32 %v1146_v7, 0.0  ;;  %v12323_v10 = vcombine.low %v17176_v31, %v17178_v49  ;;  %v17197_v20 = vld [vmem:[#allocation9 + $0x6a0] sm:$0xff] }
 0x28c   :  { %3814 = vmatprep.subr.bf16.mxu0 %v20021_v38  ;;  %v17187_v40 = vpack.c.bf16 %v1489_v62, %v1485_v47  ;;  %v17189_v13 = vpack.c.bf16 %v1487_v28, %v1483_v16  ;;  %v12324_v41 = vcombine.high %v17176_v31, %v17178_v49  ;;  %v20024_v28 = vcombine.low %v17063_v52, %v17065_v45  ;;  %v17215_v52 = vld [vmem:[#allocation9 + $0x6c8] sm:$0xff] }
 0x28d   :  { %v17199_v39 = vpack.c.bf16 %v1490_v33, %v1486_v32  ;;  %v1149_v44 = vpop.f32.mrb[52].mxu1  ;;  %v1342_v4 = vpop.f32.mrb[52].mxu0  ;;  %v17201_v46 = vpack.c.bf16 %v1488_v12, %v1484_v23  ;;  %v20025_v62 = vcombine.low %v17086_v5, %v17088_v6  ;;  %v12334_v38 = vcombine.high %v17183_v48, %v17185_v26  ;;  %v17217_v45 = vld [vmem:[#allocation9 + $0x6e8] sm:$0xff] }
 0x28e   :  { %20022 = vst [vmem:[#allocation31_spill] sm:$0xff] %v17189_v13  ;;  %3815 = vmatpush1.bf16.msra.mxu0 %v20024_v28  ;;  %v1343_v7 = vadd.f32 %v1342_v4, %v16866_v9  ;;  %v1151_v31 = vpop.f32.mrb[53].mxu1  ;;  %v1344_v49 = vpop.f32.mrb[53].mxu0  ;;  %v1150_v16 = vadd.f32 %v1149_v44, %v16863_v14  ;;  %v12332_v4 = vcombine.high %v17195_v30, %v17197_v20 }
 0x28f   :  { %20023 = vst [vmem:[#allocation32_spill] sm:$0xff] %v17201_v46  ;;  %3429 = vmatpush1.bf16.msra.mxu1 %v20025_v62  ;;  %3816 = vmatprep.subr.bf16.mxu0 %v12318_v55  ;;  %v1345_v5 = vadd.f32 %v1344_v49, %v16869_v17  ;;  %v1153_v6 = vpop.f32.mrb[54].mxu1  ;;  %v1346_v32 = vpop.f32.mrb[54].mxu0  ;;  %v1152_v33 = vadd.f32 %v1151_v31, %v16872_v18  ;;  %v17241_v55 = vld [vmem:[#allocation9 + $0x6c0] sm:$0xff] }
 0x290   :  { %3430 = vmatprep.subr.bf16.mxu1 %v12316_v21  ;;  %3293 = vmatprep.mubr.bf16.mxu1 %v17201_v46  ;;  %v1347_v21 = vadd.f32 %v1346_v32, %v16866_v9  ;;  %v1155_v23 = vpop.f32.mrb[55].mxu1  ;;  %v1348_v12 = vpop.f32.mrb[55].mxu0  ;;  %v1154_v44 = vadd.f32 %v1153_v6, %v16863_v14  ;;  %v20026_v31 = vcombine.low %v17112_v59, %v17114_v36  ;;  %v17243_v6 = vld [vmem:[#allocation9 + $0x6e0] sm:$0xff]  ;;  %v1493_v47 = vmax.f32 %v1343_v7, 0.0 }
 0x291   :  { %3679 = vmatprep.mubr.bf16.mxu0 %v17201_v46  ;;  %3294 = vmatmul.mubr.bf16.gmra.mrb[112].mxu1 %v17189_v13  ;;  %v1349_v28 = vadd.f32 %v1348_v12, %v16869_v17  ;;  %v1156_v62 = vadd.f32 %v1155_v23, %v16872_v18  ;;  %v20027_v49 = vcombine.low %v17119_v34, %v17121_v35  ;;  %v1491_v12 = vmax.f32 %v1150_v16, 0.0  ;;  %v17247_v34 = vld [vmem:[#allocation9 + $0x728] sm:$0xff] }
 0x292   :  { %3680 = vmatmul.mubr.bf16.gmra.mrb[112].mxu0 %v17189_v13  ;;  %v1497_v43 = vmax.f32 %v1347_v21, 0.0  ;;  %v1495_v11 = vmax.f32 %v1154_v44, 0.0  ;;  %v1494_v23 = vmax.f32 %v1345_v5, 0.0  ;;  %v1492_v36 = vmax.f32 %v1152_v33, 0.0 }
 0x293   :  { %3817 = vmatpush1.bf16.msra.mxu0 %v20026_v31  ;;  %3431 = vmatpush1.bf16.msra.mxu1 %v20027_v49  ;;  %v1498_v59 = vmax.f32 %v1349_v28, 0.0  ;;  %v1496_v31 = vmax.f32 %v1156_v62, 0.0  ;;  %v12342_v7 = vcombine.high %v17215_v52, %v17217_v45  ;;  %v12339_v16 = vcombine.low %v17241_v55, %v17243_v6 }
 0x294   :  { %3818 = vmatprep.subr.bf16.mxu0 %v12326_v1  ;;  %3432 = vmatprep.subr.bf16.mxu1 %v12324_v41  ;;  %v17249_v35 = vpack.c.bf16 %v1497_v43, %v1493_v47  ;;  %v17251_v49 = vpack.c.bf16 %v1495_v11, %v1491_v12  ;;  %v20030_v21 = vcombine.low %v17143_v27, %v17145_v25  ;;  %v17266_v11 = vld [vmem:[#allocation9 + $0x700] sm:$0xff] }
 0x295   :  { %v17257_v1 = vpack.c.bf16 %v1498_v59, %v1494_v23  ;;  %v1159_v41 = vpop.f32.mrb[56].mxu1  ;;  %v1352_v5 = vpop.f32.mrb[56].mxu0  ;;  %v17259_v33 = vpack.c.bf16 %v1496_v31, %v1492_v36  ;;  %v12340_v43 = vcombine.high %v17241_v55, %v17243_v6  ;;  %v17268_v47 = vld [vmem:[#allocation9 + $0x720] sm:$0xff]  ;;  %v12350_v6 = vcombine.high %v17245_v42, %v17247_v34 }
 0x296   :  { %20028 = vst [vmem:[#allocation33_spill] sm:$0xff] %v17251_v49  ;;  %v1353_v44 = vadd.f32 %v1352_v5, %v16866_v9  ;;  %v1161_v28 = vpop.f32.mrb[57].mxu1  ;;  %v1354_v62 = vpop.f32.mrb[57].mxu0  ;;  %v1160_v12 = vadd.f32 %v1159_v41, %v16863_v14  ;;  %v12347_v31 = vcombine.low %v17266_v11, %v17268_v47 }
 0x297   :  { %20029 = vst [vmem:[#allocation34_spill] sm:$0xff] %v17259_v33  ;;  %3819 = vmatpush1.bf16.msra.mxu0 %v20030_v21  ;;  %3433 = vmatpush1.bf16.msra.mxu1 %v12323_v10  ;;  %v1355_v25 = vadd.f32 %v1354_v62, %v16869_v17  ;;  %v1163_v10 = vpop.f32.mrb[58].mxu1  ;;  %v1356_v23 = vpop.f32.mrb[58].mxu0  ;;  %v1162_v55 = vadd.f32 %v1161_v28, %v16872_v18 }
 0x298   :  { %3820 = vmatprep.subr.bf16.mxu0 %v12334_v38  ;;  %3434 = vmatprep.subr.bf16.mxu1 %v12332_v4  ;;  %v1357_v59 = vadd.f32 %v1356_v23, %v16866_v9  ;;  %v1165_v38 = vpop.f32.mrb[59].mxu1  ;;  %v1358_v4 = vpop.f32.mrb[59].mxu0  ;;  %v1164_v36 = vadd.f32 %v1163_v10, %v16863_v14  ;;  %v20031_v21 = vcombine.low %v17183_v48, %v17185_v26  ;;  %v17296_v23 = vld [vmem:[#allocation9 + $0x748] sm:$0xff]  ;;  %v1501_v27 = vmax.f32 %v1353_v44, 0.0  ;;  %v17302_v48 = vld [vmem:[#allocation9 + $0x760] sm:$0xff] }
 0x299   :  { %3303 = vmatprep.mubr.bf16.mxu1 %v17259_v33  ;;  %3689 = vmatprep.mubr.bf16.mxu0 %v17259_v33  ;;  %v1359_v41 = vadd.f32 %v1358_v4, %v16869_v17  ;;  %v1166_v5 = vadd.f32 %v1165_v38, %v16872_v18  ;;  %v20032_v28 = vcombine.low %v17195_v30, %v17197_v20  ;;  %v17298_v10 = vld [vmem:[#allocation9 + $0x768] sm:$0xff]  ;;  %v1499_v4 = vmax.f32 %v1160_v12, 0.0  ;;  %v17300_v38 = vld [vmem:[#allocation9 + $0x740] sm:$0xff] }
 0x29a   :  { %3304 = vmatmul.mubr.bf16.gmra.mrb[116].mxu1 %v17251_v49  ;;  %3690 = vmatmul.mubr.bf16.gmra.mrb[116].mxu0 %v17251_v49  ;;  %v12348_v62 = vcombine.high %v17266_v11, %v17268_v47  ;;  %v1505_v32 = vmax.f32 %v1357_v59, 0.0  ;;  %v1503_v49 = vmax.f32 %v1164_v36, 0.0  ;;  %v1502_v26 = vmax.f32 %v1355_v25, 0.0 }
 0x29b   :  { %3821 = vmatpush1.bf16.msra.mxu0 %v20031_v21  ;;  %3435 = vmatpush1.bf16.msra.mxu1 %v20032_v28  ;;  %v1506_v30 = vmax.f32 %v1359_v41, 0.0  ;;  %v1500_v20 = vmax.f32 %v1162_v55, 0.0  ;;  %v1504_v21 = vmax.f32 %v1166_v5, 0.0  ;;  %v12357_v47 = vcombine.low %v17296_v23, %v17298_v10 }
 0x29c   :  { %3822 = vmatprep.subr.bf16.mxu0 %v12342_v7  ;;  %3436 = vmatprep.subr.bf16.mxu1 %v12340_v43  ;;  %v17304_v28 = vpack.c.bf16 %v1505_v32, %v1501_v27  ;;  %v17306_v11 = vpack.c.bf16 %v1503_v49, %v1499_v4  ;;  %v12358_v44 = vcombine.high %v17296_v23, %v17298_v10  ;;  %v17312_v7 = vld [vmem:[#allocation9 + $0x788] sm:$0xff]  ;;  %v17329_v10 = vld [vmem:[#allocation9 + $0x780] sm:$0xff] }
 0x29d   :  { %v17314_v43 = vld [vmem:[#allocation9 + $0x7a8] sm:$0xff]  ;;  %v17316_v12 = vpack.c.bf16 %v1506_v30, %v1502_v26  ;;  %v1169_v25 = vpop.f32.mrb[60].mxu1  ;;  %v1362_v59 = vpop.f32.mrb[60].mxu0  ;;  %v17318_v55 = vpack.c.bf16 %v1504_v21, %v1500_v20  ;;  %v20035_v32 = vcombine.low %v17215_v52, %v17217_v45  ;;  %v12355_v49 = vcombine.low %v17300_v38, %v17302_v48  ;;  %v17331_v4 = vld [vmem:[#allocation9 + $0x7a0] sm:$0xff] }
 0x29e   :  { %20033 = vst [vmem:[#allocation35_spill] sm:$0xff] %v17306_v11  ;;  %v1363_v27 = vadd.f32 %v1362_v59, %v16866_v9  ;;  %v1171_v36 = vpop.f32.mrb[61].mxu1  ;;  %v1364_v41 = vpop.f32.mrb[61].mxu0  ;;  %v1170_v5 = vadd.f32 %v1169_v25, %v16863_v14  ;;  %v12356_v23 = vcombine.high %v17300_v38, %v17302_v48  ;;  %v12366_v20 = vcombine.high %v17312_v7, %v17314_v43 }
 0x29f   :  { %20034 = vst [vmem:[#allocation36_spill] sm:$0xff] %v17318_v55  ;;  %3823 = vmatpush1.bf16.msra.mxu0 %v20035_v32  ;;  %3437 = vmatpush1.bf16.msra.mxu1 %v12339_v16  ;;  %v1365_v52 = vadd.f32 %v1364_v41, %v16869_v17  ;;  %v1173_v45 = vpop.f32.mrb[62].mxu1  ;;  %v1366_v16 = vpop.f32.mrb[62].mxu0  ;;  %v1172_v26 = vadd.f32 %v1171_v36, %v16872_v18  ;;  %v17352_v36 = vld [vmem:[#allocation9 + $0x7c8] sm:$0xff] }
 0x2a0   :  { %3824 = vmatprep.subr.bf16.mxu0 %v12350_v6  ;;  %3438 = vmatprep.subr.bf16.mxu1 %v12348_v62  ;;  %v12365_v6 = vcombine.low %v17312_v7, %v17314_v43  ;;  %v1367_v62 = vadd.f32 %v1366_v16, %v16866_v9  ;;  %v1175_v38 = vpop.f32.mrb[63].mxu1  ;;  %v1368_v48 = vpop.f32.mrb[63].mxu0  ;;  %v1174_v30 = vadd.f32 %v1173_v45, %v16863_v14  ;;  %v17354_v41 = vld [vmem:[#allocation9 + $0x7e8] sm:$0xff]  ;;  %v1509_v45 = vmax.f32 %v1363_v27, 0.0 }
 0x2a1   :  { %3313 = vmatprep.mubr.bf16.mxu1 %v17318_v55  ;;  %3699 = vmatprep.mubr.bf16.mxu0 %v17318_v55  ;;  %v1369_v21 = vadd.f32 %v1368_v48, %v16869_v17  ;;  %v1176_v25 = vadd.f32 %v1175_v38, %v16872_v18  ;;  %v20036_v59 = vcombine.low %v17245_v42, %v17247_v34  ;;  %v1510_v43 = vmax.f32 %v1365_v52, 0.0  ;;  %v1891_v42 = vld [vmem:[#allocation9 + $0x7c0] sm:$0xff] }
 0x2a2   :  { %3314 = vmatmul.mubr.bf16.gmra.mrb[120].mxu1 %v17306_v11  ;;  %3700 = vmatmul.mubr.bf16.gmra.mrb[120].mxu0 %v17306_v11  ;;  %v12364_v32 = vcombine.high %v17329_v10, %v17331_v4  ;;  %v1513_v16 = vmax.f32 %v1367_v62, 0.0  ;;  %v1507_v11 = vmax.f32 %v1170_v5, 0.0  ;;  %v1511_v7 = vmax.f32 %v1174_v30, 0.0  ;;  %v1895_v34 = vld [vmem:[#allocation9 + $0x7e0] sm:$0xff] }
 0x2a3   :  { %3825 = vmatpush1.bf16.msra.mxu0 %v20036_v59  ;;  %3439 = vmatpush1.bf16.msra.mxu1 %v12347_v31  ;;  %v1514_v38 = vmax.f32 %v1369_v21, 0.0  ;;  %v1508_v48 = vmax.f32 %v1172_v26, 0.0  ;;  %v1512_v55 = vmax.f32 %v1176_v25, 0.0  ;;  %v12363_v33 = vcombine.low %v17329_v10, %v17331_v4 }
 0x2a4   :  { %3826 = vmatprep.subr.bf16.mxu0 %v12358_v44  ;;  %3440 = vmatprep.subr.bf16.mxu1 %v12356_v23  ;;  %v17356_v31 = vpack.c.bf16 %v1513_v16, %v1509_v45  ;;  %v17358_v59 = vpack.c.bf16 %v1511_v7, %v1507_v11  ;;  %v12373_v27 = vcombine.low %v17352_v36, %v17354_v41 }
 0x2a5   :  { %v17364_v5 = vpack.c.bf16 %v1514_v38, %v1510_v43  ;;  %v1179_v44 = vpop.f32.mrb[64].mxu1  ;;  %v1372_v23 = vpop.f32.mrb[64].mxu0  ;;  %v17366_v52 = vpack.c.bf16 %v1512_v55, %v1508_v48  ;;  %v12374_v26 = vcombine.high %v17352_v36, %v17354_v41  ;;  %v12372_v4 = vcombine.high %v1891_v42, %v1895_v34 }
 0x2a6   :  { %20037 = vst [vmem:[#allocation37_spill] sm:$0xff] %v17358_v59  ;;  %v1373_v11 = vadd.f32 %v1372_v23, %v16866_v9  ;;  %v1181_v62 = vpop.f32.mrb[65].mxu1  ;;  %v1374_v30 = vpop.f32.mrb[65].mxu0  ;;  %v1180_v10 = vadd.f32 %v1179_v44, %v16863_v14  ;;  %v12371_v55 = vcombine.low %v1891_v42, %v1895_v34  ;;  %v12128_v43 = vcombine.high %v16975_v0, %v16977_v8 }
 0x2a7   :  { %20038 = vst [vmem:[#allocation38_spill] sm:$0xff] %v17366_v52  ;;  %3827 = vmatpush1.bf16.msra.mxu0 %v12357_v47  ;;  %3441 = vmatpush1.bf16.msra.mxu1 %v12355_v49  ;;  %v1375_v21 = vadd.f32 %v1374_v30, %v16869_v17  ;;  %v1183_v25 = vpop.f32.mrb[66].mxu1  ;;  %v1376_v45 = vpop.f32.mrb[66].mxu0  ;;  %v1182_v47 = vadd.f32 %v1181_v62, %v16872_v18 }
 0x2a8   :  { %3828 = vmatprep.subr.bf16.mxu0 %v12366_v20  ;;  %3442 = vmatprep.subr.bf16.mxu1 %v12364_v32  ;;  %v1377_v49 = vadd.f32 %v1376_v45, %v16866_v9  ;;  %v1185_v36 = vpop.f32.mrb[67].mxu1  ;;  %v1378_v41 = vpop.f32.mrb[67].mxu0  ;;  %v1184_v20 = vadd.f32 %v1183_v25, %v16863_v14  ;;  %v12130_v32 = vcombine.high %v16904_v57, %v16906_v58  ;;  %v1517_v38 = vmax.f32 %v1373_v11, 0.0 }
 0x2a9   :  { %3323 = vmatprep.mubr.bf16.mxu1 %v17366_v52  ;;  %3709 = vmatprep.mubr.bf16.mxu0 %v17366_v52  ;;  %v1379_v16 = vadd.f32 %v1378_v41, %v16869_v17  ;;  %v1186_v7 = vadd.f32 %v1185_v36, %v16872_v18  ;;  %v1515_v42 = vmax.f32 %v1180_v10, 0.0  ;;  %v1518_v44 = vmax.f32 %v1375_v21, 0.0 }
 0x2aa   :  { %3324 = vmatmul.mubr.bf16.gmra.mrb[124].mxu1 %v17358_v59  ;;  %3710 = vmatmul.mubr.bf16.gmra.mrb[124].mxu0 %v17358_v59  ;;  %v1521_v48 = vmax.f32 %v1377_v49, 0.0  ;;  %v1519_v34 = vmax.f32 %v1184_v20, 0.0  ;;  %v1516_v62 = vmax.f32 %v1182_v47, 0.0 }
 0x2ab   :  { %3829 = vmatpush1.bf16.msra.mxu0 %v12365_v6  ;;  %3443 = vmatpush1.bf16.msra.mxu1 %v12363_v33  ;;  %v1522_v23 = vmax.f32 %v1379_v16, 0.0  ;;  %v1520_v30 = vmax.f32 %v1186_v7, 0.0 }
 0x2ac   :  { %3830 = vmatprep.subr.bf16.mxu0 %v12374_v26  ;;  %3444 = vmatprep.subr.bf16.mxu1 %v12372_v4  ;;  %v17386_v25 = vpack.c.bf16 %v1521_v48, %v1517_v38  ;;  %v17388_v45 = vpack.c.bf16 %v1519_v34, %v1515_v42 }
 0x2ad   :  { %v17390_v36 = vpack.c.bf16 %v1522_v23, %v1518_v44  ;;  %v1189_v33 = vpop.f32.mrb[68].mxu1  ;;  %v1382_v6 = vpop.f32.mrb[68].mxu0  ;;  %v17392_v41 = vpack.c.bf16 %v1520_v30, %v1516_v62 }
 0x2ae   :  { %20039 = vst [vmem:[#allocation39_spill] sm:$0xff] %v17388_v45  ;;  %v1383_v11 = vadd.f32 %v1382_v6, %v16866_v9  ;;  %v1191_v26 = vpop.f32.mrb[69].mxu1  ;;  %v1384_v10 = vpop.f32.mrb[69].mxu0  ;;  %v1190_v4 = vadd.f32 %v1189_v33, %v16863_v14 }
 0x2af   :  { %20040 = vst [vmem:[#allocation40_spill] sm:$0xff] %v17392_v41  ;;  %3831 = vmatpush1.bf16.msra.mxu0 %v12373_v27  ;;  %3445 = vmatpush1.bf16.msra.mxu1 %v12371_v55  ;;  %v1385_v21 = vadd.f32 %v1384_v10, %v16869_v17  ;;  %v1193_v47 = vpop.f32.mrb[70].mxu1  ;;  %v1386_v49 = vpop.f32.mrb[70].mxu0  ;;  %v1192_v20 = vadd.f32 %v1191_v26, %v16872_v18 }
 0x2b0   :  { %4379 = vmatprep.subr.bf16.mxu0 %v12130_v32  ;;  %3993 = vmatprep.subr.bf16.mxu1 %v12128_v43  ;;  %v1387_v27 = vadd.f32 %v1386_v49, %v16866_v9  ;;  %v1195_v55 = vpop.f32.mrb[71].mxu1  ;;  %v1388_v16 = vpop.f32.mrb[71].mxu0  ;;  %v1194_v32 = vadd.f32 %v1193_v47, %v16863_v14  ;;  %v1525_v38 = vmax.f32 %v1383_v11, 0.0  ;;  %v1523_v42 = vmax.f32 %v1190_v4, 0.0 }
 0x2b1   :  { %3333 = vmatprep.mubr.bf16.mxu1 %v17392_v41  ;;  %3719 = vmatprep.mubr.bf16.mxu0 %v17392_v41  ;;  %v1389_v7 = vadd.f32 %v1388_v16, %v16869_v17  ;;  %v1196_v43 = vadd.f32 %v1195_v55, %v16872_v18  ;;  %v1526_v44 = vmax.f32 %v1385_v21, 0.0  ;;  %v1524_v62 = vmax.f32 %v1192_v20, 0.0 }
 0x2b2   :  { %3334 = vmatmul.mubr.bf16.gmra.mrb[128].mxu1 %v17388_v45  ;;  %3720 = vmatmul.mubr.bf16.gmra.mrb[128].mxu0 %v17388_v45  ;;  %v1529_v48 = vmax.f32 %v1387_v27, 0.0  ;;  %v1527_v34 = vmax.f32 %v1194_v32, 0.0 }
 0x2b3   :  { %v1530_v23 = vmax.f32 %v1389_v7, 0.0  ;;  %v1528_v30 = vmax.f32 %v1196_v43, 0.0 }
 0x2b4   :  { %v17406_v33 = vpack.c.bf16 %v1529_v48, %v1525_v38  ;;  %v17408_v6 = vpack.c.bf16 %v1527_v34, %v1523_v42 }
 0x2b5   :  { %v17410_v26 = vpack.c.bf16 %v1530_v23, %v1526_v44  ;;  %v1199_v10 = vpop.f32.mrb[72].mxu1  ;;  %v1392_v47 = vpop.f32.mrb[72].mxu0  ;;  %v17412_v49 = vpack.c.bf16 %v1528_v30, %v1524_v62 }
 0x2b6   :  { %20041 = vst [vmem:[#allocation41_spill] sm:$0xff] %v17408_v6  ;;  %v1393_v55 = vadd.f32 %v1392_v47, %v16866_v9  ;;  %v1201_v11 = vpop.f32.mrb[73].mxu1  ;;  %v1394_v27 = vpop.f32.mrb[73].mxu0  ;;  %v1200_v4 = vadd.f32 %v1199_v10, %v16863_v14 }
 0x2b7   :  { %20042 = vst [vmem:[#allocation42_spill] sm:$0xff] %v17412_v49  ;;  %v1395_v21 = vadd.f32 %v1394_v27, %v16869_v17  ;;  %v1203_v20 = vpop.f32.mrb[74].mxu1  ;;  %v1396_v16 = vpop.f32.mrb[74].mxu0  ;;  %3343 = vmatprep.mubr.bf16.mxu1 %v17412_v49  ;;  %3729 = vmatprep.mubr.bf16.mxu0 %v17412_v49  ;;  %v1202_v32 = vadd.f32 %v1201_v11, %v16872_v18 }
 0x2b8   :  { %v1397_v7 = vadd.f32 %v1396_v16, %v16866_v9  ;;  %v1205_v43 = vpop.f32.mrb[75].mxu1  ;;  %v1398_v38 = vpop.f32.mrb[75].mxu0  ;;  %v1204_v48 = vadd.f32 %v1203_v20, %v16863_v14  ;;  %v1533_v44 = vmax.f32 %v1393_v55, 0.0  ;;  %v1531_v62 = vmax.f32 %v1200_v4, 0.0 }
 0x2b9   :  { %v1399_v42 = vadd.f32 %v1398_v38, %v16869_v17  ;;  %v1206_v34 = vadd.f32 %v1205_v43, %v16872_v18  ;;  %v1534_v10 = vmax.f32 %v1395_v21, 0.0  ;;  %v1532_v11 = vmax.f32 %v1202_v32, 0.0 }
 0x2ba   :  { %3344 = vmatmul.mubr.bf16.gmra.mrb[132].mxu1 %v17408_v6  ;;  %3730 = vmatmul.mubr.bf16.gmra.mrb[132].mxu0 %v17408_v6  ;;  %v1537_v23 = vmax.f32 %v1397_v7, 0.0  ;;  %v1535_v30 = vmax.f32 %v1204_v48, 0.0 }
 0x2bb   :  { %v1538_v47 = vmax.f32 %v1399_v42, 0.0  ;;  %v1536_v27 = vmax.f32 %v1206_v34, 0.0 }
 0x2bc   :  { %v17426_v16 = vpack.c.bf16 %v1537_v23, %v1533_v44  ;;  %v17428_v49 = vpack.c.bf16 %v1535_v30, %v1531_v62 }
 0x2bd   :  { %v17430_v45 = vpack.c.bf16 %v1538_v47, %v1534_v10  ;;  %v1209_v6 = vpop.f32.mrb[76].mxu1  ;;  %v1402_v20 = vpop.f32.mrb[76].mxu0  ;;  %v17432_v41 = vpack.c.bf16 %v1536_v27, %v1532_v11 }
 0x2be   :  { %20043 = vst [vmem:[#allocation43_spill] sm:$0xff] %v17428_v49  ;;  %v1403_v43 = vadd.f32 %v1402_v20, %v16866_v9  ;;  %v1211_v55 = vpop.f32.mrb[77].mxu1  ;;  %v1404_v7 = vpop.f32.mrb[77].mxu0  ;;  %v1210_v4 = vadd.f32 %v1209_v6, %v16863_v14 }
 0x2bf   :  { %20044 = vst [vmem:[#allocation44_spill] sm:$0xff] %v17432_v41  ;;  %v1405_v21 = vadd.f32 %v1404_v7, %v16869_v17  ;;  %v1213_v32 = vpop.f32.mrb[78].mxu1  ;;  %v1406_v38 = vpop.f32.mrb[78].mxu0  ;;  %3353 = vmatprep.mubr.bf16.mxu1 %v17432_v41  ;;  %3739 = vmatprep.mubr.bf16.mxu0 %v17432_v41  ;;  %v1212_v48 = vadd.f32 %v1211_v55, %v16872_v18 }
 0x2c0   :  { %v1407_v42 = vadd.f32 %v1406_v38, %v16866_v9  ;;  %v1215_v34 = vpop.f32.mrb[79].mxu1  ;;  %v1408_v44 = vpop.f32.mrb[79].mxu0  ;;  %v1214_v6 = vadd.f32 %v1213_v32, %v16863_v14  ;;  %v1541_v30 = vmax.f32 %v1403_v43, 0.0  ;;  %v1539_v47 = vmax.f32 %v1210_v4, 0.0 }
 0x2c1   :  { %v1409_v23 = vadd.f32 %v1408_v44, %v16869_v17  ;;  %v1216_v62 = vadd.f32 %v1215_v34, %v16872_v18  ;;  %v1542_v27 = vmax.f32 %v1405_v21, 0.0  ;;  %v1540_v55 = vmax.f32 %v1212_v48, 0.0 }
 0x2c2   :  { %3354 = vmatmul.mubr.bf16.gmra.mrb[136].mxu1 %v17428_v49  ;;  %3740 = vmatmul.mubr.bf16.gmra.mrb[136].mxu0 %v17428_v49  ;;  %v1545_v10 = vmax.f32 %v1407_v42, 0.0  ;;  %v1543_v11 = vmax.f32 %v1214_v6, 0.0 }
 0x2c3   :  { %v1546_v20 = vmax.f32 %v1409_v23, 0.0  ;;  %v1544_v7 = vmax.f32 %v1216_v62, 0.0 }
 0x2c4   :  { %v17446_v38 = vpack.c.bf16 %v1545_v10, %v1541_v30  ;;  %v17448_v41 = vpack.c.bf16 %v1543_v11, %v1539_v47 }
 0x2c5   :  { %v17450_v59 = vpack.c.bf16 %v1546_v20, %v1542_v27  ;;  %v1219_v49 = vpop.f32.mrb[80].mxu1  ;;  %v1412_v32 = vpop.f32.mrb[80].mxu0  ;;  %v17452_v52 = vpack.c.bf16 %v1544_v7, %v1540_v55 }
 0x2c6   :  { %20045 = vst [vmem:[#allocation45_spill] sm:$0xff] %v17448_v41  ;;  %v1413_v34 = vadd.f32 %v1412_v32, %v16866_v9  ;;  %v1221_v43 = vpop.f32.mrb[81].mxu1  ;;  %v1414_v42 = vpop.f32.mrb[81].mxu0  ;;  %v1220_v4 = vadd.f32 %v1219_v49, %v16863_v14 }
 0x2c7   :  { %20046 = vst [vmem:[#allocation46_spill] sm:$0xff] %v17452_v52  ;;  %v1415_v21 = vadd.f32 %v1414_v42, %v16869_v17  ;;  %v1223_v48 = vpop.f32.mrb[82].mxu1  ;;  %v1416_v44 = vpop.f32.mrb[82].mxu0  ;;  %3363 = vmatprep.mubr.bf16.mxu1 %v17452_v52  ;;  %3749 = vmatprep.mubr.bf16.mxu0 %v17452_v52  ;;  %v1222_v6 = vadd.f32 %v1221_v43, %v16872_v18 }
 0x2c8   :  { %v1417_v23 = vadd.f32 %v1416_v44, %v16866_v9  ;;  %v1225_v62 = vpop.f32.mrb[83].mxu1  ;;  %v1418_v30 = vpop.f32.mrb[83].mxu0  ;;  %v1224_v49 = vadd.f32 %v1223_v48, %v16863_v14  ;;  %v1549_v11 = vmax.f32 %v1413_v34, 0.0  ;;  %v1547_v20 = vmax.f32 %v1220_v4, 0.0 }
 0x2c9   :  { %v1419_v10 = vadd.f32 %v1418_v30, %v16869_v17  ;;  %v1226_v47 = vadd.f32 %v1225_v62, %v16872_v18  ;;  %v1550_v7 = vmax.f32 %v1415_v21, 0.0  ;;  %v1548_v43 = vmax.f32 %v1222_v6, 0.0 }
 0x2ca   :  { %3364 = vmatmul.mubr.bf16.gmra.mrb[140].mxu1 %v17448_v41  ;;  %3750 = vmatmul.mubr.bf16.gmra.mrb[140].mxu0 %v17448_v41  ;;  %v1553_v27 = vmax.f32 %v1417_v23, 0.0  ;;  %v1551_v55 = vmax.f32 %v1224_v49, 0.0 }
 0x2cb   :  { %v1554_v32 = vmax.f32 %v1419_v10, 0.0  ;;  %v1552_v42 = vmax.f32 %v1226_v47, 0.0 }
 0x2cc   :  { %v17466_v44 = vpack.c.bf16 %v1553_v27, %v1549_v11  ;;  %v17468_v52 = vpack.c.bf16 %v1551_v55, %v1547_v20 }
 0x2cd   :  { %v17470_v13 = vpack.c.bf16 %v1554_v32, %v1550_v7  ;;  %v1229_v41 = vpop.f32.mrb[84].mxu1  ;;  %v1422_v48 = vpop.f32.mrb[84].mxu0  ;;  %v17472_v46 = vpack.c.bf16 %v1552_v42, %v1548_v43 }
 0x2ce   :  { %20047 = vst [vmem:[#allocation47_spill] sm:$0xff] %v17468_v52  ;;  %v1423_v62 = vadd.f32 %v1422_v48, %v16866_v9  ;;  %v1231_v34 = vpop.f32.mrb[85].mxu1  ;;  %v1424_v23 = vpop.f32.mrb[85].mxu0  ;;  %v1230_v4 = vadd.f32 %v1229_v41, %v16863_v14 }
 0x2cf   :  { %20048 = vst [vmem:[#allocation48_spill] sm:$0xff] %v17472_v46  ;;  %v1425_v21 = vadd.f32 %v1424_v23, %v16869_v17  ;;  %v1233_v6 = vpop.f32.mrb[86].mxu1  ;;  %v1426_v30 = vpop.f32.mrb[86].mxu0  ;;  %3373 = vmatprep.mubr.bf16.mxu1 %v17472_v46  ;;  %3759 = vmatprep.mubr.bf16.mxu0 %v17472_v46  ;;  %v1232_v49 = vadd.f32 %v1231_v34, %v16872_v18 }
 0x2d0   :  { %v1427_v10 = vadd.f32 %v1426_v30, %v16866_v9  ;;  %v1235_v47 = vpop.f32.mrb[87].mxu1  ;;  %v1428_v11 = vpop.f32.mrb[87].mxu0  ;;  %v1234_v41 = vadd.f32 %v1233_v6, %v16863_v14  ;;  %v1557_v55 = vmax.f32 %v1423_v62, 0.0  ;;  %v1555_v32 = vmax.f32 %v1230_v4, 0.0 }
 0x2d1   :  { %v1429_v27 = vadd.f32 %v1428_v11, %v16869_v17  ;;  %v1236_v20 = vadd.f32 %v1235_v47, %v16872_v18  ;;  %v1558_v42 = vmax.f32 %v1425_v21, 0.0  ;;  %v1556_v34 = vmax.f32 %v1232_v49, 0.0 }
 0x2d2   :  { %3374 = vmatmul.mubr.bf16.gmra.mrb[144].mxu1 %v17468_v52  ;;  %3760 = vmatmul.mubr.bf16.gmra.mrb[144].mxu0 %v17468_v52  ;;  %v1561_v7 = vmax.f32 %v1427_v10, 0.0  ;;  %v1559_v43 = vmax.f32 %v1234_v41, 0.0 }
 0x2d3   :  { %v1562_v48 = vmax.f32 %v1429_v27, 0.0  ;;  %v1560_v23 = vmax.f32 %v1236_v20, 0.0 }
 0x2d4   :  { %v17486_v30 = vpack.c.bf16 %v1561_v7, %v1557_v55  ;;  %v17488_v46 = vpack.c.bf16 %v1559_v43, %v1555_v32 }
 0x2d5   :  { %v17490_v37 = vpack.c.bf16 %v1562_v48, %v1558_v42  ;;  %v1239_v52 = vpop.f32.mrb[88].mxu1  ;;  %v1432_v6 = vpop.f32.mrb[88].mxu0  ;;  %v17492_v56 = vpack.c.bf16 %v1560_v23, %v1556_v34 }
 0x2d6   :  { %20049 = vst [vmem:[#allocation49_spill] sm:$0xff] %v17488_v46  ;;  %v1433_v47 = vadd.f32 %v1432_v6, %v16866_v9  ;;  %v1241_v62 = vpop.f32.mrb[89].mxu1  ;;  %v1434_v10 = vpop.f32.mrb[89].mxu0  ;;  %v1240_v4 = vadd.f32 %v1239_v52, %v16863_v14 }
 0x2d7   :  { %20050 = vst [vmem:[#allocation50_spill] sm:$0xff] %v17492_v56  ;;  %v1435_v21 = vadd.f32 %v1434_v10, %v16869_v17  ;;  %v1243_v49 = vpop.f32.mrb[90].mxu1  ;;  %v1436_v11 = vpop.f32.mrb[90].mxu0  ;;  %3383 = vmatprep.mubr.bf16.mxu1 %v17492_v56  ;;  %3769 = vmatprep.mubr.bf16.mxu0 %v17492_v56  ;;  %v1242_v41 = vadd.f32 %v1241_v62, %v16872_v18 }
 0x2d8   :  { %v1437_v27 = vadd.f32 %v1436_v11, %v16866_v9  ;;  %v1245_v20 = vpop.f32.mrb[91].mxu1  ;;  %v1438_v55 = vpop.f32.mrb[91].mxu0  ;;  %v1244_v52 = vadd.f32 %v1243_v49, %v16863_v14  ;;  %v1565_v43 = vmax.f32 %v1433_v47, 0.0  ;;  %v1563_v48 = vmax.f32 %v1240_v4, 0.0 }
 0x2d9   :  { %v1439_v7 = vadd.f32 %v1438_v55, %v16869_v17  ;;  %v1246_v32 = vadd.f32 %v1245_v20, %v16872_v18  ;;  %v1566_v23 = vmax.f32 %v1435_v21, 0.0  ;;  %v1564_v62 = vmax.f32 %v1242_v41, 0.0 }
 0x2da   :  { %3384 = vmatmul.mubr.bf16.gmra.mrb[148].mxu1 %v17488_v46  ;;  %3770 = vmatmul.mubr.bf16.gmra.mrb[148].mxu0 %v17488_v46  ;;  %v1569_v42 = vmax.f32 %v1437_v27, 0.0  ;;  %v1567_v34 = vmax.f32 %v1244_v52, 0.0 }
 0x2db   :  { %v1570_v6 = vmax.f32 %v1439_v7, 0.0  ;;  %v1568_v10 = vmax.f32 %v1246_v32, 0.0 }
 0x2dc   :  { %v17506_v11 = vpack.c.bf16 %v1569_v42, %v1565_v43  ;;  %v17508_v56 = vpack.c.bf16 %v1567_v34, %v1563_v48 }
 0x2dd   :  { %v17510_v19 = vpack.c.bf16 %v1570_v6, %v1566_v23  ;;  %v1249_v46 = vpop.f32.mrb[92].mxu1  ;;  %v1442_v49 = vpop.f32.mrb[92].mxu0  ;;  %v17512_v51 = vpack.c.bf16 %v1568_v10, %v1564_v62 }
 0x2de   :  { %20051 = vst [vmem:[#allocation51_spill] sm:$0xff] %v17508_v56  ;;  %v1443_v20 = vadd.f32 %v1442_v49, %v16866_v9  ;;  %v1251_v47 = vpop.f32.mrb[93].mxu1  ;;  %v1444_v27 = vpop.f32.mrb[93].mxu0  ;;  %v1250_v4 = vadd.f32 %v1249_v46, %v16863_v14 }
 0x2df   :  { %20052 = vst [vmem:[#allocation52_spill] sm:$0xff] %v17512_v51  ;;  %v1445_v21 = vadd.f32 %v1444_v27, %v16869_v17  ;;  %v1253_v41 = vpop.f32.mrb[94].mxu1  ;;  %v1446_v55 = vpop.f32.mrb[94].mxu0  ;;  %3393 = vmatprep.mubr.bf16.mxu1 %v17512_v51  ;;  %3779 = vmatprep.mubr.bf16.mxu0 %v17512_v51  ;;  %v1252_v52 = vadd.f32 %v1251_v47, %v16872_v18 }
 0x2e0   :  { %v1447_v7 = vadd.f32 %v1446_v55, %v16866_v9  ;;  %v1255_v32 = vpop.f32.mrb[95].mxu1  ;;  %v1448_v43 = vpop.f32.mrb[95].mxu0  ;;  %v1254_v46 = vadd.f32 %v1253_v41, %v16863_v14  ;;  %v1573_v34 = vmax.f32 %v1443_v20, 0.0  ;;  %v1571_v6 = vmax.f32 %v1250_v4, 0.0  ;;  %v17540_v14 = vld [vmem:[#allocation9 + $0x418] sm:$0xff]  ;;  %v1657_v41 = vld [vmem:[#allocation9 + $0x70] sm:$0xff] }
 0x2e1   :  { %v1449_v42 = vadd.f32 %v1448_v43, %v16869_v17  ;;  %v1256_v48 = vadd.f32 %v1255_v32, %v16872_v18  ;;  %v1574_v10 = vmax.f32 %v1445_v21, 0.0  ;;  %v1572_v47 = vmax.f32 %v1252_v52, 0.0  ;;  %v17542_v17 = vld [vmem:[#allocation9 + $0x438] sm:$0xff]  ;;  %v1653_v21 = vld [vmem:[#allocation9 + $0x50] sm:$0xff] }
 0x2e2   :  { %3394 = vmatmul.mubr.bf16.gmra.mrb[152].mxu1 %v17508_v56  ;;  %3780 = vmatmul.mubr.bf16.gmra.mrb[152].mxu0 %v17508_v56  ;;  %v1577_v23 = vmax.f32 %v1447_v7, 0.0  ;;  %v1575_v62 = vmax.f32 %v1254_v46, 0.0  ;;  %v1654_v20 = vld [vmem:[#allocation9 + $0x58] sm:$0xff]  ;;  %v12136_v7 = vcombine.high %v1653_v21, %v1657_v41  ;;  %v1661_v46 = vld [vmem:[#allocation9 + $0x90] sm:$0xff] }
 0x2e3   :  { %v1578_v49 = vmax.f32 %v1449_v42, 0.0  ;;  %v1576_v9 = vmax.f32 %v1256_v48, 0.0  ;;  %v1658_v4 = vld [vmem:[#allocation9 + $0x78] sm:$0xff]  ;;  %v1665_v42 = vld [vmem:[#allocation9 + $0xb0] sm:$0xff]  ;;  %v20053_v48 = vcombine.low %v16904_v57, %v16906_v58 }
 0x2e4   :  { %v17526_v27 = vpack.c.bf16 %v1577_v23, %v1573_v34  ;;  %v17528_v55 = vpack.c.bf16 %v1575_v62, %v1571_v6  ;;  %v12138_v52 = vcombine.high %v1654_v20, %v1658_v4  ;;  %v1662_v32 = vld [vmem:[#allocation9 + $0x98] sm:$0xff]  ;;  %v12137_v34 = vcombine.low %v1654_v20, %v1658_v4  ;;  %v17552_v23 = vld [vmem:[#allocation9 + $0x410] sm:$0xff] }
 0x2e5   :  { %v17530_v51 = vpack.c.bf16 %v1578_v49, %v1574_v10  ;;  %v17532_v56 = vpack.c.bf16 %v1576_v9, %v1572_v47  ;;  %v1666_v43 = vld [vmem:[#allocation9 + $0xb8] sm:$0xff]  ;;  %v17554_v6 = vld [vmem:[#allocation9 + $0x430] sm:$0xff]  ;;  %v20054_v62 = vcombine.low %v16975_v0, %v16977_v8  ;;  %v12135_v10 = vcombine.low %v1653_v21, %v1657_v41 }
 0x2e6   :  { %v12146_v49 = vcombine.high %v1662_v32, %v1666_v43  ;;  %v12144_v57 = vcombine.high %v1661_v46, %v1665_v42  ;;  %v1670_v58 = vld [vmem:[#allocation9 + $0xd8] sm:$0xff]  ;;  %v1669_v20 = vld [vmem:[#allocation9 + $0xd0] sm:$0xff]  ;;  %v12143_v18 = vcombine.low %v1661_v46, %v1665_v42 }
 0x2e7   :  { %3403 = vmatprep.mubr.bf16.mxu1 %v17532_v56  ;;  %3789 = vmatprep.mubr.bf16.mxu0 %v17532_v56  ;;  %v1674_v9 = vld [vmem:[#allocation9 + $0xf8] sm:$0xff]  ;;  %v1673_v4 = vld [vmem:[#allocation9 + $0xf0] sm:$0xff] }
 0x2e8   :  { %v12154_v0 = vcombine.high %v1670_v58, %v1674_v9  ;;  %v12152_v8 = vcombine.high %v1669_v20, %v1673_v4  ;;  %v1678_v21 = vld [vmem:[#allocation9 + $0x118] sm:$0xff] }
 0x2e9   :  { %v1682_v41 = vld [vmem:[#allocation9 + $0x138] sm:$0xff] }
 0x2ea   :  { %3404 = vmatmul.mubr.bf16.gmra.mrb[156].mxu1 %v17528_v55  ;;  %3790 = vmatmul.mubr.bf16.gmra.mrb[156].mxu0 %v17528_v55  ;;  %v12162_v46 = vcombine.high %v1678_v21, %v1682_v41 }
 0x2eb   :  { %3446 = vmatprep.mubr.bf16.mxu1 %v16928_v22  ;;  %3832 = vmatprep.mubr.bf16.mxu0 %v16928_v22 }
 0x2f2   :  { %3447 = vmatmul.mubr.bf16.vlgmr.msra.gmra.mrb[96].mxu1 %v16916_v60  ;;  %3833 = vmatmul.mubr.bf16.vlgmr.msra.gmra.mrb[96].mxu0 %v16916_v60 }
 0x2f3   :  { %4380 = vmatpush1.bf16.msra.mxu0 %v20053_v48  ;;  %3456 = vmatprep.mubr.bf16.mxu1 %v16993_v2  ;;  %v12145_v48 = vcombine.low %v1662_v32, %v1666_v43  ;;  %v12153_v32 = vcombine.low %v1670_v58, %v1674_v9  ;;  %v12151_v43 = vcombine.low %v1669_v20, %v1673_v4  ;;  %v1693_v58 = vld [vmem:[#allocation9 + $0x190] sm:$0xff] }
 0x2f4   :  { %3842 = vmatprep.mubr.bf16.mxu0 %v16993_v2  ;;  %3994 = vmatpush1.bf16.msra.mxu1 %v20054_v62  ;;  %v1690_v62 = vld [vmem:[#allocation9 + $0x178] sm:$0xff]  ;;  %v1697_v9 = vld [vmem:[#allocation9 + $0x1b0] sm:$0xff] }
 0x2f5   :  { %4381 = vmatprep.subr.bf16.mxu0 %v12138_v52  ;;  %3995 = vmatprep.subr.bf16.mxu1 %v12136_v7  ;;  %v1677_v52 = vld [vmem:[#allocation9 + $0x110] sm:$0xff] }
 0x2f6   :  { %v1681_v7 = vld [vmem:[#allocation9 + $0x130] sm:$0xff] }
 0x2f7   :  { %4382 = vmatpush1.bf16.msra.mxu0 %v12137_v34  ;;  %v12160_v42 = vcombine.high %v1677_v52, %v1681_v7  ;;  %v1686_v34 = vld [vmem:[#allocation9 + $0x158] sm:$0xff]  ;;  %v12159_v47 = vcombine.low %v1677_v52, %v1681_v7  ;;  %v1701_v52 = vld [vmem:[#allocation9 + $0x1d0] sm:$0xff] }
 0x2f8   :  { %3996 = vmatpush1.bf16.msra.mxu1 %v12135_v10  ;;  %4383 = vmatprep.subr.bf16.mxu0 %v12146_v49  ;;  %v1685_v10 = vld [vmem:[#allocation9 + $0x150] sm:$0xff]  ;;  %v12169_v20 = vcombine.low %v1686_v34, %v1690_v62 }
 0x2f9   :  { %3997 = vmatprep.subr.bf16.mxu1 %v12144_v57  ;;  %v1689_v49 = vld [vmem:[#allocation9 + $0x170] sm:$0xff]  ;;  %v12161_v57 = vcombine.low %v1678_v21, %v1682_v41  ;;  %v1702_v21 = vld [vmem:[#allocation9 + $0x1d8] sm:$0xff] }
 0x2fa   :  { %3457 = vmatmul.mubr.bf16.gmra.mrb[100].mxu1 %v16985_v61  ;;  %3843 = vmatmul.mubr.bf16.gmra.mrb[100].mxu0 %v16985_v61  ;;  %v12170_v61 = vcombine.high %v1686_v34, %v1690_v62  ;;  %v12167_v4 = vcombine.low %v1685_v10, %v1689_v49  ;;  %v1706_v41 = vld [vmem:[#allocation9 + $0x1f8] sm:$0xff]  ;;  %v1705_v7 = vld [vmem:[#allocation9 + $0x1f0] sm:$0xff] }
 0x2fb   :  { %3466 = vmatprep.mubr.bf16.mxu1 %v17067_v54  ;;  %3852 = vmatprep.mubr.bf16.mxu0 %v17067_v54  ;;  %v12168_v54 = vcombine.high %v1685_v10, %v1689_v49  ;;  %v12185_v34 = vcombine.low %v1702_v21, %v1706_v41  ;;  %v12183_v62 = vcombine.low %v1701_v52, %v1705_v7 }
 0x2fc   :  { %4384 = vmatpush1.bf16.msra.mxu0 %v12145_v48  ;;  %3998 = vmatpush1.bf16.msra.mxu1 %v12143_v18  ;;  %v1694_v48 = vld [vmem:[#allocation9 + $0x198] sm:$0xff] }
 0x2fd   :  { %4385 = vmatprep.subr.bf16.mxu0 %v12154_v0  ;;  %3999 = vmatprep.subr.bf16.mxu1 %v12152_v8  ;;  %v1698_v18 = vld [vmem:[#allocation9 + $0x1b8] sm:$0xff]  ;;  %v12176_v8 = vcombine.high %v1693_v58, %v1697_v9 }
 0x2fe   :  { %v12178_v0 = vcombine.high %v1694_v48, %v1698_v18 }
 0x300   :  { %4386 = vmatpush1.bf16.msra.mxu0 %v12153_v32  ;;  %4000 = vmatpush1.bf16.msra.mxu1 %v12151_v43  ;;  %v12177_v32 = vcombine.low %v1694_v48, %v1698_v18  ;;  %v12175_v43 = vcombine.low %v1693_v58, %v1697_v9  ;;  %v1718_v48 = vld [vmem:[#allocation9 + $0x258] sm:$0xff]  ;;  %v1717_v58 = vld [vmem:[#allocation9 + $0x250] sm:$0xff] }
 0x301   :  { %4387 = vmatprep.subr.bf16.mxu0 %v12162_v46  ;;  %4001 = vmatprep.subr.bf16.mxu1 %v12160_v42  ;;  %v12186_v46 = vcombine.high %v1702_v21, %v1706_v41  ;;  %v12184_v42 = vcombine.high %v1701_v52, %v1705_v7  ;;  %v1722_v18 = vld [vmem:[#allocation9 + $0x278] sm:$0xff]  ;;  %v1721_v9 = vld [vmem:[#allocation9 + $0x270] sm:$0xff] }
 0x302   :  { %3467 = vmatmul.mubr.bf16.gmra.mrb[104].mxu1 %v17055_v29  ;;  %3853 = vmatmul.mubr.bf16.gmra.mrb[104].mxu0 %v17055_v29  ;;  %v1730_v21 = vld [vmem:[#allocation9 + $0x2b8] sm:$0xff]  ;;  %v1725_v41 = vld [vmem:[#allocation9 + $0x290] sm:$0xff]  ;;  %v12201_v7 = vcombine.low %v1718_v48, %v1722_v18 }
 0x303   :  { %3476 = vmatprep.mubr.bf16.mxu1 %v17131_v53  ;;  %3862 = vmatprep.mubr.bf16.mxu0 %v17131_v53  ;;  %v1729_v52 = vld [vmem:[#allocation9 + $0x2b0] sm:$0xff] }
 0x304   :  { %4388 = vmatpush1.bf16.msra.mxu0 %v12161_v57  ;;  %4002 = vmatpush1.bf16.msra.mxu1 %v12159_v47  ;;  %v1710_v57 = vld [vmem:[#allocation9 + $0x218] sm:$0xff]  ;;  %v1713_v47 = vld [vmem:[#allocation9 + $0x230] sm:$0xff] }
 0x305   :  { %4389 = vmatprep.subr.bf16.mxu0 %v12170_v61  ;;  %4003 = vmatprep.subr.bf16.mxu1 %v12168_v54  ;;  %v1714_v61 = vld [vmem:[#allocation9 + $0x238] sm:$0xff]  ;;  %v1709_v54 = vld [vmem:[#allocation9 + $0x210] sm:$0xff] }
 0x306   :  { %v12194_v10 = vcombine.high %v1710_v57, %v1714_v61  ;;  %v12192_v49 = vcombine.high %v1709_v54, %v1713_v47 }
 0x308   :  { %4390 = vmatpush1.bf16.msra.mxu0 %v12169_v20  ;;  %4004 = vmatpush1.bf16.msra.mxu1 %v12167_v4  ;;  %v12193_v20 = vcombine.low %v1710_v57, %v1714_v61  ;;  %v12191_v4 = vcombine.low %v1709_v54, %v1713_v47  ;;  %v1734_v57 = vld [vmem:[#allocation9 + $0x2d8] sm:$0xff]  ;;  %v1733_v54 = vld [vmem:[#allocation9 + $0x2d0] sm:$0xff] }
 0x309   :  { %4391 = vmatprep.subr.bf16.mxu0 %v12178_v0  ;;  %4005 = vmatprep.subr.bf16.mxu1 %v12176_v8  ;;  %v12202_v0 = vcombine.high %v1718_v48, %v1722_v18  ;;  %v12200_v8 = vcombine.high %v1717_v58, %v1721_v9  ;;  %v1738_v61 = vld [vmem:[#allocation9 + $0x2f8] sm:$0xff]  ;;  %v1737_v47 = vld [vmem:[#allocation9 + $0x2f0] sm:$0xff] }
 0x30a   :  { %3477 = vmatmul.mubr.bf16.gmra.mrb[108].mxu1 %v17123_v63  ;;  %3863 = vmatmul.mubr.bf16.gmra.mrb[108].mxu0 %v17123_v63  ;;  %v1746_v48 = vld [vmem:[#allocation9 + $0x338] sm:$0xff]  ;;  %v1741_v18 = vld [vmem:[#allocation9 + $0x310] sm:$0xff] }
 0x30b   :  { %3486 = vmatprep.mubr.bf16.mxu1 %v17199_v39  ;;  %3872 = vmatprep.mubr.bf16.mxu0 %v17199_v39 }
 0x30c   :  { %4392 = vmatpush1.bf16.msra.mxu0 %v12177_v32  ;;  %4006 = vmatpush1.bf16.msra.mxu1 %v12175_v43  ;;  %v1726_v32 = vld [vmem:[#allocation9 + $0x298] sm:$0xff]  ;;  %v12199_v43 = vcombine.low %v1717_v58, %v1721_v9  ;;  %v1745_v58 = vld [vmem:[#allocation9 + $0x330] sm:$0xff]  ;;  %v12217_v9 = vcombine.low %v1734_v57, %v1738_v61 }
 0x30d   :  { %4393 = vmatprep.subr.bf16.mxu0 %v12186_v46  ;;  %4007 = vmatprep.subr.bf16.mxu1 %v12184_v42  ;;  %v12210_v46 = vcombine.high %v1726_v32, %v1730_v21  ;;  %v12208_v42 = vcombine.high %v1725_v41, %v1729_v52 }
 0x310   :  { %4394 = vmatpush1.bf16.msra.mxu0 %v12185_v34  ;;  %4008 = vmatpush1.bf16.msra.mxu1 %v12183_v62  ;;  %v12209_v34 = vcombine.low %v1726_v32, %v1730_v21  ;;  %v12207_v62 = vcombine.low %v1725_v41, %v1729_v52  ;;  %v1750_v32 = vld [vmem:[#allocation9 + $0x358] sm:$0xff]  ;;  %v1749_v41 = vld [vmem:[#allocation9 + $0x350] sm:$0xff] }
 0x311   :  { %4395 = vmatprep.subr.bf16.mxu0 %v12194_v10  ;;  %4009 = vmatprep.subr.bf16.mxu1 %v12192_v49  ;;  %v12218_v10 = vcombine.high %v1734_v57, %v1738_v61  ;;  %v12216_v49 = vcombine.high %v1733_v54, %v1737_v47  ;;  %v1754_v21 = vld [vmem:[#allocation9 + $0x378] sm:$0xff]  ;;  %v1753_v52 = vld [vmem:[#allocation9 + $0x370] sm:$0xff] }
 0x312   :  { %3487 = vmatmul.mubr.bf16.gmra.mrb[112].mxu1 %v17187_v40  ;;  %3873 = vmatmul.mubr.bf16.gmra.mrb[112].mxu0 %v17187_v40  ;;  %v1762_v57 = vld [vmem:[#allocation9 + $0x3b8] sm:$0xff]  ;;  %v1757_v61 = vld [vmem:[#allocation9 + $0x390] sm:$0xff] }
 0x313   :  { %3496 = vmatprep.mubr.bf16.mxu1 %v17257_v1  ;;  %3882 = vmatprep.mubr.bf16.mxu0 %v17257_v1 }
 0x314   :  { %4396 = vmatpush1.bf16.msra.mxu0 %v12193_v20  ;;  %4010 = vmatpush1.bf16.msra.mxu1 %v12191_v4  ;;  %v1742_v20 = vld [vmem:[#allocation9 + $0x318] sm:$0xff]  ;;  %v12215_v4 = vcombine.low %v1733_v54, %v1737_v47  ;;  %v1761_v54 = vld [vmem:[#allocation9 + $0x3b0] sm:$0xff]  ;;  %v12233_v47 = vcombine.low %v1750_v32, %v1754_v21 }
 0x315   :  { %4397 = vmatprep.subr.bf16.mxu0 %v12202_v0  ;;  %4011 = vmatprep.subr.bf16.mxu1 %v12200_v8  ;;  %v12226_v0 = vcombine.high %v1742_v20, %v1746_v48  ;;  %v12224_v8 = vcombine.high %v1741_v18, %v1745_v58 }
 0x318   :  { %4398 = vmatpush1.bf16.msra.mxu0 %v12201_v7  ;;  %4012 = vmatpush1.bf16.msra.mxu1 %v12199_v43  ;;  %v12225_v7 = vcombine.low %v1742_v20, %v1746_v48  ;;  %v12223_v43 = vcombine.low %v1741_v18, %v1745_v58  ;;  %v1766_v20 = vld [vmem:[#allocation9 + $0x3d8] sm:$0xff]  ;;  %v1765_v18 = vld [vmem:[#allocation9 + $0x3d0] sm:$0xff] }
 0x319   :  { %4399 = vmatprep.subr.bf16.mxu0 %v12210_v46  ;;  %4013 = vmatprep.subr.bf16.mxu1 %v12208_v42  ;;  %v12234_v46 = vcombine.high %v1750_v32, %v1754_v21  ;;  %v12232_v42 = vcombine.high %v1749_v41, %v1753_v52  ;;  %v1770_v48 = vld [vmem:[#allocation9 + $0x3f8] sm:$0xff]  ;;  %v1769_v58 = vld [vmem:[#allocation9 + $0x3f0] sm:$0xff] }
 0x31a   :  { %3497 = vmatmul.mubr.bf16.gmra.mrb[116].mxu1 %v17249_v35  ;;  %3883 = vmatmul.mubr.bf16.gmra.mrb[116].mxu0 %v17249_v35  ;;  %v12249_v32 = vcombine.low %v1766_v20, %v1770_v48  ;;  %v12247_v21 = vcombine.low %v1765_v18, %v1769_v58 }
 0x31b   :  { %3506 = vmatprep.mubr.bf16.mxu1 %v17316_v12  ;;  %3892 = vmatprep.mubr.bf16.mxu0 %v17316_v12 }
 0x31c   :  { %4400 = vmatpush1.bf16.msra.mxu0 %v12209_v34  ;;  %4014 = vmatpush1.bf16.msra.mxu1 %v12207_v62  ;;  %v1758_v34 = vld [vmem:[#allocation9 + $0x398] sm:$0xff]  ;;  %v12231_v62 = vcombine.low %v1749_v41, %v1753_v52  ;;  %v12258_v41 = vcombine.high %v17540_v14, %v17542_v17  ;;  %v12256_v52 = vcombine.high %v17552_v23, %v17554_v6 }
 0x31d   :  { %4401 = vmatprep.subr.bf16.mxu0 %v12218_v10  ;;  %4015 = vmatprep.subr.bf16.mxu1 %v12216_v49  ;;  %v12242_v10 = vcombine.high %v1758_v34, %v1762_v57  ;;  %v12240_v49 = vcombine.high %v1757_v61, %v1761_v54 }
 0x320   :  { %4402 = vmatpush1.bf16.msra.mxu0 %v12217_v9  ;;  %4016 = vmatpush1.bf16.msra.mxu1 %v12215_v4  ;;  %v12241_v9 = vcombine.low %v1758_v34, %v1762_v57  ;;  %v12239_v4 = vcombine.low %v1757_v61, %v1761_v54  ;;  %v1790_v61 = vld [vmem:[#allocation9 + $0x498] sm:$0xff] }
 0x321   :  { %4403 = vmatprep.subr.bf16.mxu0 %v12226_v0  ;;  %4017 = vmatprep.subr.bf16.mxu1 %v12224_v8  ;;  %v12250_v0 = vcombine.high %v1766_v20, %v1770_v48  ;;  %v12248_v8 = vcombine.high %v1765_v18, %v1769_v58  ;;  %v1794_v54 = vld [vmem:[#allocation9 + $0x4b8] sm:$0xff] }
 0x322   :  { %3507 = vmatmul.mubr.bf16.gmra.mrb[120].mxu1 %v17304_v28  ;;  %3893 = vmatmul.mubr.bf16.gmra.mrb[120].mxu0 %v17304_v28  ;;  %v12274_v48 = vcombine.high %v1790_v61, %v1794_v54  ;;  %v1798_v18 = vld [vmem:[#allocation9 + $0x4d8] sm:$0xff] }
 0x323   :  { %3516 = vmatprep.mubr.bf16.mxu1 %v17364_v5  ;;  %3902 = vmatprep.mubr.bf16.mxu0 %v17364_v5  ;;  %v1802_v58 = vld [vmem:[#allocation9 + $0x4f8] sm:$0xff] }
 0x324   :  { %4404 = vmatpush1.bf16.msra.mxu0 %v12225_v7  ;;  %4018 = vmatpush1.bf16.msra.mxu1 %v12223_v43  ;;  %v1782_v7 = vld [vmem:[#allocation9 + $0x458] sm:$0xff] }
 0x325   :  { %4405 = vmatprep.subr.bf16.mxu0 %v12234_v46  ;;  %4019 = vmatprep.subr.bf16.mxu1 %v12232_v42  ;;  %v1786_v43 = vld [vmem:[#allocation9 + $0x478] sm:$0xff]  ;;  %v1781_v46 = vld [vmem:[#allocation9 + $0x450] sm:$0xff] }
 0x326   :  { %v1785_v42 = vld [vmem:[#allocation9 + $0x470] sm:$0xff]  ;;  %v12266_v34 = vcombine.high %v1782_v7, %v1786_v43 }
 0x327   :  { %v12264_v57 = vcombine.high %v1781_v46, %v1785_v42  ;;  %v12263_v20 = vcombine.low %v1781_v46, %v1785_v42  ;;  %v1814_v46 = vld [vmem:[#allocation9 + $0x558] sm:$0xff] }
 0x328   :  { %4406 = vmatpush1.bf16.msra.mxu0 %v12233_v47  ;;  %4020 = vmatpush1.bf16.msra.mxu1 %v12231_v62  ;;  %v1789_v47 = vld [vmem:[#allocation9 + $0x490] sm:$0xff]  ;;  %v1818_v42 = vld [vmem:[#allocation9 + $0x578] sm:$0xff] }
 0x329   :  { %4407 = vmatprep.subr.bf16.mxu0 %v12242_v10  ;;  %4021 = vmatprep.subr.bf16.mxu1 %v12240_v49  ;;  %v1793_v62 = vld [vmem:[#allocation9 + $0x4b0] sm:$0xff]  ;;  %v20055_v10 = vcombine.low %v17540_v14, %v17542_v17  ;;  %v20056_v49 = vcombine.low %v17552_v23, %v17554_v6  ;;  %v12273_v14 = vcombine.low %v1790_v61, %v1794_v54  ;;  %v1810_v23 = vld [vmem:[#allocation9 + $0x538] sm:$0xff] }
 0x32a   :  { %3517 = vmatmul.mubr.bf16.gmra.mrb[124].mxu1 %v17356_v31  ;;  %3903 = vmatmul.mubr.bf16.gmra.mrb[124].mxu0 %v17356_v31  ;;  %v12271_v17 = vcombine.low %v1789_v47, %v1793_v62  ;;  %v1805_v6 = vld [vmem:[#allocation9 + $0x510] sm:$0xff]  ;;  %v12298_v54 = vcombine.high %v1814_v46, %v1818_v42 }
 0x32b   :  { %3526 = vmatprep.mubr.bf16.mxu1 %v17390_v36  ;;  %3912 = vmatprep.mubr.bf16.mxu0 %v17390_v36 }
 0x32c   :  { %4408 = vmatpush1.bf16.msra.mxu0 %v12241_v9  ;;  %4022 = vmatpush1.bf16.msra.mxu1 %v12239_v4  ;;  %v1797_v9 = vld [vmem:[#allocation9 + $0x4d0] sm:$0xff] }
 0x32d   :  { %4409 = vmatprep.subr.bf16.mxu0 %v12250_v0  ;;  %4023 = vmatprep.subr.bf16.mxu1 %v12248_v8  ;;  %v1801_v4 = vld [vmem:[#allocation9 + $0x4f0] sm:$0xff]  ;;  %v1806_v8 = vld [vmem:[#allocation9 + $0x518] sm:$0xff] }
 0x32e   :  { %v12280_v0 = vcombine.high %v1797_v9, %v1801_v4 }
 0x330   :  { %4410 = vmatpush1.bf16.msra.mxu0 %v12249_v32  ;;  %4024 = vmatpush1.bf16.msra.mxu1 %v12247_v21  ;;  %v1809_v32 = vld [vmem:[#allocation9 + $0x530] sm:$0xff] }
 0x331   :  { %4572 = vmatprep.subr.bf16.mxu0 %v12258_v41  ;;  %4186 = vmatprep.subr.bf16.mxu1 %v12256_v52  ;;  %v20057_v21 = vld [vmem:[#allocation28_spill] sm:$0xff]  ;;  %v12281_v41 = vcombine.low %v1798_v18, %v1802_v58  ;;  %v12279_v52 = vcombine.low %v1797_v9, %v1801_v4  ;;  %v12287_v61 = vcombine.low %v1805_v6, %v1809_v32  ;;  %v1830_v4 = vld [vmem:[#allocation9 + $0x5d8] sm:$0xff] }
 0x332   :  { %3527 = vmatmul.mubr.bf16.gmra.mrb[128].mxu1 %v17386_v25  ;;  %3913 = vmatmul.mubr.bf16.gmra.mrb[128].mxu0 %v17386_v25 }
 0x333   :  { %3536 = vmatprep.mubr.bf16.mxu1 %v17410_v26  ;;  %3922 = vmatprep.mubr.bf16.mxu0 %v17410_v26 }
 0x33a   :  { %3537 = vmatmul.mubr.bf16.gmra.mrb[132].mxu1 %v17406_v33  ;;  %3923 = vmatmul.mubr.bf16.gmra.mrb[132].mxu0 %v17406_v33 }
 0x33b   :  { %3546 = vmatprep.mubr.bf16.mxu1 %v17430_v45  ;;  %3932 = vmatprep.mubr.bf16.mxu0 %v17430_v45 }
 0x342   :  { %3547 = vmatmul.mubr.bf16.gmra.mrb[136].mxu1 %v17426_v16  ;;  %3933 = vmatmul.mubr.bf16.gmra.mrb[136].mxu0 %v17426_v16 }
 0x343   :  { %3556 = vmatprep.mubr.bf16.mxu1 %v17450_v59  ;;  %3942 = vmatprep.mubr.bf16.mxu0 %v17450_v59 }
 0x34a   :  { %3557 = vmatmul.mubr.bf16.gmra.mrb[140].mxu1 %v17446_v38  ;;  %3943 = vmatmul.mubr.bf16.gmra.mrb[140].mxu0 %v17446_v38 }
 0x34b   :  { %3566 = vmatprep.mubr.bf16.mxu1 %v17470_v13  ;;  %3952 = vmatprep.mubr.bf16.mxu0 %v17470_v13 }
 0x352   :  { %3567 = vmatmul.mubr.bf16.gmra.mrb[144].mxu1 %v17466_v44  ;;  %3953 = vmatmul.mubr.bf16.gmra.mrb[144].mxu0 %v17466_v44 }
 0x353   :  { %3576 = vmatprep.mubr.bf16.mxu1 %v17490_v37  ;;  %3962 = vmatprep.mubr.bf16.mxu0 %v17490_v37 }
 0x35a   :  { %3577 = vmatmul.mubr.bf16.gmra.mrb[148].mxu1 %v17486_v30  ;;  %3963 = vmatmul.mubr.bf16.gmra.mrb[148].mxu0 %v17486_v30 }
 0x35b   :  { %3586 = vmatprep.mubr.bf16.mxu1 %v17510_v19  ;;  %3972 = vmatprep.mubr.bf16.mxu0 %v17510_v19 }
 0x362   :  { %3587 = vmatmul.mubr.bf16.gmra.mrb[152].mxu1 %v17506_v11  ;;  %3973 = vmatmul.mubr.bf16.gmra.mrb[152].mxu0 %v17506_v11 }
 0x363   :  { %3596 = vmatprep.mubr.bf16.mxu1 %v17530_v51  ;;  %3982 = vmatprep.mubr.bf16.mxu0 %v17530_v51 }
 0x36a   :  { %3597 = vmatmul.mubr.bf16.gmra.mrb[156].mxu1 %v17526_v27  ;;  %3983 = vmatmul.mubr.bf16.gmra.mrb[156].mxu0 %v17526_v27 }
 0x36b   :  { %4025 = vmatprep.mubr.bf16.mxu1 %v16930_v24  ;;  %4411 = vmatprep.mubr.bf16.mxu0 %v16930_v24  ;;  %v12265_v24 = vcombine.low %v1782_v7, %v1786_v43  ;;  %v12290_v7 = vcombine.high %v1806_v8, %v1810_v23  ;;  %v12288_v43 = vcombine.high %v1805_v6, %v1809_v32  ;;  %v1838_v32 = vld [vmem:[#allocation9 + $0x618] sm:$0xff] }
 0x372   :  { %4026 = vmatmul.mubr.bf16.vlgmr.msra.gmra.mrb[160].mxu1 %v16918_v3  ;;  %4412 = vmatmul.mubr.bf16.vlgmr.msra.gmra.mrb[160].mxu0 %v16918_v3  ;;  %v12272_v3 = vcombine.high %v1789_v47, %v1793_v62  ;;  %v1822_v62 = vld [vmem:[#allocation9 + $0x598] sm:$0xff] }
 0x373   :  { %4573 = vmatpush1.bf16.msra.mxu0 %v20055_v10  ;;  %4035 = vmatprep.mubr.bf16.mxu1 %v16995_v15  ;;  %v20058_v10 = vld [vmem:[#allocation26_spill] sm:$0xff] }
 0x374   :  { %4421 = vmatprep.mubr.bf16.mxu0 %v16995_v15  ;;  %4187 = vmatpush1.bf16.msra.mxu1 %v20056_v49  ;;  %v12282_v15 = vcombine.high %v1798_v18, %v1802_v58  ;;  %v1821_v49 = vld [vmem:[#allocation9 + $0x590] sm:$0xff] }
 0x375   :  { %4574 = vmatprep.subr.bf16.mxu0 %v12266_v34  ;;  %4188 = vmatprep.subr.bf16.mxu1 %v12264_v57  ;;  %v1813_v34 = vld [vmem:[#allocation9 + $0x550] sm:$0xff] }
 0x376   :  { %v1817_v57 = vld [vmem:[#allocation9 + $0x570] sm:$0xff] }
 0x377   :  { %4575 = vmatpush1.bf16.msra.mxu0 %v12265_v24  ;;  %v12296_v47 = vcombine.high %v1813_v34, %v1817_v57  ;;  %v1826_v24 = vld [vmem:[#allocation9 + $0x5b8] sm:$0xff]  ;;  %v12295_v18 = vcombine.low %v1813_v34, %v1817_v57 }
 0x378   :  { %4189 = vmatpush1.bf16.msra.mxu1 %v12263_v20  ;;  %4576 = vmatprep.subr.bf16.mxu0 %v12274_v48  ;;  %v1825_v20 = vld [vmem:[#allocation9 + $0x5b0] sm:$0xff]  ;;  %v20059_v48 = vld [vmem:[#allocation30_spill] sm:$0xff]  ;;  %v12306_v58 = vcombine.high %v1822_v62, %v1826_v24 }
 0x379   :  { %4190 = vmatprep.subr.bf16.mxu1 %v12272_v3  ;;  %v12297_v3 = vcombine.low %v1814_v46, %v1818_v42  ;;  %v12304_v9 = vcombine.high %v1821_v49, %v1825_v20 }
 0x37a   :  { %4036 = vmatmul.mubr.bf16.gmra.mrb[164].mxu1 %v16987_v50  ;;  %4422 = vmatmul.mubr.bf16.gmra.mrb[164].mxu0 %v16987_v50  ;;  %v12289_v50 = vcombine.low %v1806_v8, %v1810_v23  ;;  %v12303_v8 = vcombine.low %v1821_v49, %v1825_v20  ;;  %v1854_v20 = vld [vmem:[#allocation9 + $0x698] sm:$0xff] }
 0x37b   :  { %4045 = vmatprep.mubr.bf16.mxu1 %v20057_v21  ;;  %4431 = vmatprep.mubr.bf16.mxu0 %v20057_v21  ;;  %v20060_v21 = vld [vmem:[#allocation29_spill] sm:$0xff] }
 0x37c   :  { %4577 = vmatpush1.bf16.msra.mxu0 %v12273_v14  ;;  %4191 = vmatpush1.bf16.msra.mxu1 %v12271_v17  ;;  %v1834_v14 = vld [vmem:[#allocation9 + $0x5f8] sm:$0xff]  ;;  %v1829_v17 = vld [vmem:[#allocation9 + $0x5d0] sm:$0xff] }
 0x37d   :  { %4578 = vmatprep.subr.bf16.mxu0 %v12282_v15  ;;  %4192 = vmatprep.subr.bf16.mxu1 %v12280_v0  ;;  %v1833_v15 = vld [vmem:[#allocation9 + $0x5f0] sm:$0xff]  ;;  %v12305_v0 = vcombine.low %v1822_v62, %v1826_v24  ;;  %v12314_v23 = vcombine.high %v1830_v4, %v1834_v14  ;;  %v12313_v46 = vcombine.low %v1830_v4, %v1834_v14 }
 0x37e   :  { %v12312_v6 = vcombine.high %v1829_v17, %v1833_v15  ;;  %v12311_v42 = vcombine.low %v1829_v17, %v1833_v15 }
 0x380   :  { %4579 = vmatpush1.bf16.msra.mxu0 %v12281_v41  ;;  %4193 = vmatpush1.bf16.msra.mxu1 %v12279_v52  ;;  %v1842_v41 = vld [vmem:[#allocation9 + $0x638] sm:$0xff]  ;;  %v1837_v52 = vld [vmem:[#allocation9 + $0x610] sm:$0xff] }
 0x381   :  { %4580 = vmatprep.subr.bf16.mxu0 %v12290_v7  ;;  %4194 = vmatprep.subr.bf16.mxu1 %v12288_v43  ;;  %v1841_v7 = vld [vmem:[#allocation9 + $0x630] sm:$0xff]  ;;  %v12322_v34 = vcombine.high %v1838_v32, %v1842_v41  ;;  %v12321_v62 = vcombine.low %v1838_v32, %v1842_v41 }
 0x382   :  { %4046 = vmatmul.mubr.bf16.gmra.mrb[168].mxu1 %v20058_v10  ;;  %4432 = vmatmul.mubr.bf16.gmra.mrb[168].mxu0 %v20058_v10  ;;  %v20061_v43 = vld [vmem:[#allocation32_spill] sm:$0xff]  ;;  %v12320_v57 = vcombine.high %v1837_v52, %v1841_v7  ;;  %v12319_v10 = vcombine.low %v1837_v52, %v1841_v7  ;;  %v1870_v7 = vld [vmem:[#allocation9 + $0x718] sm:$0xff] }
 0x383   :  { %4055 = vmatprep.mubr.bf16.mxu1 %v20059_v48  ;;  %4441 = vmatprep.mubr.bf16.mxu0 %v20059_v48  ;;  %v20062_v48 = vld [vmem:[#allocation31_spill] sm:$0xff] }
 0x384   :  { %4581 = vmatpush1.bf16.msra.mxu0 %v12289_v50  ;;  %4195 = vmatpush1.bf16.msra.mxu1 %v12287_v61  ;;  %v1846_v50 = vld [vmem:[#allocation9 + $0x658] sm:$0xff] }
 0x385   :  { %4582 = vmatprep.subr.bf16.mxu0 %v12298_v54  ;;  %4196 = vmatprep.subr.bf16.mxu1 %v12296_v47  ;;  %v1850_v61 = vld [vmem:[#allocation9 + $0x678] sm:$0xff]  ;;  %v1845_v54 = vld [vmem:[#allocation9 + $0x650] sm:$0xff] }
 0x386   :  { %v1849_v47 = vld [vmem:[#allocation9 + $0x670] sm:$0xff]  ;;  %v12330_v24 = vcombine.high %v1846_v50, %v1850_v61  ;;  %v12329_v4 = vcombine.low %v1846_v50, %v1850_v61 }
 0x387   :  { %v12328_v49 = vcombine.high %v1845_v54, %v1849_v47  ;;  %v12327_v14 = vcombine.low %v1845_v54, %v1849_v47 }
 0x388   :  { %4583 = vmatpush1.bf16.msra.mxu0 %v12297_v3  ;;  %4197 = vmatpush1.bf16.msra.mxu1 %v12295_v18  ;;  %v1858_v3 = vld [vmem:[#allocation9 + $0x6b8] sm:$0xff]  ;;  %v1853_v18 = vld [vmem:[#allocation9 + $0x690] sm:$0xff] }
 0x389   :  { %4584 = vmatprep.subr.bf16.mxu0 %v12306_v58  ;;  %4198 = vmatprep.subr.bf16.mxu1 %v12304_v9  ;;  %v1857_v58 = vld [vmem:[#allocation9 + $0x6b0] sm:$0xff]  ;;  %v20063_v9 = vld [vmem:[#allocation34_spill] sm:$0xff]  ;;  %v12338_v17 = vcombine.high %v1854_v20, %v1858_v3  ;;  %v12337_v32 = vcombine.low %v1854_v20, %v1858_v3 }
 0x38a   :  { %4056 = vmatmul.mubr.bf16.gmra.mrb[172].mxu1 %v20060_v21  ;;  %4442 = vmatmul.mubr.bf16.gmra.mrb[172].mxu0 %v20060_v21  ;;  %v12336_v15 = vcombine.high %v1853_v18, %v1857_v58  ;;  %v12335_v21 = vcombine.low %v1853_v18, %v1857_v58  ;;  %v1886_v58 = vld [vmem:[#allocation9 + $0x798] sm:$0xff] }
 0x38b   :  { %4065 = vmatprep.mubr.bf16.mxu1 %v20061_v43  ;;  %4451 = vmatprep.mubr.bf16.mxu0 %v20061_v43  ;;  %v20064_v43 = vld [vmem:[#allocation33_spill] sm:$0xff] }
 0x38c   :  { %4585 = vmatpush1.bf16.msra.mxu0 %v12305_v0  ;;  %4199 = vmatpush1.bf16.msra.mxu1 %v12303_v8  ;;  %v1862_v0 = vld [vmem:[#allocation9 + $0x6d8] sm:$0xff] }
 0x38d   :  { %4586 = vmatprep.subr.bf16.mxu0 %v12314_v23  ;;  %4200 = vmatprep.subr.bf16.mxu1 %v12312_v6  ;;  %v1866_v8 = vld [vmem:[#allocation9 + $0x6f8] sm:$0xff]  ;;  %v1861_v23 = vld [vmem:[#allocation9 + $0x6d0] sm:$0xff] }
 0x38e   :  { %v1865_v6 = vld [vmem:[#allocation9 + $0x6f0] sm:$0xff]  ;;  %v12346_v41 = vcombine.high %v1862_v0, %v1866_v8  ;;  %v12345_v50 = vcombine.low %v1862_v0, %v1866_v8 }
 0x38f   :  { %v12344_v52 = vcombine.high %v1861_v23, %v1865_v6  ;;  %v12343_v61 = vcombine.low %v1861_v23, %v1865_v6 }
 0x390   :  { %4587 = vmatpush1.bf16.msra.mxu0 %v12313_v46  ;;  %4201 = vmatpush1.bf16.msra.mxu1 %v12311_v42  ;;  %v1874_v46 = vld [vmem:[#allocation9 + $0x738] sm:$0xff]  ;;  %v1869_v42 = vld [vmem:[#allocation9 + $0x710] sm:$0xff] }
 0x391   :  { %4588 = vmatprep.subr.bf16.mxu0 %v12322_v34  ;;  %4202 = vmatprep.subr.bf16.mxu1 %v12320_v57  ;;  %v1873_v34 = vld [vmem:[#allocation9 + $0x730] sm:$0xff]  ;;  %v12354_v54 = vcombine.high %v1870_v7, %v1874_v46  ;;  %v12353_v20 = vcombine.low %v1870_v7, %v1874_v46 }
 0x392   :  { %4066 = vmatmul.mubr.bf16.gmra.mrb[176].mxu1 %v20062_v48  ;;  %4452 = vmatmul.mubr.bf16.gmra.mrb[176].mxu0 %v20062_v48  ;;  %v20065_v57 = vld [vmem:[#allocation36_spill] sm:$0xff]  ;;  %v12352_v47 = vcombine.high %v1869_v42, %v1873_v34  ;;  %v12351_v48 = vcombine.low %v1869_v42, %v1873_v34  ;;  %v20068_v34 = vld [vmem:[#allocation37_spill] sm:$0xff] }
 0x393   :  { %4075 = vmatprep.mubr.bf16.mxu1 %v20063_v9  ;;  %4461 = vmatprep.mubr.bf16.mxu0 %v20063_v9  ;;  %v20066_v9 = vld [vmem:[#allocation35_spill] sm:$0xff] }
 0x394   :  { %4589 = vmatpush1.bf16.msra.mxu0 %v12321_v62  ;;  %4203 = vmatpush1.bf16.msra.mxu1 %v12319_v10  ;;  %v1878_v62 = vld [vmem:[#allocation9 + $0x758] sm:$0xff] }
 0x395   :  { %4590 = vmatprep.subr.bf16.mxu0 %v12330_v24  ;;  %4204 = vmatprep.subr.bf16.mxu1 %v12328_v49  ;;  %v1882_v10 = vld [vmem:[#allocation9 + $0x778] sm:$0xff]  ;;  %v1877_v24 = vld [vmem:[#allocation9 + $0x750] sm:$0xff] }
 0x396   :  { %v1881_v49 = vld [vmem:[#allocation9 + $0x770] sm:$0xff]  ;;  %v12362_v3 = vcombine.high %v1878_v62, %v1882_v10  ;;  %v12361_v0 = vcombine.low %v1878_v62, %v1882_v10  ;;  %v20070_v62 = vld [vmem:[#allocation39_spill] sm:$0xff]  ;;  %v20071_v10 = vld [vmem:[#allocation42_spill] sm:$0xff] }
 0x397   :  { %v12360_v18 = vcombine.high %v1877_v24, %v1881_v49  ;;  %v12359_v8 = vcombine.low %v1877_v24, %v1881_v49  ;;  %v20072_v24 = vld [vmem:[#allocation41_spill] sm:$0xff]  ;;  %v20073_v49 = vld [vmem:[#allocation44_spill] sm:$0xff] }
 0x398   :  { %4591 = vmatpush1.bf16.msra.mxu0 %v12329_v4  ;;  %4205 = vmatpush1.bf16.msra.mxu1 %v12327_v14  ;;  %v1890_v4 = vld [vmem:[#allocation9 + $0x7b8] sm:$0xff]  ;;  %v1885_v14 = vld [vmem:[#allocation9 + $0x790] sm:$0xff] }
 0x399   :  { %4592 = vmatprep.subr.bf16.mxu0 %v12338_v17  ;;  %4206 = vmatprep.subr.bf16.mxu1 %v12336_v15  ;;  %v1889_v17 = vld [vmem:[#allocation9 + $0x7b0] sm:$0xff]  ;;  %v20067_v15 = vld [vmem:[#allocation38_spill] sm:$0xff]  ;;  %v12370_v23 = vcombine.high %v1886_v58, %v1890_v4  ;;  %v12369_v7 = vcombine.low %v1886_v58, %v1890_v4  ;;  %v20076_v58 = vld [vmem:[#allocation23_spill] sm:$0xff] }
 0x39a   :  { %4076 = vmatmul.mubr.bf16.gmra.mrb[180].mxu1 %v20064_v43  ;;  %4462 = vmatmul.mubr.bf16.gmra.mrb[180].mxu0 %v20064_v43  ;;  %v12368_v6 = vcombine.high %v1885_v14, %v1889_v17  ;;  %v12367_v43 = vcombine.low %v1885_v14, %v1889_v17  ;;  %v20077_v4 = vld [vmem:[#allocation46_spill] sm:$0xff] }
 0x39b   :  { %4085 = vmatprep.mubr.bf16.mxu1 %v20065_v57  ;;  %4471 = vmatprep.mubr.bf16.mxu0 %v20065_v57  ;;  %v20069_v57 = vld [vmem:[#allocation40_spill] sm:$0xff]  ;;  %v20078_v14 = vld [vmem:[#allocation22_spill] sm:$0xff] }
 0x39c   :  { %4593 = vmatpush1.bf16.msra.mxu0 %v12337_v32  ;;  %4207 = vmatpush1.bf16.msra.mxu1 %v12335_v21  ;;  %v1894_v32 = vld [vmem:[#allocation9 + $0x7d8] sm:$0xff] }
 0x39d   :  { %4594 = vmatprep.subr.bf16.mxu0 %v12346_v41  ;;  %4208 = vmatprep.subr.bf16.mxu1 %v12344_v52  ;;  %v1898_v21 = vld [vmem:[#allocation9 + $0x7f8] sm:$0xff]  ;;  %v1893_v41 = vld [vmem:[#allocation9 + $0x7d0] sm:$0xff] }
 0x39e   :  { %v1897_v52 = vld [vmem:[#allocation9 + $0x7f0] sm:$0xff]  ;;  %v12378_v46 = vcombine.high %v1894_v32, %v1898_v21 }
 0x39f   :  { %v12376_v42 = vcombine.high %v1893_v41, %v1897_v52 }
 0x3a0   :  { %4595 = vmatpush1.bf16.msra.mxu0 %v12345_v50  ;;  %4209 = vmatpush1.bf16.msra.mxu1 %v12343_v61  ;;  %v12377_v50 = vcombine.low %v1894_v32, %v1898_v21  ;;  %v12375_v61 = vcombine.low %v1893_v41, %v1897_v52 }
 0x3a1   :  { %4596 = vmatprep.subr.bf16.mxu0 %v12354_v54  ;;  %4210 = vmatprep.subr.bf16.mxu1 %v12352_v47  ;;  %v14982_v54 = vld [vmem:[#allocation12 + $0xc] ss:$28 sps:$4 sm:$0xff]   ;;  %v14985_v47 = vld [vmem:[#allocation12 + $0x4] ss:$28 sps:$4 sm:$0xff]  }
 0x3a2   :  { %4086 = vmatmul.mubr.bf16.gmra.mrb[184].mxu1 %v20066_v9  ;;  %4472 = vmatmul.mubr.bf16.gmra.mrb[184].mxu0 %v20066_v9 }
 0x3a3   :  { %4095 = vmatprep.mubr.bf16.mxu1 %v20067_v15  ;;  %4481 = vmatprep.mubr.bf16.mxu0 %v20067_v15  ;;  %v20079_v15 = vld [vmem:[#allocation24_spill] sm:$0xff] }
 0x3a4   :  { %4597 = vmatpush1.bf16.msra.mxu0 %v12353_v20  ;;  %4211 = vmatpush1.bf16.msra.mxu1 %v12351_v48  ;;  %v1899_v20 = vld [vmem:[#allocation10] sm:$0xff]  ;;  %v20074_v48 = vld [vmem:[#allocation43_spill] sm:$0xff] }
 0x3a5   :  { %4598 = vmatprep.subr.bf16.mxu0 %v12362_v3  ;;  %4212 = vmatprep.subr.bf16.mxu1 %v12360_v18  ;;  %v20075_v3 = vld [vmem:[#allocation21_spill] sm:$0xff]  ;;  %v17678_v9 = vrot.slane %v1899_v20, %v20076_v58  ;;  %v17683_v17 = vrot.slane %v1899_v20, %v20078_v14 }
 0x3a6   :  { %v17675_v18 = vrot.slane %v1899_v20, %v20075_v3  ;;  %v20092_v58 = vld [vmem:[#allocation49_spill] sm:$0xff] }
 0x3a8   :  { %4599 = vmatpush1.bf16.msra.mxu0 %v12361_v0  ;;  %4213 = vmatpush1.bf16.msra.mxu1 %v12359_v8  ;;  %v17686_v0 = vrot.slane %v1899_v20, %v20079_v15  ;;  %v20087_v15 = vld [vmem:[#allocation50_spill] sm:$0xff] }
 0x3a9   :  { %4600 = vmatprep.subr.bf16.mxu0 %v12370_v23  ;;  %4214 = vmatprep.subr.bf16.mxu1 %v12368_v6 }
 0x3aa   :  { %4096 = vmatmul.mubr.bf16.gmra.mrb[188].mxu1 %v20068_v34  ;;  %4482 = vmatmul.mubr.bf16.gmra.mrb[188].mxu0 %v20068_v34 }
 0x3ab   :  { %4105 = vmatprep.mubr.bf16.mxu1 %v20069_v57  ;;  %4491 = vmatprep.mubr.bf16.mxu0 %v20069_v57 }
 0x3ac   :  { %4601 = vmatpush1.bf16.msra.mxu0 %v12369_v7  ;;  %4215 = vmatpush1.bf16.msra.mxu1 %v12367_v43 }
 0x3ad   :  { %4602 = vmatprep.subr.bf16.mxu0 %v12378_v46  ;;  %4216 = vmatprep.subr.bf16.mxu1 %v12376_v42 }
 0x3b0   :  { %4603 = vmatpush1.bf16.msra.mxu0 %v12377_v50  ;;  %4217 = vmatpush1.bf16.msra.mxu1 %v12375_v61 }
 0x3b1   :  { %8774 = vmatprep.subr.bf16.mxu0 %v14982_v54  ;;  %8002 = vmatprep.subr.bf16.mxu1 %v14985_v47 }
 0x3b2   :  { %4106 = vmatmul.mubr.bf16.gmra.mrb[192].mxu1 %v20070_v62  ;;  %4492 = vmatmul.mubr.bf16.gmra.mrb[192].mxu0 %v20070_v62 }
 0x3b3   :  { %4115 = vmatprep.mubr.bf16.mxu1 %v20071_v10  ;;  %4501 = vmatprep.mubr.bf16.mxu0 %v20071_v10 }
 0x3ba   :  { %4116 = vmatmul.mubr.bf16.gmra.mrb[196].mxu1 %v20072_v24  ;;  %4502 = vmatmul.mubr.bf16.gmra.mrb[196].mxu0 %v20072_v24 }
 0x3bb   :  { %4125 = vmatprep.mubr.bf16.mxu1 %v20073_v49  ;;  %4511 = vmatprep.mubr.bf16.mxu0 %v20073_v49  ;;  %v20080_v49 = vld [vmem:[#allocation45_spill] sm:$0xff] }
 0x3c2   :  { %4126 = vmatmul.mubr.bf16.gmra.mrb[200].mxu1 %v20074_v48  ;;  %4512 = vmatmul.mubr.bf16.gmra.mrb[200].mxu0 %v20074_v48 }
 0x3c3   :  { %4135 = vmatprep.mubr.bf16.mxu1 %v20077_v4  ;;  %4521 = vmatprep.mubr.bf16.mxu0 %v20077_v4 }
 0x3c5   :  { %v3448_v8 = vpop.f32.mrb[96].mxu1  ;;  %v3834_v23 = vpop.f32.mrb[96].mxu0 }
 0x3c6   :  { %v13547_v6 = vadd.f32 %v3448_v8, %v17675_v18  ;;  %v13611_v32 = vadd.f32 %v3834_v23, %v17678_v9  ;;  %v3450_v21 = vpop.f32.mrb[97].mxu1  ;;  %v3836_v41 = vpop.f32.mrb[97].mxu0  ;;  %v20081_v23 = vld [vmem:[#allocation48_spill] sm:$0xff] }
 0x3c7   :  { %v13548_v52 = vadd.f32 %v3450_v21, %v17683_v17  ;;  %v13612_v7 = vadd.f32 %v3836_v41, %v17686_v0  ;;  %v3452_v43 = vpop.f32.mrb[98].mxu1  ;;  %v3838_v46 = vpop.f32.mrb[98].mxu0 }
 0x3c8   :  { %v13549_v42 = vadd.f32 %v3452_v43, %v17675_v18  ;;  %v13613_v34 = vadd.f32 %v3838_v46, %v17678_v9  ;;  %v3454_v57 = vpop.f32.mrb[99].mxu1  ;;  %v3840_v50 = vpop.f32.mrb[99].mxu0  ;;  %v4765_v47 = vmax.f32 %v13547_v6, 0.0  ;;  %v4767_v62 = vmax.f32 %v13611_v32, 0.0 }
 0x3c9   :  { %v13550_v61 = vadd.f32 %v3454_v57, %v17683_v17  ;;  %v13614_v54 = vadd.f32 %v3840_v50, %v17686_v0  ;;  %v4766_v20 = vmax.f32 %v13548_v52, 0.0  ;;  %v4768_v48 = vmax.f32 %v13612_v7, 0.0 }
 0x3ca   :  { %v4773_v10 = vmax.f32 %v13549_v42, 0.0  ;;  %v4775_v24 = vmax.f32 %v13613_v34, 0.0  ;;  %4136 = vmatmul.mubr.bf16.gmra.mrb[204].mxu1 %v20080_v49  ;;  %4522 = vmatmul.mubr.bf16.gmra.mrb[204].mxu0 %v20080_v49 }
 0x3cb   :  { %v4774_v4 = vmax.f32 %v13550_v61, 0.0  ;;  %v4776_v8 = vmax.f32 %v13614_v54, 0.0  ;;  %4145 = vmatprep.mubr.bf16.mxu1 %v20081_v23  ;;  %4531 = vmatprep.mubr.bf16.mxu0 %v20081_v23 }
 0x3cc   :  { %v17700_v21 = vpack.c.bf16 %v4773_v10, %v4765_v47  ;;  %v17702_v41 = vpack.c.bf16 %v4775_v24, %v4767_v62 }
 0x3cd   :  { %v17704_v6 = vpack.c.bf16 %v4774_v4, %v4766_v20  ;;  %v17706_v32 = vpack.c.bf16 %v4776_v8, %v4768_v48  ;;  %v3458_v43 = vpop.f32.mrb[100].mxu1  ;;  %v3844_v46 = vpop.f32.mrb[100].mxu0 }
 0x3ce   :  { %20082 = vst [vmem:[#allocation28_spill] sm:$0xff] %v17700_v21  ;;  %20083 = vst [vmem:[#allocation26_spill] sm:$0xff] %v17702_v41  ;;  %v13551_v42 = vadd.f32 %v3458_v43, %v17675_v18  ;;  %v13615_v52 = vadd.f32 %v3844_v46, %v17678_v9  ;;  %v3460_v7 = vpop.f32.mrb[101].mxu1  ;;  %v3846_v34 = vpop.f32.mrb[101].mxu0  ;;  %v20086_v43 = vld [vmem:[#allocation47_spill] sm:$0xff] }
 0x3cf   :  { %20084 = vst [vmem:[#allocation30_spill] sm:$0xff] %v17704_v6  ;;  %20085 = vst [vmem:[#allocation29_spill] sm:$0xff] %v17706_v32  ;;  %v13552_v57 = vadd.f32 %v3460_v7, %v17683_v17  ;;  %v13616_v50 = vadd.f32 %v3846_v34, %v17686_v0  ;;  %v3462_v61 = vpop.f32.mrb[102].mxu1  ;;  %v3848_v54 = vpop.f32.mrb[102].mxu0 }
 0x3d0   :  { %v13553_v47 = vadd.f32 %v3462_v61, %v17675_v18  ;;  %v13617_v62 = vadd.f32 %v3848_v54, %v17678_v9  ;;  %v3464_v10 = vpop.f32.mrb[103].mxu1  ;;  %v3850_v24 = vpop.f32.mrb[103].mxu0  ;;  %v4781_v48 = vmax.f32 %v13551_v42, 0.0  ;;  %v4783_v4 = vmax.f32 %v13615_v52, 0.0 }
 0x3d1   :  { %v13554_v49 = vadd.f32 %v3464_v10, %v17683_v17  ;;  %v13618_v20 = vadd.f32 %v3850_v24, %v17686_v0  ;;  %v4782_v46 = vmax.f32 %v13552_v57, 0.0  ;;  %v4784_v7 = vmax.f32 %v13616_v50, 0.0 }
 0x3d2   :  { %v4789_v8 = vmax.f32 %v13553_v47, 0.0  ;;  %v4791_v23 = vmax.f32 %v13617_v62, 0.0  ;;  %4146 = vmatmul.mubr.bf16.gmra.mrb[208].mxu1 %v20086_v43  ;;  %4532 = vmatmul.mubr.bf16.gmra.mrb[208].mxu0 %v20086_v43 }
 0x3d3   :  { %v4790_v34 = vmax.f32 %v13554_v49, 0.0  ;;  %v4792_v61 = vmax.f32 %v13618_v20, 0.0  ;;  %4155 = vmatprep.mubr.bf16.mxu1 %v20087_v15  ;;  %4541 = vmatprep.mubr.bf16.mxu0 %v20087_v15 }
 0x3d4   :  { %v17720_v54 = vpack.c.bf16 %v4789_v8, %v4781_v48  ;;  %v17722_v10 = vpack.c.bf16 %v4791_v23, %v4783_v4 }
 0x3d5   :  { %v17724_v42 = vpack.c.bf16 %v4790_v34, %v4782_v46  ;;  %v17726_v52 = vpack.c.bf16 %v4792_v61, %v4784_v7  ;;  %v3468_v47 = vpop.f32.mrb[104].mxu1  ;;  %v3854_v62 = vpop.f32.mrb[104].mxu0 }
 0x3d6   :  { %20088 = vst [vmem:[#allocation32_spill] sm:$0xff] %v17720_v54  ;;  %20089 = vst [vmem:[#allocation31_spill] sm:$0xff] %v17722_v10  ;;  %v13555_v24 = vadd.f32 %v3468_v47, %v17675_v18  ;;  %v13619_v57 = vadd.f32 %v3854_v62, %v17678_v9  ;;  %v3470_v50 = vpop.f32.mrb[105].mxu1  ;;  %v3856_v49 = vpop.f32.mrb[105].mxu0  ;;  %v20093_v10 = vld [vmem:[#allocation52_spill] sm:$0xff] }
 0x3d7   :  { %20090 = vst [vmem:[#allocation34_spill] sm:$0xff] %v17724_v42  ;;  %20091 = vst [vmem:[#allocation33_spill] sm:$0xff] %v17726_v52  ;;  %v13556_v20 = vadd.f32 %v3470_v50, %v17683_v17  ;;  %v13620_v15 = vadd.f32 %v3856_v49, %v17686_v0  ;;  %v3472_v48 = vpop.f32.mrb[106].mxu1  ;;  %v3858_v8 = vpop.f32.mrb[106].mxu0 }
 0x3d8   :  { %v13557_v4 = vadd.f32 %v3472_v48, %v17675_v18  ;;  %v13621_v23 = vadd.f32 %v3858_v8, %v17678_v9  ;;  %v3474_v43 = vpop.f32.mrb[107].mxu1  ;;  %v3860_v46 = vpop.f32.mrb[107].mxu0  ;;  %v4797_v61 = vmax.f32 %v13555_v24, 0.0  ;;  %v4799_v47 = vmax.f32 %v13619_v57, 0.0 }
 0x3d9   :  { %v13558_v7 = vadd.f32 %v3474_v43, %v17683_v17  ;;  %v13622_v34 = vadd.f32 %v3860_v46, %v17686_v0  ;;  %v4798_v50 = vmax.f32 %v13556_v20, 0.0  ;;  %v4800_v49 = vmax.f32 %v13620_v15, 0.0 }
 0x3da   :  { %v4805_v62 = vmax.f32 %v13557_v4, 0.0  ;;  %v4807_v14 = vmax.f32 %v13621_v23, 0.0  ;;  %4156 = vmatmul.mubr.bf16.gmra.mrb[212].mxu1 %v20092_v58  ;;  %4542 = vmatmul.mubr.bf16.gmra.mrb[212].mxu0 %v20092_v58 }
 0x3db   :  { %v4806_v3 = vmax.f32 %v13558_v7, 0.0  ;;  %v4808_v48 = vmax.f32 %v13622_v34, 0.0  ;;  %4165 = vmatprep.mubr.bf16.mxu1 %v20093_v10  ;;  %4551 = vmatprep.mubr.bf16.mxu0 %v20093_v10 }
 0x3dc   :  { %v17740_v8 = vpack.c.bf16 %v4805_v62, %v4797_v61  ;;  %v17742_v43 = vpack.c.bf16 %v4807_v14, %v4799_v47 }
 0x3dd   :  { %v17744_v24 = vpack.c.bf16 %v4806_v3, %v4798_v50  ;;  %v17746_v57 = vpack.c.bf16 %v4808_v48, %v4800_v49  ;;  %v3478_v4 = vpop.f32.mrb[108].mxu1  ;;  %v3864_v23 = vpop.f32.mrb[108].mxu0 }
 0x3de   :  { %20094 = vst [vmem:[#allocation36_spill] sm:$0xff] %v17740_v8  ;;  %20095 = vst [vmem:[#allocation35_spill] sm:$0xff] %v17742_v43  ;;  %v13559_v58 = vadd.f32 %v3478_v4, %v17675_v18  ;;  %v13623_v20 = vadd.f32 %v3864_v23, %v17678_v9  ;;  %v3480_v15 = vpop.f32.mrb[109].mxu1  ;;  %v3866_v46 = vpop.f32.mrb[109].mxu0 }
 0x3df   :  { %20096 = vst [vmem:[#allocation38_spill] sm:$0xff] %v17744_v24  ;;  %20097 = vst [vmem:[#allocation37_spill] sm:$0xff] %v17746_v57  ;;  %v13560_v7 = vadd.f32 %v3480_v15, %v17683_v17  ;;  %v13624_v10 = vadd.f32 %v3866_v46, %v17686_v0  ;;  %v3482_v34 = vpop.f32.mrb[110].mxu1  ;;  %v3868_v61 = vpop.f32.mrb[110].mxu0  ;;  %v20098_v57 = vld [vmem:[#allocation51_spill] sm:$0xff] }
 0x3e0   :  { %v13561_v14 = vadd.f32 %v3482_v34, %v17675_v18  ;;  %v13625_v3 = vadd.f32 %v3868_v61, %v17678_v9  ;;  %v3484_v47 = vpop.f32.mrb[111].mxu1  ;;  %v3870_v62 = vpop.f32.mrb[111].mxu0  ;;  %v4813_v48 = vmax.f32 %v13559_v58, 0.0  ;;  %v4815_v4 = vmax.f32 %v13623_v20, 0.0 }
 0x3e1   :  { %v13562_v50 = vadd.f32 %v3484_v47, %v17683_v17  ;;  %v13626_v49 = vadd.f32 %v3870_v62, %v17686_v0  ;;  %v4814_v15 = vmax.f32 %v13560_v7, 0.0  ;;  %v4816_v46 = vmax.f32 %v13624_v10, 0.0 }
 0x3e2   :  { %v4821_v23 = vmax.f32 %v13561_v14, 0.0  ;;  %v4823_v43 = vmax.f32 %v13625_v3, 0.0  ;;  %4166 = vmatmul.mubr.bf16.gmra.mrb[216].mxu1 %v20098_v57  ;;  %4552 = vmatmul.mubr.bf16.gmra.mrb[216].mxu0 %v20098_v57 }
 0x3e3   :  { %v4822_v52 = vmax.f32 %v13562_v50, 0.0  ;;  %v4824_v34 = vmax.f32 %v13626_v49, 0.0  ;;  %4175 = vmatprep.mubr.bf16.mxu1 %v17532_v56  ;;  %4561 = vmatprep.mubr.bf16.mxu0 %v17532_v56 }
 0x3e4   :  { %v17760_v61 = vpack.c.bf16 %v4821_v23, %v4813_v48  ;;  %v17762_v47 = vpack.c.bf16 %v4823_v43, %v4815_v4 }
 0x3e5   :  { %v17764_v58 = vpack.c.bf16 %v4822_v52, %v4814_v15  ;;  %v17766_v20 = vpack.c.bf16 %v4824_v34, %v4816_v46  ;;  %v3488_v14 = vpop.f32.mrb[112].mxu1  ;;  %v3874_v3 = vpop.f32.mrb[112].mxu0 }
 0x3e6   :  { %20099 = vst [vmem:[#allocation40_spill] sm:$0xff] %v17760_v61  ;;  %20100 = vst [vmem:[#allocation39_spill] sm:$0xff] %v17762_v47  ;;  %v13563_v57 = vadd.f32 %v3488_v14, %v17675_v18  ;;  %v13627_v7 = vadd.f32 %v3874_v3, %v17678_v9  ;;  %v3490_v10 = vpop.f32.mrb[113].mxu1  ;;  %v3876_v62 = vpop.f32.mrb[113].mxu0 }
 0x3e7   :  { %20101 = vst [vmem:[#allocation42_spill] sm:$0xff] %v17764_v58  ;;  %20102 = vst [vmem:[#allocation41_spill] sm:$0xff] %v17766_v20  ;;  %v13564_v50 = vadd.f32 %v3490_v10, %v17683_v17  ;;  %v13628_v56 = vadd.f32 %v3876_v62, %v17686_v0  ;;  %v3492_v49 = vpop.f32.mrb[114].mxu1  ;;  %v3878_v48 = vpop.f32.mrb[114].mxu0 }
 0x3e8   :  { %v13565_v43 = vadd.f32 %v3492_v49, %v17675_v18  ;;  %v13629_v52 = vadd.f32 %v3878_v48, %v17678_v9  ;;  %v3494_v4 = vpop.f32.mrb[115].mxu1  ;;  %v3880_v23 = vpop.f32.mrb[115].mxu0  ;;  %v4829_v34 = vmax.f32 %v13563_v57, 0.0  ;;  %v4831_v14 = vmax.f32 %v13627_v7, 0.0 }
 0x3e9   :  { %v13566_v15 = vadd.f32 %v3494_v4, %v17683_v17  ;;  %v13630_v46 = vadd.f32 %v3880_v23, %v17686_v0  ;;  %v4830_v10 = vmax.f32 %v13564_v50, 0.0  ;;  %v4832_v62 = vmax.f32 %v13628_v56, 0.0 }
 0x3ea   :  { %v4837_v3 = vmax.f32 %v13565_v43, 0.0  ;;  %v4839_v47 = vmax.f32 %v13629_v52, 0.0  ;;  %4176 = vmatmul.mubr.bf16.gmra.mrb[220].mxu1 %v17528_v55  ;;  %4562 = vmatmul.mubr.bf16.gmra.mrb[220].mxu0 %v17528_v55 }
 0x3eb   :  { %v4838_v20 = vmax.f32 %v13566_v15, 0.0  ;;  %v4840_v49 = vmax.f32 %v13630_v46, 0.0  ;;  %4218 = vmatprep.mubr.bf16.mxu1 %v16928_v22  ;;  %4604 = vmatprep.mubr.bf16.mxu0 %v16928_v22 }
 0x3ec   :  { %v17780_v48 = vpack.c.bf16 %v4837_v3, %v4829_v34  ;;  %v17782_v4 = vpack.c.bf16 %v4839_v47, %v4831_v14  ;;  %v14980_v47 = vld [vmem:[#allocation12 + $0x8] ss:$28 sps:$4 sm:$0xff]  }
 0x3ed   :  { %v17784_v57 = vpack.c.bf16 %v4838_v20, %v4830_v10  ;;  %v17786_v7 = vpack.c.bf16 %v4840_v49, %v4832_v62  ;;  %v3498_v43 = vpop.f32.mrb[116].mxu1  ;;  %v3884_v52 = vpop.f32.mrb[116].mxu0  ;;  %v14983_v62 = vld [vmem:[#allocation12] ss:$28 sps:$4 sm:$0xff]  }
 0x3ee   :  { %20103 = vst [vmem:[#allocation44_spill] sm:$0xff] %v17780_v48  ;;  %20104 = vst [vmem:[#allocation43_spill] sm:$0xff] %v17782_v4  ;;  %v13567_v55 = vadd.f32 %v3498_v43, %v17675_v18  ;;  %v13631_v50 = vadd.f32 %v3884_v52, %v17678_v9  ;;  %v3500_v56 = vpop.f32.mrb[117].mxu1  ;;  %v3886_v23 = vpop.f32.mrb[117].mxu0  ;;  %v14988_v52 = vld [vmem:[#allocation12 + $0x44] ss:$28 sps:$4 sm:$0xff]  }
 0x3ef   :  { %20105 = vst [vmem:[#allocation46_spill] sm:$0xff] %v17784_v57  ;;  %20106 = vst [vmem:[#allocation45_spill] sm:$0xff] %v17786_v7  ;;  %v13568_v15 = vadd.f32 %v3500_v56, %v17683_v17  ;;  %v13632_v22 = vadd.f32 %v3886_v23, %v17686_v0  ;;  %v3502_v46 = vpop.f32.mrb[118].mxu1  ;;  %v3888_v34 = vpop.f32.mrb[118].mxu0  ;;  %v14991_v4 = vld [vmem:[#allocation12 + $0x3c] ss:$28 sps:$4 sm:$0xff]  }
 0x3f0   :  { %v13569_v20 = vadd.f32 %v3502_v46, %v17675_v18  ;;  %v13633_v14 = vadd.f32 %v3888_v34, %v17678_v9  ;;  %v3504_v3 = vpop.f32.mrb[119].mxu1  ;;  %v3890_v10 = vpop.f32.mrb[119].mxu0  ;;  %v4845_v7 = vmax.f32 %v13567_v55, 0.0  ;;  %v4847_v56 = vmax.f32 %v13631_v50, 0.0  ;;  %v14989_v55 = vld [vmem:[#allocation12 + $0x38] ss:$28 sps:$4 sm:$0xff]  }
 0x3f1   :  { %v13570_v49 = vadd.f32 %v3504_v3, %v17683_v17  ;;  %v13634_v43 = vadd.f32 %v3890_v10, %v17686_v0  ;;  %v4846_v46 = vmax.f32 %v13568_v15, 0.0  ;;  %v4848_v32 = vmax.f32 %v13632_v22, 0.0  ;;  %v14986_v3 = vld [vmem:[#allocation12 + $0x40] ss:$28 sps:$4 sm:$0xff]  }
 0x3f2   :  { %v4853_v41 = vmax.f32 %v13569_v20, 0.0  ;;  %v4855_v23 = vmax.f32 %v13633_v14, 0.0  ;;  %4219 = vmatmul.mubr.bf16.vlgmr.msra.gmra.mrb[160].mxu1 %v16916_v60  ;;  %4605 = vmatmul.mubr.bf16.vlgmr.msra.gmra.mrb[160].mxu0 %v16916_v60  ;;  %v14994_v50 = vld [vmem:[#allocation12 + $0x7c] ss:$28 sps:$4 sm:$0xff]  }
 0x3f3   :  { %v4854_v34 = vmax.f32 %v13570_v49, 0.0  ;;  %v4856_v48 = vmax.f32 %v13634_v43, 0.0  ;;  %8775 = vmatpush1.bf16.msra.mxu0 %v14980_v47  ;;  %4228 = vmatprep.mubr.bf16.mxu1 %v16993_v2  ;;  %v14997_v47 = vld [vmem:[#allocation12 + $0x74] ss:$28 sps:$4 sm:$0xff]  }
 0x3f4   :  { %v17799_v57 = vpack.c.bf16 %v4853_v41, %v4845_v7  ;;  %v17801_v10 = vpack.c.bf16 %v4855_v23, %v4847_v56  ;;  %4614 = vmatprep.mubr.bf16.mxu0 %v16993_v2  ;;  %8003 = vmatpush1.bf16.msra.mxu1 %v14983_v62  ;;  %v14992_v23 = vld [vmem:[#allocation12 + $0x78] ss:$28 sps:$4 sm:$0xff]  }
 0x3f5   :  { %v17804_v20 = vpack.c.bf16 %v4854_v34, %v4846_v46  ;;  %v17806_v60 = vpack.c.bf16 %v4856_v48, %v4848_v32  ;;  %v3508_v15 = vpop.f32.mrb[120].mxu1  ;;  %v3894_v22 = vpop.f32.mrb[120].mxu0  ;;  %8776 = vmatprep.subr.bf16.mxu0 %v14988_v52  ;;  %8004 = vmatprep.subr.bf16.mxu1 %v14991_v4  ;;  %v14995_v46 = vld [vmem:[#allocation12 + $0x70] ss:$28 sps:$4 sm:$0xff]  }
 0x3f6   :  { %20107 = vst [vmem:[#allocation48_spill] sm:$0xff] %v17799_v57  ;;  %20108 = vst [vmem:[#allocation47_spill] sm:$0xff] %v17801_v10  ;;  %v13571_v14 = vadd.f32 %v3508_v15, %v17675_v18  ;;  %v13635_v41 = vadd.f32 %v3894_v22, %v17678_v9  ;;  %v3510_v7 = vpop.f32.mrb[121].mxu1  ;;  %v3896_v49 = vpop.f32.mrb[121].mxu0  ;;  %v15000_v22 = vld [vmem:[#allocation12 + $0xb4] ss:$28 sps:$4 sm:$0xff]  }
 0x3f7   :  { %20109 = vst [vmem:[#allocation50_spill] sm:$0xff] %v17804_v20  ;;  %20110 = vst [vmem:[#allocation49_spill] sm:$0xff] %v17806_v60  ;;  %v13572_v2 = vadd.f32 %v3510_v7, %v17683_v17  ;;  %v13636_v62 = vadd.f32 %v3896_v49, %v17686_v0  ;;  %v3512_v43 = vpop.f32.mrb[122].mxu1  ;;  %v3898_v56 = vpop.f32.mrb[122].mxu0  ;;  %8777 = vmatpush1.bf16.msra.mxu0 %v14986_v3  ;;  %v15003_v7 = vld [vmem:[#allocation12 + $0xac] ss:$28 sps:$4 sm:$0xff]  }
 0x3f8   :  { %v13573_v32 = vadd.f32 %v3512_v43, %v17675_v18  ;;  %v13637_v48 = vadd.f32 %v3898_v56, %v17678_v9  ;;  %v3514_v52 = vpop.f32.mrb[123].mxu1  ;;  %v3900_v4 = vpop.f32.mrb[123].mxu0  ;;  %8005 = vmatpush1.bf16.msra.mxu1 %v14989_v55  ;;  %8778 = vmatprep.subr.bf16.mxu0 %v14994_v50  ;;  %v4861_v49 = vmax.f32 %v13571_v14, 0.0  ;;  %v4863_v10 = vmax.f32 %v13635_v41, 0.0  ;;  %v20111_v43 = vld [vmem:[#allocation25_spill] sm:$0xff]  ;;  %v20112_v20 = vld [vmem:[#allocation27_spill] sm:$0xff] }
 0x3f9   :  { %v13574_v34 = vadd.f32 %v3514_v52, %v17683_v17  ;;  %v13638_v15 = vadd.f32 %v3900_v4, %v17686_v0  ;;  %8006 = vmatprep.subr.bf16.mxu1 %v14997_v47  ;;  %v4862_v56 = vmax.f32 %v13572_v2, 0.0  ;;  %v4864_v55 = vmax.f32 %v13636_v62, 0.0  ;;  %v14998_v14 = vld [vmem:[#allocation12 + $0xb0] ss:$28 sps:$4 sm:$0xff]   ;;  %v15001_v41 = vld [vmem:[#allocation12 + $0xa8] ss:$28 sps:$4 sm:$0xff]  }
 0x3fa   :  { %v4869_v3 = vmax.f32 %v13573_v32, 0.0  ;;  %v4871_v60 = vmax.f32 %v13637_v48, 0.0  ;;  %4229 = vmatmul.mubr.bf16.gmra.mrb[164].mxu1 %v20111_v43  ;;  %4615 = vmatmul.mubr.bf16.gmra.mrb[164].mxu0 %v20111_v43  ;;  %v15006_v4 = vld [vmem:[#allocation12 + $0xec] ss:$28 sps:$4 sm:$0xff]  }
 0x3fb   :  { %v4870_v57 = vmax.f32 %v13574_v34, 0.0  ;;  %v4872_v50 = vmax.f32 %v13638_v15, 0.0  ;;  %4238 = vmatprep.mubr.bf16.mxu1 %v20112_v20  ;;  %4624 = vmatprep.mubr.bf16.mxu0 %v20112_v20  ;;  %v15009_v34 = vld [vmem:[#allocation12 + $0xe4] ss:$28 sps:$4 sm:$0xff]  }
 0x3fc   :  { %v17820_v52 = vpack.c.bf16 %v4869_v3, %v4861_v49  ;;  %v17822_v47 = vpack.c.bf16 %v4871_v60, %v4863_v10  ;;  %8779 = vmatpush1.bf16.msra.mxu0 %v14992_v23  ;;  %8007 = vmatpush1.bf16.msra.mxu1 %v14995_v46 }
 0x3fd   :  { %v17824_v32 = vpack.c.bf16 %v4870_v57, %v4862_v56  ;;  %v17826_v48 = vpack.c.bf16 %v4872_v50, %v4864_v55  ;;  %v3518_v2 = vpop.f32.mrb[124].mxu1  ;;  %v3904_v62 = vpop.f32.mrb[124].mxu0  ;;  %8780 = vmatprep.subr.bf16.mxu0 %v15000_v22  ;;  %8008 = vmatprep.subr.bf16.mxu1 %v15003_v7  ;;  %v15004_v56 = vld [vmem:[#allocation12 + $0xe8] ss:$28 sps:$4 sm:$0xff]   ;;  %v15007_v55 = vld [vmem:[#allocation12 + $0xe0] ss:$28 sps:$4 sm:$0xff]  }
 0x3fe   :  { %20113 = vst [vmem:[#allocation52_spill] sm:$0xff] %v17820_v52  ;;  %20114 = vst [vmem:[#allocation51_spill] sm:$0xff] %v17822_v47  ;;  %v13575_v20 = vadd.f32 %v3518_v2, %v17675_v18  ;;  %v13639_v15 = vadd.f32 %v3904_v62, %v17678_v9  ;;  %v3520_v10 = vpop.f32.mrb[125].mxu1  ;;  %v3906_v60 = vpop.f32.mrb[125].mxu0  ;;  %v15012_v62 = vld [vmem:[#allocation12 + $0x124] ss:$28 sps:$4 sm:$0xff]  }
 0x3ff   :  { %20115 = vst [vmem:[#allocation25_spill] sm:$0xff] %v17824_v32  ;;  %20116 = vst [vmem:[#allocation27_spill] sm:$0xff] %v17826_v48  ;;  %v13576_v23 = vadd.f32 %v3520_v10, %v17683_v17  ;;  %v13640_v46 = vadd.f32 %v3906_v60, %v17686_v0  ;;  %v3522_v57 = vpop.f32.mrb[126].mxu1  ;;  %v3908_v49 = vpop.f32.mrb[126].mxu0  ;;  %v15015_v10 = vld [vmem:[#allocation12 + $0x11c] ss:$28 sps:$4 sm:$0xff]  }
 0x400   :  { %v13577_v3 = vadd.f32 %v3522_v57, %v17675_v18  ;;  %v13641_v43 = vadd.f32 %v3908_v49, %v17678_v9  ;;  %v3524_v22 = vpop.f32.mrb[127].mxu1  ;;  %v3910_v7 = vpop.f32.mrb[127].mxu0  ;;  %8781 = vmatpush1.bf16.msra.mxu0 %v14998_v14  ;;  %8009 = vmatpush1.bf16.msra.mxu1 %v15001_v41  ;;  %v4877_v60 = vmax.f32 %v13575_v20, 0.0  ;;  %v4879_v47 = vmax.f32 %v13639_v15, 0.0  ;;  %v15010_v20 = vld [vmem:[#allocation12 + $0x120] ss:$28 sps:$4 sm:$0xff]  }
 0x401   :  { %v13578_v50 = vadd.f32 %v3524_v22, %v17683_v17  ;;  %v13642_v2 = vadd.f32 %v3910_v7, %v17686_v0  ;;  %8782 = vmatprep.subr.bf16.mxu0 %v15006_v4  ;;  %8010 = vmatprep.subr.bf16.mxu1 %v15009_v34  ;;  %v4878_v14 = vmax.f32 %v13576_v23, 0.0  ;;  %v4880_v41 = vmax.f32 %v13640_v46, 0.0  ;;  %v15013_v15 = vld [vmem:[#allocation12 + $0x118] ss:$28 sps:$4 sm:$0xff]  }
 0x402   :  { %v4885_v48 = vmax.f32 %v13577_v3, 0.0  ;;  %v4887_v57 = vmax.f32 %v13641_v43, 0.0  ;;  %4239 = vmatmul.mubr.bf16.gmra.mrb[168].mxu1 %v17055_v29  ;;  %4625 = vmatmul.mubr.bf16.gmra.mrb[168].mxu0 %v17055_v29  ;;  %v15018_v46 = vld [vmem:[#allocation12 + $0x15c] ss:$28 sps:$4 sm:$0xff]   ;;  %v15021_v22 = vld [vmem:[#allocation12 + $0x154] ss:$28 sps:$4 sm:$0xff]  }
 0x403   :  { %v4886_v49 = vmax.f32 %v13578_v50, 0.0  ;;  %v4888_v52 = vmax.f32 %v13642_v2, 0.0  ;;  %4248 = vmatprep.mubr.bf16.mxu1 %v17131_v53  ;;  %4634 = vmatprep.mubr.bf16.mxu0 %v17131_v53 }
 0x404   :  { %v17840_v4 = vpack.c.bf16 %v4885_v48, %v4877_v60  ;;  %v17842_v34 = vpack.c.bf16 %v4887_v57, %v4879_v47  ;;  %8783 = vmatpush1.bf16.msra.mxu0 %v15004_v56  ;;  %8011 = vmatpush1.bf16.msra.mxu1 %v15007_v55  ;;  %v15016_v57 = vld [vmem:[#allocation12 + $0x158] ss:$28 sps:$4 sm:$0xff]  }
 0x405   :  { %v17844_v3 = vpack.c.bf16 %v4886_v49, %v4878_v14  ;;  %v17846_v43 = vpack.c.bf16 %v4888_v52, %v4880_v41  ;;  %v3528_v29 = vpop.f32.mrb[128].mxu1  ;;  %v3914_v23 = vpop.f32.mrb[128].mxu0  ;;  %8784 = vmatprep.subr.bf16.mxu0 %v15012_v62  ;;  %8012 = vmatprep.subr.bf16.mxu1 %v15015_v10  ;;  %v15019_v14 = vld [vmem:[#allocation12 + $0x150] ss:$28 sps:$4 sm:$0xff]  }
 0x406   :  { %20117 = vst [vmem:[#allocation53_spill] sm:$0xff] %v17840_v4  ;;  %20118 = vst [vmem:[#allocation54_spill] sm:$0xff] %v17842_v34  ;;  %v13579_v53 = vadd.f32 %v3528_v29, %v17675_v18  ;;  %v13643_v48 = vadd.f32 %v3914_v23, %v17678_v9  ;;  %v3530_v47 = vpop.f32.mrb[129].mxu1  ;;  %v3916_v7 = vpop.f32.mrb[129].mxu0  ;;  %v15024_v29 = vld [vmem:[#allocation12 + $0x194] ss:$28 sps:$4 sm:$0xff]  }
 0x407   :  { %20119 = vst [vmem:[#allocation55_spill] sm:$0xff] %v17844_v3  ;;  %20120 = vst [vmem:[#allocation56_spill] sm:$0xff] %v17846_v43  ;;  %v13580_v56 = vadd.f32 %v3530_v47, %v17683_v17  ;;  %v13644_v55 = vadd.f32 %v3916_v7, %v17686_v0  ;;  %v3532_v50 = vpop.f32.mrb[130].mxu1  ;;  %v3918_v2 = vpop.f32.mrb[130].mxu0  ;;  %v15027_v23 = vld [vmem:[#allocation12 + $0x18c] ss:$28 sps:$4 sm:$0xff]  }
 0x408   :  { %v13581_v52 = vadd.f32 %v3532_v50, %v17675_v18  ;;  %v13645_v60 = vadd.f32 %v3918_v2, %v17678_v9  ;;  %v3534_v62 = vpop.f32.mrb[131].mxu1  ;;  %v3920_v10 = vpop.f32.mrb[131].mxu0  ;;  %8785 = vmatpush1.bf16.msra.mxu0 %v15010_v20  ;;  %8013 = vmatpush1.bf16.msra.mxu1 %v15013_v15  ;;  %v4893_v47 = vmax.f32 %v13579_v53, 0.0  ;;  %v4895_v7 = vmax.f32 %v13643_v48, 0.0  ;;  %v15022_v53 = vld [vmem:[#allocation12 + $0x190] ss:$28 sps:$4 sm:$0xff]  }
 0x409   :  { %v13582_v41 = vadd.f32 %v3534_v62, %v17683_v17  ;;  %v13646_v49 = vadd.f32 %v3920_v10, %v17686_v0  ;;  %8786 = vmatprep.subr.bf16.mxu0 %v15018_v46  ;;  %8014 = vmatprep.subr.bf16.mxu1 %v15021_v22  ;;  %v4894_v20 = vmax.f32 %v13580_v56, 0.0  ;;  %v4896_v15 = vmax.f32 %v13644_v55, 0.0  ;;  %v15025_v48 = vld [vmem:[#allocation12 + $0x188] ss:$28 sps:$4 sm:$0xff]  }
 0x40a   :  { %v4901_v34 = vmax.f32 %v13581_v52, 0.0  ;;  %v4903_v50 = vmax.f32 %v13645_v60, 0.0  ;;  %4249 = vmatmul.mubr.bf16.gmra.mrb[172].mxu1 %v17123_v63  ;;  %4635 = vmatmul.mubr.bf16.gmra.mrb[172].mxu0 %v17123_v63  ;;  %v15030_v55 = vld [vmem:[#allocation12 + $0x1cc] ss:$28 sps:$4 sm:$0xff]   ;;  %v15033_v62 = vld [vmem:[#allocation12 + $0x1c4] ss:$28 sps:$4 sm:$0xff]  }
 0x40b   :  { %v4902_v2 = vmax.f32 %v13582_v41, 0.0  ;;  %v4904_v43 = vmax.f32 %v13646_v49, 0.0  ;;  %4258 = vmatprep.mubr.bf16.mxu1 %v17199_v39  ;;  %4644 = vmatprep.mubr.bf16.mxu0 %v17199_v39 }
 0x40c   :  { %v17860_v46 = vpack.c.bf16 %v4901_v34, %v4893_v47  ;;  %v17862_v22 = vpack.c.bf16 %v4903_v50, %v4895_v7  ;;  %8787 = vmatpush1.bf16.msra.mxu0 %v15016_v57  ;;  %8015 = vmatpush1.bf16.msra.mxu1 %v15019_v14  ;;  %v15028_v50 = vld [vmem:[#allocation12 + $0x1c8] ss:$28 sps:$4 sm:$0xff]  }
 0x40d   :  { %v17864_v52 = vpack.c.bf16 %v4902_v2, %v4894_v20  ;;  %v17866_v60 = vpack.c.bf16 %v4904_v43, %v4896_v15  ;;  %v3538_v63 = vpop.f32.mrb[132].mxu1  ;;  %v3924_v56 = vpop.f32.mrb[132].mxu0  ;;  %8788 = vmatprep.subr.bf16.mxu0 %v15024_v29  ;;  %8016 = vmatprep.subr.bf16.mxu1 %v15027_v23  ;;  %v15031_v20 = vld [vmem:[#allocation12 + $0x1c0] ss:$28 sps:$4 sm:$0xff]  }
 0x40e   :  { %20121 = vst [vmem:[#allocation57_spill] sm:$0xff] %v17860_v46  ;;  %20122 = vst [vmem:[#allocation58_spill] sm:$0xff] %v17862_v22  ;;  %v13583_v39 = vadd.f32 %v3538_v63, %v17675_v18  ;;  %v13647_v34 = vadd.f32 %v3924_v56, %v17678_v9  ;;  %v3540_v10 = vpop.f32.mrb[133].mxu1  ;;  %v3926_v41 = vpop.f32.mrb[133].mxu0  ;;  %v15036_v63 = vld [vmem:[#allocation12 + $0x204] ss:$28 sps:$4 sm:$0xff]  }
 0x40f   :  { %20123 = vst [vmem:[#allocation59_spill] sm:$0xff] %v17864_v52  ;;  %20124 = vst [vmem:[#allocation60_spill] sm:$0xff] %v17866_v60  ;;  %v13584_v57 = vadd.f32 %v3540_v10, %v17683_v17  ;;  %v13648_v14 = vadd.f32 %v3926_v41, %v17686_v0  ;;  %v3542_v49 = vpop.f32.mrb[134].mxu1  ;;  %v3928_v47 = vpop.f32.mrb[134].mxu0  ;;  %v15039_v56 = vld [vmem:[#allocation12 + $0x1fc] ss:$28 sps:$4 sm:$0xff]  }
 0x410   :  { %v13585_v43 = vadd.f32 %v3542_v49, %v17675_v18  ;;  %v13649_v7 = vadd.f32 %v3928_v47, %v17678_v9  ;;  %v3544_v29 = vpop.f32.mrb[135].mxu1  ;;  %v3930_v23 = vpop.f32.mrb[135].mxu0  ;;  %8789 = vmatpush1.bf16.msra.mxu0 %v15022_v53  ;;  %8017 = vmatpush1.bf16.msra.mxu1 %v15025_v48  ;;  %v4909_v10 = vmax.f32 %v13583_v39, 0.0  ;;  %v4911_v41 = vmax.f32 %v13647_v34, 0.0  ;;  %v15034_v39 = vld [vmem:[#allocation12 + $0x200] ss:$28 sps:$4 sm:$0xff]  }
 0x411   :  { %v13586_v15 = vadd.f32 %v3544_v29, %v17683_v17  ;;  %v13650_v2 = vadd.f32 %v3930_v23, %v17686_v0  ;;  %8790 = vmatprep.subr.bf16.mxu0 %v15030_v55  ;;  %8018 = vmatprep.subr.bf16.mxu1 %v15033_v62  ;;  %v4910_v53 = vmax.f32 %v13584_v57, 0.0  ;;  %v4912_v48 = vmax.f32 %v13648_v14, 0.0  ;;  %v15037_v34 = vld [vmem:[#allocation12 + $0x1f8] ss:$28 sps:$4 sm:$0xff]  }
 0x412   :  { %v4917_v22 = vmax.f32 %v13585_v43, 0.0  ;;  %v4919_v49 = vmax.f32 %v13649_v7, 0.0  ;;  %4259 = vmatmul.mubr.bf16.gmra.mrb[176].mxu1 %v17187_v40  ;;  %4645 = vmatmul.mubr.bf16.gmra.mrb[176].mxu0 %v17187_v40  ;;  %v15042_v14 = vld [vmem:[#allocation12 + $0x23c] ss:$28 sps:$4 sm:$0xff]   ;;  %v15045_v29 = vld [vmem:[#allocation12 + $0x234] ss:$28 sps:$4 sm:$0xff]  }
 0x413   :  { %v4918_v47 = vmax.f32 %v13586_v15, 0.0  ;;  %v4920_v60 = vmax.f32 %v13650_v2, 0.0  ;;  %4268 = vmatprep.mubr.bf16.mxu1 %v17257_v1  ;;  %4654 = vmatprep.mubr.bf16.mxu0 %v17257_v1 }
 0x414   :  { %v17880_v55 = vpack.c.bf16 %v4917_v22, %v4909_v10  ;;  %v17882_v62 = vpack.c.bf16 %v4919_v49, %v4911_v41  ;;  %8791 = vmatpush1.bf16.msra.mxu0 %v15028_v50  ;;  %8019 = vmatpush1.bf16.msra.mxu1 %v15031_v20  ;;  %v15040_v49 = vld [vmem:[#allocation12 + $0x238] ss:$28 sps:$4 sm:$0xff]  }
 0x415   :  { %v17884_v43 = vpack.c.bf16 %v4918_v47, %v4910_v53  ;;  %v17886_v7 = vpack.c.bf16 %v4920_v60, %v4912_v48  ;;  %v3548_v40 = vpop.f32.mrb[136].mxu1  ;;  %v3934_v57 = vpop.f32.mrb[136].mxu0  ;;  %8792 = vmatprep.subr.bf16.mxu0 %v15036_v63  ;;  %8020 = vmatprep.subr.bf16.mxu1 %v15039_v56  ;;  %v15043_v53 = vld [vmem:[#allocation12 + $0x230] ss:$28 sps:$4 sm:$0xff]  }
 0x416   :  { %20125 = vst [vmem:[#allocation61_spill] sm:$0xff] %v17880_v55  ;;  %20126 = vst [vmem:[#allocation62_spill] sm:$0xff] %v17882_v62  ;;  %v13587_v1 = vadd.f32 %v3548_v40, %v17675_v18  ;;  %v13651_v22 = vadd.f32 %v3934_v57, %v17678_v9  ;;  %v3550_v23 = vpop.f32.mrb[137].mxu1  ;;  %v3936_v15 = vpop.f32.mrb[137].mxu0  ;;  %v15048_v40 = vld [vmem:[#allocation12 + $0x274] ss:$28 sps:$4 sm:$0xff]  }
 0x417   :  { %20127 = vst [vmem:[#allocation63_spill] sm:$0xff] %v17884_v43  ;;  %20128 = vst [vmem:[#allocation64_spill] sm:$0xff] %v17886_v7  ;;  %v13588_v50 = vadd.f32 %v3550_v23, %v17683_v17  ;;  %v13652_v20 = vadd.f32 %v3936_v15, %v17686_v0  ;;  %v3552_v2 = vpop.f32.mrb[138].mxu1  ;;  %v3938_v10 = vpop.f32.mrb[138].mxu0  ;;  %v15051_v57 = vld [vmem:[#allocation12 + $0x26c] ss:$28 sps:$4 sm:$0xff]  }
 0x418   :  { %v13589_v60 = vadd.f32 %v3552_v2, %v17675_v18  ;;  %v13653_v41 = vadd.f32 %v3938_v10, %v17678_v9  ;;  %v3554_v63 = vpop.f32.mrb[139].mxu1  ;;  %v3940_v56 = vpop.f32.mrb[139].mxu0  ;;  %8793 = vmatpush1.bf16.msra.mxu0 %v15034_v39  ;;  %8021 = vmatpush1.bf16.msra.mxu1 %v15037_v34  ;;  %v4925_v23 = vmax.f32 %v13587_v1, 0.0  ;;  %v4927_v15 = vmax.f32 %v13651_v22, 0.0  ;;  %v15046_v1 = vld [vmem:[#allocation12 + $0x270] ss:$28 sps:$4 sm:$0xff]  }
 0x419   :  { %v13590_v48 = vadd.f32 %v3554_v63, %v17683_v17  ;;  %v13654_v47 = vadd.f32 %v3940_v56, %v17686_v0  ;;  %8794 = vmatprep.subr.bf16.mxu0 %v15042_v14  ;;  %8022 = vmatprep.subr.bf16.mxu1 %v15045_v29  ;;  %v4926_v39 = vmax.f32 %v13588_v50, 0.0  ;;  %v4928_v34 = vmax.f32 %v13652_v20, 0.0  ;;  %v15049_v22 = vld [vmem:[#allocation12 + $0x268] ss:$28 sps:$4 sm:$0xff]  }
 0x41a   :  { %v4933_v62 = vmax.f32 %v13589_v60, 0.0  ;;  %v4935_v2 = vmax.f32 %v13653_v41, 0.0  ;;  %4269 = vmatmul.mubr.bf16.gmra.mrb[180].mxu1 %v17249_v35  ;;  %4655 = vmatmul.mubr.bf16.gmra.mrb[180].mxu0 %v17249_v35  ;;  %v15054_v20 = vld [vmem:[#allocation12 + $0x2ac] ss:$28 sps:$4 sm:$0xff]   ;;  %v15057_v63 = vld [vmem:[#allocation12 + $0x2a4] ss:$28 sps:$4 sm:$0xff]  }
 0x41b   :  { %v4934_v10 = vmax.f32 %v13590_v48, 0.0  ;;  %v4936_v7 = vmax.f32 %v13654_v47, 0.0  ;;  %4278 = vmatprep.mubr.bf16.mxu1 %v17316_v12  ;;  %4664 = vmatprep.mubr.bf16.mxu0 %v17316_v12 }
 0x41c   :  { %v17900_v14 = vpack.c.bf16 %v4933_v62, %v4925_v23  ;;  %v17902_v29 = vpack.c.bf16 %v4935_v2, %v4927_v15  ;;  %8795 = vmatpush1.bf16.msra.mxu0 %v15040_v49  ;;  %8023 = vmatpush1.bf16.msra.mxu1 %v15043_v53  ;;  %v15052_v2 = vld [vmem:[#allocation12 + $0x2a8] ss:$28 sps:$4 sm:$0xff]  }
 0x41d   :  { %v17904_v60 = vpack.c.bf16 %v4934_v10, %v4926_v39  ;;  %v17906_v41 = vpack.c.bf16 %v4936_v7, %v4928_v34  ;;  %v3558_v35 = vpop.f32.mrb[140].mxu1  ;;  %v3944_v50 = vpop.f32.mrb[140].mxu0  ;;  %8796 = vmatprep.subr.bf16.mxu0 %v15048_v40  ;;  %8024 = vmatprep.subr.bf16.mxu1 %v15051_v57  ;;  %v15055_v39 = vld [vmem:[#allocation12 + $0x2a0] ss:$28 sps:$4 sm:$0xff]  }
 0x41e   :  { %20129 = vst [vmem:[#allocation65_spill] sm:$0xff] %v17900_v14  ;;  %20130 = vst [vmem:[#allocation66_spill] sm:$0xff] %v17902_v29  ;;  %v13591_v12 = vadd.f32 %v3558_v35, %v17675_v18  ;;  %v13655_v62 = vadd.f32 %v3944_v50, %v17678_v9  ;;  %v3560_v56 = vpop.f32.mrb[141].mxu1  ;;  %v3946_v48 = vpop.f32.mrb[141].mxu0  ;;  %v15060_v35 = vld [vmem:[#allocation12 + $0x2e4] ss:$28 sps:$4 sm:$0xff]  }
 0x41f   :  { %20131 = vst [vmem:[#allocation67_spill] sm:$0xff] %v17904_v60  ;;  %20132 = vst [vmem:[#allocation68_spill] sm:$0xff] %v17906_v41  ;;  %v13592_v49 = vadd.f32 %v3560_v56, %v17683_v17  ;;  %v13656_v53 = vadd.f32 %v3946_v48, %v17686_v0  ;;  %v3562_v47 = vpop.f32.mrb[142].mxu1  ;;  %v3948_v23 = vpop.f32.mrb[142].mxu0  ;;  %v15063_v50 = vld [vmem:[#allocation12 + $0x2dc] ss:$28 sps:$4 sm:$0xff]  }
 0x420   :  { %v13593_v7 = vadd.f32 %v3562_v47, %v17675_v18  ;;  %v13657_v15 = vadd.f32 %v3948_v23, %v17678_v9  ;;  %v3564_v40 = vpop.f32.mrb[143].mxu1  ;;  %v3950_v57 = vpop.f32.mrb[143].mxu0  ;;  %8797 = vmatpush1.bf16.msra.mxu0 %v15046_v1  ;;  %8025 = vmatpush1.bf16.msra.mxu1 %v15049_v22  ;;  %v4941_v56 = vmax.f32 %v13591_v12, 0.0  ;;  %v4943_v48 = vmax.f32 %v13655_v62, 0.0  ;;  %v15058_v12 = vld [vmem:[#allocation12 + $0x2e0] ss:$28 sps:$4 sm:$0xff]  }
 0x421   :  { %v13594_v34 = vadd.f32 %v3564_v40, %v17683_v17  ;;  %v13658_v10 = vadd.f32 %v3950_v57, %v17686_v0  ;;  %8798 = vmatprep.subr.bf16.mxu0 %v15054_v20  ;;  %8026 = vmatprep.subr.bf16.mxu1 %v15057_v63  ;;  %v4942_v1 = vmax.f32 %v13592_v49, 0.0  ;;  %v4944_v22 = vmax.f32 %v13656_v53, 0.0  ;;  %v15061_v62 = vld [vmem:[#allocation12 + $0x2d8] ss:$28 sps:$4 sm:$0xff]  }
 0x422   :  { %v4949_v29 = vmax.f32 %v13593_v7, 0.0  ;;  %v4951_v47 = vmax.f32 %v13657_v15, 0.0  ;;  %4279 = vmatmul.mubr.bf16.gmra.mrb[184].mxu1 %v17304_v28  ;;  %4665 = vmatmul.mubr.bf16.gmra.mrb[184].mxu0 %v17304_v28  ;;  %v15066_v53 = vld [vmem:[#allocation12 + $0x31c] ss:$28 sps:$4 sm:$0xff]   ;;  %v15069_v40 = vld [vmem:[#allocation12 + $0x314] ss:$28 sps:$4 sm:$0xff]  }
 0x423   :  { %v4950_v23 = vmax.f32 %v13594_v34, 0.0  ;;  %v4952_v41 = vmax.f32 %v13658_v10, 0.0  ;;  %4288 = vmatprep.mubr.bf16.mxu1 %v17364_v5  ;;  %4674 = vmatprep.mubr.bf16.mxu0 %v17364_v5 }
 0x424   :  { %v17920_v20 = vpack.c.bf16 %v4949_v29, %v4941_v56  ;;  %v17922_v63 = vpack.c.bf16 %v4951_v47, %v4943_v48  ;;  %8799 = vmatpush1.bf16.msra.mxu0 %v15052_v2  ;;  %8027 = vmatpush1.bf16.msra.mxu1 %v15055_v39  ;;  %v15064_v47 = vld [vmem:[#allocation12 + $0x318] ss:$28 sps:$4 sm:$0xff]  }
 0x425   :  { %v17924_v7 = vpack.c.bf16 %v4950_v23, %v4942_v1  ;;  %v17926_v15 = vpack.c.bf16 %v4952_v41, %v4944_v22  ;;  %v3568_v28 = vpop.f32.mrb[144].mxu1  ;;  %v3954_v49 = vpop.f32.mrb[144].mxu0  ;;  %8800 = vmatprep.subr.bf16.mxu0 %v15060_v35  ;;  %8028 = vmatprep.subr.bf16.mxu1 %v15063_v50  ;;  %v15067_v1 = vld [vmem:[#allocation12 + $0x310] ss:$28 sps:$4 sm:$0xff]  }
 0x426   :  { %20133 = vst [vmem:[#allocation69_spill] sm:$0xff] %v17920_v20  ;;  %20134 = vst [vmem:[#allocation70_spill] sm:$0xff] %v17922_v63  ;;  %v13595_v5 = vadd.f32 %v3568_v28, %v17675_v18  ;;  %v13659_v29 = vadd.f32 %v3954_v49, %v17678_v9  ;;  %v3570_v57 = vpop.f32.mrb[145].mxu1  ;;  %v3956_v34 = vpop.f32.mrb[145].mxu0  ;;  %v15072_v28 = vld [vmem:[#allocation12 + $0x354] ss:$28 sps:$4 sm:$0xff]  }
 0x427   :  { %20135 = vst [vmem:[#allocation71_spill] sm:$0xff] %v17924_v7  ;;  %20136 = vst [vmem:[#allocation72_spill] sm:$0xff] %v17926_v15  ;;  %v13596_v2 = vadd.f32 %v3570_v57, %v17683_v17  ;;  %v13660_v39 = vadd.f32 %v3956_v34, %v17686_v0  ;;  %v3572_v10 = vpop.f32.mrb[146].mxu1  ;;  %v3958_v56 = vpop.f32.mrb[146].mxu0  ;;  %v15075_v49 = vld [vmem:[#allocation12 + $0x34c] ss:$28 sps:$4 sm:$0xff]  }
 0x428   :  { %v13597_v41 = vadd.f32 %v3572_v10, %v17675_v18  ;;  %v13661_v48 = vadd.f32 %v3958_v56, %v17678_v9  ;;  %v3574_v35 = vpop.f32.mrb[147].mxu1  ;;  %v3960_v50 = vpop.f32.mrb[147].mxu0  ;;  %8801 = vmatpush1.bf16.msra.mxu0 %v15058_v12  ;;  %8029 = vmatpush1.bf16.msra.mxu1 %v15061_v62  ;;  %v4957_v57 = vmax.f32 %v13595_v5, 0.0  ;;  %v4959_v34 = vmax.f32 %v13659_v29, 0.0  ;;  %v15070_v5 = vld [vmem:[#allocation12 + $0x350] ss:$28 sps:$4 sm:$0xff]  }
 0x429   :  { %v13598_v22 = vadd.f32 %v3574_v35, %v17683_v17  ;;  %v13662_v23 = vadd.f32 %v3960_v50, %v17686_v0  ;;  %8802 = vmatprep.subr.bf16.mxu0 %v15066_v53  ;;  %8030 = vmatprep.subr.bf16.mxu1 %v15069_v40  ;;  %v4958_v12 = vmax.f32 %v13596_v2, 0.0  ;;  %v4960_v62 = vmax.f32 %v13660_v39, 0.0  ;;  %v15073_v29 = vld [vmem:[#allocation12 + $0x348] ss:$28 sps:$4 sm:$0xff]  }
 0x42a   :  { %v4965_v63 = vmax.f32 %v13597_v41, 0.0  ;;  %v4967_v10 = vmax.f32 %v13661_v48, 0.0  ;;  %4289 = vmatmul.mubr.bf16.gmra.mrb[188].mxu1 %v17356_v31  ;;  %4675 = vmatmul.mubr.bf16.gmra.mrb[188].mxu0 %v17356_v31  ;;  %v15078_v39 = vld [vmem:[#allocation12 + $0x38c] ss:$28 sps:$4 sm:$0xff]   ;;  %v15081_v35 = vld [vmem:[#allocation12 + $0x384] ss:$28 sps:$4 sm:$0xff]  }
 0x42b   :  { %v4966_v56 = vmax.f32 %v13598_v22, 0.0  ;;  %v4968_v15 = vmax.f32 %v13662_v23, 0.0  ;;  %4298 = vmatprep.mubr.bf16.mxu1 %v17390_v36  ;;  %4684 = vmatprep.mubr.bf16.mxu0 %v17390_v36 }
 0x42c   :  { %v17940_v53 = vpack.c.bf16 %v4965_v63, %v4957_v57  ;;  %v17942_v40 = vpack.c.bf16 %v4967_v10, %v4959_v34  ;;  %8803 = vmatpush1.bf16.msra.mxu0 %v15064_v47  ;;  %8031 = vmatpush1.bf16.msra.mxu1 %v15067_v1 }
 0x42d   :  { %v17944_v41 = vpack.c.bf16 %v4966_v56, %v4958_v12  ;;  %v17946_v48 = vpack.c.bf16 %v4968_v15, %v4960_v62  ;;  %v3578_v31 = vpop.f32.mrb[148].mxu1  ;;  %v3964_v2 = vpop.f32.mrb[148].mxu0  ;;  %8804 = vmatprep.subr.bf16.mxu0 %v15072_v28  ;;  %8032 = vmatprep.subr.bf16.mxu1 %v15075_v49 }
 0x42e   :  { %20137 = vst [vmem:[#allocation73_spill] sm:$0xff] %v17940_v53  ;;  %v13599_v36 = vadd.f32 %v3578_v31, %v17675_v18  ;;  %v13663_v63 = vadd.f32 %v3964_v2, %v17678_v9  ;;  %v3580_v50 = vpop.f32.mrb[149].mxu1  ;;  %v3966_v22 = vpop.f32.mrb[149].mxu0 }
 0x42f   :  { %20138 = vst [vmem:[#allocation74_spill] sm:$0xff] %v17944_v41  ;;  %v13600_v47 = vadd.f32 %v3580_v50, %v17683_v17  ;;  %v13664_v1 = vadd.f32 %v3966_v22, %v17686_v0  ;;  %v3582_v23 = vpop.f32.mrb[150].mxu1  ;;  %v3968_v57 = vpop.f32.mrb[150].mxu0 }
 0x430   :  { %v13601_v15 = vadd.f32 %v3582_v23, %v17675_v18  ;;  %v13665_v34 = vadd.f32 %v3968_v57, %v17678_v9  ;;  %v3584_v28 = vpop.f32.mrb[151].mxu1  ;;  %v3970_v49 = vpop.f32.mrb[151].mxu0  ;;  %8805 = vmatpush1.bf16.msra.mxu0 %v15070_v5  ;;  %8033 = vmatpush1.bf16.msra.mxu1 %v15073_v29  ;;  %v4973_v62 = vmax.f32 %v13599_v36, 0.0  ;;  %v4975_v56 = vmax.f32 %v13663_v63, 0.0 }
 0x431   :  { %v13602_v10 = vadd.f32 %v3584_v28, %v17683_v17  ;;  %v13666_v12 = vadd.f32 %v3970_v49, %v17686_v0  ;;  %8967 = vmatprep.subr.bf16.mxu0 %v15078_v39  ;;  %8195 = vmatprep.subr.bf16.mxu1 %v15081_v35  ;;  %v4974_v50 = vmax.f32 %v13600_v47, 0.0  ;;  %v4976_v22 = vmax.f32 %v13664_v1, 0.0 }
 0x432   :  { %v4981_v31 = vmax.f32 %v13601_v15, 0.0  ;;  %v4983_v2 = vmax.f32 %v13665_v34, 0.0  ;;  %4299 = vmatmul.mubr.bf16.gmra.mrb[192].mxu1 %v17386_v25  ;;  %4685 = vmatmul.mubr.bf16.gmra.mrb[192].mxu0 %v17386_v25 }
 0x433   :  { %v4982_v23 = vmax.f32 %v13602_v10, 0.0  ;;  %v4984_v57 = vmax.f32 %v13666_v12, 0.0  ;;  %4308 = vmatprep.mubr.bf16.mxu1 %v17410_v26  ;;  %4694 = vmatprep.mubr.bf16.mxu0 %v17410_v26 }
 0x434   :  { %v17960_v5 = vpack.c.bf16 %v4981_v31, %v4973_v62  ;;  %v17962_v29 = vpack.c.bf16 %v4983_v2, %v4975_v56 }
 0x435   :  { %v17964_v39 = vpack.c.bf16 %v4982_v23, %v4974_v50  ;;  %v17966_v35 = vpack.c.bf16 %v4984_v57, %v4976_v22  ;;  %v3588_v36 = vpop.f32.mrb[152].mxu1  ;;  %v3974_v63 = vpop.f32.mrb[152].mxu0 }
 0x436   :  { %20139 = vst [vmem:[#allocation75_spill] sm:$0xff] %v17960_v5  ;;  %v13603_v25 = vadd.f32 %v3588_v36, %v17675_v18  ;;  %v13667_v47 = vadd.f32 %v3974_v63, %v17678_v9  ;;  %v3590_v1 = vpop.f32.mrb[153].mxu1  ;;  %v3976_v15 = vpop.f32.mrb[153].mxu0 }
 0x437   :  { %20140 = vst [vmem:[#allocation76_spill] sm:$0xff] %v17964_v39  ;;  %v13604_v34 = vadd.f32 %v3590_v1, %v17683_v17  ;;  %v13668_v26 = vadd.f32 %v3976_v15, %v17686_v0  ;;  %v3592_v28 = vpop.f32.mrb[154].mxu1  ;;  %v3978_v49 = vpop.f32.mrb[154].mxu0 }
 0x438   :  { %v13605_v10 = vadd.f32 %v3592_v28, %v17675_v18  ;;  %v13669_v12 = vadd.f32 %v3978_v49, %v17678_v9  ;;  %v3594_v62 = vpop.f32.mrb[155].mxu1  ;;  %v3980_v56 = vpop.f32.mrb[155].mxu0  ;;  %v4989_v50 = vmax.f32 %v13603_v25, 0.0  ;;  %v4991_v22 = vmax.f32 %v13667_v47, 0.0 }
 0x439   :  { %v13606_v31 = vadd.f32 %v3594_v62, %v17683_v17  ;;  %v13670_v2 = vadd.f32 %v3980_v56, %v17686_v0  ;;  %v4990_v36 = vmax.f32 %v13604_v34, 0.0  ;;  %v4992_v63 = vmax.f32 %v13668_v26, 0.0 }
 0x43a   :  { %v4997_v23 = vmax.f32 %v13605_v10, 0.0  ;;  %v4999_v57 = vmax.f32 %v13669_v12, 0.0  ;;  %4309 = vmatmul.mubr.bf16.gmra.mrb[196].mxu1 %v17406_v33  ;;  %4695 = vmatmul.mubr.bf16.gmra.mrb[196].mxu0 %v17406_v33 }
 0x43b   :  { %v4998_v1 = vmax.f32 %v13606_v31, 0.0  ;;  %v5000_v15 = vmax.f32 %v13670_v2, 0.0  ;;  %4318 = vmatprep.mubr.bf16.mxu1 %v17430_v45  ;;  %4704 = vmatprep.mubr.bf16.mxu0 %v17430_v45 }
 0x43c   :  { %v17980_v28 = vpack.c.bf16 %v4997_v23, %v4989_v50  ;;  %v17982_v49 = vpack.c.bf16 %v4999_v57, %v4991_v22 }
 0x43d   :  { %v17984_v25 = vpack.c.bf16 %v4998_v1, %v4990_v36  ;;  %v17986_v47 = vpack.c.bf16 %v5000_v15, %v4992_v63  ;;  %v3598_v10 = vpop.f32.mrb[156].mxu1  ;;  %v3984_v12 = vpop.f32.mrb[156].mxu0 }
 0x43e   :  { %20141 = vst [vmem:[#allocation77_spill] sm:$0xff] %v17980_v28  ;;  %20142 = vst [vmem:[#allocation78_spill] sm:$0xff] %v17982_v49  ;;  %v13607_v33 = vadd.f32 %v3598_v10, %v17675_v18  ;;  %v13671_v34 = vadd.f32 %v3984_v12, %v17678_v9  ;;  %v3600_v26 = vpop.f32.mrb[157].mxu1  ;;  %v3986_v62 = vpop.f32.mrb[157].mxu0 }
 0x43f   :  { %20143 = vst [vmem:[#allocation79_spill] sm:$0xff] %v17984_v25  ;;  %v13608_v56 = vadd.f32 %v3600_v26, %v17683_v17  ;;  %v13672_v45 = vadd.f32 %v3986_v62, %v17686_v0  ;;  %v3602_v31 = vpop.f32.mrb[158].mxu1  ;;  %v3988_v2 = vpop.f32.mrb[158].mxu0 }
 0x440   :  { %v13609_v50 = vadd.f32 %v3602_v31, %v17675_v18  ;;  %v13673_v22 = vadd.f32 %v3988_v2, %v17678_v9  ;;  %v3604_v23 = vpop.f32.mrb[159].mxu1  ;;  %v3990_v57 = vpop.f32.mrb[159].mxu0  ;;  %v5005_v1 = vmax.f32 %v13607_v33, 0.0  ;;  %v5007_v15 = vmax.f32 %v13671_v34, 0.0  ;;  %v15094_v34 = vld [vmem:[#allocation12 + $0x430] ss:$28 sps:$4 sm:$0xff]  }
 0x441   :  { %v13610_v36 = vadd.f32 %v3604_v23, %v17683_v17  ;;  %v13674_v63 = vadd.f32 %v3990_v57, %v17686_v0  ;;  %v5006_v26 = vmax.f32 %v13608_v56, 0.0  ;;  %v5008_v62 = vmax.f32 %v13672_v45, 0.0  ;;  %v15097_v56 = vld [vmem:[#allocation12 + $0x428] ss:$28 sps:$4 sm:$0xff]   ;;  %v15111_v23 = vld [vmem:[#allocation12 + $0x49c] ss:$28 sps:$4 sm:$0xff]  }
 0x442   :  { %v5013_v10 = vmax.f32 %v13609_v50, 0.0  ;;  %v5015_v12 = vmax.f32 %v13673_v22, 0.0  ;;  %4319 = vmatmul.mubr.bf16.gmra.mrb[200].mxu1 %v17426_v16  ;;  %4705 = vmatmul.mubr.bf16.gmra.mrb[200].mxu0 %v17426_v16  ;;  %v15085_v16 = vld [vmem:[#allocation12 + $0x3b8] ss:$28 sps:$4 sm:$0xff]   ;;  %v15102_v45 = vld [vmem:[#allocation12 + $0x46c] ss:$28 sps:$4 sm:$0xff]  }
 0x443   :  { %v5014_v49 = vmax.f32 %v13610_v36, 0.0  ;;  %v5016_v18 = vmax.f32 %v13674_v63, 0.0  ;;  %4328 = vmatprep.mubr.bf16.mxu1 %v17450_v59  ;;  %4714 = vmatprep.mubr.bf16.mxu0 %v17450_v59  ;;  %v15084_v59 = vld [vmem:[#allocation12 + $0x3c4] ss:$28 sps:$4 sm:$0xff]   ;;  %v15109_v36 = vld [vmem:[#allocation12 + $0x498] ss:$28 sps:$4 sm:$0xff]  }
 0x444   :  { %v18000_v9 = vpack.c.bf16 %v5013_v10, %v5005_v1  ;;  %v18002_v17 = vpack.c.bf16 %v5015_v12, %v5007_v15  ;;  %v15105_v31 = vld [vmem:[#allocation12 + $0x464] ss:$28 sps:$4 sm:$0xff]   ;;  %v15114_v63 = vld [vmem:[#allocation12 + $0x4dc] ss:$28 sps:$4 sm:$0xff]   ;;  %v15117_v1 = vld [vmem:[#allocation12 + $0x4d4] ss:$28 sps:$4 sm:$0xff]  }
 0x445   :  { %v18004_v0 = vpack.c.bf16 %v5014_v49, %v5006_v26  ;;  %v18006_v33 = vpack.c.bf16 %v5016_v18, %v5008_v62  ;;  %v15099_v49 = vld [vmem:[#allocation12 + $0x42c] ss:$28 sps:$4 sm:$0xff]   ;;  %v15103_v50 = vld [vmem:[#allocation12 + $0x460] ss:$28 sps:$4 sm:$0xff]   ;;  %v15112_v15 = vld [vmem:[#allocation12 + $0x4d8] ss:$28 sps:$4 sm:$0xff]  }
 0x446   :  { %20144 = vst [vmem:[#allocation80_spill] sm:$0xff] %v18000_v9  ;;  %v15100_v2 = vld [vmem:[#allocation12 + $0x468] ss:$28 sps:$4 sm:$0xff]   ;;  %v15106_v57 = vld [vmem:[#allocation12 + $0x4a0] ss:$28 sps:$4 sm:$0xff]  }
 0x447   :  { %20145 = vst [vmem:[#allocation81_spill] sm:$0xff] %v18004_v0  ;;  %v15108_v22 = vld [vmem:[#allocation12 + $0x4a4] ss:$28 sps:$4 sm:$0xff]   ;;  %v15115_v10 = vld [vmem:[#allocation12 + $0x4d0] ss:$28 sps:$4 sm:$0xff]   ;;  %v20146_v62 = vld [vmem:[#allocation46_spill] sm:$0xff] }
 0x448   :  { %v15120_v12 = vld [vmem:[#allocation12 + $0x514] ss:$28 sps:$4 sm:$0xff]   ;;  %v15123_v26 = vld [vmem:[#allocation12 + $0x50c] ss:$28 sps:$4 sm:$0xff]  }
 0x449   :  { %v15118_v18 = vld [vmem:[#allocation12 + $0x510] ss:$28 sps:$4 sm:$0xff]  }
 0x44a   :  { %4329 = vmatmul.mubr.bf16.gmra.mrb[204].mxu1 %v17446_v38  ;;  %4715 = vmatmul.mubr.bf16.gmra.mrb[204].mxu0 %v17446_v38  ;;  %v15090_v38 = vld [vmem:[#allocation12 + $0x3fc] ss:$28 sps:$4 sm:$0xff]  }
 0x44b   :  { %4338 = vmatprep.mubr.bf16.mxu1 %v17470_v13  ;;  %4724 = vmatprep.mubr.bf16.mxu0 %v17470_v13  ;;  %v15076_v13 = vld [vmem:[#allocation12 + $0x388] ss:$28 sps:$4 sm:$0xff]  }
 0x452   :  { %4339 = vmatmul.mubr.bf16.gmra.mrb[208].mxu1 %v17466_v44  ;;  %4725 = vmatmul.mubr.bf16.gmra.mrb[208].mxu0 %v17466_v44  ;;  %v15093_v44 = vld [vmem:[#allocation12 + $0x3f4] ss:$28 sps:$4 sm:$0xff]  }
 0x453   :  { %4348 = vmatprep.mubr.bf16.mxu1 %v17490_v37  ;;  %4734 = vmatprep.mubr.bf16.mxu0 %v17490_v37  ;;  %v15079_v37 = vld [vmem:[#allocation12 + $0x380] ss:$28 sps:$4 sm:$0xff]  }
 0x45a   :  { %4349 = vmatmul.mubr.bf16.gmra.mrb[212].mxu1 %v17486_v30  ;;  %4735 = vmatmul.mubr.bf16.gmra.mrb[212].mxu0 %v17486_v30  ;;  %v15088_v30 = vld [vmem:[#allocation12 + $0x3f8] ss:$28 sps:$4 sm:$0xff]  }
 0x45b   :  { %4358 = vmatprep.mubr.bf16.mxu1 %v17510_v19  ;;  %4744 = vmatprep.mubr.bf16.mxu0 %v17510_v19  ;;  %v15087_v19 = vld [vmem:[#allocation12 + $0x3bc] ss:$28 sps:$4 sm:$0xff]  }
 0x462   :  { %4359 = vmatmul.mubr.bf16.gmra.mrb[216].mxu1 %v17506_v11  ;;  %4745 = vmatmul.mubr.bf16.gmra.mrb[216].mxu0 %v17506_v11  ;;  %v15091_v11 = vld [vmem:[#allocation12 + $0x3f0] ss:$28 sps:$4 sm:$0xff]  }
 0x463   :  { %4368 = vmatprep.mubr.bf16.mxu1 %v17530_v51  ;;  %4754 = vmatprep.mubr.bf16.mxu0 %v17530_v51  ;;  %v15082_v51 = vld [vmem:[#allocation12 + $0x3c0] ss:$28 sps:$4 sm:$0xff]  }
 0x46a   :  { %4369 = vmatmul.mubr.bf16.gmra.mrb[220].mxu1 %v17526_v27  ;;  %4755 = vmatmul.mubr.bf16.gmra.mrb[220].mxu0 %v17526_v27  ;;  %v15096_v27 = vld [vmem:[#allocation12 + $0x434] ss:$28 sps:$4 sm:$0xff]  }
 0x46b   :  { %8034 = vmatprep.mubr.bf16.mxu1 %v17704_v6  ;;  %8806 = vmatprep.mubr.bf16.mxu0 %v17704_v6 }
 0x472   :  { %8035 = vmatmul.mubr.bf16.vlgmr.msra.gmra.mrb[224].mxu1 %v17700_v21  ;;  %8807 = vmatmul.mubr.bf16.vlgmr.msra.gmra.mrb[224].mxu0 %v17700_v21  ;;  %v20171_v21 = vld [vmem:[#allocation35_spill] sm:$0xff] }
 0x473   :  { %8968 = vmatpush1.bf16.msra.mxu0 %v15076_v13  ;;  %8044 = vmatprep.mubr.bf16.mxu1 %v17724_v42  ;;  %v15121_v13 = vld [vmem:[#allocation12 + $0x508] ss:$28 sps:$4 sm:$0xff]  }
 0x474   :  { %8816 = vmatprep.mubr.bf16.mxu0 %v17724_v42  ;;  %8196 = vmatpush1.bf16.msra.mxu1 %v15079_v37  ;;  %v15126_v37 = vld [vmem:[#allocation12 + $0x54c] ss:$28 sps:$4 sm:$0xff]  }
 0x475   :  { %8969 = vmatprep.subr.bf16.mxu0 %v15084_v59  ;;  %8197 = vmatprep.subr.bf16.mxu1 %v15087_v19  ;;  %v15129_v59 = vld [vmem:[#allocation12 + $0x544] ss:$28 sps:$4 sm:$0xff]  }
 0x476   :  { %v15124_v19 = vld [vmem:[#allocation12 + $0x548] ss:$28 sps:$4 sm:$0xff]  }
 0x477   :  { %8970 = vmatpush1.bf16.msra.mxu0 %v15082_v51  ;;  %v15127_v51 = vld [vmem:[#allocation12 + $0x540] ss:$28 sps:$4 sm:$0xff]  }
 0x478   :  { %8198 = vmatpush1.bf16.msra.mxu1 %v15085_v16  ;;  %8971 = vmatprep.subr.bf16.mxu0 %v15090_v38  ;;  %v15132_v16 = vld [vmem:[#allocation12 + $0x584] ss:$28 sps:$4 sm:$0xff]   ;;  %v15135_v38 = vld [vmem:[#allocation12 + $0x57c] ss:$28 sps:$4 sm:$0xff]  }
 0x479   :  { %8199 = vmatprep.subr.bf16.mxu1 %v15093_v44  ;;  %v20147_v44 = vld [vmem:[#allocation44_spill] sm:$0xff] }
 0x47a   :  { %8045 = vmatmul.mubr.bf16.gmra.mrb[228].mxu1 %v17720_v54  ;;  %8817 = vmatmul.mubr.bf16.gmra.mrb[228].mxu0 %v17720_v54 }
 0x47b   :  { %8054 = vmatprep.mubr.bf16.mxu1 %v17744_v24  ;;  %8826 = vmatprep.mubr.bf16.mxu0 %v17744_v24  ;;  %v20168_v24 = vld [vmem:[#allocation37_spill] sm:$0xff] }
 0x47c   :  { %8972 = vmatpush1.bf16.msra.mxu0 %v15088_v30  ;;  %8200 = vmatpush1.bf16.msra.mxu1 %v15091_v11  ;;  %v20148_v30 = vld [vmem:[#allocation50_spill] sm:$0xff] }
 0x47d   :  { %8973 = vmatprep.subr.bf16.mxu0 %v15096_v27  ;;  %8201 = vmatprep.subr.bf16.mxu1 %v15099_v49  ;;  %v15130_v11 = vld [vmem:[#allocation12 + $0x580] ss:$28 sps:$4 sm:$0xff]   ;;  %v15133_v27 = vld [vmem:[#allocation12 + $0x578] ss:$28 sps:$4 sm:$0xff]  }
 0x47e   :  { %v15138_v49 = vld [vmem:[#allocation12 + $0x5bc] ss:$28 sps:$4 sm:$0xff]  }
 0x480   :  { %8974 = vmatpush1.bf16.msra.mxu0 %v15094_v34  ;;  %8202 = vmatpush1.bf16.msra.mxu1 %v15097_v56  ;;  %v15141_v34 = vld [vmem:[#allocation12 + $0x5b4] ss:$28 sps:$4 sm:$0xff]  }
 0x481   :  { %8975 = vmatprep.subr.bf16.mxu0 %v15102_v45  ;;  %8203 = vmatprep.subr.bf16.mxu1 %v15105_v31  ;;  %v15136_v56 = vld [vmem:[#allocation12 + $0x5b8] ss:$28 sps:$4 sm:$0xff]   ;;  %v15139_v45 = vld [vmem:[#allocation12 + $0x5b0] ss:$28 sps:$4 sm:$0xff]  }
 0x482   :  { %8055 = vmatmul.mubr.bf16.gmra.mrb[232].mxu1 %v17740_v8  ;;  %8827 = vmatmul.mubr.bf16.gmra.mrb[232].mxu0 %v17740_v8  ;;  %v15144_v31 = vld [vmem:[#allocation12 + $0x5f4] ss:$28 sps:$4 sm:$0xff]  }
 0x483   :  { %8064 = vmatprep.mubr.bf16.mxu1 %v17764_v58  ;;  %8836 = vmatprep.mubr.bf16.mxu0 %v17764_v58 }
 0x484   :  { %8976 = vmatpush1.bf16.msra.mxu0 %v15100_v2  ;;  %8204 = vmatpush1.bf16.msra.mxu1 %v15103_v50  ;;  %v15147_v2 = vld [vmem:[#allocation12 + $0x5ec] ss:$28 sps:$4 sm:$0xff]  }
 0x485   :  { %8977 = vmatprep.subr.bf16.mxu0 %v15108_v22  ;;  %8205 = vmatprep.subr.bf16.mxu1 %v15111_v23  ;;  %v20149_v50 = vld [vmem:[#allocation48_spill] sm:$0xff] }
 0x486   :  { %v15142_v22 = vld [vmem:[#allocation12 + $0x5f0] ss:$28 sps:$4 sm:$0xff]   ;;  %v15145_v23 = vld [vmem:[#allocation12 + $0x5e8] ss:$28 sps:$4 sm:$0xff]  }
 0x488   :  { %8978 = vmatpush1.bf16.msra.mxu0 %v15106_v57  ;;  %8206 = vmatpush1.bf16.msra.mxu1 %v15109_v36  ;;  %v15150_v57 = vld [vmem:[#allocation12 + $0x62c] ss:$28 sps:$4 sm:$0xff]   ;;  %v15153_v36 = vld [vmem:[#allocation12 + $0x624] ss:$28 sps:$4 sm:$0xff]  }
 0x489   :  { %8979 = vmatprep.subr.bf16.mxu0 %v15114_v63  ;;  %8207 = vmatprep.subr.bf16.mxu1 %v15117_v1  ;;  %v15148_v63 = vld [vmem:[#allocation12 + $0x628] ss:$28 sps:$4 sm:$0xff]   ;;  %v15151_v1 = vld [vmem:[#allocation12 + $0x620] ss:$28 sps:$4 sm:$0xff]  }
 0x48a   :  { %8065 = vmatmul.mubr.bf16.gmra.mrb[236].mxu1 %v17760_v61  ;;  %8837 = vmatmul.mubr.bf16.gmra.mrb[236].mxu0 %v17760_v61 }
 0x48b   :  { %8074 = vmatprep.mubr.bf16.mxu1 %v20146_v62  ;;  %8846 = vmatprep.mubr.bf16.mxu0 %v20146_v62 }
 0x48c   :  { %8980 = vmatpush1.bf16.msra.mxu0 %v15112_v15  ;;  %8208 = vmatpush1.bf16.msra.mxu1 %v15115_v10  ;;  %v15156_v15 = vld [vmem:[#allocation12 + $0x664] ss:$28 sps:$4 sm:$0xff]   ;;  %v15159_v10 = vld [vmem:[#allocation12 + $0x65c] ss:$28 sps:$4 sm:$0xff]  }
 0x48d   :  { %8981 = vmatprep.subr.bf16.mxu0 %v15120_v12  ;;  %8209 = vmatprep.subr.bf16.mxu1 %v15123_v26  ;;  %v20150_v12 = vld [vmem:[#allocation52_spill] sm:$0xff]  ;;  %v15154_v26 = vld [vmem:[#allocation12 + $0x660] ss:$28 sps:$4 sm:$0xff]  }
 0x490   :  { %8982 = vmatpush1.bf16.msra.mxu0 %v15118_v18  ;;  %8210 = vmatpush1.bf16.msra.mxu1 %v15121_v13  ;;  %v15157_v18 = vld [vmem:[#allocation12 + $0x658] ss:$28 sps:$4 sm:$0xff]  }
 0x491   :  { %8983 = vmatprep.subr.bf16.mxu0 %v15126_v37  ;;  %8211 = vmatprep.subr.bf16.mxu1 %v15129_v59  ;;  %v15162_v13 = vld [vmem:[#allocation12 + $0x69c] ss:$28 sps:$4 sm:$0xff]   ;;  %v15165_v37 = vld [vmem:[#allocation12 + $0x694] ss:$28 sps:$4 sm:$0xff]  }
 0x492   :  { %8075 = vmatmul.mubr.bf16.gmra.mrb[240].mxu1 %v20147_v44  ;;  %8847 = vmatmul.mubr.bf16.gmra.mrb[240].mxu0 %v20147_v44  ;;  %v15160_v59 = vld [vmem:[#allocation12 + $0x698] ss:$28 sps:$4 sm:$0xff]  }
 0x493   :  { %8084 = vmatprep.mubr.bf16.mxu1 %v20148_v30  ;;  %8856 = vmatprep.mubr.bf16.mxu0 %v20148_v30  ;;  %v20164_v44 = vld [vmem:[#allocation33_spill] sm:$0xff] }
 0x494   :  { %8984 = vmatpush1.bf16.msra.mxu0 %v15124_v19  ;;  %8212 = vmatpush1.bf16.msra.mxu1 %v15127_v51  ;;  %v15163_v19 = vld [vmem:[#allocation12 + $0x690] ss:$28 sps:$4 sm:$0xff]  }
 0x495   :  { %8985 = vmatprep.subr.bf16.mxu0 %v15132_v16  ;;  %8213 = vmatprep.subr.bf16.mxu1 %v15135_v38  ;;  %v15168_v51 = vld [vmem:[#allocation12 + $0x6d4] ss:$28 sps:$4 sm:$0xff]   ;;  %v15171_v16 = vld [vmem:[#allocation12 + $0x6cc] ss:$28 sps:$4 sm:$0xff]  }
 0x496   :  { %v15166_v38 = vld [vmem:[#allocation12 + $0x6d0] ss:$28 sps:$4 sm:$0xff]  }
 0x498   :  { %8986 = vmatpush1.bf16.msra.mxu0 %v15130_v11  ;;  %8214 = vmatpush1.bf16.msra.mxu1 %v15133_v27  ;;  %v15169_v11 = vld [vmem:[#allocation12 + $0x6c8] ss:$28 sps:$4 sm:$0xff]  }
 0x499   :  { %8987 = vmatprep.subr.bf16.mxu0 %v15138_v49  ;;  %8215 = vmatprep.subr.bf16.mxu1 %v15141_v34  ;;  %v15174_v27 = vld [vmem:[#allocation12 + $0x70c] ss:$28 sps:$4 sm:$0xff]   ;;  %v15177_v49 = vld [vmem:[#allocation12 + $0x704] ss:$28 sps:$4 sm:$0xff]  }
 0x49a   :  { %8085 = vmatmul.mubr.bf16.gmra.mrb[244].mxu1 %v20149_v50  ;;  %8857 = vmatmul.mubr.bf16.gmra.mrb[244].mxu0 %v20149_v50  ;;  %v20151_v34 = vld [vmem:[#allocation20_spill] sm:$0xff] }
 0x49b   :  { %8094 = vmatprep.mubr.bf16.mxu1 %v17824_v32  ;;  %8866 = vmatprep.mubr.bf16.mxu0 %v17824_v32  ;;  %v20163_v32 = vld [vmem:[#allocation26_spill] sm:$0xff] }
 0x49c   :  { %8988 = vmatpush1.bf16.msra.mxu0 %v15136_v56  ;;  %8216 = vmatpush1.bf16.msra.mxu1 %v15139_v45  ;;  %v19844_v56 = vsub.s32 4, %v20151_v34  ;;  %v19845_v45 = vsub.s32 6, %v20151_v34 }
 0x49d   :  { %8989 = vmatprep.subr.bf16.mxu0 %v15144_v31  ;;  %8217 = vmatprep.subr.bf16.mxu1 %v15147_v2  ;;  %v19843_v31 = vsub.s32 5, %v20151_v34  ;;  %v1931_v2 = vsub.s32 7, %v20151_v34 }
 0x4a0   :  { %8990 = vmatpush1.bf16.msra.mxu0 %v15142_v22  ;;  %8218 = vmatpush1.bf16.msra.mxu1 %v15145_v23  ;;  %v16068_v22 = vld [vmem:[#allocation10] sm:$0xff] }
 0x4a1   :  { %8991 = vmatprep.subr.bf16.mxu0 %v15150_v57  ;;  %8219 = vmatprep.subr.bf16.mxu1 %v15153_v36  ;;  %v18076_v23 = vrot.slane %v16068_v22, %v19844_v56  ;;  %v18080_v57 = vrot.slane %v16068_v22, %v19845_v45  ;;  %v18086_v36 = vrot.slane %v16068_v22, %v19843_v31 }
 0x4a2   :  { %8095 = vmatmul.mubr.bf16.gmra.mrb[248].mxu1 %v20150_v12  ;;  %8867 = vmatmul.mubr.bf16.gmra.mrb[248].mxu0 %v20150_v12 }
 0x4a3   :  { %8104 = vmatprep.mubr.bf16.mxu1 %v17844_v3  ;;  %8876 = vmatprep.mubr.bf16.mxu0 %v17844_v3 }
 0x4a4   :  { %8992 = vmatpush1.bf16.msra.mxu0 %v15148_v63  ;;  %8220 = vmatpush1.bf16.msra.mxu1 %v15151_v1  ;;  %v18088_v63 = vrot.slane %v16068_v22, %v1931_v2 }
 0x4a5   :  { %8993 = vmatprep.subr.bf16.mxu0 %v15156_v15  ;;  %8221 = vmatprep.subr.bf16.mxu1 %v15159_v10 }
 0x4a8   :  { %8994 = vmatpush1.bf16.msra.mxu0 %v15154_v26  ;;  %8222 = vmatpush1.bf16.msra.mxu1 %v15157_v18 }
 0x4a9   :  { %8995 = vmatprep.subr.bf16.mxu0 %v15162_v13  ;;  %8223 = vmatprep.subr.bf16.mxu1 %v15165_v37 }
 0x4aa   :  { %8105 = vmatmul.mubr.bf16.gmra.mrb[252].mxu1 %v17840_v4  ;;  %8877 = vmatmul.mubr.bf16.gmra.mrb[252].mxu0 %v17840_v4  ;;  %v15183_v4 = vld [vmem:[#allocation12 + $0x73c] ss:$28 sps:$4 sm:$0xff]  }
 0x4ab   :  { %8114 = vmatprep.mubr.bf16.mxu1 %v17864_v52  ;;  %8886 = vmatprep.mubr.bf16.mxu0 %v17864_v52  ;;  %v20160_v52 = vld [vmem:[#allocation29_spill] sm:$0xff] }
 0x4ac   :  { %8996 = vmatpush1.bf16.msra.mxu0 %v15160_v59  ;;  %8224 = vmatpush1.bf16.msra.mxu1 %v15163_v19 }
 0x4ad   :  { %8997 = vmatprep.subr.bf16.mxu0 %v15168_v51  ;;  %8225 = vmatprep.subr.bf16.mxu1 %v15171_v16 }
 0x4b0   :  { %8998 = vmatpush1.bf16.msra.mxu0 %v15166_v38  ;;  %8226 = vmatpush1.bf16.msra.mxu1 %v15169_v11 }
 0x4b1   :  { %9160 = vmatprep.subr.bf16.mxu0 %v15174_v27  ;;  %8388 = vmatprep.subr.bf16.mxu1 %v15177_v49 }
 0x4b2   :  { %8115 = vmatmul.mubr.bf16.gmra.mrb[0].mxu1 %v17860_v46  ;;  %8887 = vmatmul.mubr.bf16.gmra.mrb[0].mxu0 %v17860_v46 }
 0x4b3   :  { %8124 = vmatprep.mubr.bf16.mxu1 %v17884_v43  ;;  %8896 = vmatprep.mubr.bf16.mxu0 %v17884_v43 }
 0x4ba   :  { %8125 = vmatmul.mubr.bf16.gmra.mrb[4].mxu1 %v17880_v55  ;;  %8897 = vmatmul.mubr.bf16.gmra.mrb[4].mxu0 %v17880_v55 }
 0x4bb   :  { %8134 = vmatprep.mubr.bf16.mxu1 %v17904_v60  ;;  %8906 = vmatprep.mubr.bf16.mxu0 %v17904_v60 }
 0x4c2   :  { %8135 = vmatmul.mubr.bf16.gmra.mrb[8].mxu1 %v17900_v14  ;;  %8907 = vmatmul.mubr.bf16.gmra.mrb[8].mxu0 %v17900_v14 }
 0x4c3   :  { %8144 = vmatprep.mubr.bf16.mxu1 %v17924_v7  ;;  %8916 = vmatprep.mubr.bf16.mxu0 %v17924_v7 }
 0x4c5   :  { %v4220_v1 = vpop.f32.mrb[160].mxu1  ;;  %v4606_v15 = vpop.f32.mrb[160].mxu0 }
 0x4c6   :  { %v13675_v10 = vadd.f32 %v4220_v1, %v18076_v23  ;;  %v13739_v26 = vadd.f32 %v4606_v15, %v18080_v57  ;;  %v4222_v18 = vpop.f32.mrb[161].mxu1  ;;  %v4608_v13 = vpop.f32.mrb[161].mxu0 }
 0x4c7   :  { %v13676_v37 = vadd.f32 %v4222_v18, %v18086_v36  ;;  %v13740_v59 = vadd.f32 %v4608_v13, %v18088_v63  ;;  %v4224_v19 = vpop.f32.mrb[162].mxu1  ;;  %v4610_v51 = vpop.f32.mrb[162].mxu0 }
 0x4c8   :  { %v13677_v16 = vadd.f32 %v4224_v19, %v18076_v23  ;;  %v13741_v38 = vadd.f32 %v4610_v51, %v18080_v57  ;;  %v4226_v11 = vpop.f32.mrb[163].mxu1  ;;  %v4612_v27 = vpop.f32.mrb[163].mxu0  ;;  %v4769_v22 = vmax.f32 %v13675_v10, 0.0  ;;  %v4771_v1 = vmax.f32 %v13739_v26, 0.0 }
 0x4c9   :  { %v13678_v49 = vadd.f32 %v4226_v11, %v18086_v36  ;;  %v13742_v2 = vadd.f32 %v4612_v27, %v18088_v63  ;;  %v4770_v18 = vmax.f32 %v13676_v37, 0.0  ;;  %v4772_v13 = vmax.f32 %v13740_v59, 0.0 }
 0x4ca   :  { %v4777_v15 = vmax.f32 %v13677_v16, 0.0  ;;  %v4779_v31 = vmax.f32 %v13741_v38, 0.0  ;;  %8145 = vmatmul.mubr.bf16.gmra.mrb[12].mxu1 %v17920_v20  ;;  %8917 = vmatmul.mubr.bf16.gmra.mrb[12].mxu0 %v17920_v20 }
 0x4cb   :  { %v4778_v56 = vmax.f32 %v13678_v49, 0.0  ;;  %v4780_v19 = vmax.f32 %v13742_v2, 0.0  ;;  %8154 = vmatprep.mubr.bf16.mxu1 %v17944_v41  ;;  %8926 = vmatprep.mubr.bf16.mxu0 %v17944_v41 }
 0x4cc   :  { %v18102_v51 = vpack.c.bf16 %v4777_v15, %v4769_v22  ;;  %v18104_v11 = vpack.c.bf16 %v4779_v31, %v4771_v1 }
 0x4cd   :  { %v18106_v10 = vpack.c.bf16 %v4778_v56, %v4770_v18  ;;  %v18108_v26 = vpack.c.bf16 %v4780_v19, %v4772_v13  ;;  %v4230_v16 = vpop.f32.mrb[164].mxu1  ;;  %v4616_v38 = vpop.f32.mrb[164].mxu0 }
 0x4ce   :  { %20152 = vst [vmem:[#allocation82_spill] sm:$0xff] %v18104_v11  ;;  %v13679_v27 = vadd.f32 %v4230_v16, %v18076_v23  ;;  %v13743_v37 = vadd.f32 %v4616_v38, %v18080_v57  ;;  %v4232_v59 = vpop.f32.mrb[165].mxu1  ;;  %v4618_v49 = vpop.f32.mrb[165].mxu0 }
 0x4cf   :  { %20153 = vst [vmem:[#allocation83_spill] sm:$0xff] %v18108_v26  ;;  %v13680_v2 = vadd.f32 %v4232_v59, %v18086_v36  ;;  %v13744_v45 = vadd.f32 %v4618_v49, %v18088_v63  ;;  %v4234_v22 = vpop.f32.mrb[166].mxu1  ;;  %v4620_v15 = vpop.f32.mrb[166].mxu0 }
 0x4d0   :  { %v13681_v31 = vadd.f32 %v4234_v22, %v18076_v23  ;;  %v13745_v56 = vadd.f32 %v4620_v15, %v18080_v57  ;;  %v4236_v1 = vpop.f32.mrb[167].mxu1  ;;  %v4622_v18 = vpop.f32.mrb[167].mxu0  ;;  %v4785_v16 = vmax.f32 %v13679_v27, 0.0  ;;  %v4787_v38 = vmax.f32 %v13743_v37, 0.0 }
 0x4d1   :  { %v13682_v13 = vadd.f32 %v4236_v1, %v18086_v36  ;;  %v13746_v19 = vadd.f32 %v4622_v18, %v18088_v63  ;;  %v4786_v59 = vmax.f32 %v13680_v2, 0.0  ;;  %v4788_v49 = vmax.f32 %v13744_v45, 0.0 }
 0x4d2   :  { %v4793_v34 = vmax.f32 %v13681_v31, 0.0  ;;  %v4795_v41 = vmax.f32 %v13745_v56, 0.0  ;;  %8155 = vmatmul.mubr.bf16.gmra.mrb[16].mxu1 %v17940_v53  ;;  %8927 = vmatmul.mubr.bf16.gmra.mrb[16].mxu0 %v17940_v53 }
 0x4d3   :  { %v4794_v20 = vmax.f32 %v13682_v13, 0.0  ;;  %v4796_v22 = vmax.f32 %v13746_v19, 0.0  ;;  %8164 = vmatprep.mubr.bf16.mxu1 %v17964_v39  ;;  %8936 = vmatprep.mubr.bf16.mxu0 %v17964_v39 }
 0x4d4   :  { %v18122_v15 = vpack.c.bf16 %v4793_v34, %v4785_v16  ;;  %v18124_v1 = vpack.c.bf16 %v4795_v41, %v4787_v38 }
 0x4d5   :  { %v18126_v27 = vpack.c.bf16 %v4794_v20, %v4786_v59  ;;  %v18128_v37 = vpack.c.bf16 %v4796_v22, %v4788_v49  ;;  %v4240_v31 = vpop.f32.mrb[168].mxu1  ;;  %v4626_v56 = vpop.f32.mrb[168].mxu0 }
 0x4d6   :  { %20154 = vst [vmem:[#allocation84_spill] sm:$0xff] %v18124_v1  ;;  %v13683_v18 = vadd.f32 %v4240_v31, %v18076_v23  ;;  %v13747_v45 = vadd.f32 %v4626_v56, %v18080_v57  ;;  %v4242_v2 = vpop.f32.mrb[169].mxu1  ;;  %v4628_v13 = vpop.f32.mrb[169].mxu0  ;;  %v20192_v1 = vld [vmem:[#allocation60_spill] sm:$0xff] }
 0x4d7   :  { %20155 = vst [vmem:[#allocation85_spill] sm:$0xff] %v18128_v37  ;;  %v13684_v19 = vadd.f32 %v4242_v2, %v18086_v36  ;;  %v13748_v39 = vadd.f32 %v4628_v13, %v18088_v63  ;;  %v4244_v34 = vpop.f32.mrb[170].mxu1  ;;  %v4630_v16 = vpop.f32.mrb[170].mxu0 }
 0x4d8   :  { %v13685_v41 = vadd.f32 %v4244_v34, %v18076_v23  ;;  %v13749_v20 = vadd.f32 %v4630_v16, %v18080_v57  ;;  %v4246_v38 = vpop.f32.mrb[171].mxu1  ;;  %v4632_v59 = vpop.f32.mrb[171].mxu0  ;;  %v4801_v31 = vmax.f32 %v13683_v18, 0.0  ;;  %v4803_v56 = vmax.f32 %v13747_v45, 0.0 }
 0x4d9   :  { %v13686_v49 = vadd.f32 %v4246_v38, %v18086_v36  ;;  %v13750_v22 = vadd.f32 %v4632_v59, %v18088_v63  ;;  %v4802_v2 = vmax.f32 %v13684_v19, 0.0  ;;  %v4804_v13 = vmax.f32 %v13748_v39, 0.0 }
 0x4da   :  { %v4809_v53 = vmax.f32 %v13685_v41, 0.0  ;;  %v4811_v7 = vmax.f32 %v13749_v20, 0.0  ;;  %8165 = vmatmul.mubr.bf16.gmra.mrb[20].mxu1 %v17960_v5  ;;  %8937 = vmatmul.mubr.bf16.gmra.mrb[20].mxu0 %v17960_v5 }
 0x4db   :  { %v4810_v14 = vmax.f32 %v13686_v49, 0.0  ;;  %v4812_v34 = vmax.f32 %v13750_v22, 0.0  ;;  %8174 = vmatprep.mubr.bf16.mxu1 %v17984_v25  ;;  %8946 = vmatprep.mubr.bf16.mxu0 %v17984_v25 }
 0x4dc   :  { %v18142_v16 = vpack.c.bf16 %v4809_v53, %v4801_v31  ;;  %v18144_v38 = vpack.c.bf16 %v4811_v7, %v4803_v56 }
 0x4dd   :  { %v18146_v18 = vpack.c.bf16 %v4810_v14, %v4802_v2  ;;  %v18148_v45 = vpack.c.bf16 %v4812_v34, %v4804_v13  ;;  %v4250_v41 = vpop.f32.mrb[172].mxu1  ;;  %v4636_v20 = vpop.f32.mrb[172].mxu0 }
 0x4de   :  { %20156 = vst [vmem:[#allocation86_spill] sm:$0xff] %v18144_v38  ;;  %v13687_v59 = vadd.f32 %v4250_v41, %v18076_v23  ;;  %v13751_v39 = vadd.f32 %v4636_v20, %v18080_v57  ;;  %v4252_v19 = vpop.f32.mrb[173].mxu1  ;;  %v4638_v49 = vpop.f32.mrb[173].mxu0  ;;  %v20188_v38 = vld [vmem:[#allocation56_spill] sm:$0xff] }
 0x4df   :  { %20157 = vst [vmem:[#allocation87_spill] sm:$0xff] %v18148_v45  ;;  %v13688_v22 = vadd.f32 %v4252_v19, %v18086_v36  ;;  %v13752_v25 = vadd.f32 %v4638_v49, %v18088_v63  ;;  %v4254_v53 = vpop.f32.mrb[174].mxu1  ;;  %v4640_v31 = vpop.f32.mrb[174].mxu0 }
 0x4e0   :  { %v13689_v7 = vadd.f32 %v4254_v53, %v18076_v23  ;;  %v13753_v14 = vadd.f32 %v4640_v31, %v18080_v57  ;;  %v4256_v56 = vpop.f32.mrb[175].mxu1  ;;  %v4642_v2 = vpop.f32.mrb[175].mxu0  ;;  %v4817_v41 = vmax.f32 %v13687_v59, 0.0  ;;  %v4819_v20 = vmax.f32 %v13751_v39, 0.0 }
 0x4e1   :  { %v13690_v13 = vadd.f32 %v4256_v56, %v18086_v36  ;;  %v13754_v34 = vadd.f32 %v4642_v2, %v18088_v63  ;;  %v4818_v19 = vmax.f32 %v13688_v22, 0.0  ;;  %v4820_v49 = vmax.f32 %v13752_v25, 0.0 }
 0x4e2   :  { %v4825_v5 = vmax.f32 %v13689_v7, 0.0  ;;  %v4827_v60 = vmax.f32 %v13753_v14, 0.0  ;;  %8175 = vmatmul.mubr.bf16.gmra.mrb[24].mxu1 %v17980_v28  ;;  %8947 = vmatmul.mubr.bf16.gmra.mrb[24].mxu0 %v17980_v28 }
 0x4e3   :  { %v4826_v55 = vmax.f32 %v13690_v13, 0.0  ;;  %v4828_v53 = vmax.f32 %v13754_v34, 0.0  ;;  %8184 = vmatprep.mubr.bf16.mxu1 %v18004_v0  ;;  %8956 = vmatprep.mubr.bf16.mxu0 %v18004_v0 }
 0x4e4   :  { %v18162_v31 = vpack.c.bf16 %v4825_v5, %v4817_v41  ;;  %v18164_v56 = vpack.c.bf16 %v4827_v60, %v4819_v20 }
 0x4e5   :  { %v18166_v59 = vpack.c.bf16 %v4826_v55, %v4818_v19  ;;  %v18168_v39 = vpack.c.bf16 %v4828_v53, %v4820_v49  ;;  %v4260_v7 = vpop.f32.mrb[176].mxu1  ;;  %v4646_v14 = vpop.f32.mrb[176].mxu0 }
 0x4e6   :  { %20158 = vst [vmem:[#allocation88_spill] sm:$0xff] %v18164_v56  ;;  %v13691_v2 = vadd.f32 %v4260_v7, %v18076_v23  ;;  %v13755_v25 = vadd.f32 %v4646_v14, %v18080_v57  ;;  %v4262_v22 = vpop.f32.mrb[177].mxu1  ;;  %v4648_v13 = vpop.f32.mrb[177].mxu0  ;;  %v20184_v56 = vld [vmem:[#allocation27_spill] sm:$0xff] }
 0x4e7   :  { %20159 = vst [vmem:[#allocation89_spill] sm:$0xff] %v18168_v39  ;;  %v13692_v34 = vadd.f32 %v4262_v22, %v18086_v36  ;;  %v13756_v0 = vadd.f32 %v4648_v13, %v18088_v63  ;;  %v4264_v5 = vpop.f32.mrb[178].mxu1  ;;  %v4650_v41 = vpop.f32.mrb[178].mxu0 }
 0x4e8   :  { %v13693_v60 = vadd.f32 %v4264_v5, %v18076_v23  ;;  %v13757_v55 = vadd.f32 %v4650_v41, %v18080_v57  ;;  %v4266_v20 = vpop.f32.mrb[179].mxu1  ;;  %v4652_v19 = vpop.f32.mrb[179].mxu0  ;;  %v4833_v7 = vmax.f32 %v13691_v2, 0.0  ;;  %v4835_v14 = vmax.f32 %v13755_v25, 0.0 }
 0x4e9   :  { %v13694_v49 = vadd.f32 %v4266_v20, %v18086_v36  ;;  %v13758_v53 = vadd.f32 %v4652_v19, %v18088_v63  ;;  %v4834_v22 = vmax.f32 %v13692_v34, 0.0  ;;  %v4836_v13 = vmax.f32 %v13756_v0, 0.0 }
 0x4ea   :  { %v4841_v28 = vmax.f32 %v13693_v60, 0.0  ;;  %v4843_v43 = vmax.f32 %v13757_v55, 0.0  ;;  %8185 = vmatmul.mubr.bf16.gmra.mrb[28].mxu1 %v18000_v9  ;;  %8957 = vmatmul.mubr.bf16.gmra.mrb[28].mxu0 %v18000_v9  ;;  %v15180_v9 = vld [vmem:[#allocation12 + $0x744] ss:$28 sps:$4 sm:$0xff]  }
 0x4eb   :  { %v4842_v46 = vmax.f32 %v13694_v49, 0.0  ;;  %v4844_v5 = vmax.f32 %v13758_v53, 0.0  ;;  %8227 = vmatprep.mubr.bf16.mxu1 %v20160_v52  ;;  %8999 = vmatprep.mubr.bf16.mxu0 %v20160_v52 }
 0x4ec   :  { %v18182_v41 = vpack.c.bf16 %v4841_v28, %v4833_v7  ;;  %v18184_v20 = vpack.c.bf16 %v4843_v43, %v4835_v14  ;;  %v15172_v43 = vld [vmem:[#allocation12 + $0x708] ss:$28 sps:$4 sm:$0xff]  }
 0x4ed   :  { %v18186_v2 = vpack.c.bf16 %v4842_v46, %v4834_v22  ;;  %v18188_v25 = vpack.c.bf16 %v4844_v5, %v4836_v13  ;;  %v4270_v60 = vpop.f32.mrb[180].mxu1  ;;  %v4656_v55 = vpop.f32.mrb[180].mxu0  ;;  %v15175_v5 = vld [vmem:[#allocation12 + $0x700] ss:$28 sps:$4 sm:$0xff]  }
 0x4ee   :  { %20161 = vst [vmem:[#allocation90_spill] sm:$0xff] %v18184_v20  ;;  %v13695_v19 = vadd.f32 %v4270_v60, %v18076_v23  ;;  %v13759_v0 = vadd.f32 %v4656_v55, %v18080_v57  ;;  %v4272_v34 = vpop.f32.mrb[181].mxu1  ;;  %v4658_v49 = vpop.f32.mrb[181].mxu0  ;;  %v20180_v20 = vld [vmem:[#allocation49_spill] sm:$0xff] }
 0x4ef   :  { %20162 = vst [vmem:[#allocation91_spill] sm:$0xff] %v18188_v25  ;;  %v13696_v53 = vadd.f32 %v4272_v34, %v18086_v36  ;;  %v13760_v52 = vadd.f32 %v4658_v49, %v18088_v63  ;;  %v4274_v28 = vpop.f32.mrb[182].mxu1  ;;  %v4660_v7 = vpop.f32.mrb[182].mxu0 }
 0x4f0   :  { %v13697_v46 = vadd.f32 %v4274_v28, %v18076_v23  ;;  %v13761_v14 = vadd.f32 %v4660_v7, %v18080_v57  ;;  %v4276_v22 = vpop.f32.mrb[183].mxu1  ;;  %v4662_v13 = vpop.f32.mrb[183].mxu0  ;;  %v4849_v3 = vmax.f32 %v13695_v19, 0.0  ;;  %v4851_v34 = vmax.f32 %v13759_v0, 0.0  ;;  %v15181_v19 = vld [vmem:[#allocation12 + $0x738] ss:$28 sps:$4 sm:$0xff]  }
 0x4f1   :  { %v13698_v60 = vadd.f32 %v4276_v22, %v18086_v36  ;;  %v13762_v55 = vadd.f32 %v4662_v13, %v18088_v63  ;;  %v4850_v28 = vmax.f32 %v13696_v53, 0.0  ;;  %v4852_v50 = vmax.f32 %v13760_v52, 0.0  ;;  %v15178_v22 = vld [vmem:[#allocation12 + $0x740] ss:$28 sps:$4 sm:$0xff]  }
 0x4f2   :  { %v4857_v12 = vmax.f32 %v13697_v46, 0.0  ;;  %v4859_v49 = vmax.f32 %v13761_v14, 0.0  ;;  %8228 = vmatmul.mubr.bf16.vlgmr.msra.gmra.mrb[224].mxu1 %v20163_v32  ;;  %9000 = vmatmul.mubr.bf16.vlgmr.msra.gmra.mrb[224].mxu0 %v20163_v32  ;;  %v15186_v0 = vld [vmem:[#allocation12 + $0x77c] ss:$28 sps:$4 sm:$0xff]  }
 0x4f3   :  { %v4858_v7 = vmax.f32 %v13698_v60, 0.0  ;;  %v4860_v30 = vmax.f32 %v13762_v55, 0.0  ;;  %9161 = vmatpush1.bf16.msra.mxu0 %v15172_v43  ;;  %8237 = vmatprep.mubr.bf16.mxu1 %v20164_v44  ;;  %v15189_v43 = vld [vmem:[#allocation12 + $0x774] ss:$28 sps:$4 sm:$0xff]  }
 0x4f4   :  { %v18201_v62 = vpack.c.bf16 %v4857_v12, %v4849_v3  ;;  %v18203_v13 = vpack.c.bf16 %v4859_v49, %v4851_v34  ;;  %9009 = vmatprep.mubr.bf16.mxu0 %v20164_v44  ;;  %8389 = vmatpush1.bf16.msra.mxu1 %v15175_v5 }
 0x4f5   :  { %v18206_v46 = vpack.c.bf16 %v4858_v7, %v4850_v28  ;;  %v18208_v14 = vpack.c.bf16 %v4860_v30, %v4852_v50  ;;  %v4280_v52 = vpop.f32.mrb[184].mxu1  ;;  %v4666_v53 = vpop.f32.mrb[184].mxu0  ;;  %9162 = vmatprep.subr.bf16.mxu0 %v15180_v9  ;;  %8390 = vmatprep.subr.bf16.mxu1 %v15183_v4  ;;  %v15184_v7 = vld [vmem:[#allocation12 + $0x778] ss:$28 sps:$4 sm:$0xff]  }
 0x4f6   :  { %20165 = vst [vmem:[#allocation92_spill] sm:$0xff] %v18203_v13  ;;  %v13699_v60 = vadd.f32 %v4280_v52, %v18076_v23  ;;  %v13763_v3 = vadd.f32 %v4666_v53, %v18080_v57  ;;  %v4282_v12 = vpop.f32.mrb[185].mxu1  ;;  %v4668_v55 = vpop.f32.mrb[185].mxu0  ;;  %v15187_v52 = vld [vmem:[#allocation12 + $0x770] ss:$28 sps:$4 sm:$0xff]  }
 0x4f7   :  { %20166 = vst [vmem:[#allocation93_spill] sm:$0xff] %v18208_v14  ;;  %v13700_v34 = vadd.f32 %v4282_v12, %v18086_v36  ;;  %v13764_v5 = vadd.f32 %v4668_v55, %v18088_v63  ;;  %v4284_v49 = vpop.f32.mrb[186].mxu1  ;;  %v4670_v28 = vpop.f32.mrb[186].mxu0  ;;  %9163 = vmatpush1.bf16.msra.mxu0 %v15178_v22  ;;  %v15192_v12 = vld [vmem:[#allocation12 + $0x7b4] ss:$28 sps:$4 sm:$0xff]  }
 0x4f8   :  { %v13701_v30 = vadd.f32 %v4284_v49, %v18076_v23  ;;  %v13765_v50 = vadd.f32 %v4670_v28, %v18080_v57  ;;  %v4286_v9 = vpop.f32.mrb[187].mxu1  ;;  %v4672_v4 = vpop.f32.mrb[187].mxu0  ;;  %8391 = vmatpush1.bf16.msra.mxu1 %v15181_v19  ;;  %9164 = vmatprep.subr.bf16.mxu0 %v15186_v0  ;;  %v15195_v55 = vld [vmem:[#allocation12 + $0x7ac] ss:$28 sps:$4 sm:$0xff]   ;;  %v4865_v32 = vmax.f32 %v13699_v60, 0.0  ;;  %v4867_v61 = vmax.f32 %v13763_v3, 0.0 }
 0x4f9   :  { %v13702_v53 = vadd.f32 %v4286_v9, %v18086_v36  ;;  %v13766_v44 = vadd.f32 %v4672_v4, %v18088_v63  ;;  %8392 = vmatprep.subr.bf16.mxu1 %v15189_v43  ;;  %v20167_v49 = vld [vmem:[#allocation31_spill] sm:$0xff]  ;;  %v4866_v28 = vmax.f32 %v13700_v34, 0.0  ;;  %v4868_v19 = vmax.f32 %v13764_v5, 0.0  ;;  %v15190_v60 = vld [vmem:[#allocation12 + $0x7b0] ss:$28 sps:$4 sm:$0xff]  }
 0x4fa   :  { %v4873_v22 = vmax.f32 %v13701_v30, 0.0  ;;  %v4875_v58 = vmax.f32 %v13765_v50, 0.0  ;;  %8238 = vmatmul.mubr.bf16.gmra.mrb[228].mxu1 %v20167_v49  ;;  %9010 = vmatmul.mubr.bf16.gmra.mrb[228].mxu0 %v20167_v49  ;;  %v15193_v3 = vld [vmem:[#allocation12 + $0x7a8] ss:$28 sps:$4 sm:$0xff]   ;;  %v20176_v13 = vld [vmem:[#allocation45_spill] sm:$0xff] }
 0x4fb   :  { %v4874_v8 = vmax.f32 %v13702_v53, 0.0  ;;  %v4876_v0 = vmax.f32 %v13766_v44, 0.0  ;;  %8247 = vmatprep.mubr.bf16.mxu1 %v20168_v24  ;;  %9019 = vmatprep.mubr.bf16.mxu0 %v20168_v24  ;;  %v15198_v44 = vld [vmem:[#allocation12 + $0x7ec] ss:$28 sps:$4 sm:$0xff]   ;;  %v15201_v4 = vld [vmem:[#allocation12 + $0x7e4] ss:$28 sps:$4 sm:$0xff]  }
 0x4fc   :  { %v18222_v9 = vpack.c.bf16 %v4873_v22, %v4865_v32  ;;  %v18224_v43 = vpack.c.bf16 %v4875_v58, %v4867_v61  ;;  %9165 = vmatpush1.bf16.msra.mxu0 %v15184_v7  ;;  %8393 = vmatpush1.bf16.msra.mxu1 %v15187_v52 }
 0x4fd   :  { %v18226_v30 = vpack.c.bf16 %v4874_v8, %v4866_v28  ;;  %v18228_v50 = vpack.c.bf16 %v4876_v0, %v4868_v19  ;;  %v4290_v34 = vpop.f32.mrb[188].mxu1  ;;  %v4676_v5 = vpop.f32.mrb[188].mxu0  ;;  %9166 = vmatprep.subr.bf16.mxu0 %v15192_v12  ;;  %8394 = vmatprep.subr.bf16.mxu1 %v15195_v55  ;;  %v15196_v0 = vld [vmem:[#allocation12 + $0x7e8] ss:$28 sps:$4 sm:$0xff]  }
 0x4fe   :  { %20169 = vst [vmem:[#allocation94_spill] sm:$0xff] %v18224_v43  ;;  %v13703_v53 = vadd.f32 %v4290_v34, %v18076_v23  ;;  %v13767_v32 = vadd.f32 %v4676_v5, %v18080_v57  ;;  %v4292_v61 = vpop.f32.mrb[189].mxu1  ;;  %v4678_v58 = vpop.f32.mrb[189].mxu0  ;;  %v15199_v34 = vld [vmem:[#allocation12 + $0x7e0] ss:$28 sps:$4 sm:$0xff]   ;;  %v20172_v43 = vld [vmem:[#allocation41_spill] sm:$0xff] }
 0x4ff   :  { %20170 = vst [vmem:[#allocation95_spill] sm:$0xff] %v18228_v50  ;;  %v13704_v7 = vadd.f32 %v4292_v61, %v18086_v36  ;;  %v13768_v52 = vadd.f32 %v4678_v58, %v18088_v63  ;;  %v4294_v8 = vpop.f32.mrb[190].mxu1  ;;  %v4680_v22 = vpop.f32.mrb[190].mxu0  ;;  %v15204_v61 = vld [vmem:[#allocation12 + $0x824] ss:$28 sps:$4 sm:$0xff]  }
 0x500   :  { %v13705_v28 = vadd.f32 %v4294_v8, %v18076_v23  ;;  %v13769_v19 = vadd.f32 %v4680_v22, %v18080_v57  ;;  %v4296_v12 = vpop.f32.mrb[191].mxu1  ;;  %v4682_v55 = vpop.f32.mrb[191].mxu0  ;;  %9167 = vmatpush1.bf16.msra.mxu0 %v15190_v60  ;;  %8395 = vmatpush1.bf16.msra.mxu1 %v15193_v3  ;;  %v15207_v58 = vld [vmem:[#allocation12 + $0x81c] ss:$28 sps:$4 sm:$0xff]   ;;  %v4881_v49 = vmax.f32 %v13703_v53, 0.0  ;;  %v4883_v54 = vmax.f32 %v13767_v32, 0.0 }
 0x501   :  { %v13706_v5 = vadd.f32 %v4296_v12, %v18086_v36  ;;  %v13770_v24 = vadd.f32 %v4682_v55, %v18088_v63  ;;  %9168 = vmatprep.subr.bf16.mxu0 %v15198_v44  ;;  %8396 = vmatprep.subr.bf16.mxu1 %v15201_v4  ;;  %v4882_v60 = vmax.f32 %v13704_v7, 0.0  ;;  %v4884_v3 = vmax.f32 %v13768_v52, 0.0  ;;  %v15202_v53 = vld [vmem:[#allocation12 + $0x820] ss:$28 sps:$4 sm:$0xff]   ;;  %v15205_v32 = vld [vmem:[#allocation12 + $0x818] ss:$28 sps:$4 sm:$0xff]  }
 0x502   :  { %v4889_v42 = vmax.f32 %v13705_v28, 0.0  ;;  %v4891_v8 = vmax.f32 %v13769_v19, 0.0  ;;  %8248 = vmatmul.mubr.bf16.gmra.mrb[232].mxu1 %v20171_v21  ;;  %9020 = vmatmul.mubr.bf16.gmra.mrb[232].mxu0 %v20171_v21  ;;  %v15213_v12 = vld [vmem:[#allocation12 + $0x854] ss:$28 sps:$4 sm:$0xff]  }
 0x503   :  { %v4890_v22 = vmax.f32 %v13706_v5, 0.0  ;;  %v4892_v6 = vmax.f32 %v13770_v24, 0.0  ;;  %8257 = vmatprep.mubr.bf16.mxu1 %v20172_v43  ;;  %9029 = vmatprep.mubr.bf16.mxu0 %v20172_v43  ;;  %v15210_v24 = vld [vmem:[#allocation12 + $0x85c] ss:$28 sps:$4 sm:$0xff]  }
 0x504   :  { %v18242_v44 = vpack.c.bf16 %v4889_v42, %v4881_v49  ;;  %v18244_v4 = vpack.c.bf16 %v4891_v8, %v4883_v54  ;;  %9169 = vmatpush1.bf16.msra.mxu0 %v15196_v0  ;;  %8397 = vmatpush1.bf16.msra.mxu1 %v15199_v34 }
 0x505   :  { %v18246_v28 = vpack.c.bf16 %v4890_v22, %v4882_v60  ;;  %v18248_v19 = vpack.c.bf16 %v4892_v6, %v4884_v3  ;;  %v4300_v7 = vpop.f32.mrb[192].mxu1  ;;  %v4686_v52 = vpop.f32.mrb[192].mxu0  ;;  %9170 = vmatprep.subr.bf16.mxu0 %v15204_v61  ;;  %8398 = vmatprep.subr.bf16.mxu1 %v15207_v58  ;;  %v15208_v3 = vld [vmem:[#allocation12 + $0x858] ss:$28 sps:$4 sm:$0xff]   ;;  %v15211_v22 = vld [vmem:[#allocation12 + $0x850] ss:$28 sps:$4 sm:$0xff]  }
 0x506   :  { %20173 = vst [vmem:[#allocation96_spill] sm:$0xff] %v18244_v4  ;;  %v13707_v55 = vadd.f32 %v4300_v7, %v18076_v23  ;;  %v13771_v42 = vadd.f32 %v4686_v52, %v18080_v57  ;;  %v4302_v54 = vpop.f32.mrb[193].mxu1  ;;  %v4688_v49 = vpop.f32.mrb[193].mxu0 }
 0x507   :  { %20174 = vst [vmem:[#allocation97_spill] sm:$0xff] %v18248_v19  ;;  %v13708_v0 = vadd.f32 %v4302_v54, %v18086_v36  ;;  %v13772_v34 = vadd.f32 %v4688_v49, %v18088_v63  ;;  %v4304_v5 = vpop.f32.mrb[194].mxu1  ;;  %v4690_v8 = vpop.f32.mrb[194].mxu0  ;;  %v15216_v54 = vld [vmem:[#allocation12 + $0x894] ss:$28 sps:$4 sm:$0xff]   ;;  %v20175_v19 = vld [vmem:[#allocation39_spill] sm:$0xff] }
 0x508   :  { %v13709_v6 = vadd.f32 %v4304_v5, %v18076_v23  ;;  %v13773_v60 = vadd.f32 %v4690_v8, %v18080_v57  ;;  %v4306_v61 = vpop.f32.mrb[195].mxu1  ;;  %v4692_v58 = vpop.f32.mrb[195].mxu0  ;;  %9171 = vmatpush1.bf16.msra.mxu0 %v15202_v53  ;;  %8399 = vmatpush1.bf16.msra.mxu1 %v15205_v32  ;;  %v15219_v49 = vld [vmem:[#allocation12 + $0x88c] ss:$28 sps:$4 sm:$0xff]   ;;  %v4897_v43 = vmax.f32 %v13707_v55, 0.0  ;;  %v4899_v21 = vmax.f32 %v13771_v42, 0.0 }
 0x509   :  { %v13710_v7 = vadd.f32 %v4306_v61, %v18086_v36  ;;  %v13774_v52 = vadd.f32 %v4692_v58, %v18088_v63  ;;  %9172 = vmatprep.subr.bf16.mxu0 %v15210_v24  ;;  %8400 = vmatprep.subr.bf16.mxu1 %v15213_v12  ;;  %v4898_v53 = vmax.f32 %v13708_v0, 0.0  ;;  %v4900_v32 = vmax.f32 %v13772_v34, 0.0  ;;  %v15214_v55 = vld [vmem:[#allocation12 + $0x890] ss:$28 sps:$4 sm:$0xff]   ;;  %v15217_v42 = vld [vmem:[#allocation12 + $0x888] ss:$28 sps:$4 sm:$0xff]  }
 0x50a   :  { %v4905_v4 = vmax.f32 %v13709_v6, 0.0  ;;  %v4907_v5 = vmax.f32 %v13773_v60, 0.0  ;;  %8258 = vmatmul.mubr.bf16.gmra.mrb[236].mxu1 %v20175_v19  ;;  %9030 = vmatmul.mubr.bf16.gmra.mrb[236].mxu0 %v20175_v19  ;;  %v15222_v61 = vld [vmem:[#allocation12 + $0x8cc] ss:$28 sps:$4 sm:$0xff]   ;;  %v15225_v58 = vld [vmem:[#allocation12 + $0x8c4] ss:$28 sps:$4 sm:$0xff]  }
 0x50b   :  { %v4906_v8 = vmax.f32 %v13710_v7, 0.0  ;;  %v4908_v50 = vmax.f32 %v13774_v52, 0.0  ;;  %8267 = vmatprep.mubr.bf16.mxu1 %v20176_v13  ;;  %9039 = vmatprep.mubr.bf16.mxu0 %v20176_v13 }
 0x50c   :  { %v18262_v24 = vpack.c.bf16 %v4905_v4, %v4897_v43  ;;  %v18264_v12 = vpack.c.bf16 %v4907_v5, %v4899_v21  ;;  %9173 = vmatpush1.bf16.msra.mxu0 %v15208_v3  ;;  %8401 = vmatpush1.bf16.msra.mxu1 %v15211_v22 }
 0x50d   :  { %v18266_v6 = vpack.c.bf16 %v4906_v8, %v4898_v53  ;;  %v18268_v60 = vpack.c.bf16 %v4908_v50, %v4900_v32  ;;  %v4310_v0 = vpop.f32.mrb[196].mxu1  ;;  %v4696_v34 = vpop.f32.mrb[196].mxu0  ;;  %9174 = vmatprep.subr.bf16.mxu0 %v15216_v54  ;;  %8402 = vmatprep.subr.bf16.mxu1 %v15219_v49  ;;  %v15220_v32 = vld [vmem:[#allocation12 + $0x8c8] ss:$28 sps:$4 sm:$0xff]   ;;  %v15223_v8 = vld [vmem:[#allocation12 + $0x8c0] ss:$28 sps:$4 sm:$0xff]  }
 0x50e   :  { %20177 = vst [vmem:[#allocation98_spill] sm:$0xff] %v18264_v12  ;;  %v13711_v7 = vadd.f32 %v4310_v0, %v18076_v23  ;;  %v13775_v43 = vadd.f32 %v4696_v34, %v18080_v57  ;;  %v4312_v21 = vpop.f32.mrb[197].mxu1  ;;  %v4698_v4 = vpop.f32.mrb[197].mxu0 }
 0x50f   :  { %20178 = vst [vmem:[#allocation99_spill] sm:$0xff] %v18268_v60  ;;  %v13712_v3 = vadd.f32 %v4312_v21, %v18086_v36  ;;  %v13776_v22 = vadd.f32 %v4698_v4, %v18088_v63  ;;  %v4314_v52 = vpop.f32.mrb[198].mxu1  ;;  %v4700_v5 = vpop.f32.mrb[198].mxu0  ;;  %v15228_v21 = vld [vmem:[#allocation12 + $0x904] ss:$28 sps:$4 sm:$0xff]  }
 0x510   :  { %v13713_v50 = vadd.f32 %v4314_v52, %v18076_v23  ;;  %v13777_v53 = vadd.f32 %v4700_v5, %v18080_v57  ;;  %v4316_v54 = vpop.f32.mrb[199].mxu1  ;;  %v4702_v49 = vpop.f32.mrb[199].mxu0  ;;  %9175 = vmatpush1.bf16.msra.mxu0 %v15214_v55  ;;  %8403 = vmatpush1.bf16.msra.mxu1 %v15217_v42  ;;  %v15231_v4 = vld [vmem:[#allocation12 + $0x8fc] ss:$28 sps:$4 sm:$0xff]   ;;  %v4913_v13 = vmax.f32 %v13711_v7, 0.0  ;;  %v4915_v19 = vmax.f32 %v13775_v43, 0.0 }
 0x511   :  { %v13714_v0 = vadd.f32 %v4316_v54, %v18086_v36  ;;  %v13778_v34 = vadd.f32 %v4702_v49, %v18088_v63  ;;  %9176 = vmatprep.subr.bf16.mxu0 %v15222_v61  ;;  %8404 = vmatprep.subr.bf16.mxu1 %v15225_v58  ;;  %v20179_v60 = vld [vmem:[#allocation43_spill] sm:$0xff]  ;;  %v4914_v55 = vmax.f32 %v13712_v3, 0.0  ;;  %v4916_v42 = vmax.f32 %v13776_v22, 0.0  ;;  %v15229_v43 = vld [vmem:[#allocation12 + $0x8f8] ss:$28 sps:$4 sm:$0xff]  }
 0x512   :  { %v4921_v12 = vmax.f32 %v13713_v50, 0.0  ;;  %v4923_v52 = vmax.f32 %v13777_v53, 0.0  ;;  %8268 = vmatmul.mubr.bf16.gmra.mrb[240].mxu1 %v20179_v60  ;;  %9040 = vmatmul.mubr.bf16.gmra.mrb[240].mxu0 %v20179_v60  ;;  %v15226_v7 = vld [vmem:[#allocation12 + $0x900] ss:$28 sps:$4 sm:$0xff]   ;;  %v15237_v49 = vld [vmem:[#allocation12 + $0x934] ss:$28 sps:$4 sm:$0xff]  }
 0x513   :  { %v4922_v5 = vmax.f32 %v13714_v0, 0.0  ;;  %v4924_v14 = vmax.f32 %v13778_v34, 0.0  ;;  %8277 = vmatprep.mubr.bf16.mxu1 %v20180_v20  ;;  %9049 = vmatprep.mubr.bf16.mxu0 %v20180_v20  ;;  %v15234_v54 = vld [vmem:[#allocation12 + $0x93c] ss:$28 sps:$4 sm:$0xff]  }
 0x514   :  { %v18282_v61 = vpack.c.bf16 %v4921_v12, %v4913_v13  ;;  %v18284_v58 = vpack.c.bf16 %v4923_v52, %v4915_v19  ;;  %9177 = vmatpush1.bf16.msra.mxu0 %v15220_v32  ;;  %8405 = vmatpush1.bf16.msra.mxu1 %v15223_v8 }
 0x515   :  { %v18286_v50 = vpack.c.bf16 %v4922_v5, %v4914_v55  ;;  %v18288_v53 = vpack.c.bf16 %v4924_v14, %v4916_v42  ;;  %v4320_v3 = vpop.f32.mrb[200].mxu1  ;;  %v4706_v22 = vpop.f32.mrb[200].mxu0  ;;  %9178 = vmatprep.subr.bf16.mxu0 %v15228_v21  ;;  %8406 = vmatprep.subr.bf16.mxu1 %v15231_v4  ;;  %v15232_v42 = vld [vmem:[#allocation12 + $0x938] ss:$28 sps:$4 sm:$0xff]   ;;  %v15235_v5 = vld [vmem:[#allocation12 + $0x930] ss:$28 sps:$4 sm:$0xff]  }
 0x516   :  { %20181 = vst [vmem:[#allocation100_spill] sm:$0xff] %v18284_v58  ;;  %v13715_v0 = vadd.f32 %v4320_v3, %v18076_v23  ;;  %v13779_v13 = vadd.f32 %v4706_v22, %v18080_v57  ;;  %v4322_v19 = vpop.f32.mrb[201].mxu1  ;;  %v4708_v12 = vpop.f32.mrb[201].mxu0 }
 0x517   :  { %20182 = vst [vmem:[#allocation101_spill] sm:$0xff] %v18288_v53  ;;  %v13716_v32 = vadd.f32 %v4322_v19, %v18086_v36  ;;  %v13780_v8 = vadd.f32 %v4708_v12, %v18088_v63  ;;  %v4324_v34 = vpop.f32.mrb[202].mxu1  ;;  %v4710_v52 = vpop.f32.mrb[202].mxu0  ;;  %v15240_v19 = vld [vmem:[#allocation12 + $0x974] ss:$28 sps:$4 sm:$0xff]   ;;  %v20183_v53 = vld [vmem:[#allocation47_spill] sm:$0xff] }
 0x518   :  { %v13717_v14 = vadd.f32 %v4324_v34, %v18076_v23  ;;  %v13781_v55 = vadd.f32 %v4710_v52, %v18080_v57  ;;  %v4326_v21 = vpop.f32.mrb[203].mxu1  ;;  %v4712_v4 = vpop.f32.mrb[203].mxu0  ;;  %9179 = vmatpush1.bf16.msra.mxu0 %v15226_v7  ;;  %8407 = vmatpush1.bf16.msra.mxu1 %v15229_v43  ;;  %v15243_v12 = vld [vmem:[#allocation12 + $0x96c] ss:$28 sps:$4 sm:$0xff]   ;;  %v4929_v20 = vmax.f32 %v13715_v0, 0.0  ;;  %v4931_v60 = vmax.f32 %v13779_v13, 0.0 }
 0x519   :  { %v13718_v3 = vadd.f32 %v4326_v21, %v18086_v36  ;;  %v13782_v22 = vadd.f32 %v4712_v4, %v18088_v63  ;;  %9180 = vmatprep.subr.bf16.mxu0 %v15234_v54  ;;  %8408 = vmatprep.subr.bf16.mxu1 %v15237_v49  ;;  %v4930_v7 = vmax.f32 %v13716_v32, 0.0  ;;  %v4932_v43 = vmax.f32 %v13780_v8, 0.0  ;;  %v15238_v0 = vld [vmem:[#allocation12 + $0x970] ss:$28 sps:$4 sm:$0xff]   ;;  %v15241_v13 = vld [vmem:[#allocation12 + $0x968] ss:$28 sps:$4 sm:$0xff]  }
 0x51a   :  { %v4937_v58 = vmax.f32 %v13717_v14, 0.0  ;;  %v4939_v34 = vmax.f32 %v13781_v55, 0.0  ;;  %8278 = vmatmul.mubr.bf16.gmra.mrb[244].mxu1 %v20183_v53  ;;  %9050 = vmatmul.mubr.bf16.gmra.mrb[244].mxu0 %v20183_v53  ;;  %v15246_v21 = vld [vmem:[#allocation12 + $0x9ac] ss:$28 sps:$4 sm:$0xff]   ;;  %v15249_v4 = vld [vmem:[#allocation12 + $0x9a4] ss:$28 sps:$4 sm:$0xff]  }
 0x51b   :  { %v4938_v52 = vmax.f32 %v13718_v3, 0.0  ;;  %v4940_v25 = vmax.f32 %v13782_v22, 0.0  ;;  %8287 = vmatprep.mubr.bf16.mxu1 %v20184_v56  ;;  %9059 = vmatprep.mubr.bf16.mxu0 %v20184_v56 }
 0x51c   :  { %v18302_v54 = vpack.c.bf16 %v4937_v58, %v4929_v20  ;;  %v18304_v49 = vpack.c.bf16 %v4939_v34, %v4931_v60  ;;  %9181 = vmatpush1.bf16.msra.mxu0 %v15232_v42  ;;  %8409 = vmatpush1.bf16.msra.mxu1 %v15235_v5 }
 0x51d   :  { %v18306_v14 = vpack.c.bf16 %v4938_v52, %v4930_v7  ;;  %v18308_v55 = vpack.c.bf16 %v4940_v25, %v4932_v43  ;;  %v4330_v32 = vpop.f32.mrb[204].mxu1  ;;  %v4716_v8 = vpop.f32.mrb[204].mxu0  ;;  %9182 = vmatprep.subr.bf16.mxu0 %v15240_v19  ;;  %8410 = vmatprep.subr.bf16.mxu1 %v15243_v12  ;;  %v15244_v43 = vld [vmem:[#allocation12 + $0x9a8] ss:$28 sps:$4 sm:$0xff]   ;;  %v15247_v52 = vld [vmem:[#allocation12 + $0x9a0] ss:$28 sps:$4 sm:$0xff]  }
 0x51e   :  { %20185 = vst [vmem:[#allocation102_spill] sm:$0xff] %v18304_v49  ;;  %v13719_v3 = vadd.f32 %v4330_v32, %v18076_v23  ;;  %v13783_v20 = vadd.f32 %v4716_v8, %v18080_v57  ;;  %v4332_v60 = vpop.f32.mrb[205].mxu1  ;;  %v4718_v58 = vpop.f32.mrb[205].mxu0 }
 0x51f   :  { %20186 = vst [vmem:[#allocation103_spill] sm:$0xff] %v18308_v55  ;;  %v13720_v42 = vadd.f32 %v4332_v60, %v18086_v36  ;;  %v13784_v5 = vadd.f32 %v4718_v58, %v18088_v63  ;;  %v4334_v22 = vpop.f32.mrb[206].mxu1  ;;  %v4720_v34 = vpop.f32.mrb[206].mxu0  ;;  %v15252_v60 = vld [vmem:[#allocation12 + $0x9e4] ss:$28 sps:$4 sm:$0xff]  }
 0x520   :  { %v13721_v25 = vadd.f32 %v4334_v22, %v18076_v23  ;;  %v13785_v7 = vadd.f32 %v4720_v34, %v18080_v57  ;;  %v4336_v19 = vpop.f32.mrb[207].mxu1  ;;  %v4722_v12 = vpop.f32.mrb[207].mxu0  ;;  %9183 = vmatpush1.bf16.msra.mxu0 %v15238_v0  ;;  %8411 = vmatpush1.bf16.msra.mxu1 %v15241_v13  ;;  %v15255_v58 = vld [vmem:[#allocation12 + $0x9dc] ss:$28 sps:$4 sm:$0xff]   ;;  %v4945_v56 = vmax.f32 %v13719_v3, 0.0  ;;  %v4947_v53 = vmax.f32 %v13783_v20, 0.0 }
 0x521   :  { %v13722_v32 = vadd.f32 %v4336_v19, %v18086_v36  ;;  %v13786_v8 = vadd.f32 %v4722_v12, %v18088_v63  ;;  %9184 = vmatprep.subr.bf16.mxu0 %v15246_v21  ;;  %8412 = vmatprep.subr.bf16.mxu1 %v15249_v4  ;;  %v20187_v55 = vld [vmem:[#allocation51_spill] sm:$0xff]  ;;  %v4946_v0 = vmax.f32 %v13720_v42, 0.0  ;;  %v4948_v13 = vmax.f32 %v13784_v5, 0.0  ;;  %v15253_v20 = vld [vmem:[#allocation12 + $0x9d8] ss:$28 sps:$4 sm:$0xff]  }
 0x522   :  { %v4953_v49 = vmax.f32 %v13721_v25, 0.0  ;;  %v4955_v22 = vmax.f32 %v13785_v7, 0.0  ;;  %8288 = vmatmul.mubr.bf16.gmra.mrb[248].mxu1 %v20187_v55  ;;  %9060 = vmatmul.mubr.bf16.gmra.mrb[248].mxu0 %v20187_v55  ;;  %v15250_v3 = vld [vmem:[#allocation12 + $0x9e0] ss:$28 sps:$4 sm:$0xff]   ;;  %v15261_v12 = vld [vmem:[#allocation12 + $0xa14] ss:$28 sps:$4 sm:$0xff]  }
 0x523   :  { %v4954_v34 = vmax.f32 %v13722_v32, 0.0  ;;  %v4956_v39 = vmax.f32 %v13786_v8, 0.0  ;;  %8297 = vmatprep.mubr.bf16.mxu1 %v20188_v38  ;;  %9069 = vmatprep.mubr.bf16.mxu0 %v20188_v38  ;;  %v15258_v19 = vld [vmem:[#allocation12 + $0xa1c] ss:$28 sps:$4 sm:$0xff]  }
 0x524   :  { %v18322_v21 = vpack.c.bf16 %v4953_v49, %v4945_v56  ;;  %v18324_v4 = vpack.c.bf16 %v4955_v22, %v4947_v53  ;;  %9185 = vmatpush1.bf16.msra.mxu0 %v15244_v43  ;;  %8413 = vmatpush1.bf16.msra.mxu1 %v15247_v52 }
 0x525   :  { %v18326_v25 = vpack.c.bf16 %v4954_v34, %v4946_v0  ;;  %v18328_v7 = vpack.c.bf16 %v4956_v39, %v4948_v13  ;;  %v4340_v42 = vpop.f32.mrb[208].mxu1  ;;  %v4726_v5 = vpop.f32.mrb[208].mxu0  ;;  %9186 = vmatprep.subr.bf16.mxu0 %v15252_v60  ;;  %8414 = vmatprep.subr.bf16.mxu1 %v15255_v58  ;;  %v15256_v13 = vld [vmem:[#allocation12 + $0xa18] ss:$28 sps:$4 sm:$0xff]   ;;  %v15259_v34 = vld [vmem:[#allocation12 + $0xa10] ss:$28 sps:$4 sm:$0xff]  }
 0x526   :  { %20189 = vst [vmem:[#allocation104_spill] sm:$0xff] %v18324_v4  ;;  %v13723_v32 = vadd.f32 %v4340_v42, %v18076_v23  ;;  %v13787_v56 = vadd.f32 %v4726_v5, %v18080_v57  ;;  %v4342_v53 = vpop.f32.mrb[209].mxu1  ;;  %v4728_v49 = vpop.f32.mrb[209].mxu0 }
 0x527   :  { %20190 = vst [vmem:[#allocation105_spill] sm:$0xff] %v18328_v7  ;;  %v13724_v43 = vadd.f32 %v4342_v53, %v18086_v36  ;;  %v13788_v52 = vadd.f32 %v4728_v49, %v18088_v63  ;;  %v4344_v8 = vpop.f32.mrb[210].mxu1  ;;  %v4730_v22 = vpop.f32.mrb[210].mxu0  ;;  %v15264_v53 = vld [vmem:[#allocation12 + $0xa54] ss:$28 sps:$4 sm:$0xff]   ;;  %v20191_v7 = vld [vmem:[#allocation54_spill] sm:$0xff] }
 0x528   :  { %v13725_v39 = vadd.f32 %v4344_v8, %v18076_v23  ;;  %v13789_v0 = vadd.f32 %v4730_v22, %v18080_v57  ;;  %v4346_v60 = vpop.f32.mrb[211].mxu1  ;;  %v4732_v58 = vpop.f32.mrb[211].mxu0  ;;  %9187 = vmatpush1.bf16.msra.mxu0 %v15250_v3  ;;  %8415 = vmatpush1.bf16.msra.mxu1 %v15253_v20  ;;  %v15267_v49 = vld [vmem:[#allocation12 + $0xa4c] ss:$28 sps:$4 sm:$0xff]   ;;  %v4961_v38 = vmax.f32 %v13723_v32, 0.0  ;;  %v4963_v55 = vmax.f32 %v13787_v56, 0.0 }
 0x529   :  { %v13726_v42 = vadd.f32 %v4346_v60, %v18086_v36  ;;  %v13790_v5 = vadd.f32 %v4732_v58, %v18088_v63  ;;  %9188 = vmatprep.subr.bf16.mxu0 %v15258_v19  ;;  %8416 = vmatprep.subr.bf16.mxu1 %v15261_v12  ;;  %v4962_v3 = vmax.f32 %v13724_v43, 0.0  ;;  %v4964_v20 = vmax.f32 %v13788_v52, 0.0  ;;  %v15262_v32 = vld [vmem:[#allocation12 + $0xa50] ss:$28 sps:$4 sm:$0xff]   ;;  %v15265_v56 = vld [vmem:[#allocation12 + $0xa48] ss:$28 sps:$4 sm:$0xff]  }
 0x52a   :  { %v4969_v4 = vmax.f32 %v13725_v39, 0.0  ;;  %v4971_v8 = vmax.f32 %v13789_v0, 0.0  ;;  %8298 = vmatmul.mubr.bf16.gmra.mrb[252].mxu1 %v20191_v7  ;;  %9070 = vmatmul.mubr.bf16.gmra.mrb[252].mxu0 %v20191_v7  ;;  %v15270_v60 = vld [vmem:[#allocation12 + $0xa8c] ss:$28 sps:$4 sm:$0xff]   ;;  %v15273_v58 = vld [vmem:[#allocation12 + $0xa84] ss:$28 sps:$4 sm:$0xff]  }
 0x52b   :  { %v4970_v22 = vmax.f32 %v13726_v42, 0.0  ;;  %v4972_v45 = vmax.f32 %v13790_v5, 0.0  ;;  %8307 = vmatprep.mubr.bf16.mxu1 %v20192_v1  ;;  %9079 = vmatprep.mubr.bf16.mxu0 %v20192_v1  ;;  %v20197_v1 = vld [vmem:[#allocation58_spill] sm:$0xff] }
 0x52c   :  { %v18342_v19 = vpack.c.bf16 %v4969_v4, %v4961_v38  ;;  %v18344_v12 = vpack.c.bf16 %v4971_v8, %v4963_v55  ;;  %9189 = vmatpush1.bf16.msra.mxu0 %v15256_v13  ;;  %8417 = vmatpush1.bf16.msra.mxu1 %v15259_v34 }
 0x52d   :  { %v18346_v39 = vpack.c.bf16 %v4970_v22, %v4962_v3  ;;  %v18348_v0 = vpack.c.bf16 %v4972_v45, %v4964_v20  ;;  %v4350_v43 = vpop.f32.mrb[212].mxu1  ;;  %v4736_v52 = vpop.f32.mrb[212].mxu0  ;;  %9190 = vmatprep.subr.bf16.mxu0 %v15264_v53  ;;  %8418 = vmatprep.subr.bf16.mxu1 %v15267_v49 }
 0x52e   :  { %20193 = vst [vmem:[#allocation106_spill] sm:$0xff] %v18342_v19  ;;  %20194 = vst [vmem:[#allocation107_spill] sm:$0xff] %v18344_v12  ;;  %v13727_v42 = vadd.f32 %v4350_v43, %v18076_v23  ;;  %v13791_v38 = vadd.f32 %v4736_v52, %v18080_v57  ;;  %v4352_v55 = vpop.f32.mrb[213].mxu1  ;;  %v4738_v4 = vpop.f32.mrb[213].mxu0 }
 0x52f   :  { %20195 = vst [vmem:[#allocation108_spill] sm:$0xff] %v18346_v39  ;;  %20196 = vst [vmem:[#allocation109_spill] sm:$0xff] %v18348_v0  ;;  %v13728_v13 = vadd.f32 %v4352_v55, %v18086_v36  ;;  %v13792_v34 = vadd.f32 %v4738_v4, %v18088_v63  ;;  %v4354_v5 = vpop.f32.mrb[214].mxu1  ;;  %v4740_v8 = vpop.f32.mrb[214].mxu0 }
 0x530   :  { %v13729_v45 = vadd.f32 %v4354_v5, %v18076_v23  ;;  %v13793_v3 = vadd.f32 %v4740_v8, %v18080_v57  ;;  %v4356_v53 = vpop.f32.mrb[215].mxu1  ;;  %v4742_v49 = vpop.f32.mrb[215].mxu0  ;;  %9191 = vmatpush1.bf16.msra.mxu0 %v15262_v32  ;;  %8419 = vmatpush1.bf16.msra.mxu1 %v15265_v56  ;;  %v4977_v43 = vmax.f32 %v13727_v42, 0.0  ;;  %v4979_v52 = vmax.f32 %v13791_v38, 0.0  ;;  %v20198_v32 = vld [vmem:[#allocation64_spill] sm:$0xff] }
 0x531   :  { %v13730_v20 = vadd.f32 %v4356_v53, %v18086_v36  ;;  %v13794_v22 = vadd.f32 %v4742_v49, %v18088_v63  ;;  %9353 = vmatprep.subr.bf16.mxu0 %v15270_v60  ;;  %8581 = vmatprep.subr.bf16.mxu1 %v15273_v58  ;;  %v4978_v5 = vmax.f32 %v13728_v13, 0.0  ;;  %v4980_v8 = vmax.f32 %v13792_v34, 0.0 }
 0x532   :  { %v4985_v55 = vmax.f32 %v13729_v45, 0.0  ;;  %v4987_v4 = vmax.f32 %v13793_v3, 0.0  ;;  %8308 = vmatmul.mubr.bf16.gmra.mrb[0].mxu1 %v20197_v1  ;;  %9080 = vmatmul.mubr.bf16.gmra.mrb[0].mxu0 %v20197_v1  ;;  %v20203_v1 = vld [vmem:[#allocation62_spill] sm:$0xff] }
 0x533   :  { %v4986_v7 = vmax.f32 %v13730_v20, 0.0  ;;  %v4988_v12 = vmax.f32 %v13794_v22, 0.0  ;;  %8317 = vmatprep.mubr.bf16.mxu1 %v20198_v32  ;;  %9089 = vmatprep.mubr.bf16.mxu0 %v20198_v32 }
 0x534   :  { %v18362_v56 = vpack.c.bf16 %v4985_v55, %v4977_v43  ;;  %v18364_v60 = vpack.c.bf16 %v4987_v4, %v4979_v52 }
 0x535   :  { %v18366_v58 = vpack.c.bf16 %v4986_v7, %v4978_v5  ;;  %v18368_v42 = vpack.c.bf16 %v4988_v12, %v4980_v8  ;;  %v4360_v38 = vpop.f32.mrb[216].mxu1  ;;  %v4746_v45 = vpop.f32.mrb[216].mxu0 }
 0x536   :  { %20199 = vst [vmem:[#allocation110_spill] sm:$0xff] %v18362_v56  ;;  %20200 = vst [vmem:[#allocation111_spill] sm:$0xff] %v18364_v60  ;;  %v13731_v3 = vadd.f32 %v4360_v38, %v18076_v23  ;;  %v13795_v13 = vadd.f32 %v4746_v45, %v18080_v57  ;;  %v4362_v34 = vpop.f32.mrb[217].mxu1  ;;  %v4748_v53 = vpop.f32.mrb[217].mxu0 }
 0x537   :  { %20201 = vst [vmem:[#allocation112_spill] sm:$0xff] %v18366_v58  ;;  %20202 = vst [vmem:[#allocation113_spill] sm:$0xff] %v18368_v42  ;;  %v13732_v49 = vadd.f32 %v4362_v34, %v18086_v36  ;;  %v13796_v20 = vadd.f32 %v4748_v53, %v18088_v63  ;;  %v4364_v22 = vpop.f32.mrb[218].mxu1  ;;  %v4750_v43 = vpop.f32.mrb[218].mxu0  ;;  %v20204_v42 = vld [vmem:[#allocation68_spill] sm:$0xff] }
 0x538   :  { %v13733_v52 = vadd.f32 %v4364_v22, %v18076_v23  ;;  %v13797_v7 = vadd.f32 %v4750_v43, %v18080_v57  ;;  %v4366_v12 = vpop.f32.mrb[219].mxu1  ;;  %v4752_v55 = vpop.f32.mrb[219].mxu0  ;;  %v4993_v8 = vmax.f32 %v13731_v3, 0.0  ;;  %v4995_v38 = vmax.f32 %v13795_v13, 0.0 }
 0x539   :  { %v13734_v4 = vadd.f32 %v4366_v12, %v18086_v36  ;;  %v13798_v5 = vadd.f32 %v4752_v55, %v18088_v63  ;;  %v4994_v34 = vmax.f32 %v13732_v49, 0.0  ;;  %v4996_v53 = vmax.f32 %v13796_v20, 0.0 }
 0x53a   :  { %v5001_v45 = vmax.f32 %v13733_v52, 0.0  ;;  %v5003_v32 = vmax.f32 %v13797_v7, 0.0  ;;  %8318 = vmatmul.mubr.bf16.gmra.mrb[4].mxu1 %v20203_v1  ;;  %9090 = vmatmul.mubr.bf16.gmra.mrb[4].mxu0 %v20203_v1 }
 0x53b   :  { %v5002_v60 = vmax.f32 %v13734_v4, 0.0  ;;  %v5004_v22 = vmax.f32 %v13798_v5, 0.0  ;;  %8327 = vmatprep.mubr.bf16.mxu1 %v20204_v42  ;;  %9099 = vmatprep.mubr.bf16.mxu0 %v20204_v42 }
 0x53c   :  { %v18382_v43 = vpack.c.bf16 %v5001_v45, %v4993_v8  ;;  %v18384_v12 = vpack.c.bf16 %v5003_v32, %v4995_v38 }
 0x53d   :  { %v18386_v3 = vpack.c.bf16 %v5002_v60, %v4994_v34  ;;  %v18388_v13 = vpack.c.bf16 %v5004_v22, %v4996_v53  ;;  %v4370_v52 = vpop.f32.mrb[220].mxu1  ;;  %v4756_v7 = vpop.f32.mrb[220].mxu0 }
 0x53e   :  { %20205 = vst [vmem:[#allocation114_spill] sm:$0xff] %v18382_v43  ;;  %20206 = vst [vmem:[#allocation115_spill] sm:$0xff] %v18384_v12  ;;  %v13735_v55 = vadd.f32 %v4370_v52, %v18076_v23  ;;  %v13799_v49 = vadd.f32 %v4756_v7, %v18080_v57  ;;  %v4372_v20 = vpop.f32.mrb[221].mxu1  ;;  %v4758_v4 = vpop.f32.mrb[221].mxu0 }
 0x53f   :  { %20207 = vst [vmem:[#allocation116_spill] sm:$0xff] %v18386_v3  ;;  %20208 = vst [vmem:[#allocation117_spill] sm:$0xff] %v18388_v13  ;;  %v13736_v5 = vadd.f32 %v4372_v20, %v18086_v36  ;;  %v13800_v42 = vadd.f32 %v4758_v4, %v18088_v63  ;;  %v4374_v8 = vpop.f32.mrb[222].mxu1  ;;  %v4760_v45 = vpop.f32.mrb[222].mxu0  ;;  %v20209_v13 = vld [vmem:[#allocation66_spill] sm:$0xff] }
 0x540   :  { %v13737_v32 = vadd.f32 %v4374_v8, %v18076_v23  ;;  %v13801_v60 = vadd.f32 %v4760_v45, %v18080_v57  ;;  %v4376_v38 = vpop.f32.mrb[223].mxu1  ;;  %v4762_v34 = vpop.f32.mrb[223].mxu0  ;;  %v5009_v52 = vmax.f32 %v13735_v55, 0.0  ;;  %v5011_v7 = vmax.f32 %v13799_v49, 0.0  ;;  %v20210_v8 = vld [vmem:[#allocation72_spill] sm:$0xff]  ;;  %v20215_v49 = vld [vmem:[#allocation70_spill] sm:$0xff] }
 0x541   :  { %v13738_v53 = vadd.f32 %v4376_v38, %v18086_v36  ;;  %v13802_v22 = vadd.f32 %v4762_v34, %v18088_v63  ;;  %v5010_v20 = vmax.f32 %v13736_v5, 0.0  ;;  %v5012_v4 = vmax.f32 %v13800_v42, 0.0  ;;  %v15271_v42 = vld [vmem:[#allocation12 + $0xa80] ss:$28 sps:$4 sm:$0xff]   ;;  %v15285_v38 = vld [vmem:[#allocation12 + $0xaf4] ss:$28 sps:$4 sm:$0xff]  }
 0x542   :  { %v5017_v1 = vmax.f32 %v13737_v32, 0.0  ;;  %v5019_v12 = vmax.f32 %v13801_v60, 0.0  ;;  %8328 = vmatmul.mubr.bf16.gmra.mrb[8].mxu1 %v20209_v13  ;;  %9100 = vmatmul.mubr.bf16.gmra.mrb[8].mxu0 %v20209_v13  ;;  %v15279_v5 = vld [vmem:[#allocation12 + $0xabc] ss:$28 sps:$4 sm:$0xff]  }
 0x543   :  { %v5018_v0 = vmax.f32 %v13738_v53, 0.0  ;;  %v5020_v23 = vmax.f32 %v13802_v22, 0.0  ;;  %8337 = vmatprep.mubr.bf16.mxu1 %v20210_v8  ;;  %9109 = vmatprep.mubr.bf16.mxu0 %v20210_v8  ;;  %v15274_v45 = vld [vmem:[#allocation12 + $0xac0] ss:$28 sps:$4 sm:$0xff]   ;;  %v15277_v32 = vld [vmem:[#allocation12 + $0xab8] ss:$28 sps:$4 sm:$0xff]  }
 0x544   :  { %v18402_v57 = vpack.c.bf16 %v5017_v1, %v5009_v52  ;;  %v18404_v36 = vpack.c.bf16 %v5019_v12, %v5011_v7  ;;  %v20216_v1 = vld [vmem:[#allocation78_spill] sm:$0xff]  ;;  %v15276_v12 = vld [vmem:[#allocation12 + $0xac4] ss:$28 sps:$4 sm:$0xff]   ;;  %v15283_v53 = vld [vmem:[#allocation12 + $0xaf0] ss:$28 sps:$4 sm:$0xff]  }
 0x545   :  { %v18406_v63 = vpack.c.bf16 %v5018_v0, %v5010_v20  ;;  %v18408_v55 = vpack.c.bf16 %v5020_v23, %v5012_v4  ;;  %v15268_v0 = vld [vmem:[#allocation12 + $0xa88] ss:$28 sps:$4 sm:$0xff]   ;;  %v15282_v60 = vld [vmem:[#allocation12 + $0xafc] ss:$28 sps:$4 sm:$0xff]   ;;  %v15288_v22 = vld [vmem:[#allocation12 + $0xb34] ss:$28 sps:$4 sm:$0xff]  }
 0x546   :  { %20211 = vst [vmem:[#allocation66_spill] sm:$0xff] %v18402_v57  ;;  %20212 = vst [vmem:[#allocation72_spill] sm:$0xff] %v18404_v36  ;;  %v15280_v34 = vld [vmem:[#allocation12 + $0xaf8] ss:$28 sps:$4 sm:$0xff]   ;;  %v15291_v52 = vld [vmem:[#allocation12 + $0xb2c] ss:$28 sps:$4 sm:$0xff]  }
 0x547   :  { %20213 = vst [vmem:[#allocation118_spill] sm:$0xff] %v18406_v63  ;;  %20214 = vst [vmem:[#allocation119_spill] sm:$0xff] %v18408_v55  ;;  %v15286_v7 = vld [vmem:[#allocation12 + $0xb30] ss:$28 sps:$4 sm:$0xff]   ;;  %v15289_v20 = vld [vmem:[#allocation12 + $0xb28] ss:$28 sps:$4 sm:$0xff]  }
 0x548   :  { %v15294_v4 = vld [vmem:[#allocation12 + $0xb6c] ss:$28 sps:$4 sm:$0xff]   ;;  %v15297_v23 = vld [vmem:[#allocation12 + $0xb64] ss:$28 sps:$4 sm:$0xff]  }
 0x54a   :  { %8338 = vmatmul.mubr.bf16.gmra.mrb[12].mxu1 %v20215_v49  ;;  %9110 = vmatmul.mubr.bf16.gmra.mrb[12].mxu0 %v20215_v49 }
 0x54b   :  { %8347 = vmatprep.mubr.bf16.mxu1 %v17946_v48  ;;  %9119 = vmatprep.mubr.bf16.mxu0 %v17946_v48 }
 0x552   :  { %8348 = vmatmul.mubr.bf16.gmra.mrb[16].mxu1 %v17942_v40  ;;  %9120 = vmatmul.mubr.bf16.gmra.mrb[16].mxu0 %v17942_v40 }
 0x553   :  { %8357 = vmatprep.mubr.bf16.mxu1 %v17966_v35  ;;  %9129 = vmatprep.mubr.bf16.mxu0 %v17966_v35 }
 0x55a   :  { %8358 = vmatmul.mubr.bf16.gmra.mrb[20].mxu1 %v17962_v29  ;;  %9130 = vmatmul.mubr.bf16.gmra.mrb[20].mxu0 %v17962_v29 }
 0x55b   :  { %8367 = vmatprep.mubr.bf16.mxu1 %v17986_v47  ;;  %9139 = vmatprep.mubr.bf16.mxu0 %v17986_v47 }
 0x562   :  { %8368 = vmatmul.mubr.bf16.gmra.mrb[24].mxu1 %v20216_v1  ;;  %9140 = vmatmul.mubr.bf16.gmra.mrb[24].mxu0 %v20216_v1 }
 0x563   :  { %8377 = vmatprep.mubr.bf16.mxu1 %v18006_v33  ;;  %9149 = vmatprep.mubr.bf16.mxu0 %v18006_v33 }
 0x56a   :  { %8378 = vmatmul.mubr.bf16.gmra.mrb[28].mxu1 %v18002_v17  ;;  %9150 = vmatmul.mubr.bf16.gmra.mrb[28].mxu0 %v18002_v17 }
 0x56b   :  { %8420 = vmatprep.mubr.bf16.mxu1 %v18106_v10  ;;  %9192 = vmatprep.mubr.bf16.mxu0 %v18106_v10 }
 0x572   :  { %8421 = vmatmul.mubr.bf16.vlgmr.msra.gmra.mrb[224].mxu1 %v18102_v51  ;;  %9193 = vmatmul.mubr.bf16.vlgmr.msra.gmra.mrb[224].mxu0 %v18102_v51 }
 0x573   :  { %9354 = vmatpush1.bf16.msra.mxu0 %v15268_v0  ;;  %8430 = vmatprep.mubr.bf16.mxu1 %v18126_v27  ;;  %v15292_v0 = vld [vmem:[#allocation12 + $0xb68] ss:$28 sps:$4 sm:$0xff]  }
 0x574   :  { %9202 = vmatprep.mubr.bf16.mxu0 %v18126_v27  ;;  %8582 = vmatpush1.bf16.msra.mxu1 %v15271_v42  ;;  %v15295_v42 = vld [vmem:[#allocation12 + $0xb60] ss:$28 sps:$4 sm:$0xff]  }
 0x575   :  { %9355 = vmatprep.subr.bf16.mxu0 %v15276_v12  ;;  %8583 = vmatprep.subr.bf16.mxu1 %v15279_v5  ;;  %v15300_v12 = vld [vmem:[#allocation12 + $0xba4] ss:$28 sps:$4 sm:$0xff]   ;;  %v15303_v5 = vld [vmem:[#allocation12 + $0xb9c] ss:$28 sps:$4 sm:$0xff]  }
 0x577   :  { %9356 = vmatpush1.bf16.msra.mxu0 %v15274_v45  ;;  %v15298_v45 = vld [vmem:[#allocation12 + $0xba0] ss:$28 sps:$4 sm:$0xff]  }
 0x578   :  { %8584 = vmatpush1.bf16.msra.mxu1 %v15277_v32  ;;  %9357 = vmatprep.subr.bf16.mxu0 %v15282_v60  ;;  %v15301_v32 = vld [vmem:[#allocation12 + $0xb98] ss:$28 sps:$4 sm:$0xff]  }
 0x579   :  { %8585 = vmatprep.subr.bf16.mxu1 %v15285_v38  ;;  %v15306_v60 = vld [vmem:[#allocation12 + $0xbdc] ss:$28 sps:$4 sm:$0xff]   ;;  %v15309_v38 = vld [vmem:[#allocation12 + $0xbd4] ss:$28 sps:$4 sm:$0xff]  }
 0x57a   :  { %8431 = vmatmul.mubr.bf16.gmra.mrb[228].mxu1 %v18122_v15  ;;  %9203 = vmatmul.mubr.bf16.gmra.mrb[228].mxu0 %v18122_v15 }
 0x57b   :  { %8440 = vmatprep.mubr.bf16.mxu1 %v18146_v18  ;;  %9212 = vmatprep.mubr.bf16.mxu0 %v18146_v18 }
 0x57c   :  { %9358 = vmatpush1.bf16.msra.mxu0 %v15280_v34  ;;  %8586 = vmatpush1.bf16.msra.mxu1 %v15283_v53  ;;  %v15304_v34 = vld [vmem:[#allocation12 + $0xbd8] ss:$28 sps:$4 sm:$0xff]   ;;  %v15307_v53 = vld [vmem:[#allocation12 + $0xbd0] ss:$28 sps:$4 sm:$0xff]  }
 0x57d   :  { %9359 = vmatprep.subr.bf16.mxu0 %v15288_v22  ;;  %8587 = vmatprep.subr.bf16.mxu1 %v15291_v52  ;;  %v15312_v22 = vld [vmem:[#allocation12 + $0xc14] ss:$28 sps:$4 sm:$0xff]   ;;  %v15315_v52 = vld [vmem:[#allocation12 + $0xc0c] ss:$28 sps:$4 sm:$0xff]  }
 0x580   :  { %9360 = vmatpush1.bf16.msra.mxu0 %v15286_v7  ;;  %8588 = vmatpush1.bf16.msra.mxu1 %v15289_v20  ;;  %v15310_v7 = vld [vmem:[#allocation12 + $0xc10] ss:$28 sps:$4 sm:$0xff]   ;;  %v15313_v20 = vld [vmem:[#allocation12 + $0xc08] ss:$28 sps:$4 sm:$0xff]  }
 0x581   :  { %9361 = vmatprep.subr.bf16.mxu0 %v15294_v4  ;;  %8589 = vmatprep.subr.bf16.mxu1 %v15297_v23  ;;  %v15318_v4 = vld [vmem:[#allocation12 + $0xc4c] ss:$28 sps:$4 sm:$0xff]   ;;  %v15321_v23 = vld [vmem:[#allocation12 + $0xc44] ss:$28 sps:$4 sm:$0xff]  }
 0x582   :  { %8441 = vmatmul.mubr.bf16.gmra.mrb[232].mxu1 %v18142_v16  ;;  %9213 = vmatmul.mubr.bf16.gmra.mrb[232].mxu0 %v18142_v16 }
 0x583   :  { %8450 = vmatprep.mubr.bf16.mxu1 %v18166_v59  ;;  %9222 = vmatprep.mubr.bf16.mxu0 %v18166_v59 }
 0x584   :  { %9362 = vmatpush1.bf16.msra.mxu0 %v15292_v0  ;;  %8590 = vmatpush1.bf16.msra.mxu1 %v15295_v42  ;;  %v15316_v0 = vld [vmem:[#allocation12 + $0xc48] ss:$28 sps:$4 sm:$0xff]   ;;  %v15319_v42 = vld [vmem:[#allocation12 + $0xc40] ss:$28 sps:$4 sm:$0xff]  }
 0x585   :  { %9363 = vmatprep.subr.bf16.mxu0 %v15300_v12  ;;  %8591 = vmatprep.subr.bf16.mxu1 %v15303_v5  ;;  %v15324_v12 = vld [vmem:[#allocation12 + $0xc84] ss:$28 sps:$4 sm:$0xff]   ;;  %v15327_v5 = vld [vmem:[#allocation12 + $0xc7c] ss:$28 sps:$4 sm:$0xff]  }
 0x588   :  { %9364 = vmatpush1.bf16.msra.mxu0 %v15298_v45  ;;  %8592 = vmatpush1.bf16.msra.mxu1 %v15301_v32  ;;  %v15322_v45 = vld [vmem:[#allocation12 + $0xc80] ss:$28 sps:$4 sm:$0xff]   ;;  %v15325_v32 = vld [vmem:[#allocation12 + $0xc78] ss:$28 sps:$4 sm:$0xff]  }
 0x589   :  { %9365 = vmatprep.subr.bf16.mxu0 %v15306_v60  ;;  %8593 = vmatprep.subr.bf16.mxu1 %v15309_v38  ;;  %v15330_v60 = vld [vmem:[#allocation12 + $0xcbc] ss:$28 sps:$4 sm:$0xff]   ;;  %v15333_v38 = vld [vmem:[#allocation12 + $0xcb4] ss:$28 sps:$4 sm:$0xff]  }
 0x58a   :  { %8451 = vmatmul.mubr.bf16.gmra.mrb[236].mxu1 %v18162_v31  ;;  %9223 = vmatmul.mubr.bf16.gmra.mrb[236].mxu0 %v18162_v31 }
 0x58b   :  { %8460 = vmatprep.mubr.bf16.mxu1 %v18186_v2  ;;  %9232 = vmatprep.mubr.bf16.mxu0 %v18186_v2 }
 0x58c   :  { %9366 = vmatpush1.bf16.msra.mxu0 %v15304_v34  ;;  %8594 = vmatpush1.bf16.msra.mxu1 %v15307_v53  ;;  %v15328_v34 = vld [vmem:[#allocation12 + $0xcb8] ss:$28 sps:$4 sm:$0xff]   ;;  %v15331_v53 = vld [vmem:[#allocation12 + $0xcb0] ss:$28 sps:$4 sm:$0xff]  }
 0x58d   :  { %9367 = vmatprep.subr.bf16.mxu0 %v15312_v22  ;;  %8595 = vmatprep.subr.bf16.mxu1 %v15315_v52  ;;  %v15336_v22 = vld [vmem:[#allocation12 + $0xcf4] ss:$28 sps:$4 sm:$0xff]   ;;  %v15339_v52 = vld [vmem:[#allocation12 + $0xcec] ss:$28 sps:$4 sm:$0xff]  }
 0x590   :  { %9368 = vmatpush1.bf16.msra.mxu0 %v15310_v7  ;;  %8596 = vmatpush1.bf16.msra.mxu1 %v15313_v20  ;;  %v15334_v7 = vld [vmem:[#allocation12 + $0xcf0] ss:$28 sps:$4 sm:$0xff]   ;;  %v15337_v20 = vld [vmem:[#allocation12 + $0xce8] ss:$28 sps:$4 sm:$0xff]  }
 0x591   :  { %9369 = vmatprep.subr.bf16.mxu0 %v15318_v4  ;;  %8597 = vmatprep.subr.bf16.mxu1 %v15321_v23  ;;  %v15342_v4 = vld [vmem:[#allocation12 + $0xd2c] ss:$28 sps:$4 sm:$0xff]   ;;  %v15345_v23 = vld [vmem:[#allocation12 + $0xd24] ss:$28 sps:$4 sm:$0xff]  }
 0x592   :  { %8461 = vmatmul.mubr.bf16.gmra.mrb[240].mxu1 %v18182_v41  ;;  %9233 = vmatmul.mubr.bf16.gmra.mrb[240].mxu0 %v18182_v41 }
 0x593   :  { %8470 = vmatprep.mubr.bf16.mxu1 %v18206_v46  ;;  %9242 = vmatprep.mubr.bf16.mxu0 %v18206_v46 }
 0x594   :  { %9370 = vmatpush1.bf16.msra.mxu0 %v15316_v0  ;;  %8598 = vmatpush1.bf16.msra.mxu1 %v15319_v42  ;;  %v15340_v0 = vld [vmem:[#allocation12 + $0xd28] ss:$28 sps:$4 sm:$0xff]   ;;  %v15343_v42 = vld [vmem:[#allocation12 + $0xd20] ss:$28 sps:$4 sm:$0xff]  }
 0x595   :  { %9371 = vmatprep.subr.bf16.mxu0 %v15324_v12  ;;  %8599 = vmatprep.subr.bf16.mxu1 %v15327_v5  ;;  %v15348_v12 = vld [vmem:[#allocation12 + $0xd64] ss:$28 sps:$4 sm:$0xff]   ;;  %v15351_v5 = vld [vmem:[#allocation12 + $0xd5c] ss:$28 sps:$4 sm:$0xff]  }
 0x598   :  { %9372 = vmatpush1.bf16.msra.mxu0 %v15322_v45  ;;  %8600 = vmatpush1.bf16.msra.mxu1 %v15325_v32  ;;  %v15346_v45 = vld [vmem:[#allocation12 + $0xd60] ss:$28 sps:$4 sm:$0xff]   ;;  %v15349_v32 = vld [vmem:[#allocation12 + $0xd58] ss:$28 sps:$4 sm:$0xff]  }
 0x599   :  { %9373 = vmatprep.subr.bf16.mxu0 %v15330_v60  ;;  %8601 = vmatprep.subr.bf16.mxu1 %v15333_v38  ;;  %v15354_v60 = vld [vmem:[#allocation12 + $0xd9c] ss:$28 sps:$4 sm:$0xff]   ;;  %v15357_v38 = vld [vmem:[#allocation12 + $0xd94] ss:$28 sps:$4 sm:$0xff]  }
 0x59a   :  { %8471 = vmatmul.mubr.bf16.gmra.mrb[244].mxu1 %v18201_v62  ;;  %9243 = vmatmul.mubr.bf16.gmra.mrb[244].mxu0 %v18201_v62 }
 0x59b   :  { %8480 = vmatprep.mubr.bf16.mxu1 %v18226_v30  ;;  %9252 = vmatprep.mubr.bf16.mxu0 %v18226_v30 }
 0x59c   :  { %9374 = vmatpush1.bf16.msra.mxu0 %v15328_v34  ;;  %8602 = vmatpush1.bf16.msra.mxu1 %v15331_v53  ;;  %v15352_v34 = vld [vmem:[#allocation12 + $0xd98] ss:$28 sps:$4 sm:$0xff]   ;;  %v15355_v53 = vld [vmem:[#allocation12 + $0xd90] ss:$28 sps:$4 sm:$0xff]  }
 0x59d   :  { %9375 = vmatprep.subr.bf16.mxu0 %v15336_v22  ;;  %8603 = vmatprep.subr.bf16.mxu1 %v15339_v52  ;;  %v15360_v22 = vld [vmem:[#allocation12 + $0xdd4] ss:$28 sps:$4 sm:$0xff]   ;;  %v15363_v52 = vld [vmem:[#allocation12 + $0xdcc] ss:$28 sps:$4 sm:$0xff]  }
 0x5a0   :  { %9376 = vmatpush1.bf16.msra.mxu0 %v15334_v7  ;;  %8604 = vmatpush1.bf16.msra.mxu1 %v15337_v20  ;;  %v15358_v7 = vld [vmem:[#allocation12 + $0xdd0] ss:$28 sps:$4 sm:$0xff]   ;;  %v15361_v20 = vld [vmem:[#allocation12 + $0xdc8] ss:$28 sps:$4 sm:$0xff]  }
 0x5a1   :  { %9377 = vmatprep.subr.bf16.mxu0 %v15342_v4  ;;  %8605 = vmatprep.subr.bf16.mxu1 %v15345_v23  ;;  %v15364_v4 = vld [vmem:[#allocation12 + $0x1d8] ss:$28 sps:$4 sm:$0xff]  }
 0x5a2   :  { %8481 = vmatmul.mubr.bf16.gmra.mrb[248].mxu1 %v18222_v9  ;;  %9253 = vmatmul.mubr.bf16.gmra.mrb[248].mxu0 %v18222_v9  ;;  %v15368_v23 = vld [vmem:[#allocation12 + $0x14] ss:$28 sps:$4 sm:$0xff]  }
 0x5a3   :  { %8490 = vmatprep.mubr.bf16.mxu1 %v18246_v28  ;;  %9262 = vmatprep.mubr.bf16.mxu0 %v18246_v28 }
 0x5a4   :  { %9378 = vmatpush1.bf16.msra.mxu0 %v15340_v0  ;;  %8606 = vmatpush1.bf16.msra.mxu1 %v15343_v42  ;;  %v15365_v0 = vld [vmem:[#allocation12 + $0x18] ss:$28 sps:$4 sm:$0xff]   ;;  %v15366_v42 = vld [vmem:[#allocation12 + $0x10] ss:$28 sps:$4 sm:$0xff]  }
 0x5a5   :  { %9379 = vmatprep.subr.bf16.mxu0 %v15348_v12  ;;  %8607 = vmatprep.subr.bf16.mxu1 %v15351_v5  ;;  %v15371_v12 = vld [vmem:[#allocation12 + $0x4c] ss:$28 sps:$4 sm:$0xff]  }
 0x5a6   :  { %v15372_v5 = vld [vmem:[#allocation12 + $0x210] ss:$28 sps:$4 sm:$0xff]  }
 0x5a8   :  { %9380 = vmatpush1.bf16.msra.mxu0 %v15346_v45  ;;  %8608 = vmatpush1.bf16.msra.mxu1 %v15349_v32  ;;  %v15373_v45 = vld [vmem:[#allocation12 + $0x50] ss:$28 sps:$4 sm:$0xff]   ;;  %v15369_v32 = vld [vmem:[#allocation12 + $0x48] ss:$28 sps:$4 sm:$0xff]  }
 0x5a9   :  { %9381 = vmatprep.subr.bf16.mxu0 %v15354_v60  ;;  %8609 = vmatprep.subr.bf16.mxu1 %v15357_v38  ;;  %v15380_v60 = vld [vmem:[#allocation12 + $0x248] ss:$28 sps:$4 sm:$0xff]  }
 0x5aa   :  { %8491 = vmatmul.mubr.bf16.gmra.mrb[252].mxu1 %v18242_v44  ;;  %9263 = vmatmul.mubr.bf16.gmra.mrb[252].mxu0 %v18242_v44  ;;  %v15376_v38 = vld [vmem:[#allocation12 + $0x84] ss:$28 sps:$4 sm:$0xff]  }
 0x5ab   :  { %8500 = vmatprep.mubr.bf16.mxu1 %v18266_v6  ;;  %9272 = vmatprep.mubr.bf16.mxu0 %v18266_v6 }
 0x5ac   :  { %9382 = vmatpush1.bf16.msra.mxu0 %v15352_v34  ;;  %8610 = vmatpush1.bf16.msra.mxu1 %v15355_v53  ;;  %v15374_v34 = vld [vmem:[#allocation12 + $0x80] ss:$28 sps:$4 sm:$0xff]   ;;  %v15381_v53 = vld [vmem:[#allocation12 + $0x88] ss:$28 sps:$4 sm:$0xff]  }
 0x5ad   :  { %9383 = vmatprep.subr.bf16.mxu0 %v15360_v22  ;;  %8611 = vmatprep.subr.bf16.mxu1 %v15363_v52  ;;  %v15379_v22 = vld [vmem:[#allocation12 + $0xbc] ss:$28 sps:$4 sm:$0xff]  }
 0x5ae   :  { %v15388_v52 = vld [vmem:[#allocation12 + $0x280] ss:$28 sps:$4 sm:$0xff]  }
 0x5b0   :  { %9384 = vmatpush1.bf16.msra.mxu0 %v15358_v7  ;;  %8612 = vmatpush1.bf16.msra.mxu1 %v15361_v20  ;;  %v20217_v7 = vld [vmem:[#allocation84_spill] sm:$0xff]  ;;  %v20218_v20 = vld [vmem:[#allocation87_spill] sm:$0xff] }
 0x5b1   :  { %13083 = vmatprep.subr.bf16.mxu0 %v15364_v4  ;;  %9546 = vmatprep.subr.bf16.mxu1 %v15368_v23  ;;  %v15377_v4 = vld [vmem:[#allocation12 + $0xb8] ss:$28 sps:$4 sm:$0xff]   ;;  %v15389_v23 = vld [vmem:[#allocation12 + $0xc0] ss:$28 sps:$4 sm:$0xff]  }
 0x5b2   :  { %8501 = vmatmul.mubr.bf16.gmra.mrb[0].mxu1 %v18262_v24  ;;  %9273 = vmatmul.mubr.bf16.gmra.mrb[0].mxu0 %v18262_v24 }
 0x5b3   :  { %8510 = vmatprep.mubr.bf16.mxu1 %v18286_v50  ;;  %9282 = vmatprep.mubr.bf16.mxu0 %v18286_v50 }
 0x5ba   :  { %8511 = vmatmul.mubr.bf16.gmra.mrb[4].mxu1 %v18282_v61  ;;  %9283 = vmatmul.mubr.bf16.gmra.mrb[4].mxu0 %v18282_v61 }
 0x5bb   :  { %8520 = vmatprep.mubr.bf16.mxu1 %v18306_v14  ;;  %9292 = vmatprep.mubr.bf16.mxu0 %v18306_v14 }
 0x5c2   :  { %8521 = vmatmul.mubr.bf16.gmra.mrb[8].mxu1 %v18302_v54  ;;  %9293 = vmatmul.mubr.bf16.gmra.mrb[8].mxu0 %v18302_v54 }
 0x5c3   :  { %8530 = vmatprep.mubr.bf16.mxu1 %v18326_v25  ;;  %9302 = vmatprep.mubr.bf16.mxu0 %v18326_v25 }
 0x5ca   :  { %8531 = vmatmul.mubr.bf16.gmra.mrb[12].mxu1 %v18322_v21  ;;  %9303 = vmatmul.mubr.bf16.gmra.mrb[12].mxu0 %v18322_v21 }
 0x5cb   :  { %8540 = vmatprep.mubr.bf16.mxu1 %v18346_v39  ;;  %9312 = vmatprep.mubr.bf16.mxu0 %v18346_v39 }
 0x5d2   :  { %8541 = vmatmul.mubr.bf16.gmra.mrb[16].mxu1 %v18342_v19  ;;  %9313 = vmatmul.mubr.bf16.gmra.mrb[16].mxu0 %v18342_v19  ;;  %v20281_v19 = vld [vmem:[#allocation26_spill] sm:$0xff] }
 0x5d3   :  { %8550 = vmatprep.mubr.bf16.mxu1 %v18366_v58  ;;  %9322 = vmatprep.mubr.bf16.mxu0 %v18366_v58 }
 0x5da   :  { %8551 = vmatmul.mubr.bf16.gmra.mrb[20].mxu1 %v18362_v56  ;;  %9323 = vmatmul.mubr.bf16.gmra.mrb[20].mxu0 %v18362_v56 }
 0x5db   :  { %8560 = vmatprep.mubr.bf16.mxu1 %v18386_v3  ;;  %9332 = vmatprep.mubr.bf16.mxu0 %v18386_v3 }
 0x5e2   :  { %8561 = vmatmul.mubr.bf16.gmra.mrb[24].mxu1 %v18382_v43  ;;  %9333 = vmatmul.mubr.bf16.gmra.mrb[24].mxu0 %v18382_v43  ;;  %v20275_v43 = vld [vmem:[#allocation75_spill] sm:$0xff] }
 0x5e3   :  { %8570 = vmatprep.mubr.bf16.mxu1 %v18406_v63  ;;  %9342 = vmatprep.mubr.bf16.mxu0 %v18406_v63 }
 0x5ea   :  { %8571 = vmatmul.mubr.bf16.gmra.mrb[28].mxu1 %v18402_v57  ;;  %9343 = vmatmul.mubr.bf16.gmra.mrb[28].mxu0 %v18402_v57 }
 0x5eb   :  { %8613 = vmatprep.mubr.bf16.mxu1 %v18108_v26  ;;  %9385 = vmatprep.mubr.bf16.mxu0 %v18108_v26 }
 0x5f2   :  { %8614 = vmatmul.mubr.bf16.vlgmr.msra.gmra.mrb[224].mxu1 %v18104_v11  ;;  %9386 = vmatmul.mubr.bf16.vlgmr.msra.gmra.mrb[224].mxu0 %v18104_v11  ;;  %v20273_v11 = vld [vmem:[#allocation73_spill] sm:$0xff] }
 0x5f3   :  { %13084 = vmatpush3.bf16.msra.mxu0 %v15365_v0  ;;  %8623 = vmatprep.mubr.bf16.mxu1 %v18128_v37  ;;  %v15384_v0 = vld [vmem:[#allocation12 + $0xf4] ss:$28 sps:$4 sm:$0xff]  }
 0x5f4   :  { %9395 = vmatprep.mubr.bf16.mxu0 %v18128_v37  ;;  %9547 = vmatpush1.bf16.msra.mxu1 %v15366_v42  ;;  %v15396_v42 = vld [vmem:[#allocation12 + $0x2b8] ss:$28 sps:$4 sm:$0xff]  }
 0x5f5   :  { %9548 = vmatprep.subr.bf16.mxu1 %v15371_v12  ;;  %13085 = vmatprep.subr.bf16.mxu0 %v15372_v5  ;;  %v15382_v12 = vld [vmem:[#allocation12 + $0xf0] ss:$28 sps:$4 sm:$0xff]   ;;  %v15397_v5 = vld [vmem:[#allocation12 + $0xf8] ss:$28 sps:$4 sm:$0xff]  }
 0x5f7   :  { %13086 = vmatpush3.bf16.msra.mxu0 %v15373_v45  ;;  %v15387_v45 = vld [vmem:[#allocation12 + $0x12c] ss:$28 sps:$4 sm:$0xff]  }
 0x5f8   :  { %9549 = vmatpush1.bf16.msra.mxu1 %v15369_v32  ;;  %13087 = vmatprep.subr.bf16.mxu0 %v15380_v60  ;;  %v15404_v32 = vld [vmem:[#allocation12 + $0x2f0] ss:$28 sps:$4 sm:$0xff]   ;;  %v20219_v60 = vld [vmem:[#allocation86_spill] sm:$0xff] }
 0x5f9   :  { %9550 = vmatprep.subr.bf16.mxu1 %v15376_v38  ;;  %v20220_v38 = vld [vmem:[#allocation89_spill] sm:$0xff] }
 0x5fa   :  { %8624 = vmatmul.mubr.bf16.gmra.mrb[228].mxu1 %v20217_v7  ;;  %9396 = vmatmul.mubr.bf16.gmra.mrb[228].mxu0 %v20217_v7 }
 0x5fb   :  { %8633 = vmatprep.mubr.bf16.mxu1 %v20218_v20  ;;  %9405 = vmatprep.mubr.bf16.mxu0 %v20218_v20 }
 0x5fc   :  { %9551 = vmatpush1.bf16.msra.mxu1 %v15374_v34  ;;  %13088 = vmatpush3.bf16.msra.mxu0 %v15381_v53  ;;  %v15385_v34 = vld [vmem:[#allocation12 + $0x128] ss:$28 sps:$4 sm:$0xff]   ;;  %v15405_v53 = vld [vmem:[#allocation12 + $0x130] ss:$28 sps:$4 sm:$0xff]  }
 0x5fd   :  { %9552 = vmatprep.subr.bf16.mxu1 %v15379_v22  ;;  %13089 = vmatprep.subr.bf16.mxu0 %v15388_v52  ;;  %v15392_v22 = vld [vmem:[#allocation12 + $0x164] ss:$28 sps:$4 sm:$0xff]  }
 0x5fe   :  { %v15412_v52 = vld [vmem:[#allocation12 + $0x328] ss:$28 sps:$4 sm:$0xff]  }
 0x600   :  { %9553 = vmatpush1.bf16.msra.mxu1 %v15377_v4  ;;  %13090 = vmatpush3.bf16.msra.mxu0 %v15389_v23  ;;  %v15390_v4 = vld [vmem:[#allocation12 + $0x160] ss:$28 sps:$4 sm:$0xff]   ;;  %v15413_v23 = vld [vmem:[#allocation12 + $0x168] ss:$28 sps:$4 sm:$0xff]  }
 0x601   :  { %9554 = vmatprep.subr.bf16.mxu1 %v15384_v0  ;;  %13091 = vmatprep.subr.bf16.mxu0 %v15396_v42  ;;  %v15395_v0 = vld [vmem:[#allocation12 + $0x19c] ss:$28 sps:$4 sm:$0xff]  }
 0x602   :  { %8634 = vmatmul.mubr.bf16.gmra.mrb[232].mxu1 %v20219_v60  ;;  %9406 = vmatmul.mubr.bf16.gmra.mrb[232].mxu0 %v20219_v60  ;;  %v15420_v42 = vld [vmem:[#allocation12 + $0x360] ss:$28 sps:$4 sm:$0xff]   ;;  %v20221_v60 = vld [vmem:[#allocation88_spill] sm:$0xff] }
 0x603   :  { %8643 = vmatprep.mubr.bf16.mxu1 %v20220_v38  ;;  %9415 = vmatprep.mubr.bf16.mxu0 %v20220_v38 }
 0x604   :  { %9555 = vmatpush1.bf16.msra.mxu1 %v15382_v12  ;;  %13092 = vmatpush3.bf16.msra.mxu0 %v15397_v5  ;;  %v20222_v12 = vld [vmem:[#allocation91_spill] sm:$0xff]  ;;  %v15393_v5 = vld [vmem:[#allocation12 + $0x198] ss:$28 sps:$4 sm:$0xff]  }
 0x605   :  { %9556 = vmatprep.subr.bf16.mxu1 %v15387_v45  ;;  %13093 = vmatprep.subr.bf16.mxu0 %v15404_v32  ;;  %v15421_v45 = vld [vmem:[#allocation12 + $0x1a0] ss:$28 sps:$4 sm:$0xff]   ;;  %v15400_v32 = vld [vmem:[#allocation12 + $0x1d4] ss:$28 sps:$4 sm:$0xff]  }
 0x608   :  { %9557 = vmatpush1.bf16.msra.mxu1 %v15385_v34  ;;  %13094 = vmatpush3.bf16.msra.mxu0 %v15405_v53  ;;  %v15428_v34 = vld [vmem:[#allocation12 + $0x558] ss:$28 sps:$4 sm:$0xff]   ;;  %v15398_v53 = vld [vmem:[#allocation12 + $0x1d0] ss:$28 sps:$4 sm:$0xff]  }
 0x609   :  { %9558 = vmatprep.subr.bf16.mxu1 %v15392_v22  ;;  %13095 = vmatprep.subr.bf16.mxu0 %v15412_v52  ;;  %v15403_v22 = vld [vmem:[#allocation12 + $0x20c] ss:$28 sps:$4 sm:$0xff]   ;;  %v20223_v52 = vld [vmem:[#allocation90_spill] sm:$0xff] }
 0x60a   :  { %8644 = vmatmul.mubr.bf16.gmra.mrb[236].mxu1 %v20221_v60  ;;  %9416 = vmatmul.mubr.bf16.gmra.mrb[236].mxu0 %v20221_v60  ;;  %v20224_v60 = vld [vmem:[#allocation93_spill] sm:$0xff] }
 0x60b   :  { %8653 = vmatprep.mubr.bf16.mxu1 %v20222_v12  ;;  %9425 = vmatprep.mubr.bf16.mxu0 %v20222_v12 }
 0x60c   :  { %9559 = vmatpush1.bf16.msra.mxu1 %v15390_v4  ;;  %13096 = vmatpush3.bf16.msra.mxu0 %v15413_v23  ;;  %v15401_v4 = vld [vmem:[#allocation12 + $0x208] ss:$28 sps:$4 sm:$0xff]  }
 0x60d   :  { %9560 = vmatprep.subr.bf16.mxu1 %v15395_v0  ;;  %13097 = vmatprep.subr.bf16.mxu0 %v15420_v42  ;;  %v15408_v23 = vld [vmem:[#allocation12 + $0x244] ss:$28 sps:$4 sm:$0xff]   ;;  %v15411_v42 = vld [vmem:[#allocation12 + $0x27c] ss:$28 sps:$4 sm:$0xff]  }
 0x60e   :  { %v15406_v0 = vld [vmem:[#allocation12 + $0x240] ss:$28 sps:$4 sm:$0xff]  }
 0x610   :  { %9561 = vmatpush1.bf16.msra.mxu1 %v15393_v5  ;;  %13098 = vmatpush3.bf16.msra.mxu0 %v15421_v45  ;;  %v20225_v5 = vld [vmem:[#allocation92_spill] sm:$0xff]  ;;  %v20226_v45 = vld [vmem:[#allocation95_spill] sm:$0xff] }
 0x611   :  { %9562 = vmatprep.subr.bf16.mxu1 %v15400_v32  ;;  %13195 = vmatprep.subr.bf16.mxu0 %v15428_v34  ;;  %v15409_v32 = vld [vmem:[#allocation12 + $0x278] ss:$28 sps:$4 sm:$0xff]  }
 0x612   :  { %8654 = vmatmul.mubr.bf16.gmra.mrb[240].mxu1 %v20223_v52  ;;  %9426 = vmatmul.mubr.bf16.gmra.mrb[240].mxu0 %v20223_v52  ;;  %v15416_v34 = vld [vmem:[#allocation12 + $0x2b4] ss:$28 sps:$4 sm:$0xff]   ;;  %v20248_v52 = vld [vmem:[#allocation38_spill] sm:$0xff] }
 0x613   :  { %8663 = vmatprep.mubr.bf16.mxu1 %v20224_v60  ;;  %9435 = vmatprep.mubr.bf16.mxu0 %v20224_v60  ;;  %v15443_v60 = vld [vmem:[#allocation12 + $0x43c] ss:$28 sps:$4 sm:$0xff]  }
 0x614   :  { %9563 = vmatpush1.bf16.msra.mxu1 %v15398_v53  ;;  %v15414_v53 = vld [vmem:[#allocation12 + $0x2b0] ss:$28 sps:$4 sm:$0xff]  }
 0x615   :  { %9564 = vmatprep.subr.bf16.mxu1 %v15403_v22  ;;  %v15419_v22 = vld [vmem:[#allocation12 + $0x2ec] ss:$28 sps:$4 sm:$0xff]  }
 0x618   :  { %9565 = vmatpush1.bf16.msra.mxu1 %v15401_v4  ;;  %v20227_v4 = vld [vmem:[#allocation94_spill] sm:$0xff] }
 0x619   :  { %9566 = vmatprep.subr.bf16.mxu1 %v15408_v23  ;;  %v20228_v23 = vld [vmem:[#allocation97_spill] sm:$0xff] }
 0x61a   :  { %8664 = vmatmul.mubr.bf16.gmra.mrb[244].mxu1 %v20225_v5  ;;  %9436 = vmatmul.mubr.bf16.gmra.mrb[244].mxu0 %v20225_v5  ;;  %v15417_v5 = vld [vmem:[#allocation12 + $0x2e8] ss:$28 sps:$4 sm:$0xff]  }
 0x61b   :  { %8673 = vmatprep.mubr.bf16.mxu1 %v20226_v45  ;;  %9445 = vmatprep.mubr.bf16.mxu0 %v20226_v45  ;;  %v15424_v45 = vld [vmem:[#allocation12 + $0x324] ss:$28 sps:$4 sm:$0xff]  }
 0x61c   :  { %9567 = vmatpush1.bf16.msra.mxu1 %v15406_v0  ;;  %v15422_v0 = vld [vmem:[#allocation12 + $0x320] ss:$28 sps:$4 sm:$0xff]  }
 0x61d   :  { %9568 = vmatprep.subr.bf16.mxu1 %v15411_v42  ;;  %v15427_v42 = vld [vmem:[#allocation12 + $0x35c] ss:$28 sps:$4 sm:$0xff]  }
 0x620   :  { %9569 = vmatpush1.bf16.msra.mxu1 %v15409_v32  ;;  %v20229_v32 = vld [vmem:[#allocation96_spill] sm:$0xff] }
 0x621   :  { %9570 = vmatprep.subr.bf16.mxu1 %v15416_v34  ;;  %v20230_v34 = vld [vmem:[#allocation99_spill] sm:$0xff] }
 0x622   :  { %8674 = vmatmul.mubr.bf16.gmra.mrb[248].mxu1 %v20227_v4  ;;  %9446 = vmatmul.mubr.bf16.gmra.mrb[248].mxu0 %v20227_v4  ;;  %v15425_v4 = vld [vmem:[#allocation12 + $0x358] ss:$28 sps:$4 sm:$0xff]  }
 0x623   :  { %8683 = vmatprep.mubr.bf16.mxu1 %v20228_v23  ;;  %9455 = vmatprep.mubr.bf16.mxu0 %v20228_v23  ;;  %v15432_v23 = vld [vmem:[#allocation12 + $0x394] ss:$28 sps:$4 sm:$0xff]  }
 0x624   :  { %9571 = vmatpush1.bf16.msra.mxu1 %v15414_v53  ;;  %v20231_v53 = vld [vmem:[#allocation98_spill] sm:$0xff] }
 0x625   :  { %9572 = vmatprep.subr.bf16.mxu1 %v15419_v22  ;;  %v20234_v22 = vld [vmem:[#allocation103_spill] sm:$0xff] }
 0x628   :  { %9573 = vmatpush1.bf16.msra.mxu1 %v15417_v5  ;;  %v20232_v5 = vld [vmem:[#allocation101_spill] sm:$0xff] }
 0x629   :  { %9574 = vmatprep.subr.bf16.mxu1 %v15424_v45  ;;  %v20233_v45 = vld [vmem:[#allocation100_spill] sm:$0xff] }
 0x62a   :  { %8684 = vmatmul.mubr.bf16.gmra.mrb[252].mxu1 %v20229_v32  ;;  %9456 = vmatmul.mubr.bf16.gmra.mrb[252].mxu0 %v20229_v32  ;;  %v15445_v32 = vld [vmem:[#allocation12 + $0x408] ss:$28 sps:$4 sm:$0xff]  }
 0x62b   :  { %8693 = vmatprep.mubr.bf16.mxu1 %v20230_v34  ;;  %9465 = vmatprep.mubr.bf16.mxu0 %v20230_v34  ;;  %v15438_v34 = vld [vmem:[#allocation12 + $0x400] ss:$28 sps:$4 sm:$0xff]  }
 0x62c   :  { %9575 = vmatpush1.bf16.msra.mxu1 %v15422_v0  ;;  %v20235_v0 = vld [vmem:[#allocation102_spill] sm:$0xff] }
 0x62d   :  { %9576 = vmatprep.subr.bf16.mxu1 %v15427_v42  ;;  %v20238_v42 = vld [vmem:[#allocation109_spill] sm:$0xff] }
 0x630   :  { %9577 = vmatpush1.bf16.msra.mxu1 %v15425_v4  ;;  %v20236_v4 = vld [vmem:[#allocation105_spill] sm:$0xff] }
 0x631   :  { %9739 = vmatprep.subr.bf16.mxu1 %v15432_v23  ;;  %v20237_v23 = vld [vmem:[#allocation104_spill] sm:$0xff] }
 0x632   :  { %8694 = vmatmul.mubr.bf16.gmra.mrb[0].mxu1 %v20231_v53  ;;  %9466 = vmatmul.mubr.bf16.gmra.mrb[0].mxu0 %v20231_v53  ;;  %v15444_v53 = vld [vmem:[#allocation12 + $0x5c8] ss:$28 sps:$4 sm:$0xff]  }
 0x633   :  { %8703 = vmatprep.mubr.bf16.mxu1 %v20232_v5  ;;  %9475 = vmatprep.mubr.bf16.mxu0 %v20232_v5  ;;  %v20245_v5 = vld [vmem:[#allocation28_spill] sm:$0xff] }
 0x63a   :  { %8704 = vmatmul.mubr.bf16.gmra.mrb[4].mxu1 %v20233_v45  ;;  %9476 = vmatmul.mubr.bf16.gmra.mrb[4].mxu0 %v20233_v45  ;;  %v20239_v45 = vld [vmem:[#allocation107_spill] sm:$0xff] }
 0x63b   :  { %8713 = vmatprep.mubr.bf16.mxu1 %v20234_v22  ;;  %9485 = vmatprep.mubr.bf16.mxu0 %v20234_v22  ;;  %v20240_v22 = vld [vmem:[#allocation113_spill] sm:$0xff] }
 0x642   :  { %8714 = vmatmul.mubr.bf16.gmra.mrb[8].mxu1 %v20235_v0  ;;  %9486 = vmatmul.mubr.bf16.gmra.mrb[8].mxu0 %v20235_v0  ;;  %v20241_v0 = vld [vmem:[#allocation111_spill] sm:$0xff] }
 0x643   :  { %8723 = vmatprep.mubr.bf16.mxu1 %v20236_v4  ;;  %9495 = vmatprep.mubr.bf16.mxu0 %v20236_v4  ;;  %v20242_v4 = vld [vmem:[#allocation117_spill] sm:$0xff] }
 0x64a   :  { %8724 = vmatmul.mubr.bf16.gmra.mrb[12].mxu1 %v20237_v23  ;;  %9496 = vmatmul.mubr.bf16.gmra.mrb[12].mxu0 %v20237_v23  ;;  %v20243_v23 = vld [vmem:[#allocation115_spill] sm:$0xff] }
 0x64b   :  { %8733 = vmatprep.mubr.bf16.mxu1 %v20238_v42  ;;  %9505 = vmatprep.mubr.bf16.mxu0 %v20238_v42  ;;  %v15435_v42 = vld [vmem:[#allocation12 + $0x3cc] ss:$28 sps:$4 sm:$0xff]  }
 0x652   :  { %8734 = vmatmul.mubr.bf16.gmra.mrb[16].mxu1 %v20239_v45  ;;  %9506 = vmatmul.mubr.bf16.gmra.mrb[16].mxu0 %v20239_v45  ;;  %v15430_v45 = vld [vmem:[#allocation12 + $0x390] ss:$28 sps:$4 sm:$0xff]  }
 0x653   :  { %8743 = vmatprep.mubr.bf16.mxu1 %v20240_v22  ;;  %9515 = vmatprep.mubr.bf16.mxu0 %v20240_v22  ;;  %v20244_v22 = vld [vmem:[#allocation30_spill] sm:$0xff] }
 0x65a   :  { %8744 = vmatmul.mubr.bf16.gmra.mrb[20].mxu1 %v20241_v0  ;;  %9516 = vmatmul.mubr.bf16.gmra.mrb[20].mxu0 %v20241_v0  ;;  %v15429_v0 = vld [vmem:[#allocation12 + $0x398] ss:$28 sps:$4 sm:$0xff]  }
 0x65b   :  { %8753 = vmatprep.mubr.bf16.mxu1 %v20242_v4  ;;  %9525 = vmatprep.mubr.bf16.mxu0 %v20242_v4  ;;  %v15436_v4 = vld [vmem:[#allocation12 + $0x590] ss:$28 sps:$4 sm:$0xff]  }
 0x662   :  { %8754 = vmatmul.mubr.bf16.gmra.mrb[24].mxu1 %v20243_v23  ;;  %9526 = vmatmul.mubr.bf16.gmra.mrb[24].mxu0 %v20243_v23  ;;  %v20246_v23 = vld [vmem:[#allocation34_spill] sm:$0xff] }
 0x663   :  { %8763 = vmatprep.mubr.bf16.mxu1 %v18408_v55  ;;  %9535 = vmatprep.mubr.bf16.mxu0 %v18408_v55  ;;  %v15437_v55 = vld [vmem:[#allocation12 + $0x3d0] ss:$28 sps:$4 sm:$0xff]  }
 0x66a   :  { %8764 = vmatmul.mubr.bf16.gmra.mrb[28].mxu1 %v18404_v36  ;;  %9536 = vmatmul.mubr.bf16.gmra.mrb[28].mxu0 %v18404_v36  ;;  %v15433_v36 = vld [vmem:[#allocation12 + $0x3c8] ss:$28 sps:$4 sm:$0xff]  }
 0x66b   :  { %9578 = vmatprep.mubr.bf16.mxu1 %v20244_v22  ;;  %10350 = vmatprep.mubr.bf16.mxu0 %v20244_v22  ;;  %v15440_v22 = vld [vmem:[#allocation12 + $0x404] ss:$28 sps:$4 sm:$0xff]  }
 0x672   :  { %9579 = vmatmul.mubr.bf16.vlgmr.msra.gmra.mrb[32].mxu1 %v20245_v5  ;;  %10351 = vmatmul.mubr.bf16.vlgmr.msra.gmra.mrb[32].mxu0 %v20245_v5  ;;  %v15452_v5 = vld [vmem:[#allocation12 + $0x600] ss:$28 sps:$4 sm:$0xff]  }
 0x673   :  { %13196 = vmatpush3.bf16.msra.mxu0 %v15429_v0  ;;  %9588 = vmatprep.mubr.bf16.mxu1 %v20246_v23  ;;  %v20247_v0 = vld [vmem:[#allocation32_spill] sm:$0xff] }
 0x674   :  { %10358 = vmatprep.mubr.bf16.mxu0 %v20246_v23  ;;  %9740 = vmatpush1.bf16.msra.mxu1 %v15430_v45  ;;  %v15441_v45 = vld [vmem:[#allocation12 + $0x438] ss:$28 sps:$4 sm:$0xff]  }
 0x675   :  { %9741 = vmatprep.subr.bf16.mxu1 %v15435_v42  ;;  %13197 = vmatprep.subr.bf16.mxu0 %v15436_v4  ;;  %v15453_v4 = vld [vmem:[#allocation12 + $0x440] ss:$28 sps:$4 sm:$0xff]   ;;  %v15461_v23 = vld [vmem:[#allocation12 + $0x478] ss:$28 sps:$4 sm:$0xff]   ;;  %v15451_v42 = vld [vmem:[#allocation12 + $0x4ac] ss:$28 sps:$4 sm:$0xff]  }
 0x677   :  { %13198 = vmatpush3.bf16.msra.mxu0 %v15437_v55  ;;  %v15460_v55 = vld [vmem:[#allocation12 + $0x638] ss:$28 sps:$4 sm:$0xff]  }
 0x678   :  { %9742 = vmatpush1.bf16.msra.mxu1 %v15433_v36  ;;  %13199 = vmatprep.subr.bf16.mxu0 %v15444_v53  ;;  %v15448_v36 = vld [vmem:[#allocation12 + $0x474] ss:$28 sps:$4 sm:$0xff]  }
 0x679   :  { %9743 = vmatprep.subr.bf16.mxu1 %v15440_v22  ;;  %v15446_v53 = vld [vmem:[#allocation12 + $0x470] ss:$28 sps:$4 sm:$0xff]  }
 0x67a   :  { %9589 = vmatmul.mubr.bf16.gmra.mrb[36].mxu1 %v20247_v0  ;;  %10359 = vmatmul.mubr.bf16.gmra.mrb[36].mxu0 %v20247_v0  ;;  %v15468_v22 = vld [vmem:[#allocation12 + $0x670] ss:$28 sps:$4 sm:$0xff]  }
 0x67b   :  { %9598 = vmatprep.mubr.bf16.mxu1 %v20248_v52  ;;  %10366 = vmatprep.mubr.bf16.mxu0 %v20248_v52  ;;  %v20249_v0 = vld [vmem:[#allocation36_spill] sm:$0xff]  ;;  %v20250_v52 = vld [vmem:[#allocation42_spill] sm:$0xff] }
 0x67c   :  { %9744 = vmatpush1.bf16.msra.mxu1 %v15438_v34  ;;  %13200 = vmatpush3.bf16.msra.mxu0 %v15445_v32  ;;  %v15469_v32 = vld [vmem:[#allocation12 + $0x4b0] ss:$28 sps:$4 sm:$0xff]   ;;  %v15456_v34 = vld [vmem:[#allocation12 + $0x4e4] ss:$28 sps:$4 sm:$0xff]  }
 0x67d   :  { %9745 = vmatprep.subr.bf16.mxu1 %v15443_v60  ;;  %13201 = vmatprep.subr.bf16.mxu0 %v15452_v5  ;;  %v15449_v60 = vld [vmem:[#allocation12 + $0x4a8] ss:$28 sps:$4 sm:$0xff]  }
 0x67e   :  { %v15476_v5 = vld [vmem:[#allocation12 + $0x6a8] ss:$28 sps:$4 sm:$0xff]  }
 0x680   :  { %9746 = vmatpush1.bf16.msra.mxu1 %v15441_v45  ;;  %13202 = vmatpush3.bf16.msra.mxu0 %v15453_v4  ;;  %v15454_v45 = vld [vmem:[#allocation12 + $0x4e0] ss:$28 sps:$4 sm:$0xff]   ;;  %v15477_v4 = vld [vmem:[#allocation12 + $0x4e8] ss:$28 sps:$4 sm:$0xff]  }
 0x681   :  { %9747 = vmatprep.subr.bf16.mxu1 %v15448_v36  ;;  %13203 = vmatprep.subr.bf16.mxu0 %v15460_v55  ;;  %v15459_v36 = vld [vmem:[#allocation12 + $0x51c] ss:$28 sps:$4 sm:$0xff]  }
 0x682   :  { %9599 = vmatmul.mubr.bf16.gmra.mrb[40].mxu1 %v20249_v0  ;;  %10367 = vmatmul.mubr.bf16.gmra.mrb[40].mxu0 %v20249_v0  ;;  %v15484_v55 = vld [vmem:[#allocation12 + $0x6e0] ss:$28 sps:$4 sm:$0xff]   ;;  %v20251_v0 = vld [vmem:[#allocation40_spill] sm:$0xff] }
 0x683   :  { %9608 = vmatprep.mubr.bf16.mxu1 %v20250_v52  ;;  %10374 = vmatprep.mubr.bf16.mxu0 %v20250_v52  ;;  %v15492_v52 = vld [vmem:[#allocation12 + $0x8d8] ss:$28 sps:$4 sm:$0xff]  }
 0x684   :  { %9748 = vmatpush1.bf16.msra.mxu1 %v15446_v53  ;;  %13204 = vmatpush3.bf16.msra.mxu0 %v15461_v23  ;;  %v20252_v53 = vld [vmem:[#allocation46_spill] sm:$0xff] }
 0x685   :  { %9749 = vmatprep.subr.bf16.mxu1 %v15451_v42  ;;  %13205 = vmatprep.subr.bf16.mxu0 %v15468_v22  ;;  %v15457_v23 = vld [vmem:[#allocation12 + $0x518] ss:$28 sps:$4 sm:$0xff]   ;;  %v15485_v42 = vld [vmem:[#allocation12 + $0x520] ss:$28 sps:$4 sm:$0xff]  }
 0x686   :  { %v15464_v22 = vld [vmem:[#allocation12 + $0x554] ss:$28 sps:$4 sm:$0xff]  }
 0x688   :  { %9750 = vmatpush1.bf16.msra.mxu1 %v15449_v60  ;;  %13206 = vmatpush3.bf16.msra.mxu0 %v15469_v32  ;;  %v15462_v60 = vld [vmem:[#allocation12 + $0x550] ss:$28 sps:$4 sm:$0xff]  }
 0x689   :  { %9751 = vmatprep.subr.bf16.mxu1 %v15456_v34  ;;  %13207 = vmatprep.subr.bf16.mxu0 %v15476_v5  ;;  %v15467_v32 = vld [vmem:[#allocation12 + $0x58c] ss:$28 sps:$4 sm:$0xff]   ;;  %v20254_v5 = vld [vmem:[#allocation50_spill] sm:$0xff] }
 0x68a   :  { %9609 = vmatmul.mubr.bf16.gmra.mrb[44].mxu1 %v20251_v0  ;;  %10375 = vmatmul.mubr.bf16.gmra.mrb[44].mxu0 %v20251_v0  ;;  %v20253_v34 = vld [vmem:[#allocation44_spill] sm:$0xff] }
 0x68b   :  { %9618 = vmatprep.mubr.bf16.mxu1 %v20252_v53  ;;  %10382 = vmatprep.mubr.bf16.mxu0 %v20252_v53  ;;  %v20255_v0 = vld [vmem:[#allocation48_spill] sm:$0xff]  ;;  %v20256_v53 = vld [vmem:[#allocation25_spill] sm:$0xff] }
 0x68c   :  { %9752 = vmatpush1.bf16.msra.mxu1 %v15454_v45  ;;  %13208 = vmatpush3.bf16.msra.mxu0 %v15477_v4  ;;  %v15465_v45 = vld [vmem:[#allocation12 + $0x588] ss:$28 sps:$4 sm:$0xff]  }
 0x68d   :  { %9753 = vmatprep.subr.bf16.mxu1 %v15459_v36  ;;  %13209 = vmatprep.subr.bf16.mxu0 %v15484_v55  ;;  %v15472_v4 = vld [vmem:[#allocation12 + $0x5c4] ss:$28 sps:$4 sm:$0xff]   ;;  %v15475_v55 = vld [vmem:[#allocation12 + $0x5fc] ss:$28 sps:$4 sm:$0xff]  }
 0x68e   :  { %v15470_v36 = vld [vmem:[#allocation12 + $0x5c0] ss:$28 sps:$4 sm:$0xff]  }
 0x690   :  { %9754 = vmatpush1.bf16.msra.mxu1 %v15457_v23  ;;  %13210 = vmatpush3.bf16.msra.mxu0 %v15485_v42  ;;  %v15473_v23 = vld [vmem:[#allocation12 + $0x5f8] ss:$28 sps:$4 sm:$0xff]  }
 0x691   :  { %9755 = vmatprep.subr.bf16.mxu1 %v15464_v22  ;;  %13307 = vmatprep.subr.bf16.mxu0 %v15492_v52  ;;  %v15480_v42 = vld [vmem:[#allocation12 + $0x634] ss:$28 sps:$4 sm:$0xff]   ;;  %v15483_v52 = vld [vmem:[#allocation12 + $0x66c] ss:$28 sps:$4 sm:$0xff]  }
 0x692   :  { %9619 = vmatmul.mubr.bf16.gmra.mrb[48].mxu1 %v20253_v34  ;;  %10383 = vmatmul.mubr.bf16.gmra.mrb[48].mxu0 %v20253_v34  ;;  %v15478_v22 = vld [vmem:[#allocation12 + $0x630] ss:$28 sps:$4 sm:$0xff]   ;;  %v15481_v34 = vld [vmem:[#allocation12 + $0x668] ss:$28 sps:$4 sm:$0xff]  }
 0x693   :  { %9628 = vmatprep.mubr.bf16.mxu1 %v20254_v5  ;;  %10390 = vmatprep.mubr.bf16.mxu0 %v20254_v5  ;;  %v15488_v5 = vld [vmem:[#allocation12 + $0x6a4] ss:$28 sps:$4 sm:$0xff]  }
 0x694   :  { %9756 = vmatpush1.bf16.msra.mxu1 %v15462_v60  ;;  %v20257_v60 = vld [vmem:[#allocation52_spill] sm:$0xff] }
 0x695   :  { %9757 = vmatprep.subr.bf16.mxu1 %v15467_v32  ;;  %v20258_v32 = vld [vmem:[#allocation55_spill] sm:$0xff] }
 0x698   :  { %9758 = vmatpush1.bf16.msra.mxu1 %v15465_v45  ;;  %v15486_v45 = vld [vmem:[#allocation12 + $0x6a0] ss:$28 sps:$4 sm:$0xff]  }
 0x699   :  { %9759 = vmatprep.subr.bf16.mxu1 %v15472_v4  ;;  %v15491_v4 = vld [vmem:[#allocation12 + $0x6dc] ss:$28 sps:$4 sm:$0xff]  }
 0x69a   :  { %9629 = vmatmul.mubr.bf16.gmra.mrb[52].mxu1 %v20255_v0  ;;  %10391 = vmatmul.mubr.bf16.gmra.mrb[52].mxu0 %v20255_v0  ;;  %v15489_v0 = vld [vmem:[#allocation12 + $0x6d8] ss:$28 sps:$4 sm:$0xff]  }
 0x69b   :  { %9638 = vmatprep.mubr.bf16.mxu1 %v20256_v53  ;;  %10398 = vmatprep.mubr.bf16.mxu0 %v20256_v53  ;;  %v15496_v53 = vld [vmem:[#allocation12 + $0x714] ss:$28 sps:$4 sm:$0xff]  }
 0x69c   :  { %9760 = vmatpush1.bf16.msra.mxu1 %v15470_v36  ;;  %v20259_v36 = vld [vmem:[#allocation53_spill] sm:$0xff] }
 0x69d   :  { %9761 = vmatprep.subr.bf16.mxu1 %v15475_v55  ;;  %v20260_v55 = vld [vmem:[#allocation59_spill] sm:$0xff] }
 0x6a0   :  { %9762 = vmatpush1.bf16.msra.mxu1 %v15473_v23  ;;  %v20261_v23 = vld [vmem:[#allocation57_spill] sm:$0xff] }
 0x6a1   :  { %9763 = vmatprep.subr.bf16.mxu1 %v15480_v42  ;;  %v20262_v42 = vld [vmem:[#allocation63_spill] sm:$0xff] }
 0x6a2   :  { %9639 = vmatmul.mubr.bf16.gmra.mrb[56].mxu1 %v20257_v60  ;;  %10399 = vmatmul.mubr.bf16.gmra.mrb[56].mxu0 %v20257_v60  ;;  %v5661_v60 = vld [vmem:[#allocation13] sm:$0xff] }
 0x6a3   :  { %9648 = vmatprep.mubr.bf16.mxu1 %v20258_v32  ;;  %10406 = vmatprep.mubr.bf16.mxu0 %v20258_v32  ;;  %v20265_v32 = vld [vmem:[#allocation65_spill] sm:$0xff] }
 0x6a4   :  { %9764 = vmatpush1.bf16.msra.mxu1 %v15478_v22  ;;  %v20263_v22 = vld [vmem:[#allocation61_spill] sm:$0xff] }
 0x6a5   :  { %9765 = vmatprep.subr.bf16.mxu1 %v15483_v52  ;;  %v20264_v52 = vld [vmem:[#allocation67_spill] sm:$0xff] }
 0x6a8   :  { %9766 = vmatpush1.bf16.msra.mxu1 %v15481_v34  ;;  %v20266_v34 = vld [vmem:[#allocation21_spill] sm:$0xff] }
 0x6a9   :  { %9767 = vmatprep.subr.bf16.mxu1 %v15488_v5  ;;  %v18601_v5 = vrot.slane %v5661_v60, %v20266_v34 }
 0x6aa   :  { %9649 = vmatmul.mubr.bf16.gmra.mrb[60].mxu1 %v20259_v36  ;;  %10407 = vmatmul.mubr.bf16.gmra.mrb[60].mxu0 %v20259_v36  ;;  %v20268_v36 = vld [vmem:[#allocation71_spill] sm:$0xff] }
 0x6ab   :  { %9658 = vmatprep.mubr.bf16.mxu1 %v20260_v55  ;;  %10414 = vmatprep.mubr.bf16.mxu0 %v20260_v55  ;;  %v20269_v55 = vld [vmem:[#allocation22_spill] sm:$0xff] }
 0x6ac   :  { %9768 = vmatpush1.bf16.msra.mxu1 %v15486_v45  ;;  %v20267_v45 = vld [vmem:[#allocation23_spill] sm:$0xff] }
 0x6ad   :  { %9769 = vmatprep.subr.bf16.mxu1 %v15491_v4  ;;  %v18604_v4 = vrot.slane %v5661_v60, %v20267_v45 }
 0x6b0   :  { %9770 = vmatpush1.bf16.msra.mxu1 %v15489_v0  ;;  %v18609_v0 = vrot.slane %v5661_v60, %v20269_v55 }
 0x6b1   :  { %9932 = vmatprep.subr.bf16.mxu1 %v15496_v53  ;;  %v20270_v53 = vld [vmem:[#allocation24_spill] sm:$0xff] }
 0x6b2   :  { %9659 = vmatmul.mubr.bf16.gmra.mrb[64].mxu1 %v20261_v23  ;;  %10415 = vmatmul.mubr.bf16.gmra.mrb[64].mxu0 %v20261_v23  ;;  %v18612_v23 = vrot.slane %v5661_v60, %v20270_v53 }
 0x6b3   :  { %9668 = vmatprep.mubr.bf16.mxu1 %v20262_v42  ;;  %10422 = vmatprep.mubr.bf16.mxu0 %v20262_v42 }
 0x6ba   :  { %9669 = vmatmul.mubr.bf16.gmra.mrb[68].mxu1 %v20263_v22  ;;  %10423 = vmatmul.mubr.bf16.gmra.mrb[68].mxu0 %v20263_v22 }
 0x6bb   :  { %9678 = vmatprep.mubr.bf16.mxu1 %v20264_v52  ;;  %10430 = vmatprep.mubr.bf16.mxu0 %v20264_v52 }
 0x6c2   :  { %9679 = vmatmul.mubr.bf16.gmra.mrb[72].mxu1 %v20265_v32  ;;  %10431 = vmatmul.mubr.bf16.gmra.mrb[72].mxu0 %v20265_v32 }
 0x6c3   :  { %9688 = vmatprep.mubr.bf16.mxu1 %v20268_v36  ;;  %10438 = vmatprep.mubr.bf16.mxu0 %v20268_v36 }
 0x6c5   :  { %v8615_v42 = vpop.f32.mrb[224].mxu1  ;;  %v9387_v22 = vpop.f32.mrb[224].mxu0 }
 0x6c6   :  { %v13803_v52 = vadd.f32 %v8615_v42, %v18601_v5  ;;  %v13867_v32 = vadd.f32 %v9387_v22, %v18604_v4  ;;  %v8617_v34 = vpop.f32.mrb[225].mxu1  ;;  %v9389_v12 = vpop.f32.mrb[225].mxu0  ;;  %v20271_v22 = vld [vmem:[#allocation69_spill] sm:$0xff] }
 0x6c7   :  { %v13804_v45 = vadd.f32 %v8617_v34, %v18609_v0  ;;  %v13868_v38 = vadd.f32 %v9389_v12, %v18612_v23  ;;  %v8619_v20 = vpop.f32.mrb[226].mxu1  ;;  %v9391_v36 = vpop.f32.mrb[226].mxu0  ;;  %v20272_v34 = vld [vmem:[#allocation74_spill] sm:$0xff] }
 0x6c8   :  { %15620 = vtanh.f32 %v13803_v52  ;;  %v13805_v55 = vadd.f32 %v8619_v20, %v18601_v5  ;;  %v8621_v7 = vpop.f32.mrb[227].mxu1  ;;  %v9393_v60 = vpop.f32.mrb[227].mxu0  ;;  %v13869_v53 = vadd.f32 %v9391_v36, %v18604_v4 }
 0x6c9   :  { %15622 = vtanh.f32 %v13867_v32  ;;  %v13806_v42 = vadd.f32 %v8621_v7, %v18609_v0  ;;  %v13870_v12 = vadd.f32 %v9393_v60, %v18612_v23 }
 0x6ca   :  { %15624 = vtanh.f32 %v13804_v45  ;;  %9689 = vmatmul.mubr.bf16.gmra.mrb[76].mxu1 %v20271_v22  ;;  %10439 = vmatmul.mubr.bf16.gmra.mrb[76].mxu0 %v20271_v22 }
 0x6cb   :  { %15626 = vtanh.f32 %v13868_v38  ;;  %9698 = vmatprep.mubr.bf16.mxu1 %v20272_v34  ;;  %10446 = vmatprep.mubr.bf16.mxu0 %v20272_v34 }
 0x6cc   :  { %15628 = vtanh.f32 %v13805_v55 }
 0x6cd   :  { %15630 = vtanh.f32 %v13869_v53  ;;  %v8625_v20 = vpop.f32.mrb[228].mxu1  ;;  %v9397_v52 = vpop.f32.mrb[228].mxu0 }
 0x6ce   :  { %15632 = vtanh.f32 %v13806_v42  ;;  %v13807_v32 = vadd.f32 %v8625_v20, %v18601_v5  ;;  %v13871_v7 = vadd.f32 %v9397_v52, %v18604_v4  ;;  %v8627_v45 = vpop.f32.mrb[229].mxu1  ;;  %v9399_v36 = vpop.f32.mrb[229].mxu0 }
 0x6cf   :  { %15634 = vtanh.f32 %v13870_v12  ;;  %v13808_v38 = vadd.f32 %v8627_v45, %v18609_v0  ;;  %v13872_v60 = vadd.f32 %v9399_v36, %v18612_v23  ;;  %v8629_v22 = vpop.f32.mrb[230].mxu1  ;;  %v9401_v37 = vpop.f32.mrb[230].mxu0 }
 0x6d0   :  { %15636 = vtanh.f32 %v13807_v32  ;;  %v13809_v55 = vadd.f32 %v8629_v22, %v18601_v5  ;;  %v8631_v53 = vpop.f32.mrb[231].mxu1  ;;  %v9403_v34 = vpop.f32.mrb[231].mxu0  ;;  %v13873_v42 = vadd.f32 %v9401_v37, %v18604_v4  ;;  %v20274_v32 = vld [vmem:[#allocation76_spill] sm:$0xff] }
 0x6d1   :  { %15638 = vtanh.f32 %v13871_v7  ;;  %v13810_v52 = vadd.f32 %v8631_v53, %v18609_v0  ;;  %v13874_v45 = vadd.f32 %v9403_v34, %v18612_v23 }
 0x6d2   :  { %v15621_v20 = vpop.eup %15620  ;;  %15640 = vtanh.f32 %v13808_v38  ;;  %9699 = vmatmul.mubr.bf16.gmra.mrb[80].mxu1 %v20273_v11  ;;  %10447 = vmatmul.mubr.bf16.gmra.mrb[80].mxu0 %v20273_v11 }
 0x6d3   :  { %v15623_v12 = vpop.eup %15622  ;;  %15642 = vtanh.f32 %v13872_v60  ;;  %9708 = vmatprep.mubr.bf16.mxu1 %v20274_v32  ;;  %10454 = vmatprep.mubr.bf16.mxu0 %v20274_v32 }
 0x6d4   :  { %v15625_v36 = vpop.eup %15624  ;;  %15644 = vtanh.f32 %v13809_v55 }
 0x6d5   :  { %v15627_v7 = vpop.eup %15626  ;;  %v12955_v37 = vpack.c.bf16 %v15625_v36, %v15621_v20  ;;  %15646 = vtanh.f32 %v13873_v42  ;;  %v8635_v38 = vpop.f32.mrb[232].mxu1 }
 0x6d6   :  { %v9407_v22 = vpop.f32.mrb[232].mxu0  ;;  %v15629_v53 = vpop.eup %15628  ;;  %v12956_v26 = vpack.c.bf16 %v15627_v7, %v15623_v12  ;;  %15648 = vtanh.f32 %v13810_v52  ;;  %v13811_v11 = vadd.f32 %v8635_v38, %v18601_v5 }
 0x6d7   :  { %v13875_v60 = vadd.f32 %v9407_v22, %v18604_v4  ;;  %v8637_v57 = vpop.f32.mrb[233].mxu1  ;;  %v9409_v34 = vpop.f32.mrb[233].mxu0  ;;  %11890 = vst [vmem:[%s19746_s9] sm:$0xff] %v12955_v37  ;;  %15650 = vtanh.f32 %v13874_v45 }
 0x6d8   :  { %v15631_v63 = vpop.eup %15630  ;;  %v13812_v55 = vadd.f32 %v8637_v57, %v18609_v0  ;;  %v13876_v42 = vadd.f32 %v9409_v34, %v18612_v23  ;;  %v8639_v20 = vpop.f32.mrb[234].mxu1  ;;  %11891 = vst [vmem:[%s19746_s9 + $0x8] sm:$0xff] %v12956_v26  ;;  %15652 = vtanh.f32 %v13811_v11  ;;  %v20276_v11 = vld [vmem:[#allocation79_spill] sm:$0xff] }
 0x6d9   :  { %v9411_v32 = vpop.f32.mrb[234].mxu0  ;;  %v15633_v12 = vpop.eup %15632  ;;  %v13813_v52 = vadd.f32 %v8639_v20, %v18601_v5  ;;  %15654 = vtanh.f32 %v13875_v60 }
 0x6da   :  { %v8641_v36 = vpop.f32.mrb[235].mxu1  ;;  %v9413_v7 = vpop.f32.mrb[235].mxu0  ;;  %v12959_v22 = vpack.c.bf16 %v15633_v12, %v15629_v53  ;;  %v13877_v45 = vadd.f32 %v9411_v32, %v18604_v4  ;;  %15656 = vtanh.f32 %v13812_v55  ;;  %9709 = vmatmul.mubr.bf16.gmra.mrb[84].mxu1 %v20275_v43  ;;  %10455 = vmatmul.mubr.bf16.gmra.mrb[84].mxu0 %v20275_v43 }
 0x6db   :  { %v15635_v38 = vpop.eup %15634  ;;  %v13814_v34 = vadd.f32 %v8641_v36, %v18609_v0  ;;  %15658 = vtanh.f32 %v13876_v42  ;;  %v13878_v53 = vadd.f32 %v9413_v7, %v18612_v23  ;;  %9718 = vmatprep.mubr.bf16.mxu1 %v20276_v11  ;;  %10462 = vmatprep.mubr.bf16.mxu0 %v20276_v11 }
 0x6dc   :  { %v15637_v57 = vpop.eup %15636  ;;  %v12960_v37 = vpack.c.bf16 %v15635_v38, %v15631_v63  ;;  %11894 = vst [vmem:[%s19746_s9 + $0x1c] sm:$0xff] %v12959_v22  ;;  %15660 = vtanh.f32 %v13813_v52 }
 0x6dd   :  { %v15639_v26 = vpop.eup %15638  ;;  %15662 = vtanh.f32 %v13877_v45  ;;  %v8645_v55 = vpop.f32.mrb[236].mxu1 }
 0x6de   :  { %v15641_v63 = vpop.eup %15640  ;;  %11895 = vst [vmem:[%s19746_s9 + $0x24] sm:$0xff] %v12960_v37  ;;  %v9417_v20 = vpop.f32.mrb[236].mxu0  ;;  %15664 = vtanh.f32 %v13814_v34  ;;  %v13815_v42 = vadd.f32 %v8645_v55, %v18601_v5 }
 0x6df   :  { %v15643_v60 = vpop.eup %15642  ;;  %v12963_v43 = vpack.c.bf16 %v15641_v63, %v15637_v57  ;;  %v13879_v36 = vadd.f32 %v9417_v20, %v18604_v4  ;;  %v8647_v7 = vpop.f32.mrb[237].mxu1  ;;  %15666 = vtanh.f32 %v13878_v53 }
 0x6e0   :  { %v15645_v32 = vpop.eup %15644  ;;  %v12964_v12 = vpack.c.bf16 %v15643_v60, %v15639_v26  ;;  %v9419_v38 = vpop.f32.mrb[237].mxu0  ;;  %v13816_v52 = vadd.f32 %v8647_v7, %v18609_v0  ;;  %15668 = vtanh.f32 %v13815_v42  ;;  %v20278_v42 = vld [vmem:[#allocation81_spill] sm:$0xff] }
 0x6e1   :  { %v15647_v22 = vpop.eup %15646  ;;  %11898 = vst [vmem:[%s19746_s9 + $0x38] sm:$0xff] %v12963_v43  ;;  %v13880_v45 = vadd.f32 %v9419_v38, %v18612_v23  ;;  %v8649_v57 = vpop.f32.mrb[238].mxu1  ;;  %15670 = vtanh.f32 %v13879_v36  ;;  %v20277_v38 = vld [vmem:[#allocation77_spill] sm:$0xff] }
 0x6e2   :  { %v9421_v37 = vpop.f32.mrb[238].mxu0  ;;  %v15649_v26 = vpop.eup %15648  ;;  %11899 = vst [vmem:[%s19746_s9 + $0x40] sm:$0xff] %v12964_v12  ;;  %v13817_v34 = vadd.f32 %v8649_v57, %v18601_v5  ;;  %15672 = vtanh.f32 %v13816_v52  ;;  %9719 = vmatmul.mubr.bf16.gmra.mrb[88].mxu1 %v20277_v38  ;;  %10463 = vmatmul.mubr.bf16.gmra.mrb[88].mxu0 %v20277_v38 }
 0x6e3   :  { %v8651_v11 = vpop.f32.mrb[239].mxu1  ;;  %v9423_v63 = vpop.f32.mrb[239].mxu0  ;;  %v12967_v55 = vpack.c.bf16 %v15649_v26, %v15645_v32  ;;  %v13881_v53 = vadd.f32 %v9421_v37, %v18604_v4  ;;  %15674 = vtanh.f32 %v13880_v45  ;;  %9728 = vmatprep.mubr.bf16.mxu1 %v20278_v42  ;;  %10470 = vmatprep.mubr.bf16.mxu0 %v20278_v42 }
 0x6e4   :  { %v15651_v60 = vpop.eup %15650  ;;  %v13818_v7 = vadd.f32 %v8651_v11, %v18609_v0  ;;  %v13882_v32 = vadd.f32 %v9423_v63, %v18612_v23  ;;  %15676 = vtanh.f32 %v13817_v34 }
 0x6e5   :  { %v15653_v43 = vpop.eup %15652  ;;  %v12968_v20 = vpack.c.bf16 %v15651_v60, %v15647_v22  ;;  %11902 = vst [vmem:[%s19746_s9 + $0x54] sm:$0xff] %v12967_v55  ;;  %15678 = vtanh.f32 %v13881_v53  ;;  %v8655_v57 = vpop.f32.mrb[240].mxu1 }
 0x6e6   :  { %v15655_v12 = vpop.eup %15654  ;;  %v9427_v37 = vpop.f32.mrb[240].mxu0  ;;  %15680 = vtanh.f32 %v13818_v7  ;;  %v13819_v45 = vadd.f32 %v8655_v57, %v18601_v5 }
 0x6e7   :  { %v15657_v36 = vpop.eup %15656  ;;  %11903 = vst [vmem:[%s19746_s9 + $0x5c] sm:$0xff] %v12968_v20  ;;  %v13883_v63 = vadd.f32 %v9427_v37, %v18604_v4  ;;  %v8657_v60 = vpop.f32.mrb[241].mxu1  ;;  %15682 = vtanh.f32 %v13882_v32 }
 0x6e8   :  { %v15659_v22 = vpop.eup %15658  ;;  %v12971_v52 = vpack.c.bf16 %v15657_v36, %v15653_v43  ;;  %v9429_v55 = vpop.f32.mrb[241].mxu0  ;;  %v13820_v34 = vadd.f32 %v8657_v60, %v18609_v0  ;;  %15684 = vtanh.f32 %v13819_v45  ;;  %v20280_v45 = vld [vmem:[#allocation29_spill] sm:$0xff] }
 0x6e9   :  { %v15661_v26 = vpop.eup %15660  ;;  %v12972_v11 = vpack.c.bf16 %v15659_v22, %v15655_v12  ;;  %v13884_v53 = vadd.f32 %v9429_v55, %v18612_v23  ;;  %v8659_v43 = vpop.f32.mrb[242].mxu1  ;;  %15686 = vtanh.f32 %v13883_v63  ;;  %v20279_v55 = vld [vmem:[#allocation80_spill] sm:$0xff] }
 0x6ea   :  { %v15663_v38 = vpop.eup %15662  ;;  %11906 = vst [vmem:[%s19746_s9 + $0x70] sm:$0xff] %v12971_v52  ;;  %v9431_v20 = vpop.f32.mrb[242].mxu0  ;;  %v13821_v7 = vadd.f32 %v8659_v43, %v18601_v5  ;;  %15688 = vtanh.f32 %v13820_v34  ;;  %9729 = vmatmul.mubr.bf16.gmra.mrb[92].mxu1 %v20279_v55  ;;  %10471 = vmatmul.mubr.bf16.gmra.mrb[92].mxu0 %v20279_v55 }
 0x6eb   :  { %v15665_v12 = vpop.eup %15664  ;;  %11907 = vst [vmem:[%s19746_s9 + $0x78] sm:$0xff] %v12972_v11  ;;  %v8661_v42 = vpop.f32.mrb[243].mxu1  ;;  %v13885_v32 = vadd.f32 %v9431_v20, %v18604_v4  ;;  %15690 = vtanh.f32 %v13884_v53  ;;  %9771 = vmatprep.mubr.bf16.mxu1 %v20280_v45  ;;  %10511 = vmatprep.mubr.bf16.mxu0 %v20280_v45 }
 0x6ec   :  { %v9433_v36 = vpop.f32.mrb[243].mxu0  ;;  %v15667_v22 = vpop.eup %15666  ;;  %v12975_v57 = vpack.c.bf16 %v15665_v12, %v15661_v26  ;;  %v13822_v60 = vadd.f32 %v8661_v42, %v18609_v0  ;;  %15692 = vtanh.f32 %v13821_v7 }
 0x6ed   :  { %v15669_v52 = vpop.eup %15668  ;;  %v12976_v37 = vpack.c.bf16 %v15667_v22, %v15663_v38  ;;  %v13886_v26 = vadd.f32 %v9433_v36, %v18612_v23  ;;  %15694 = vtanh.f32 %v13885_v32  ;;  %v8665_v43 = vpop.f32.mrb[244].mxu1 }
 0x6ee   :  { %v15671_v11 = vpop.eup %15670  ;;  %11910 = vst [vmem:[%s19746_s9 + $0x8c] sm:$0xff] %v12975_v57  ;;  %v9437_v20 = vpop.f32.mrb[244].mxu0  ;;  %15696 = vtanh.f32 %v13822_v60  ;;  %v13823_v53 = vadd.f32 %v8665_v43, %v18601_v5  ;;  %v15494_v43 = vld [vmem:[#allocation12 + $0x710] ss:$28 sps:$4 sm:$0xff]  }
 0x6ef   :  { %v15673_v63 = vpop.eup %15672  ;;  %11911 = vst [vmem:[%s19746_s9 + $0x94] sm:$0xff] %v12976_v37  ;;  %v13887_v36 = vadd.f32 %v9437_v20, %v18604_v4  ;;  %v8667_v22 = vpop.f32.mrb[245].mxu1  ;;  %15698 = vtanh.f32 %v13886_v26 }
 0x6f0   :  { %v15675_v38 = vpop.eup %15674  ;;  %v12979_v34 = vpack.c.bf16 %v15673_v63, %v15669_v52  ;;  %v9439_v57 = vpop.f32.mrb[245].mxu0  ;;  %v13824_v7 = vadd.f32 %v8667_v22, %v18609_v0  ;;  %15700 = vtanh.f32 %v13823_v53  ;;  %v15499_v22 = vld [vmem:[#allocation12 + $0x74c] ss:$28 sps:$4 sm:$0xff]   ;;  %v20282_v53 = vld [vmem:[#allocation33_spill] sm:$0xff] }
 0x6f1   :  { %v15677_v12 = vpop.eup %15676  ;;  %v12980_v42 = vpack.c.bf16 %v15675_v38, %v15671_v11  ;;  %v13888_v32 = vadd.f32 %v9439_v57, %v18612_v23  ;;  %v8669_v52 = vpop.f32.mrb[246].mxu1  ;;  %v15493_v11 = vld [vmem:[#allocation12 + $0x718] ss:$28 sps:$4 sm:$0xff]   ;;  %15702 = vtanh.f32 %v13887_v36  ;;  %v15500_v57 = vld [vmem:[#allocation12 + $0x910] ss:$28 sps:$4 sm:$0xff]  }
 0x6f2   :  { %v15679_v55 = vpop.eup %15678  ;;  %11914 = vst [vmem:[%s19746_s9 + $0xa8] sm:$0xff] %v12979_v34  ;;  %v9441_v37 = vpop.f32.mrb[246].mxu0  ;;  %v13825_v45 = vadd.f32 %v8669_v52, %v18601_v5  ;;  %15704 = vtanh.f32 %v13824_v7  ;;  %9772 = vmatmul.mubr.bf16.vlgmr.msra.gmra.mrb[32].mxu1 %v20281_v19  ;;  %10512 = vmatmul.mubr.bf16.vlgmr.msra.gmra.mrb[96].mxu0 %v20281_v19  ;;  %v15501_v36 = vld [vmem:[#allocation12 + $0x750] ss:$28 sps:$4 sm:$0xff]   ;;  %v15497_v19 = vld [vmem:[#allocation12 + $0x748] ss:$28 sps:$4 sm:$0xff]  }
 0x6f3   :  { %v15681_v60 = vpop.eup %15680  ;;  %11915 = vst [vmem:[%s19746_s9 + $0xb0] sm:$0xff] %v12980_v42  ;;  %v8671_v63 = vpop.f32.mrb[247].mxu1  ;;  %v13889_v20 = vadd.f32 %v9441_v37, %v18604_v4  ;;  %15706 = vtanh.f32 %v13888_v32  ;;  %13308 = vmatpush3.bf16.msra.mxu0 %v15493_v11  ;;  %9781 = vmatprep.mubr.bf16.mxu1 %v20282_v53  ;;  %v15508_v7 = vld [vmem:[#allocation12 + $0x948] ss:$28 sps:$4 sm:$0xff]  }
 0x6f4   :  { %v9443_v38 = vpop.f32.mrb[247].mxu0  ;;  %v15683_v34 = vpop.eup %15682  ;;  %v12983_v26 = vpack.c.bf16 %v15681_v60, %v15677_v12  ;;  %v13826_v58 = vadd.f32 %v8671_v63, %v18609_v0  ;;  %15708 = vtanh.f32 %v13825_v45  ;;  %10519 = vmatprep.mubr.bf16.mxu0 %v20282_v53  ;;  %9933 = vmatpush1.bf16.msra.mxu1 %v15494_v43  ;;  %v15504_v11 = vld [vmem:[#allocation12 + $0x784] ss:$28 sps:$4 sm:$0xff]  }
 0x6f5   :  { %v15685_v3 = vpop.eup %15684  ;;  %v12984_v56 = vpack.c.bf16 %v15683_v34, %v15679_v55  ;;  %v13890_v12 = vadd.f32 %v9443_v38, %v18612_v23  ;;  %15710 = vtanh.f32 %v13889_v20  ;;  %v8675_v32 = vpop.f32.mrb[248].mxu1  ;;  %9934 = vmatprep.subr.bf16.mxu1 %v15499_v22  ;;  %13309 = vmatprep.subr.bf16.mxu0 %v15500_v57 }
 0x6f6   :  { %v15687_v42 = vpop.eup %15686  ;;  %11918 = vst [vmem:[%s19746_s9 + $0xc4] sm:$0xff] %v12983_v26  ;;  %v9447_v60 = vpop.f32.mrb[248].mxu0  ;;  %15712 = vtanh.f32 %v13826_v58  ;;  %v13827_v34 = vadd.f32 %v8675_v32, %v18601_v5 }
 0x6f7   :  { %v15689_v55 = vpop.eup %15688  ;;  %11919 = vst [vmem:[%s19746_s9 + $0xcc] sm:$0xff] %v12984_v56  ;;  %v13891_v56 = vadd.f32 %v9447_v60, %v18604_v4  ;;  %v8677_v45 = vpop.f32.mrb[249].mxu1  ;;  %15714 = vtanh.f32 %v13890_v12  ;;  %13310 = vmatpush3.bf16.msra.mxu0 %v15501_v36  ;;  %v15509_v12 = vld [vmem:[#allocation12 + $0x788] ss:$28 sps:$4 sm:$0xff]   ;;  %v15507_v36 = vld [vmem:[#allocation12 + $0x7bc] ss:$28 sps:$4 sm:$0xff]  }
 0x6f8   :  { %v15691_v52 = vpop.eup %15690  ;;  %v12987_v37 = vpack.c.bf16 %v15689_v55, %v15685_v3  ;;  %v9449_v26 = vpop.f32.mrb[249].mxu0  ;;  %v13828_v3 = vadd.f32 %v8677_v45, %v18609_v0  ;;  %15716 = vtanh.f32 %v13827_v34  ;;  %9935 = vmatpush1.bf16.msra.mxu1 %v15497_v19  ;;  %13311 = vmatprep.subr.bf16.mxu0 %v15508_v7  ;;  %v15516_v45 = vld [vmem:[#allocation12 + $0x980] ss:$28 sps:$4 sm:$0xff]  }
 0x6f9   :  { %v15693_v63 = vpop.eup %15692  ;;  %v12988_v38 = vpack.c.bf16 %v15691_v52, %v15687_v42  ;;  %v13892_v20 = vadd.f32 %v9449_v26, %v18612_v23  ;;  %v8679_v22 = vpop.f32.mrb[250].mxu1  ;;  %v15502_v52 = vld [vmem:[#allocation12 + $0x780] ss:$28 sps:$4 sm:$0xff]   ;;  %15718 = vtanh.f32 %v13891_v56  ;;  %9936 = vmatprep.subr.bf16.mxu1 %v15504_v11  ;;  %v20284_v11 = vld [vmem:[#allocation37_spill] sm:$0xff] }
 0x6fa   :  { %v15695_v43 = vpop.eup %15694  ;;  %11922 = vst [vmem:[%s19746_s9 + $0xe0] sm:$0xff] %v12987_v37  ;;  %v9451_v57 = vpop.f32.mrb[250].mxu0  ;;  %v13829_v42 = vadd.f32 %v8679_v22, %v18601_v5  ;;  %15720 = vtanh.f32 %v13828_v3  ;;  %v20283_v34 = vld [vmem:[#allocation31_spill] sm:$0xff]  ;;  %v15505_v56 = vld [vmem:[#allocation12 + $0x7b8] ss:$28 sps:$4 sm:$0xff]  }
 0x6fb   :  { %v15697_v58 = vpop.eup %15696  ;;  %11923 = vst [vmem:[%s19746_s9 + $0xe8] sm:$0xff] %v12988_v38  ;;  %v8681_v53 = vpop.f32.mrb[251].mxu1  ;;  %v13893_v60 = vadd.f32 %v9451_v57, %v18604_v4  ;;  %9782 = vmatmul.mubr.bf16.gmra.mrb[36].mxu1 %v20283_v34  ;;  %10520 = vmatmul.mubr.bf16.gmra.mrb[100].mxu0 %v20283_v34  ;;  %15722 = vtanh.f32 %v13892_v20 }
 0x6fc   :  { %v9453_v55 = vpop.f32.mrb[251].mxu0  ;;  %v15699_v37 = vpop.eup %15698  ;;  %v12991_v32 = vpack.c.bf16 %v15697_v58, %v15693_v63  ;;  %v13830_v38 = vadd.f32 %v8681_v53, %v18609_v0  ;;  %9791 = vmatprep.mubr.bf16.mxu1 %v20284_v11  ;;  %10527 = vmatprep.mubr.bf16.mxu0 %v20284_v11  ;;  %15724 = vtanh.f32 %v13829_v42  ;;  %v15512_v58 = vld [vmem:[#allocation12 + $0x7f4] ss:$28 sps:$4 sm:$0xff]  }
 0x6fd   :  { %v15701_v26 = vpop.eup %15700  ;;  %v12992_v39 = vpack.c.bf16 %v15699_v37, %v15695_v43  ;;  %v13894_v7 = vadd.f32 %v9453_v55, %v18612_v23  ;;  %9937 = vmatpush1.bf16.msra.mxu1 %v15502_v52  ;;  %13312 = vmatpush3.bf16.msra.mxu0 %v15509_v12  ;;  %v15517_v43 = vld [vmem:[#allocation12 + $0x7c0] ss:$28 sps:$4 sm:$0xff]   ;;  %15726 = vtanh.f32 %v13893_v60  ;;  %v8685_v20 = vpop.f32.mrb[252].mxu1  ;;  %v15524_v53 = vld [vmem:[#allocation12 + $0x9b8] ss:$28 sps:$4 sm:$0xff]  }
 0x6fe   :  { %v15703_v19 = vpop.eup %15702  ;;  %11926 = vst [vmem:[%s19746_s9 + $0xfc] sm:$0xff] %v12991_v32  ;;  %v9457_v57 = vpop.f32.mrb[252].mxu0  ;;  %9938 = vmatprep.subr.bf16.mxu1 %v15507_v36  ;;  %13313 = vmatprep.subr.bf16.mxu0 %v15516_v45  ;;  %15728 = vtanh.f32 %v13830_v38  ;;  %v13831_v32 = vadd.f32 %v8685_v20, %v18601_v5 }
 0x6ff   :  { %v15705_v63 = vpop.eup %15704  ;;  %11927 = vst [vmem:[%s19746_s9 + $0x104] sm:$0xff] %v12992_v39  ;;  %v13895_v39 = vadd.f32 %v9457_v57, %v18604_v4  ;;  %v8687_v42 = vpop.f32.mrb[253].mxu1  ;;  %15730 = vtanh.f32 %v13894_v7  ;;  %v15525_v7 = vld [vmem:[#allocation12 + $0x7f8] ss:$28 sps:$4 sm:$0xff]   ;;  %v15515_v57 = vld [vmem:[#allocation12 + $0x82c] ss:$28 sps:$4 sm:$0xff]  }
 0x700   :  { %v15707_v3 = vpop.eup %15706  ;;  %v12995_v22 = vpack.c.bf16 %v15705_v63, %v15701_v26  ;;  %v9459_v52 = vpop.f32.mrb[253].mxu0  ;;  %v13832_v60 = vadd.f32 %v8687_v42, %v18609_v0  ;;  %15732 = vtanh.f32 %v13831_v32  ;;  %v15510_v63 = vld [vmem:[#allocation12 + $0x7f0] ss:$28 sps:$4 sm:$0xff]  }
 0x701   :  { %v15709_v55 = vpop.eup %15708  ;;  %v12996_v37 = vpack.c.bf16 %v15707_v3, %v15703_v19  ;;  %v13896_v36 = vadd.f32 %v9459_v52, %v18612_v23  ;;  %v8689_v45 = vpop.f32.mrb[254].mxu1  ;;  %9939 = vmatpush1.bf16.msra.mxu1 %v15505_v56  ;;  %13314 = vmatpush3.bf16.msra.mxu0 %v15517_v43  ;;  %15734 = vtanh.f32 %v13895_v39  ;;  %v15532_v42 = vld [vmem:[#allocation12 + $0x9f0] ss:$28 sps:$4 sm:$0xff]  }
 0x702   :  { %v15711_v12 = vpop.eup %15710  ;;  %11930 = vst [vmem:[%s19746_s9 + $0x118] sm:$0xff] %v12995_v22  ;;  %v9461_v26 = vpop.f32.mrb[254].mxu0  ;;  %v13833_v38 = vadd.f32 %v8689_v45, %v18601_v5  ;;  %9940 = vmatprep.subr.bf16.mxu1 %v15512_v58  ;;  %13315 = vmatprep.subr.bf16.mxu0 %v15524_v53  ;;  %15736 = vtanh.f32 %v13832_v60  ;;  %v20285_v45 = vld [vmem:[#allocation35_spill] sm:$0xff]  ;;  %v20286_v58 = vld [vmem:[#allocation41_spill] sm:$0xff] }
 0x703   :  { %v15713_v34 = vpop.eup %15712  ;;  %11931 = vst [vmem:[%s19746_s9 + $0x120] sm:$0xff] %v12996_v37  ;;  %v8691_v19 = vpop.f32.mrb[255].mxu1  ;;  %v13897_v20 = vadd.f32 %v9461_v26, %v18604_v4  ;;  %9792 = vmatmul.mubr.bf16.gmra.mrb[40].mxu1 %v20285_v45  ;;  %10528 = vmatmul.mubr.bf16.gmra.mrb[104].mxu0 %v20285_v45  ;;  %15738 = vtanh.f32 %v13896_v36  ;;  %v15533_v39 = vld [vmem:[#allocation12 + $0x830] ss:$28 sps:$4 sm:$0xff]  }
 0x704   :  { %v9463_v11 = vpop.f32.mrb[255].mxu0  ;;  %v15715_v3 = vpop.eup %15714  ;;  %v12999_v22 = vpack.c.bf16 %v15713_v34, %v15709_v55  ;;  %v13834_v32 = vadd.f32 %v8691_v19, %v18609_v0  ;;  %9801 = vmatprep.mubr.bf16.mxu1 %v20286_v58  ;;  %10535 = vmatprep.mubr.bf16.mxu0 %v20286_v58  ;;  %15740 = vtanh.f32 %v13833_v38  ;;  %v15513_v55 = vld [vmem:[#allocation12 + $0x828] ss:$28 sps:$4 sm:$0xff]  }
 0x705   :  { %v15717_v52 = vpop.eup %15716  ;;  %v13000_v37 = vpack.c.bf16 %v15715_v3, %v15711_v12  ;;  %v13898_v43 = vadd.f32 %v9463_v11, %v18612_v23  ;;  %9941 = vmatpush1.bf16.msra.mxu1 %v15510_v63  ;;  %13316 = vmatpush3.bf16.msra.mxu0 %v15525_v7  ;;  %15742 = vtanh.f32 %v13897_v20  ;;  %v8695_v36 = vpop.f32.mrb[0].mxu1  ;;  %v15520_v34 = vld [vmem:[#allocation12 + $0x864] ss:$28 sps:$4 sm:$0xff]  }
 0x706   :  { %v15719_v56 = vpop.eup %15718  ;;  %11934 = vst [vmem:[%s19746_s9 + $0x134] sm:$0xff] %v12999_v22  ;;  %v9467_v26 = vpop.f32.mrb[0].mxu0  ;;  %9942 = vmatprep.subr.bf16.mxu1 %v15515_v57  ;;  %13317 = vmatprep.subr.bf16.mxu0 %v15532_v42  ;;  %v15540_v19 = vld [vmem:[#allocation12 + $0xa28] ss:$28 sps:$4 sm:$0xff]   ;;  %15744 = vtanh.f32 %v13834_v32  ;;  %v13835_v22 = vadd.f32 %v8695_v36, %v18601_v5 }
 0x707   :  { %v15721_v53 = vpop.eup %15720  ;;  %11935 = vst [vmem:[%s19746_s9 + $0x13c] sm:$0xff] %v13000_v37  ;;  %v13899_v38 = vadd.f32 %v9467_v26, %v18604_v4  ;;  %v8697_v63 = vpop.f32.mrb[1].mxu1  ;;  %15746 = vtanh.f32 %v13898_v43  ;;  %v15541_v43 = vld [vmem:[#allocation12 + $0x868] ss:$28 sps:$4 sm:$0xff]   ;;  %v15523_v26 = vld [vmem:[#allocation12 + $0x89c] ss:$28 sps:$4 sm:$0xff]  }
 0x708   :  { %v15723_v12 = vpop.eup %15722  ;;  %v13003_v60 = vpack.c.bf16 %v15721_v53, %v15717_v52  ;;  %v9469_v37 = vpop.f32.mrb[1].mxu0  ;;  %v13836_v20 = vadd.f32 %v8697_v63, %v18609_v0  ;;  %15748 = vtanh.f32 %v13835_v22  ;;  %v15518_v53 = vld [vmem:[#allocation12 + $0x860] ss:$28 sps:$4 sm:$0xff]  }
 0x709   :  { %v15725_v11 = vpop.eup %15724  ;;  %v13004_v3 = vpack.c.bf16 %v15723_v12, %v15719_v56  ;;  %v13900_v57 = vadd.f32 %v9469_v37, %v18612_v23  ;;  %v8699_v42 = vpop.f32.mrb[2].mxu1  ;;  %9943 = vmatpush1.bf16.msra.mxu1 %v15513_v55  ;;  %13318 = vmatpush3.bf16.msra.mxu0 %v15533_v39  ;;  %15750 = vtanh.f32 %v13899_v38  ;;  %v15548_v63 = vld [vmem:[#allocation12 + $0xa60] ss:$28 sps:$4 sm:$0xff]  }
 0x70a   :  { %v15727_v7 = vpop.eup %15726  ;;  %11938 = vst [vmem:[%s19746_s9 + $0x150] sm:$0xff] %v13003_v60  ;;  %v9471_v52 = vpop.f32.mrb[2].mxu0  ;;  %v13837_v32 = vadd.f32 %v8699_v42, %v18601_v5  ;;  %9944 = vmatprep.subr.bf16.mxu1 %v15520_v34  ;;  %13319 = vmatprep.subr.bf16.mxu0 %v15540_v19  ;;  %15752 = vtanh.f32 %v13836_v20  ;;  %v20287_v42 = vld [vmem:[#allocation39_spill] sm:$0xff]  ;;  %v20288_v34 = vld [vmem:[#allocation45_spill] sm:$0xff] }
 0x70b   :  { %v15729_v45 = vpop.eup %15728  ;;  %11939 = vst [vmem:[%s19746_s9 + $0x158] sm:$0xff] %v13004_v3  ;;  %v8701_v56 = vpop.f32.mrb[3].mxu1  ;;  %v13901_v36 = vadd.f32 %v9471_v52, %v18604_v4  ;;  %9802 = vmatmul.mubr.bf16.gmra.mrb[44].mxu1 %v20287_v42  ;;  %10536 = vmatmul.mubr.bf16.gmra.mrb[108].mxu0 %v20287_v42  ;;  %15754 = vtanh.f32 %v13900_v57  ;;  %v15549_v38 = vld [vmem:[#allocation12 + $0x8a0] ss:$28 sps:$4 sm:$0xff]  }
 0x70c   :  { %v9473_v58 = vpop.f32.mrb[3].mxu0  ;;  %v15731_v12 = vpop.eup %15730  ;;  %v13007_v60 = vpack.c.bf16 %v15729_v45, %v15725_v11  ;;  %v13838_v22 = vadd.f32 %v8701_v56, %v18609_v0  ;;  %9811 = vmatprep.mubr.bf16.mxu1 %v20288_v34  ;;  %10543 = vmatprep.mubr.bf16.mxu0 %v20288_v34  ;;  %15756 = vtanh.f32 %v13837_v32  ;;  %v15521_v11 = vld [vmem:[#allocation12 + $0x898] ss:$28 sps:$4 sm:$0xff]  }
 0x70d   :  { %v15733_v37 = vpop.eup %15732  ;;  %v13008_v3 = vpack.c.bf16 %v15731_v12, %v15727_v7  ;;  %v13902_v39 = vadd.f32 %v9473_v58, %v18612_v23  ;;  %9945 = vmatpush1.bf16.msra.mxu1 %v15518_v53  ;;  %13320 = vmatpush3.bf16.msra.mxu0 %v15541_v43  ;;  %15758 = vtanh.f32 %v13901_v36  ;;  %v8705_v57 = vpop.f32.mrb[4].mxu1  ;;  %v15528_v45 = vld [vmem:[#allocation12 + $0x8d4] ss:$28 sps:$4 sm:$0xff]  }
 0x70e   :  { %v15735_v55 = vpop.eup %15734  ;;  %11942 = vst [vmem:[%s19746_s9 + $0x16c] sm:$0xff] %v13007_v60  ;;  %v9477_v52 = vpop.f32.mrb[4].mxu0  ;;  %9946 = vmatprep.subr.bf16.mxu1 %v15523_v26  ;;  %13321 = vmatprep.subr.bf16.mxu0 %v15548_v63  ;;  %v15556_v56 = vld [vmem:[#allocation12 + $0xc58] ss:$28 sps:$4 sm:$0xff]   ;;  %15760 = vtanh.f32 %v13838_v22  ;;  %v13839_v60 = vadd.f32 %v8705_v57, %v18601_v5  ;;  %v15531_v57 = vld [vmem:[#allocation12 + $0x90c] ss:$28 sps:$4 sm:$0xff]  }
 0x70f   :  { %v15737_v19 = vpop.eup %15736  ;;  %11943 = vst [vmem:[%s19746_s9 + $0x174] sm:$0xff] %v13008_v3  ;;  %v13903_v32 = vadd.f32 %v9477_v52, %v18604_v4  ;;  %v8707_v53 = vpop.f32.mrb[5].mxu1  ;;  %15762 = vtanh.f32 %v13902_v39 }
 0x710   :  { %v15739_v7 = vpop.eup %15738  ;;  %v13011_v20 = vpack.c.bf16 %v15737_v19, %v15733_v37  ;;  %v9479_v3 = vpop.f32.mrb[5].mxu0  ;;  %v13840_v36 = vadd.f32 %v8707_v53, %v18609_v0  ;;  %15764 = vtanh.f32 %v13839_v60  ;;  %v15526_v19 = vld [vmem:[#allocation12 + $0x8d0] ss:$28 sps:$4 sm:$0xff]   ;;  %v20289_v60 = vld [vmem:[#allocation43_spill] sm:$0xff] }
 0x711   :  { %v15741_v58 = vpop.eup %15740  ;;  %v13012_v12 = vpack.c.bf16 %v15739_v7, %v15735_v55  ;;  %v13904_v26 = vadd.f32 %v9479_v3, %v18612_v23  ;;  %v8709_v63 = vpop.f32.mrb[6].mxu1  ;;  %9947 = vmatpush1.bf16.msra.mxu1 %v15521_v11  ;;  %13322 = vmatpush3.bf16.msra.mxu0 %v15549_v38  ;;  %15766 = vtanh.f32 %v13903_v32 }
 0x712   :  { %v15743_v43 = vpop.eup %15742  ;;  %11946 = vst [vmem:[%s19746_s9 + $0x188] sm:$0xff] %v13011_v20  ;;  %v9481_v37 = vpop.f32.mrb[6].mxu0  ;;  %v13841_v22 = vadd.f32 %v8709_v63, %v18601_v5  ;;  %9948 = vmatprep.subr.bf16.mxu1 %v15528_v45  ;;  %13419 = vmatprep.subr.bf16.mxu0 %v15556_v56  ;;  %15768 = vtanh.f32 %v13840_v36  ;;  %v20290_v45 = vld [vmem:[#allocation49_spill] sm:$0xff] }
 0x713   :  { %v15745_v42 = vpop.eup %15744  ;;  %11947 = vst [vmem:[%s19746_s9 + $0x190] sm:$0xff] %v13012_v12  ;;  %v8711_v55 = vpop.f32.mrb[7].mxu1  ;;  %v13905_v20 = vadd.f32 %v9481_v37, %v18604_v4  ;;  %9812 = vmatmul.mubr.bf16.gmra.mrb[48].mxu1 %v20289_v60  ;;  %10544 = vmatmul.mubr.bf16.gmra.mrb[112].mxu0 %v20289_v60  ;;  %15770 = vtanh.f32 %v13904_v26  ;;  %v15536_v26 = vld [vmem:[#allocation12 + $0x944] ss:$28 sps:$4 sm:$0xff]  }
 0x714   :  { %v9483_v34 = vpop.f32.mrb[7].mxu0  ;;  %v15747_v39 = vpop.eup %15746  ;;  %v13015_v7 = vpack.c.bf16 %v15745_v42, %v15741_v58  ;;  %v13842_v12 = vadd.f32 %v8711_v55, %v18609_v0  ;;  %9821 = vmatprep.mubr.bf16.mxu1 %v20290_v45  ;;  %10551 = vmatprep.mubr.bf16.mxu0 %v20290_v45  ;;  %15772 = vtanh.f32 %v13841_v22  ;;  %v15529_v58 = vld [vmem:[#allocation12 + $0x908] ss:$28 sps:$4 sm:$0xff]  }
 0x715   :  { %v15749_v52 = vpop.eup %15748  ;;  %v13016_v53 = vpack.c.bf16 %v15747_v39, %v15743_v43  ;;  %v13906_v38 = vadd.f32 %v9483_v34, %v18612_v23  ;;  %9949 = vmatpush1.bf16.msra.mxu1 %v15526_v19  ;;  %15774 = vtanh.f32 %v13905_v20  ;;  %v8715_v43 = vpop.f32.mrb[8].mxu1 }
 0x716   :  { %v15751_v11 = vpop.eup %15750  ;;  %11950 = vst [vmem:[%s19746_s9 + $0x1a4] sm:$0xff] %v13015_v7  ;;  %v9487_v36 = vpop.f32.mrb[8].mxu0  ;;  %9950 = vmatprep.subr.bf16.mxu1 %v15531_v57  ;;  %15776 = vtanh.f32 %v13842_v12  ;;  %v13843_v42 = vadd.f32 %v8715_v43, %v18601_v5 }
 0x717   :  { %v15753_v56 = vpop.eup %15752  ;;  %11951 = vst [vmem:[%s19746_s9 + $0x1ac] sm:$0xff] %v13016_v53  ;;  %v13907_v55 = vadd.f32 %v9487_v36, %v18604_v4  ;;  %v8717_v34 = vpop.f32.mrb[9].mxu1  ;;  %15778 = vtanh.f32 %v13906_v38 }
 0x718   :  { %v15755_v32 = vpop.eup %15754  ;;  %v13019_v3 = vpack.c.bf16 %v15753_v56, %v15749_v52  ;;  %v9489_v39 = vpop.f32.mrb[9].mxu0  ;;  %v13844_v22 = vadd.f32 %v8717_v34, %v18609_v0  ;;  %15780 = vtanh.f32 %v13843_v42 }
 0x719   :  { %v15757_v63 = vpop.eup %15756  ;;  %v13020_v37 = vpack.c.bf16 %v15755_v32, %v15751_v11  ;;  %v13908_v19 = vadd.f32 %v9489_v39, %v18612_v23  ;;  %v8719_v20 = vpop.f32.mrb[10].mxu1  ;;  %9951 = vmatpush1.bf16.msra.mxu1 %v15529_v58  ;;  %v15534_v11 = vld [vmem:[#allocation12 + $0x940] ss:$28 sps:$4 sm:$0xff]   ;;  %15782 = vtanh.f32 %v13907_v55  ;;  %v15537_v55 = vld [vmem:[#allocation12 + $0x978] ss:$28 sps:$4 sm:$0xff]  }
 0x71a   :  { %v15759_v7 = vpop.eup %15758  ;;  %11954 = vst [vmem:[%s19746_s9 + $0x1c0] sm:$0xff] %v13019_v3  ;;  %v9491_v57 = vpop.f32.mrb[10].mxu0  ;;  %v13845_v53 = vadd.f32 %v8719_v20, %v18601_v5  ;;  %9952 = vmatprep.subr.bf16.mxu1 %v15536_v26  ;;  %v15539_v32 = vld [vmem:[#allocation12 + $0x97c] ss:$28 sps:$4 sm:$0xff]   ;;  %15784 = vtanh.f32 %v13844_v22 }
 0x71b   :  { %v15761_v52 = vpop.eup %15760  ;;  %11955 = vst [vmem:[%s19746_s9 + $0x1c8] sm:$0xff] %v13020_v37  ;;  %v8721_v12 = vpop.f32.mrb[11].mxu1  ;;  %v13909_v56 = vadd.f32 %v9491_v57, %v18604_v4  ;;  %v20291_v37 = vld [vmem:[#allocation47_spill] sm:$0xff]  ;;  %15786 = vtanh.f32 %v13908_v19  ;;  %v15544_v19 = vld [vmem:[#allocation12 + $0x9b4] ss:$28 sps:$4 sm:$0xff]  }
 0x71c   :  { %v9493_v60 = vpop.f32.mrb[11].mxu0  ;;  %v15763_v45 = vpop.eup %15762  ;;  %v13023_v38 = vpack.c.bf16 %v15761_v52, %v15757_v63  ;;  %v13846_v36 = vadd.f32 %v8721_v12, %v18609_v0  ;;  %9822 = vmatmul.mubr.bf16.gmra.mrb[52].mxu1 %v20291_v37  ;;  %10552 = vmatmul.mubr.bf16.gmra.mrb[116].mxu0 %v20291_v37  ;;  %v20292_v63 = vld [vmem:[#allocation27_spill] sm:$0xff]  ;;  %15788 = vtanh.f32 %v13845_v53 }
 0x71d   :  { %v15765_v3 = vpop.eup %15764  ;;  %v13024_v43 = vpack.c.bf16 %v15763_v45, %v15759_v7  ;;  %v13910_v58 = vadd.f32 %v9493_v60, %v18612_v23  ;;  %9831 = vmatprep.mubr.bf16.mxu1 %v20292_v63  ;;  %10559 = vmatprep.mubr.bf16.mxu0 %v20292_v63  ;;  %15790 = vtanh.f32 %v13909_v56  ;;  %v8725_v7 = vpop.f32.mrb[12].mxu1 }
 0x71e   :  { %v15767_v42 = vpop.eup %15766  ;;  %11958 = vst [vmem:[%s19746_s9 + $0x1dc] sm:$0xff] %v13023_v38  ;;  %9953 = vmatpush1.bf16.msra.mxu1 %v15534_v11  ;;  %v9497_v22 = vpop.f32.mrb[12].mxu0  ;;  %15792 = vtanh.f32 %v13846_v36  ;;  %v13847_v52 = vadd.f32 %v8725_v7, %v18601_v5 }
 0x71f   :  { %v15769_v26 = vpop.eup %15768  ;;  %11959 = vst [vmem:[%s19746_s9 + $0x1e4] sm:$0xff] %v13024_v43  ;;  %9954 = vmatprep.subr.bf16.mxu1 %v15539_v32  ;;  %v13911_v12 = vadd.f32 %v9497_v22, %v18604_v4  ;;  %v8727_v60 = vpop.f32.mrb[13].mxu1  ;;  %15794 = vtanh.f32 %v13910_v58 }
 0x720   :  { %v15771_v34 = vpop.eup %15770  ;;  %v13027_v39 = vpack.c.bf16 %v15769_v26, %v15765_v3  ;;  %v9499_v45 = vpop.f32.mrb[13].mxu0  ;;  %v13848_v53 = vadd.f32 %v8727_v60, %v18609_v0  ;;  %15796 = vtanh.f32 %v13847_v52 }
 0x721   :  { %v15773_v20 = vpop.eup %15772  ;;  %v13028_v57 = vpack.c.bf16 %v15771_v34, %v15767_v42  ;;  %v13912_v11 = vadd.f32 %v9499_v45, %v18612_v23  ;;  %v8729_v56 = vpop.f32.mrb[14].mxu1  ;;  %v15542_v42 = vld [vmem:[#allocation12 + $0x9b0] ss:$28 sps:$4 sm:$0xff]   ;;  %15798 = vtanh.f32 %v13911_v12  ;;  %v15545_v12 = vld [vmem:[#allocation12 + $0x9e8] ss:$28 sps:$4 sm:$0xff]  }
 0x722   :  { %v15775_v38 = vpop.eup %15774  ;;  %11962 = vst [vmem:[%s19746_s9 + $0x1f8] sm:$0xff] %v13027_v39  ;;  %v9501_v32 = vpop.f32.mrb[14].mxu0  ;;  %v13849_v43 = vadd.f32 %v8729_v56, %v18601_v5  ;;  %9955 = vmatpush1.bf16.msra.mxu1 %v15537_v55  ;;  %v15547_v34 = vld [vmem:[#allocation12 + $0x9ec] ss:$28 sps:$4 sm:$0xff]   ;;  %15800 = vtanh.f32 %v13848_v53 }
 0x723   :  { %v15777_v3 = vpop.eup %15776  ;;  %11963 = vst [vmem:[%s19746_s9 + $0x200] sm:$0xff] %v13028_v57  ;;  %v8731_v36 = vpop.f32.mrb[15].mxu1  ;;  %v13913_v26 = vadd.f32 %v9501_v32, %v18604_v4  ;;  %9956 = vmatprep.subr.bf16.mxu1 %v15544_v19  ;;  %v20293_v57 = vld [vmem:[#allocation51_spill] sm:$0xff]  ;;  %15802 = vtanh.f32 %v13912_v11 }
 0x724   :  { %v9503_v37 = vpop.f32.mrb[15].mxu0  ;;  %v15779_v63 = vpop.eup %15778  ;;  %v13031_v58 = vpack.c.bf16 %v15777_v3, %v15773_v20  ;;  %v13850_v22 = vadd.f32 %v8731_v36, %v18609_v0  ;;  %9832 = vmatmul.mubr.bf16.gmra.mrb[56].mxu1 %v20293_v57  ;;  %10560 = vmatmul.mubr.bf16.gmra.mrb[120].mxu0 %v20293_v57  ;;  %v20294_v20 = vld [vmem:[#allocation56_spill] sm:$0xff]  ;;  %15804 = vtanh.f32 %v13849_v43  ;;  %v15552_v11 = vld [vmem:[#allocation12 + $0xa24] ss:$28 sps:$4 sm:$0xff]  }
 0x725   :  { %v15781_v39 = vpop.eup %15780  ;;  %v13032_v7 = vpack.c.bf16 %v15779_v63, %v15775_v38  ;;  %v13914_v55 = vadd.f32 %v9503_v37, %v18612_v23  ;;  %9841 = vmatprep.mubr.bf16.mxu1 %v20294_v20  ;;  %10567 = vmatprep.mubr.bf16.mxu0 %v20294_v20  ;;  %15806 = vtanh.f32 %v13913_v26  ;;  %v8735_v38 = vpop.f32.mrb[16].mxu1 }
 0x726   :  { %v15783_v52 = vpop.eup %15782  ;;  %11966 = vst [vmem:[%s19746_s9 + $0x214] sm:$0xff] %v13031_v58  ;;  %9957 = vmatpush1.bf16.msra.mxu1 %v15542_v42  ;;  %v9507_v53 = vpop.f32.mrb[16].mxu0  ;;  %15808 = vtanh.f32 %v13850_v22  ;;  %v13851_v3 = vadd.f32 %v8735_v38, %v18601_v5 }
 0x727   :  { %v15785_v19 = vpop.eup %15784  ;;  %11967 = vst [vmem:[%s19746_s9 + $0x21c] sm:$0xff] %v13032_v7  ;;  %9958 = vmatprep.subr.bf16.mxu1 %v15547_v34  ;;  %v13915_v36 = vadd.f32 %v9507_v53, %v18604_v4  ;;  %v8737_v37 = vpop.f32.mrb[17].mxu1  ;;  %15810 = vtanh.f32 %v13914_v55 }
 0x728   :  { %v15787_v60 = vpop.eup %15786  ;;  %v13035_v45 = vpack.c.bf16 %v15785_v19, %v15781_v39  ;;  %v9509_v63 = vpop.f32.mrb[17].mxu0  ;;  %v13852_v43 = vadd.f32 %v8737_v37, %v18609_v0  ;;  %15812 = vtanh.f32 %v13851_v3 }
 0x729   :  { %v15789_v56 = vpop.eup %15788  ;;  %v13036_v32 = vpack.c.bf16 %v15787_v60, %v15783_v52  ;;  %v13916_v42 = vadd.f32 %v9509_v63, %v18612_v23  ;;  %v8739_v26 = vpop.f32.mrb[18].mxu1  ;;  %v15550_v52 = vld [vmem:[#allocation12 + $0xa20] ss:$28 sps:$4 sm:$0xff]   ;;  %15814 = vtanh.f32 %v13915_v36  ;;  %v15553_v36 = vld [vmem:[#allocation12 + $0xa58] ss:$28 sps:$4 sm:$0xff]  }
 0x72a   :  { %v15791_v58 = vpop.eup %15790  ;;  %11970 = vst [vmem:[%s19746_s9 + $0x230] sm:$0xff] %v13035_v45  ;;  %v9511_v34 = vpop.f32.mrb[18].mxu0  ;;  %v13853_v7 = vadd.f32 %v8739_v26, %v18601_v5  ;;  %9959 = vmatpush1.bf16.msra.mxu1 %v15545_v12  ;;  %v15555_v60 = vld [vmem:[#allocation12 + $0xa5c] ss:$28 sps:$4 sm:$0xff]   ;;  %15816 = vtanh.f32 %v13852_v43 }
 0x72b   :  { %v15793_v39 = vpop.eup %15792  ;;  %11971 = vst [vmem:[%s19746_s9 + $0x238] sm:$0xff] %v13036_v32  ;;  %v8741_v22 = vpop.f32.mrb[19].mxu1  ;;  %v13917_v19 = vadd.f32 %v9511_v34, %v18604_v4  ;;  %9960 = vmatprep.subr.bf16.mxu1 %v15552_v11  ;;  %v20295_v32 = vld [vmem:[#allocation54_spill] sm:$0xff]  ;;  %15818 = vtanh.f32 %v13916_v42  ;;  %v15560_v42 = vld [vmem:[#allocation12 + $0xa94] ss:$28 sps:$4 sm:$0xff]  }
 0x72c   :  { %v9513_v57 = vpop.f32.mrb[19].mxu0  ;;  %v15795_v20 = vpop.eup %15794  ;;  %v13039_v55 = vpack.c.bf16 %v15793_v39, %v15789_v56  ;;  %v13854_v53 = vadd.f32 %v8741_v22, %v18609_v0  ;;  %9842 = vmatmul.mubr.bf16.gmra.mrb[60].mxu1 %v20295_v32  ;;  %10568 = vmatmul.mubr.bf16.gmra.mrb[124].mxu0 %v20295_v32  ;;  %v20296_v56 = vld [vmem:[#allocation60_spill] sm:$0xff]  ;;  %15820 = vtanh.f32 %v13853_v7 }
 0x72d   :  { %v15797_v45 = vpop.eup %15796  ;;  %v13040_v38 = vpack.c.bf16 %v15795_v20, %v15791_v58  ;;  %v13918_v12 = vadd.f32 %v9513_v57, %v18612_v23  ;;  %9851 = vmatprep.mubr.bf16.mxu1 %v20296_v56  ;;  %10575 = vmatprep.mubr.bf16.mxu0 %v20296_v56  ;;  %15822 = vtanh.f32 %v13917_v19  ;;  %v8745_v58 = vpop.f32.mrb[20].mxu1 }
 0x72e   :  { %v15799_v3 = vpop.eup %15798  ;;  %11974 = vst [vmem:[%s19746_s9 + $0x24c] sm:$0xff] %v13039_v55  ;;  %9961 = vmatpush1.bf16.msra.mxu1 %v15550_v52  ;;  %v9517_v43 = vpop.f32.mrb[20].mxu0  ;;  %15824 = vtanh.f32 %v13854_v53  ;;  %v13855_v39 = vadd.f32 %v8745_v58, %v18601_v5  ;;  %v20297_v58 = vld [vmem:[#allocation58_spill] sm:$0xff] }
 0x72f   :  { %v15801_v11 = vpop.eup %15800  ;;  %11975 = vst [vmem:[%s19746_s9 + $0x254] sm:$0xff] %v13040_v38  ;;  %9962 = vmatprep.subr.bf16.mxu1 %v15555_v60  ;;  %v13919_v22 = vadd.f32 %v9517_v43, %v18604_v4  ;;  %v8747_v57 = vpop.f32.mrb[21].mxu1  ;;  %15826 = vtanh.f32 %v13918_v12 }
 0x730   :  { %v15803_v37 = vpop.eup %15802  ;;  %v13043_v63 = vpack.c.bf16 %v15801_v11, %v15797_v45  ;;  %v9519_v20 = vpop.f32.mrb[21].mxu0  ;;  %v13856_v7 = vadd.f32 %v8747_v57, %v18609_v0  ;;  %15828 = vtanh.f32 %v13855_v39 }
 0x731   :  { %v15805_v26 = vpop.eup %15804  ;;  %v13044_v34 = vpack.c.bf16 %v15803_v37, %v15799_v3  ;;  %v13920_v52 = vadd.f32 %v9519_v20, %v18612_v23  ;;  %v8749_v19 = vpop.f32.mrb[22].mxu1  ;;  %15830 = vtanh.f32 %v13919_v22 }
 0x732   :  { %v15807_v55 = vpop.eup %15806  ;;  %11978 = vst [vmem:[%s19746_s9 + $0x268] sm:$0xff] %v13043_v63  ;;  %v9521_v60 = vpop.f32.mrb[22].mxu0  ;;  %v13857_v38 = vadd.f32 %v8749_v19, %v18601_v5  ;;  %9963 = vmatpush1.bf16.msra.mxu1 %v15553_v36  ;;  %15832 = vtanh.f32 %v13856_v7 }
 0x733   :  { %v15809_v45 = vpop.eup %15808  ;;  %11979 = vst [vmem:[%s19746_s9 + $0x270] sm:$0xff] %v13044_v34  ;;  %v8751_v53 = vpop.f32.mrb[23].mxu1  ;;  %v13921_v12 = vadd.f32 %v9521_v60, %v18604_v4  ;;  %10125 = vmatprep.subr.bf16.mxu1 %v15560_v42  ;;  %15834 = vtanh.f32 %v13920_v52 }
 0x734   :  { %v9523_v32 = vpop.f32.mrb[23].mxu0  ;;  %v15811_v3 = vpop.eup %15810  ;;  %v13047_v56 = vpack.c.bf16 %v15809_v45, %v15805_v26  ;;  %v13858_v63 = vadd.f32 %v8751_v53, %v18609_v0  ;;  %9852 = vmatmul.mubr.bf16.gmra.mrb[64].mxu1 %v20297_v58  ;;  %10576 = vmatmul.mubr.bf16.gmra.mrb[128].mxu0 %v20297_v58  ;;  %v20298_v26 = vld [vmem:[#allocation64_spill] sm:$0xff]  ;;  %15836 = vtanh.f32 %v13857_v38 }
 0x735   :  { %v15813_v11 = vpop.eup %15812  ;;  %v13048_v37 = vpack.c.bf16 %v15811_v3, %v15807_v55  ;;  %v13922_v36 = vadd.f32 %v9523_v32, %v18612_v23  ;;  %9861 = vmatprep.mubr.bf16.mxu1 %v20298_v26  ;;  %10583 = vmatprep.mubr.bf16.mxu0 %v20298_v26  ;;  %15838 = vtanh.f32 %v13921_v12  ;;  %v8755_v22 = vpop.f32.mrb[24].mxu1 }
 0x736   :  { %v15815_v43 = vpop.eup %15814  ;;  %11982 = vst [vmem:[%s19746_s9 + $0x284] sm:$0xff] %v13047_v56  ;;  %v9527_v57 = vpop.f32.mrb[24].mxu0  ;;  %15840 = vtanh.f32 %v13858_v63  ;;  %v13859_v7 = vadd.f32 %v8755_v22, %v18601_v5 }
 0x737   :  { %v15817_v42 = vpop.eup %15816  ;;  %11983 = vst [vmem:[%s19746_s9 + $0x28c] sm:$0xff] %v13048_v37  ;;  %v13923_v52 = vadd.f32 %v9527_v57, %v18604_v4  ;;  %v8757_v19 = vpop.f32.mrb[25].mxu1  ;;  %15842 = vtanh.f32 %v13922_v36  ;;  %v20300_v57 = vld [vmem:[#allocation68_spill] sm:$0xff] }
 0x738   :  { %v15819_v34 = vpop.eup %15818  ;;  %v13051_v39 = vpack.c.bf16 %v15817_v42, %v15813_v11  ;;  %v9529_v60 = vpop.f32.mrb[25].mxu0  ;;  %v13860_v38 = vadd.f32 %v8757_v19, %v18609_v0  ;;  %15844 = vtanh.f32 %v13859_v7 }
 0x739   :  { %v15821_v20 = vpop.eup %15820  ;;  %v13052_v55 = vpack.c.bf16 %v15819_v34, %v15815_v43  ;;  %v13924_v53 = vadd.f32 %v9529_v60, %v18612_v23  ;;  %v8759_v32 = vpop.f32.mrb[26].mxu1  ;;  %15846 = vtanh.f32 %v13923_v52  ;;  %v20299_v34 = vld [vmem:[#allocation62_spill] sm:$0xff] }
 0x73a   :  { %v15823_v45 = vpop.eup %15822  ;;  %11986 = vst [vmem:[%s19746_s9 + $0x2a0] sm:$0xff] %v13051_v39  ;;  %v9531_v3 = vpop.f32.mrb[26].mxu0  ;;  %v13861_v12 = vadd.f32 %v8759_v32, %v18601_v5  ;;  %15848 = vtanh.f32 %v13860_v38 }
 0x73b   :  { %v15825_v56 = vpop.eup %15824  ;;  %11987 = vst [vmem:[%s19746_s9 + $0x2a8] sm:$0xff] %v13052_v55  ;;  %v8761_v11 = vpop.f32.mrb[27].mxu1  ;;  %v13925_v43 = vadd.f32 %v9531_v3, %v18604_v4  ;;  %15850 = vtanh.f32 %v13924_v53 }
 0x73c   :  { %v9533_v37 = vpop.f32.mrb[27].mxu0  ;;  %v15827_v63 = vpop.eup %15826  ;;  %v13055_v58 = vpack.c.bf16 %v15825_v56, %v15821_v20  ;;  %v13862_v42 = vadd.f32 %v8761_v11, %v18609_v0  ;;  %9862 = vmatmul.mubr.bf16.gmra.mrb[68].mxu1 %v20299_v34  ;;  %10584 = vmatmul.mubr.bf16.gmra.mrb[132].mxu0 %v20299_v34  ;;  %15852 = vtanh.f32 %v13861_v12 }
 0x73d   :  { %v15829_v36 = vpop.eup %15828  ;;  %v13056_v26 = vpack.c.bf16 %v15827_v63, %v15823_v45  ;;  %v13926_v22 = vadd.f32 %v9533_v37, %v18612_v23  ;;  %9871 = vmatprep.mubr.bf16.mxu1 %v20300_v57  ;;  %10591 = vmatprep.mubr.bf16.mxu0 %v20300_v57  ;;  %15854 = vtanh.f32 %v13925_v43  ;;  %v8765_v52 = vpop.f32.mrb[28].mxu1 }
 0x73e   :  { %v15831_v39 = vpop.eup %15830  ;;  %11990 = vst [vmem:[%s19746_s9 + $0x2bc] sm:$0xff] %v13055_v58  ;;  %v9537_v19 = vpop.f32.mrb[28].mxu0  ;;  %15856 = vtanh.f32 %v13862_v42  ;;  %v13863_v38 = vadd.f32 %v8765_v52, %v18601_v5 }
 0x73f   :  { %v15833_v20 = vpop.eup %15832  ;;  %11991 = vst [vmem:[%s19746_s9 + $0x2c4] sm:$0xff] %v13056_v26  ;;  %v13927_v53 = vadd.f32 %v9537_v19, %v18604_v4  ;;  %v8767_v32 = vpop.f32.mrb[29].mxu1  ;;  %15858 = vtanh.f32 %v13926_v22 }
 0x740   :  { %v15835_v55 = vpop.eup %15834  ;;  %v13059_v7 = vpack.c.bf16 %v15833_v20, %v15829_v36  ;;  %v9539_v3 = vpop.f32.mrb[29].mxu0  ;;  %v13864_v12 = vadd.f32 %v8767_v32, %v18609_v0  ;;  %15860 = vtanh.f32 %v13863_v38 }
 0x741   :  { %v15837_v60 = vpop.eup %15836  ;;  %v13060_v45 = vpack.c.bf16 %v15835_v55, %v15831_v39  ;;  %v13928_v11 = vadd.f32 %v9539_v3, %v18612_v23  ;;  %v8769_v37 = vpop.f32.mrb[30].mxu1  ;;  %15862 = vtanh.f32 %v13927_v53 }
 0x742   :  { %v15839_v56 = vpop.eup %15838  ;;  %11994 = vst [vmem:[%s19746_s9 + $0x2d8] sm:$0xff] %v13059_v7  ;;  %v9541_v63 = vpop.f32.mrb[30].mxu0  ;;  %v13865_v43 = vadd.f32 %v8769_v37, %v18601_v5  ;;  %15864 = vtanh.f32 %v13864_v12 }
 0x743   :  { %v15841_v58 = vpop.eup %15840  ;;  %11995 = vst [vmem:[%s19746_s9 + $0x2e0] sm:$0xff] %v13060_v45  ;;  %v8771_v36 = vpop.f32.mrb[31].mxu1  ;;  %v13929_v39 = vadd.f32 %v9541_v63, %v18604_v4  ;;  %15866 = vtanh.f32 %v13928_v11 }
 0x744   :  { %v9543_v26 = vpop.f32.mrb[31].mxu0  ;;  %v15843_v42 = vpop.eup %15842  ;;  %v13063_v34 = vpack.c.bf16 %v15841_v58, %v15837_v60  ;;  %v13866_v20 = vadd.f32 %v8771_v36, %v18609_v0  ;;  %9872 = vmatmul.mubr.bf16.gmra.mrb[72].mxu1 %v20209_v13  ;;  %10592 = vmatmul.mubr.bf16.gmra.mrb[136].mxu0 %v20209_v13  ;;  %15868 = vtanh.f32 %v13865_v43 }
 0x745   :  { %v15845_v22 = vpop.eup %15844  ;;  %v13064_v57 = vpack.c.bf16 %v15843_v42, %v15839_v56  ;;  %v13930_v5 = vadd.f32 %v9543_v26, %v18612_v23  ;;  %9881 = vmatprep.mubr.bf16.mxu1 %v20210_v8  ;;  %10599 = vmatprep.mubr.bf16.mxu0 %v20210_v8  ;;  %15870 = vtanh.f32 %v13929_v39  ;;  %v13099_v7 = vpop.f32.mrb[32].mxu0 }
 0x746   :  { %v15847_v55 = vpop.eup %15846  ;;  %11998 = vst [vmem:[%s19746_s9 + $0x2f4] sm:$0xff] %v13063_v34  ;;  %15872 = vtanh.f32 %v13866_v20  ;;  %v13100_v60 = vpop.f32.mrb[33].mxu0 }
 0x747   :  { %v15849_v4 = vpop.eup %15848  ;;  %11999 = vst [vmem:[%s19746_s9 + $0x2fc] sm:$0xff] %v13064_v57  ;;  %15874 = vtanh.f32 %v13930_v5  ;;  %v18977_v8 = vadd.f32 %v13100_v60, %v13099_v7  ;;  %v13102_v23 = vpop.f32.mrb[34].mxu0 }
 0x748   :  { %v15851_v0 = vpop.eup %15850  ;;  %v13067_v13 = vpack.c.bf16 %v15849_v4, %v15845_v22  ;;  %v13103_v53 = vpop.f32.mrb[35].mxu0 }
 0x749   :  { %v15853_v52 = vpop.eup %15852  ;;  %v13068_v19 = vpack.c.bf16 %v15851_v0, %v15847_v55  ;;  %v18982_v56 = vadd.f32 %v13103_v53, %v13102_v23 }
 0x74a   :  { %v15855_v45 = vpop.eup %15854  ;;  %12002 = vst [vmem:[%s19746_s9 + $0x310] sm:$0xff] %v13067_v13 }
 0x74b   :  { %v15857_v38 = vpop.eup %15856  ;;  %12003 = vst [vmem:[%s19746_s9 + $0x318] sm:$0xff] %v13068_v19 }
 0x74c   :  { %v15859_v32 = vpop.eup %15858  ;;  %v13071_v3 = vpack.c.bf16 %v15857_v38, %v15853_v52  ;;  %9882 = vmatmul.mubr.bf16.gmra.mrb[76].mxu1 %v20215_v49  ;;  %10600 = vmatmul.mubr.bf16.gmra.mrb[140].mxu0 %v20215_v49 }
 0x74d   :  { %v15861_v12 = vpop.eup %15860  ;;  %v13072_v11 = vpack.c.bf16 %v15859_v32, %v15855_v45  ;;  %9891 = vmatprep.mubr.bf16.mxu1 %v17946_v48  ;;  %10607 = vmatprep.mubr.bf16.mxu0 %v17946_v48  ;;  %v13105_v36 = vpop.f32.mrb[36].mxu0 }
 0x74e   :  { %v15863_v37 = vpop.eup %15862  ;;  %12006 = vst [vmem:[%s19746_s9 + $0x32c] sm:$0xff] %v13071_v3  ;;  %v13106_v49 = vpop.f32.mrb[37].mxu0 }
 0x74f   :  { %v15865_v63 = vpop.eup %15864  ;;  %12007 = vst [vmem:[%s19746_s9 + $0x334] sm:$0xff] %v13072_v11  ;;  %v18997_v39 = vadd.f32 %v13106_v49, %v13105_v36  ;;  %v13108_v22 = vpop.f32.mrb[38].mxu0  ;;  %v15558_v36 = vld [vmem:[#allocation12 + $0xa90] ss:$28 sps:$4 sm:$0xff]  }
 0x750   :  { %v15867_v58 = vpop.eup %15866  ;;  %v13075_v43 = vpack.c.bf16 %v15865_v63, %v15861_v12  ;;  %v13109_v57 = vpop.f32.mrb[39].mxu0  ;;  %v15564_v49 = vld [vmem:[#allocation12 + $0xc90] ss:$28 sps:$4 sm:$0xff]  }
 0x751   :  { %v15869_v26 = vpop.eup %15868  ;;  %v13076_v42 = vpack.c.bf16 %v15867_v58, %v15863_v37  ;;  %v19002_v5 = vadd.f32 %v13109_v57, %v13108_v22  ;;  %v15557_v58 = vld [vmem:[#allocation12 + $0xa98] ss:$28 sps:$4 sm:$0xff]  }
 0x752   :  { %v15871_v34 = vpop.eup %15870  ;;  %12010 = vst [vmem:[%s19746_s9 + $0x348] sm:$0xff] %v13075_v43 }
 0x753   :  { %v15873_v48 = vpop.eup %15872  ;;  %12011 = vst [vmem:[%s19746_s9 + $0x350] sm:$0xff] %v13076_v42  ;;  %v15563_v42 = vld [vmem:[#allocation12 + $0xacc] ss:$28 sps:$4 sm:$0xff]  }
 0x754   :  { %v15875_v20 = vpop.eup %15874  ;;  %v13079_v55 = vpack.c.bf16 %v15873_v48, %v15869_v26  ;;  %9892 = vmatmul.mubr.bf16.gmra.mrb[80].mxu1 %v17942_v40  ;;  %10608 = vmatmul.mubr.bf16.gmra.mrb[144].mxu0 %v17942_v40  ;;  %v15568_v48 = vld [vmem:[#allocation12 + $0xb04] ss:$28 sps:$4 sm:$0xff]  }
 0x755   :  { %v13080_v4 = vpack.c.bf16 %v15875_v20, %v15871_v34  ;;  %9901 = vmatprep.mubr.bf16.mxu1 %v17966_v35  ;;  %10615 = vmatprep.mubr.bf16.mxu0 %v17966_v35  ;;  %v13111_v0 = vpop.f32.mrb[40].mxu0  ;;  %v15572_v34 = vld [vmem:[#allocation12 + $0xcc8] ss:$28 sps:$4 sm:$0xff]  }
 0x756   :  { %12014 = vst [vmem:[%s19746_s9 + $0x364] sm:$0xff] %v13079_v55  ;;  %v13112_v13 = vpop.f32.mrb[41].mxu0 }
 0x757   :  { %12015 = vst [vmem:[%s19746_s9 + $0x36c] sm:$0xff] %v13080_v4  ;;  %v19014_v7 = vadd.f32 %v13112_v13, %v13111_v0  ;;  %v13114_v52 = vpop.f32.mrb[42].mxu0  ;;  %v15573_v0 = vld [vmem:[#allocation12 + $0xb08] ss:$28 sps:$4 sm:$0xff]  }
 0x758   :  { %v13115_v19 = vpop.f32.mrb[43].mxu0 }
 0x759   :  { %v19016_v60 = vadd.f32 %v13115_v19, %v13114_v52  ;;  %v15580_v52 = vld [vmem:[#allocation12 + $0xd00] ss:$28 sps:$4 sm:$0xff]   ;;  %v15569_v19 = vld [vmem:[#allocation12 + $0xb38] ss:$28 sps:$4 sm:$0xff]  }
 0x75c   :  { %9902 = vmatmul.mubr.bf16.gmra.mrb[84].mxu1 %v17962_v29  ;;  %10616 = vmatmul.mubr.bf16.gmra.mrb[148].mxu0 %v17962_v29 }
 0x75d   :  { %9911 = vmatprep.mubr.bf16.mxu1 %v17986_v47  ;;  %10623 = vmatprep.mubr.bf16.mxu0 %v17986_v47  ;;  %v13117_v40 = vpop.f32.mrb[44].mxu0 }
 0x75e   :  { %v13118_v35 = vpop.f32.mrb[45].mxu0 }
 0x75f   :  { %v19022_v45 = vadd.f32 %v13118_v35, %v13117_v40  ;;  %v13120_v23 = vpop.f32.mrb[46].mxu0  ;;  %v15581_v40 = vld [vmem:[#allocation12 + $0xb40] ss:$28 sps:$4 sm:$0xff]  }
 0x760   :  { %v13121_v38 = vpop.f32.mrb[47].mxu0 }
 0x761   :  { %v19024_v53 = vadd.f32 %v13121_v38, %v13120_v23  ;;  %v15576_v23 = vld [vmem:[#allocation12 + $0xb74] ss:$28 sps:$4 sm:$0xff]  }
 0x762   :  { %v15588_v38 = vld [vmem:[#allocation12 + $0xd38] ss:$28 sps:$4 sm:$0xff]  }
 0x764   :  { %9912 = vmatmul.mubr.bf16.gmra.mrb[88].mxu1 %v20216_v1  ;;  %10624 = vmatmul.mubr.bf16.gmra.mrb[152].mxu0 %v20216_v1 }
 0x765   :  { %9921 = vmatprep.mubr.bf16.mxu1 %v18006_v33  ;;  %10631 = vmatprep.mubr.bf16.mxu0 %v18006_v33  ;;  %v13123_v29 = vpop.f32.mrb[48].mxu0 }
 0x766   :  { %v13124_v32 = vpop.f32.mrb[49].mxu0 }
 0x767   :  { %v19030_v3 = vadd.f32 %v13124_v32, %v13123_v29  ;;  %v13126_v47 = vpop.f32.mrb[50].mxu0 }
 0x768   :  { %v13127_v12 = vpop.f32.mrb[51].mxu0 }
 0x769   :  { %v19032_v11 = vadd.f32 %v13127_v12, %v13126_v47 }
 0x76c   :  { %9922 = vmatmul.mubr.bf16.gmra.mrb[92].mxu1 %v18002_v17  ;;  %10632 = vmatmul.mubr.bf16.gmra.mrb[156].mxu0 %v18002_v17  ;;  %v15565_v17 = vld [vmem:[#allocation12 + $0xad0] ss:$28 sps:$4 sm:$0xff]  }
 0x76d   :  { %9964 = vmatprep.mubr.bf16.mxu1 %v18106_v10  ;;  %10672 = vmatprep.mubr.bf16.mxu0 %v18106_v10  ;;  %v13129_v1 = vpop.f32.mrb[52].mxu0  ;;  %v15561_v10 = vld [vmem:[#allocation12 + $0xac8] ss:$28 sps:$4 sm:$0xff]  }
 0x76e   :  { %v13130_v37 = vpop.f32.mrb[53].mxu0 }
 0x76f   :  { %v19038_v63 = vadd.f32 %v13130_v37, %v13129_v1  ;;  %v13132_v33 = vpop.f32.mrb[54].mxu0  ;;  %v15589_v1 = vld [vmem:[#allocation12 + $0xb78] ss:$28 sps:$4 sm:$0xff]  }
 0x770   :  { %v13133_v43 = vpop.f32.mrb[55].mxu0 }
 0x771   :  { %v19040_v26 = vadd.f32 %v13133_v43, %v13132_v33  ;;  %v15596_v33 = vld [vmem:[#allocation12 + $0xd70] ss:$28 sps:$4 sm:$0xff]  }
 0x772   :  { %v15597_v43 = vld [vmem:[#allocation12 + $0xbb0] ss:$28 sps:$4 sm:$0xff]  }
 0x774   :  { %9965 = vmatmul.mubr.bf16.vlgmr.msra.gmra.mrb[32].mxu1 %v18102_v51  ;;  %10673 = vmatmul.mubr.bf16.vlgmr.msra.gmra.mrb[160].mxu0 %v18102_v51  ;;  %v15566_v51 = vld [vmem:[#allocation12 + $0xb00] ss:$28 sps:$4 sm:$0xff]  }
 0x775   :  { %13420 = vmatpush3.bf16.msra.mxu0 %v15557_v58  ;;  %9974 = vmatprep.mubr.bf16.mxu1 %v18126_v27  ;;  %v13135_v22 = vpop.f32.mrb[56].mxu0  ;;  %v15577_v58 = vld [vmem:[#allocation12 + $0xba8] ss:$28 sps:$4 sm:$0xff]  }
 0x776   :  { %10680 = vmatprep.mubr.bf16.mxu0 %v18126_v27  ;;  %10126 = vmatpush1.bf16.msra.mxu1 %v15558_v36  ;;  %v13136_v57 = vpop.f32.mrb[57].mxu0  ;;  %v15571_v27 = vld [vmem:[#allocation12 + $0xb3c] ss:$28 sps:$4 sm:$0xff]  }
 0x777   :  { %10127 = vmatprep.subr.bf16.mxu1 %v15563_v42  ;;  %13421 = vmatprep.subr.bf16.mxu0 %v15564_v49  ;;  %v19046_v20 = vadd.f32 %v13136_v57, %v13135_v22  ;;  %v13138_v55 = vpop.f32.mrb[58].mxu0  ;;  %v15584_v42 = vld [vmem:[#allocation12 + $0xbe4] ss:$28 sps:$4 sm:$0xff]  }
 0x778   :  { %v13139_v4 = vpop.f32.mrb[59].mxu0  ;;  %v15604_v49 = vld [vmem:[#allocation12 + $0xda8] ss:$28 sps:$4 sm:$0xff]  }
 0x779   :  { %13422 = vmatpush3.bf16.msra.mxu0 %v15565_v17  ;;  %v19048_v13 = vadd.f32 %v13139_v4, %v13138_v55  ;;  %v15612_v55 = vld [vmem:[#allocation12 + $0xde0] ss:$28 sps:$4 sm:$0xff]   ;;  %v15585_v4 = vld [vmem:[#allocation12 + $0xc18] ss:$28 sps:$4 sm:$0xff]  }
 0x77a   :  { %10128 = vmatpush1.bf16.msra.mxu1 %v15561_v10  ;;  %13423 = vmatprep.subr.bf16.mxu0 %v15572_v34 }
 0x77b   :  { %10129 = vmatprep.subr.bf16.mxu1 %v15568_v48  ;;  %v15605_v48 = vld [vmem:[#allocation12 + $0xbe8] ss:$28 sps:$4 sm:$0xff]  }
 0x77c   :  { %9975 = vmatmul.mubr.bf16.gmra.mrb[36].mxu1 %v18122_v15  ;;  %10681 = vmatmul.mubr.bf16.gmra.mrb[164].mxu0 %v18122_v15  ;;  %v15574_v15 = vld [vmem:[#allocation12 + $0xb70] ss:$28 sps:$4 sm:$0xff]  }
 0x77d   :  { %9984 = vmatprep.mubr.bf16.mxu1 %v18146_v18  ;;  %10688 = vmatprep.mubr.bf16.mxu0 %v18146_v18  ;;  %v13141_v35 = vpop.f32.mrb[60].mxu0  ;;  %v15579_v18 = vld [vmem:[#allocation12 + $0xbac] ss:$28 sps:$4 sm:$0xff]  }
 0x77e   :  { %10130 = vmatpush1.bf16.msra.mxu1 %v15566_v51  ;;  %13424 = vmatpush3.bf16.msra.mxu0 %v15573_v0  ;;  %v13142_v29 = vpop.f32.mrb[61].mxu0  ;;  %v15613_v51 = vld [vmem:[#allocation12 + $0xc20] ss:$28 sps:$4 sm:$0xff]  }
 0x77f   :  { %10131 = vmatprep.subr.bf16.mxu1 %v15571_v27  ;;  %13425 = vmatprep.subr.bf16.mxu0 %v15580_v52  ;;  %v19054_v32 = vadd.f32 %v13142_v29, %v13141_v35  ;;  %v13144_v47 = vpop.f32.mrb[62].mxu0  ;;  %v15592_v27 = vld [vmem:[#allocation12 + $0xc54] ss:$28 sps:$4 sm:$0xff]  }
 0x780   :  { %v13145_v12 = vpop.f32.mrb[63].mxu0 }
 0x781   :  { %v19056_v37 = vadd.f32 %v13145_v12, %v13144_v47  ;;  %v15600_v47 = vld [vmem:[#allocation12 + $0xcc4] ss:$28 sps:$4 sm:$0xff]  }
 0x782   :  { %10132 = vmatpush1.bf16.msra.mxu1 %v15569_v19  ;;  %13426 = vmatpush3.bf16.msra.mxu0 %v15581_v40 }
 0x783   :  { %10133 = vmatprep.subr.bf16.mxu1 %v15576_v23  ;;  %13427 = vmatprep.subr.bf16.mxu0 %v15588_v38  ;;  %v15590_v23 = vld [vmem:[#allocation12 + $0xc50] ss:$28 sps:$4 sm:$0xff]   ;;  %v15593_v38 = vld [vmem:[#allocation12 + $0xc88] ss:$28 sps:$4 sm:$0xff]  }
 0x784   :  { %9985 = vmatmul.mubr.bf16.gmra.mrb[40].mxu1 %v18142_v16  ;;  %10689 = vmatmul.mubr.bf16.gmra.mrb[168].mxu0 %v18142_v16  ;;  %v15582_v16 = vld [vmem:[#allocation12 + $0xbe0] ss:$28 sps:$4 sm:$0xff]  }
 0x785   :  { %9994 = vmatprep.mubr.bf16.mxu1 %v18166_v59  ;;  %10696 = vmatprep.mubr.bf16.mxu0 %v18166_v59  ;;  %v13147_v36 = vpop.f32.mrb[64].mxu0  ;;  %v15587_v59 = vld [vmem:[#allocation12 + $0xc1c] ss:$28 sps:$4 sm:$0xff]  }
 0x786   :  { %10134 = vmatpush1.bf16.msra.mxu1 %v15574_v15  ;;  %13428 = vmatpush3.bf16.msra.mxu0 %v15589_v1  ;;  %v13148_v17 = vpop.f32.mrb[65].mxu0 }
 0x787   :  { %10135 = vmatprep.subr.bf16.mxu1 %v15579_v18  ;;  %13429 = vmatprep.subr.bf16.mxu0 %v15596_v33  ;;  %v19062_v10 = vadd.f32 %v13148_v17, %v13147_v36  ;;  %v13150_v34 = vpop.f32.mrb[66].mxu0  ;;  %v15598_v33 = vld [vmem:[#allocation12 + $0xcc0] ss:$28 sps:$4 sm:$0xff]   ;;  %v15608_v36 = vld [vmem:[#allocation12 + $0xd34] ss:$28 sps:$4 sm:$0xff]  }
 0x788   :  { %v13151_v22 = vpop.f32.mrb[67].mxu0 }
 0x789   :  { %v19064_v57 = vadd.f32 %v13151_v22, %v13150_v34  ;;  %v15606_v22 = vld [vmem:[#allocation12 + $0xd30] ss:$28 sps:$4 sm:$0xff]  }
 0x78a   :  { %10136 = vmatpush1.bf16.msra.mxu1 %v15577_v58  ;;  %13430 = vmatpush3.bf16.msra.mxu0 %v15597_v43 }
 0x78b   :  { %10137 = vmatprep.subr.bf16.mxu1 %v15584_v42  ;;  %13431 = vmatprep.subr.bf16.mxu0 %v15604_v49 }
 0x78c   :  { %9995 = vmatmul.mubr.bf16.gmra.mrb[44].mxu1 %v18162_v31  ;;  %10697 = vmatmul.mubr.bf16.gmra.mrb[172].mxu0 %v18162_v31 }
 0x78d   :  { %10004 = vmatprep.mubr.bf16.mxu1 %v18186_v2  ;;  %10704 = vmatprep.mubr.bf16.mxu0 %v18186_v2  ;;  %v13153_v0 = vpop.f32.mrb[68].mxu0  ;;  %v15595_v2 = vld [vmem:[#allocation12 + $0xc8c] ss:$28 sps:$4 sm:$0xff]  }
 0x78e   :  { %10138 = vmatpush1.bf16.msra.mxu1 %v15582_v16  ;;  %13432 = vmatpush3.bf16.msra.mxu0 %v15605_v48  ;;  %v13154_v52 = vpop.f32.mrb[69].mxu0 }
 0x78f   :  { %10139 = vmatprep.subr.bf16.mxu1 %v15587_v59  ;;  %13433 = vmatprep.subr.bf16.mxu0 %v15612_v55  ;;  %v19070_v19 = vadd.f32 %v13154_v52, %v13153_v0  ;;  %v13156_v40 = vpop.f32.mrb[70].mxu0  ;;  %v15616_v59 = vld [vmem:[#allocation12 + $0xda4] ss:$28 sps:$4 sm:$0xff]  }
 0x790   :  { %v13157_v35 = vpop.f32.mrb[71].mxu0 }
 0x791   :  { %v19072_v31 = vadd.f32 %v13157_v35, %v13156_v40 }
 0x792   :  { %10140 = vmatpush1.bf16.msra.mxu1 %v15585_v4  ;;  %13434 = vmatpush3.bf16.msra.mxu0 %v15613_v51 }
 0x793   :  { %10141 = vmatprep.subr.bf16.mxu1 %v15592_v27  ;;  %v15614_v27 = vld [vmem:[#allocation12 + $0xda0] ss:$28 sps:$4 sm:$0xff]  }
 0x794   :  { %10005 = vmatmul.mubr.bf16.gmra.mrb[48].mxu1 %v18182_v41  ;;  %10705 = vmatmul.mubr.bf16.gmra.mrb[176].mxu0 %v18182_v41  ;;  %v15603_v41 = vld [vmem:[#allocation12 + $0xcfc] ss:$28 sps:$4 sm:$0xff]  }
 0x795   :  { %10014 = vmatprep.mubr.bf16.mxu1 %v18206_v46  ;;  %10712 = vmatprep.mubr.bf16.mxu0 %v18206_v46  ;;  %v13159_v29 = vpop.f32.mrb[72].mxu0  ;;  %v15601_v46 = vld [vmem:[#allocation12 + $0xcf8] ss:$28 sps:$4 sm:$0xff]  }
 0x796   :  { %10142 = vmatpush1.bf16.msra.mxu1 %v15590_v23  ;;  %v13160_v12 = vpop.f32.mrb[73].mxu0 }
 0x797   :  { %10143 = vmatprep.subr.bf16.mxu1 %v15595_v2  ;;  %v19078_v15 = vadd.f32 %v13160_v12, %v13159_v29  ;;  %v13162_v1 = vpop.f32.mrb[74].mxu0 }
 0x798   :  { %v13163_v18 = vpop.f32.mrb[75].mxu0 }
 0x799   :  { %v19080_v58 = vadd.f32 %v13163_v18, %v13162_v1 }
 0x79a   :  { %10144 = vmatpush1.bf16.msra.mxu1 %v15593_v38 }
 0x79b   :  { %10145 = vmatprep.subr.bf16.mxu1 %v15600_v47 }
 0x79c   :  { %10015 = vmatmul.mubr.bf16.gmra.mrb[52].mxu1 %v18201_v62  ;;  %10713 = vmatmul.mubr.bf16.gmra.mrb[180].mxu0 %v18201_v62  ;;  %v15611_v62 = vld [vmem:[#allocation12 + $0xd6c] ss:$28 sps:$4 sm:$0xff]  }
 0x79d   :  { %10024 = vmatprep.mubr.bf16.mxu1 %v18226_v30  ;;  %10720 = vmatprep.mubr.bf16.mxu0 %v18226_v30  ;;  %v13165_v43 = vpop.f32.mrb[76].mxu0  ;;  %v15609_v30 = vld [vmem:[#allocation12 + $0xd68] ss:$28 sps:$4 sm:$0xff]  }
 0x79e   :  { %10146 = vmatpush1.bf16.msra.mxu1 %v15598_v33  ;;  %v13166_v42 = vpop.f32.mrb[77].mxu0 }
 0x79f   :  { %10147 = vmatprep.subr.bf16.mxu1 %v15603_v41  ;;  %v19086_v49 = vadd.f32 %v13166_v42, %v13165_v43  ;;  %v13168_v17 = vpop.f32.mrb[78].mxu0  ;;  %v20301_v42 = vld [vmem:[#allocation20_spill] sm:$0xff] }
 0x7a0   :  { %v13169_v34 = vpop.f32.mrb[79].mxu0 }
 0x7a1   :  { %v19088_v16 = vadd.f32 %v13169_v34, %v13168_v17 }
 0x7a2   :  { %10148 = vmatpush1.bf16.msra.mxu1 %v15601_v46 }
 0x7a3   :  { %10149 = vmatprep.subr.bf16.mxu1 %v15608_v36  ;;  %v19124_v36 = vld [vmem:[#allocation13] sm:$0xff] }
 0x7a4   :  { %10025 = vmatmul.mubr.bf16.gmra.mrb[56].mxu1 %v18222_v9  ;;  %10721 = vmatmul.mubr.bf16.gmra.mrb[184].mxu0 %v18222_v9  ;;  %v15619_v9 = vld [vmem:[#allocation12 + $0xddc] ss:$28 sps:$4 sm:$0xff]  }
 0x7a5   :  { %10034 = vmatprep.mubr.bf16.mxu1 %v18246_v28  ;;  %10728 = vmatprep.mubr.bf16.mxu0 %v18246_v28  ;;  %v13171_v48 = vpop.f32.mrb[80].mxu0  ;;  %v15617_v28 = vld [vmem:[#allocation12 + $0xdd8] ss:$28 sps:$4 sm:$0xff]  }
 0x7a6   :  { %10150 = vmatpush1.bf16.msra.mxu1 %v15606_v22  ;;  %v13172_v55 = vpop.f32.mrb[81].mxu0 }
 0x7a7   :  { %10151 = vmatprep.subr.bf16.mxu1 %v15611_v62  ;;  %v19094_v4 = vadd.f32 %v13172_v55, %v13171_v48  ;;  %v13174_v51 = vpop.f32.mrb[82].mxu0 }
 0x7a8   :  { %v13175_v0 = vpop.f32.mrb[83].mxu0 }
 0x7a9   :  { %v19096_v52 = vadd.f32 %v13175_v0, %v13174_v51 }
 0x7aa   :  { %10152 = vmatpush1.bf16.msra.mxu1 %v15609_v30 }
 0x7ab   :  { %10153 = vmatprep.subr.bf16.mxu1 %v15616_v59 }
 0x7ac   :  { %10035 = vmatmul.mubr.bf16.gmra.mrb[60].mxu1 %v18242_v44  ;;  %10729 = vmatmul.mubr.bf16.gmra.mrb[188].mxu0 %v18242_v44 }
 0x7ad   :  { %10044 = vmatprep.mubr.bf16.mxu1 %v18266_v6  ;;  %10736 = vmatprep.mubr.bf16.mxu0 %v18266_v6  ;;  %v13177_v40 = vpop.f32.mrb[84].mxu0 }
 0x7ae   :  { %10154 = vmatpush1.bf16.msra.mxu1 %v15614_v27  ;;  %v13178_v35 = vpop.f32.mrb[85].mxu0 }
 0x7af   :  { %10155 = vmatprep.subr.bf16.mxu1 %v15619_v9  ;;  %v19102_v23 = vadd.f32 %v13178_v35, %v13177_v40  ;;  %v13180_v2 = vpop.f32.mrb[86].mxu0 }
 0x7b0   :  { %v13181_v38 = vpop.f32.mrb[87].mxu0 }
 0x7b1   :  { %v19104_v29 = vadd.f32 %v13181_v38, %v13180_v2  ;;  %v20304_v2 = vld [vmem:[#allocation106_spill] sm:$0xff] }
 0x7b2   :  { %10156 = vmatpush1.bf16.msra.mxu1 %v15617_v28 }
 0x7b4   :  { %10045 = vmatmul.mubr.bf16.gmra.mrb[64].mxu1 %v18262_v24  ;;  %10737 = vmatmul.mubr.bf16.gmra.mrb[192].mxu0 %v18262_v24 }
 0x7b5   :  { %10054 = vmatprep.mubr.bf16.mxu1 %v18286_v50  ;;  %10744 = vmatprep.mubr.bf16.mxu0 %v18286_v50  ;;  %v13183_v44 = vpop.f32.mrb[88].mxu0 }
 0x7b6   :  { %v13184_v6 = vpop.f32.mrb[89].mxu0 }
 0x7b7   :  { %v19110_v47 = vadd.f32 %v13184_v6, %v13183_v44  ;;  %v13186_v12 = vpop.f32.mrb[90].mxu0  ;;  %v20305_v44 = vld [vmem:[#allocation112_spill] sm:$0xff] }
 0x7b8   :  { %v13187_v1 = vpop.f32.mrb[91].mxu0 }
 0x7b9   :  { %v19112_v18 = vadd.f32 %v13187_v1, %v13186_v12 }
 0x7bc   :  { %10055 = vmatmul.mubr.bf16.gmra.mrb[68].mxu1 %v18282_v61  ;;  %10745 = vmatmul.mubr.bf16.gmra.mrb[196].mxu0 %v18282_v61  ;;  %v20302_v61 = vsub.s32 6, %v20301_v42 }
 0x7bd   :  { %10064 = vmatprep.mubr.bf16.mxu1 %v18306_v14  ;;  %10752 = vmatprep.mubr.bf16.mxu0 %v18306_v14  ;;  %v13189_v24 = vpop.f32.mrb[92].mxu0 }
 0x7be   :  { %v13190_v33 = vpop.f32.mrb[93].mxu0  ;;  %v19129_v17 = vrot.slane %v19124_v36, %v20302_v61  ;;  %v20306_v61 = vld [vmem:[#allocation110_spill] sm:$0xff] }
 0x7bf   :  { %v19118_v41 = vadd.f32 %v13190_v33, %v13189_v24  ;;  %v13192_v50 = vpop.f32.mrb[94].mxu0 }
 0x7c0   :  { %v13193_v46 = vpop.f32.mrb[95].mxu0  ;;  %v10353_v22 = vadd.f32 %v18977_v8, %v19129_v17  ;;  %v10361_v27 = vadd.f32 %v18997_v39, %v19129_v17  ;;  %v10364_v40 = vadd.f32 %v19002_v5, %v19129_v17  ;;  %v10369_v12 = vadd.f32 %v19014_v7, %v19129_v17 }
 0x7c1   :  { %v19120_v43 = vadd.f32 %v13193_v46, %v13192_v50  ;;  %v10372_v33 = vadd.f32 %v19016_v60, %v19129_v17 }
 0x7c4   :  { %10065 = vmatmul.mubr.bf16.gmra.mrb[72].mxu1 %v18302_v54  ;;  %10753 = vmatmul.mubr.bf16.gmra.mrb[200].mxu0 %v18302_v54  ;;  %v10356_v54 = vadd.f32 %v18982_v56, %v19129_v17 }
 0x7c5   :  { %10074 = vmatprep.mubr.bf16.mxu1 %v18326_v25  ;;  %10760 = vmatprep.mubr.bf16.mxu0 %v18326_v25  ;;  %v13211_v14 = vpop.f32.mrb[96].mxu0  ;;  %v20303_v25 = vld [vmem:[#allocation108_spill] sm:$0xff] }
 0x7c6   :  { %v13212_v34 = vpop.f32.mrb[97].mxu0 }
 0x7c7   :  { %v13213_v62 = vadd.f32 %v13212_v34, %v13211_v14  ;;  %v13214_v30 = vpop.f32.mrb[98].mxu0  ;;  %v20307_v34 = vld [vmem:[#allocation116_spill] sm:$0xff] }
 0x7c8   :  { %v13215_v48 = vpop.f32.mrb[99].mxu0 }
 0x7c9   :  { %v19137_v59 = vadd.f32 %v13213_v62, %v10353_v22  ;;  %v13216_v55 = vadd.f32 %v13215_v48, %v13214_v30  ;;  %v10377_v62 = vadd.f32 %v19022_v45, %v19129_v17 }
 0x7cb   :  { %v19141_v51 = vadd.f32 %v13216_v55, %v10356_v54  ;;  %v10380_v54 = vadd.f32 %v19024_v53, %v19129_v17 }
 0x7cc   :  { %10075 = vmatmul.mubr.bf16.gmra.mrb[76].mxu1 %v18322_v21  ;;  %10761 = vmatmul.mubr.bf16.gmra.mrb[204].mxu0 %v18322_v21 }
 0x7cd   :  { %10084 = vmatprep.mubr.bf16.mxu1 %v20303_v25  ;;  %10768 = vmatprep.mubr.bf16.mxu0 %v20303_v25 }
 0x7ce   :  { %v13217_v8 = vpop.f32.mrb[100].mxu0 }
 0x7cf   :  { %v13218_v0 = vpop.f32.mrb[101].mxu0 }
 0x7d0   :  { %v13219_v9 = vadd.f32 %v13218_v0, %v13217_v8  ;;  %v13220_v56 = vpop.f32.mrb[102].mxu0  ;;  %v20308_v8 = vld [vmem:[#allocation114_spill] sm:$0xff] }
 0x7d1   :  { %v13221_v28 = vpop.f32.mrb[103].mxu0 }
 0x7d2   :  { %v19149_v35 = vadd.f32 %v13219_v9, %v10361_v27  ;;  %v13222_v21 = vadd.f32 %v13221_v28, %v13220_v56  ;;  %v20309_v27 = vld [vmem:[#allocation118_spill] sm:$0xff]  ;;  %v10385_v56 = vadd.f32 %v19030_v3, %v19129_v17 }
 0x7d4   :  { %10085 = vmatmul.mubr.bf16.gmra.mrb[80].mxu1 %v20304_v2  ;;  %10769 = vmatmul.mubr.bf16.gmra.mrb[208].mxu0 %v20304_v2  ;;  %v19153_v38 = vadd.f32 %v13222_v21, %v10364_v40  ;;  %v10388_v21 = vadd.f32 %v19032_v11, %v19129_v17 }
 0x7d5   :  { %10094 = vmatprep.mubr.bf16.mxu1 %v20305_v44  ;;  %10776 = vmatprep.mubr.bf16.mxu0 %v20305_v44 }
 0x7d6   :  { %v13223_v39 = vpop.f32.mrb[104].mxu0 }
 0x7d7   :  { %v13224_v6 = vpop.f32.mrb[105].mxu0 }
 0x7d8   :  { %v13225_v1 = vadd.f32 %v13224_v6, %v13223_v39  ;;  %v13226_v5 = vpop.f32.mrb[106].mxu0  ;;  %v20310_v39 = vld [vmem:[#allocation66_spill] sm:$0xff] }
 0x7d9   :  { %v13227_v24 = vpop.f32.mrb[107].mxu0 }
 0x7da   :  { %v19161_v50 = vadd.f32 %v13225_v1, %v10369_v12  ;;  %v13228_v46 = vadd.f32 %v13227_v24, %v13226_v5  ;;  %v20311_v12 = vld [vmem:[#allocation83_spill] sm:$0xff]  ;;  %v10393_v5 = vadd.f32 %v19038_v63, %v19129_v17 }
 0x7dc   :  { %10095 = vmatmul.mubr.bf16.gmra.mrb[84].mxu1 %v20306_v61  ;;  %10777 = vmatmul.mubr.bf16.gmra.mrb[212].mxu0 %v20306_v61  ;;  %v19165_v14 = vadd.f32 %v13228_v46, %v10372_v33  ;;  %v10396_v46 = vadd.f32 %v19040_v26, %v19129_v17 }
 0x7dd   :  { %10104 = vmatprep.mubr.bf16.mxu1 %v20307_v34  ;;  %10784 = vmatprep.mubr.bf16.mxu0 %v20307_v34 }
 0x7de   :  { %v13229_v7 = vpop.f32.mrb[108].mxu0 }
 0x7df   :  { %v13230_v22 = vpop.f32.mrb[109].mxu0 }
 0x7e0   :  { %v13231_v30 = vadd.f32 %v13230_v22, %v13229_v7  ;;  %v13232_v60 = vpop.f32.mrb[110].mxu0  ;;  %v20312_v7 = vld [vmem:[#allocation82_spill] sm:$0xff] }
 0x7e1   :  { %v13233_v48 = vpop.f32.mrb[111].mxu0 }
 0x7e2   :  { %v19173_v55 = vadd.f32 %v13231_v30, %v10377_v62  ;;  %v13234_v25 = vadd.f32 %v13233_v48, %v13232_v60  ;;  %v20313_v62 = vld [vmem:[#allocation85_spill] sm:$0xff]  ;;  %v10401_v60 = vadd.f32 %v19046_v20, %v19129_v17 }
 0x7e4   :  { %10105 = vmatmul.mubr.bf16.gmra.mrb[88].mxu1 %v20308_v8  ;;  %10785 = vmatmul.mubr.bf16.gmra.mrb[216].mxu0 %v20308_v8  ;;  %v19177_v0 = vadd.f32 %v13234_v25, %v10380_v54  ;;  %v10404_v25 = vadd.f32 %v19048_v13, %v19129_v17 }
 0x7e5   :  { %10114 = vmatprep.mubr.bf16.mxu1 %v20309_v27  ;;  %10792 = vmatprep.mubr.bf16.mxu0 %v20309_v27 }
 0x7e6   :  { %v13235_v45 = vpop.f32.mrb[112].mxu0 }
 0x7e7   :  { %v13236_v9 = vpop.f32.mrb[113].mxu0 }
 0x7e8   :  { %v13237_v28 = vadd.f32 %v13236_v9, %v13235_v45  ;;  %v13238_v53 = vpop.f32.mrb[114].mxu0  ;;  %v20314_v45 = vld [vmem:[#allocation84_spill] sm:$0xff] }
 0x7e9   :  { %v13239_v40 = vpop.f32.mrb[115].mxu0 }
 0x7ea   :  { %v19185_v2 = vadd.f32 %v13237_v28, %v10385_v56  ;;  %v13240_v44 = vadd.f32 %v13239_v40, %v13238_v53  ;;  %v20315_v56 = vld [vmem:[#allocation87_spill] sm:$0xff]  ;;  %v10409_v53 = vadd.f32 %v19054_v32, %v19129_v17 }
 0x7ec   :  { %10115 = vmatmul.mubr.bf16.gmra.mrb[92].mxu1 %v20310_v39  ;;  %10793 = vmatmul.mubr.bf16.gmra.mrb[220].mxu0 %v20310_v39  ;;  %v19189_v6 = vadd.f32 %v13240_v44, %v10388_v21  ;;  %v10412_v44 = vadd.f32 %v19056_v37, %v19129_v17 }
 0x7ed   :  { %10157 = vmatprep.mubr.bf16.mxu1 %v20311_v12  ;;  %10833 = vmatprep.mubr.bf16.mxu0 %v20311_v12 }
 0x7ef   :  { %v13241_v3 = vpop.f32.mrb[116].mxu0 }
 0x7f0   :  { %v13242_v1 = vpop.f32.mrb[117].mxu0 }
 0x7f1   :  { %v13243_v24 = vadd.f32 %v13242_v1, %v13241_v3  ;;  %v13244_v11 = vpop.f32.mrb[118].mxu0  ;;  %v20316_v3 = vld [vmem:[#allocation86_spill] sm:$0xff] }
 0x7f2   :  { %v13245_v33 = vpop.f32.mrb[119].mxu0 }
 0x7f3   :  { %v19197_v61 = vadd.f32 %v13243_v24, %v10393_v5  ;;  %v13246_v34 = vadd.f32 %v13245_v33, %v13244_v11  ;;  %v20317_v5 = vld [vmem:[#allocation89_spill] sm:$0xff]  ;;  %v10417_v11 = vadd.f32 %v19062_v10, %v19129_v17 }
 0x7f4   :  { %10158 = vmatmul.mubr.bf16.vlgmr.msra.gmra.mrb[32].mxu1 %v20312_v7  ;;  %10834 = vmatmul.mubr.bf16.vlgmr.msra.gmra.mrb[224].mxu0 %v20312_v7 }
 0x7f5   :  { %v19201_v22 = vadd.f32 %v13246_v34, %v10396_v46  ;;  %10167 = vmatprep.mubr.bf16.mxu1 %v20313_v62  ;;  %10841 = vmatprep.mubr.bf16.mxu0 %v20313_v62  ;;  %v10420_v34 = vadd.f32 %v19064_v57, %v19129_v17 }
 0x7f7   :  { %v13247_v63 = vpop.f32.mrb[120].mxu0 }
 0x7f8   :  { %v13248_v30 = vpop.f32.mrb[121].mxu0 }
 0x7f9   :  { %v13249_v48 = vadd.f32 %v13248_v30, %v13247_v63  ;;  %v13250_v26 = vpop.f32.mrb[122].mxu0  ;;  %v20318_v63 = vld [vmem:[#allocation88_spill] sm:$0xff] }
 0x7fa   :  { %v13251_v54 = vpop.f32.mrb[123].mxu0 }
 0x7fb   :  { %v19209_v8 = vadd.f32 %v13249_v48, %v10401_v60  ;;  %v13252_v27 = vadd.f32 %v13251_v54, %v13250_v26  ;;  %v20319_v60 = vld [vmem:[#allocation91_spill] sm:$0xff]  ;;  %v10425_v26 = vadd.f32 %v19070_v19, %v19129_v17 }
 0x7fc   :  { %10168 = vmatmul.mubr.bf16.gmra.mrb[36].mxu1 %v20314_v45  ;;  %10842 = vmatmul.mubr.bf16.gmra.mrb[228].mxu0 %v20314_v45 }
 0x7fd   :  { %v19213_v9 = vadd.f32 %v13252_v27, %v10404_v25  ;;  %10177 = vmatprep.mubr.bf16.mxu1 %v20315_v56  ;;  %10849 = vmatprep.mubr.bf16.mxu0 %v20315_v56  ;;  %v10428_v27 = vadd.f32 %v19072_v31, %v19129_v17 }
 0x7ff   :  { %v13253_v20 = vpop.f32.mrb[124].mxu0 }
 0x800   :  { %v13254_v28 = vpop.f32.mrb[125].mxu0 }
 0x801   :  { %v13255_v40 = vadd.f32 %v13254_v28, %v13253_v20  ;;  %v13256_v13 = vpop.f32.mrb[126].mxu0  ;;  %v20320_v20 = vld [vmem:[#allocation90_spill] sm:$0xff] }
 0x802   :  { %v13257_v21 = vpop.f32.mrb[127].mxu0 }
 0x803   :  { %v19221_v39 = vadd.f32 %v13255_v40, %v10409_v53  ;;  %v13258_v12 = vadd.f32 %v13257_v21, %v13256_v13  ;;  %v20321_v53 = vld [vmem:[#allocation93_spill] sm:$0xff]  ;;  %v10433_v13 = vadd.f32 %v19078_v15, %v19129_v17 }
 0x804   :  { %10178 = vmatmul.mubr.bf16.gmra.mrb[40].mxu1 %v20316_v3  ;;  %10850 = vmatmul.mubr.bf16.gmra.mrb[232].mxu0 %v20316_v3 }
 0x805   :  { %v19225_v1 = vadd.f32 %v13258_v12, %v10412_v44  ;;  %10187 = vmatprep.mubr.bf16.mxu1 %v20317_v5  ;;  %10857 = vmatprep.mubr.bf16.mxu0 %v20317_v5  ;;  %v10436_v12 = vadd.f32 %v19080_v58, %v19129_v17 }
 0x807   :  { %v13259_v32 = vpop.f32.mrb[128].mxu0 }
 0x808   :  { %v13260_v24 = vpop.f32.mrb[129].mxu0 }
 0x809   :  { %v13261_v33 = vadd.f32 %v13260_v24, %v13259_v32  ;;  %v13262_v37 = vpop.f32.mrb[130].mxu0  ;;  %v20322_v32 = vld [vmem:[#allocation92_spill] sm:$0xff] }
 0x80a   :  { %v13263_v46 = vpop.f32.mrb[131].mxu0 }
 0x80b   :  { %v19233_v7 = vadd.f32 %v13261_v33, %v10417_v11  ;;  %v13264_v62 = vadd.f32 %v13263_v46, %v13262_v37  ;;  %v20323_v11 = vld [vmem:[#allocation95_spill] sm:$0xff]  ;;  %v10441_v37 = vadd.f32 %v19086_v49, %v19129_v17 }
 0x80c   :  { %10188 = vmatmul.mubr.bf16.gmra.mrb[44].mxu1 %v20318_v63  ;;  %10858 = vmatmul.mubr.bf16.gmra.mrb[236].mxu0 %v20318_v63 }
 0x80d   :  { %v19237_v30 = vadd.f32 %v13264_v62, %v10420_v34  ;;  %10197 = vmatprep.mubr.bf16.mxu1 %v20319_v60  ;;  %10865 = vmatprep.mubr.bf16.mxu0 %v20319_v60  ;;  %v10444_v62 = vadd.f32 %v19088_v16, %v19129_v17 }
 0x80f   :  { %v13265_v10 = vpop.f32.mrb[132].mxu0 }
 0x810   :  { %v13266_v48 = vpop.f32.mrb[133].mxu0 }
 0x811   :  { %v13267_v54 = vadd.f32 %v13266_v48, %v13265_v10  ;;  %v13268_v57 = vpop.f32.mrb[134].mxu0  ;;  %v20324_v10 = vld [vmem:[#allocation94_spill] sm:$0xff] }
 0x812   :  { %v13269_v25 = vpop.f32.mrb[135].mxu0 }
 0x813   :  { %v19245_v45 = vadd.f32 %v13267_v54, %v10425_v26  ;;  %v13270_v56 = vadd.f32 %v13269_v25, %v13268_v57  ;;  %v20325_v26 = vld [vmem:[#allocation97_spill] sm:$0xff]  ;;  %v10449_v57 = vadd.f32 %v19094_v4, %v19129_v17 }
 0x814   :  { %10198 = vmatmul.mubr.bf16.gmra.mrb[48].mxu1 %v20320_v20  ;;  %10866 = vmatmul.mubr.bf16.gmra.mrb[240].mxu0 %v20320_v20 }
 0x815   :  { %v19249_v28 = vadd.f32 %v13270_v56, %v10428_v27  ;;  %10207 = vmatprep.mubr.bf16.mxu1 %v20321_v53  ;;  %10873 = vmatprep.mubr.bf16.mxu0 %v20321_v53  ;;  %v10452_v56 = vadd.f32 %v19096_v52, %v19129_v17 }
 0x817   :  { %v13271_v19 = vpop.f32.mrb[136].mxu0 }
 0x818   :  { %v13272_v40 = vpop.f32.mrb[137].mxu0 }
 0x819   :  { %v13273_v21 = vadd.f32 %v13272_v40, %v13271_v19  ;;  %v13274_v31 = vpop.f32.mrb[138].mxu0  ;;  %v20326_v19 = vld [vmem:[#allocation96_spill] sm:$0xff] }
 0x81a   :  { %v13275_v44 = vpop.f32.mrb[139].mxu0 }
 0x81b   :  { %v19257_v3 = vadd.f32 %v13273_v21, %v10433_v13  ;;  %v13276_v5 = vadd.f32 %v13275_v44, %v13274_v31  ;;  %v20327_v13 = vld [vmem:[#allocation99_spill] sm:$0xff]  ;;  %v10457_v31 = vadd.f32 %v19102_v23, %v19129_v17 }
 0x81c   :  { %10208 = vmatmul.mubr.bf16.gmra.mrb[52].mxu1 %v20322_v32  ;;  %10874 = vmatmul.mubr.bf16.gmra.mrb[244].mxu0 %v20322_v32 }
 0x81d   :  { %v19261_v24 = vadd.f32 %v13276_v5, %v10436_v12  ;;  %10217 = vmatprep.mubr.bf16.mxu1 %v20323_v11  ;;  %10881 = vmatprep.mubr.bf16.mxu0 %v20323_v11  ;;  %v10460_v5 = vadd.f32 %v19104_v29, %v19129_v17 }
 0x81f   :  { %v13277_v15 = vpop.f32.mrb[140].mxu0 }
 0x820   :  { %v13278_v33 = vpop.f32.mrb[141].mxu0 }
 0x821   :  { %v13279_v46 = vadd.f32 %v13278_v33, %v13277_v15  ;;  %v13280_v58 = vpop.f32.mrb[142].mxu0  ;;  %v20328_v15 = vld [vmem:[#allocation98_spill] sm:$0xff] }
 0x822   :  { %v13281_v34 = vpop.f32.mrb[143].mxu0 }
 0x823   :  { %v19269_v63 = vadd.f32 %v13279_v46, %v10441_v37  ;;  %v13282_v60 = vadd.f32 %v13281_v34, %v13280_v58  ;;  %v20329_v37 = vld [vmem:[#allocation101_spill] sm:$0xff]  ;;  %v10465_v58 = vadd.f32 %v19110_v47, %v19129_v17 }
 0x824   :  { %10218 = vmatmul.mubr.bf16.gmra.mrb[56].mxu1 %v20324_v10  ;;  %10882 = vmatmul.mubr.bf16.gmra.mrb[248].mxu0 %v20324_v10 }
 0x825   :  { %v19273_v48 = vadd.f32 %v13282_v60, %v10444_v62  ;;  %10227 = vmatprep.mubr.bf16.mxu1 %v20325_v26  ;;  %10889 = vmatprep.mubr.bf16.mxu0 %v20325_v26  ;;  %v10468_v60 = vadd.f32 %v19112_v18, %v19129_v17 }
 0x827   :  { %v13283_v49 = vpop.f32.mrb[144].mxu0 }
 0x828   :  { %v13284_v54 = vpop.f32.mrb[145].mxu0 }
 0x829   :  { %v13285_v25 = vadd.f32 %v13284_v54, %v13283_v49  ;;  %v13286_v16 = vpop.f32.mrb[146].mxu0  ;;  %v20330_v49 = vld [vmem:[#allocation100_spill] sm:$0xff] }
 0x82a   :  { %v13287_v27 = vpop.f32.mrb[147].mxu0 }
 0x82b   :  { %v19281_v20 = vadd.f32 %v13285_v25, %v10449_v57  ;;  %v13288_v53 = vadd.f32 %v13287_v27, %v13286_v16  ;;  %v20331_v57 = vld [vmem:[#allocation103_spill] sm:$0xff]  ;;  %v10473_v16 = vadd.f32 %v19118_v41, %v19129_v17 }
 0x82c   :  { %10228 = vmatmul.mubr.bf16.gmra.mrb[60].mxu1 %v20326_v19  ;;  %10890 = vmatmul.mubr.bf16.gmra.mrb[252].mxu0 %v20326_v19 }
 0x82d   :  { %v19285_v40 = vadd.f32 %v13288_v53, %v10452_v56  ;;  %10237 = vmatprep.mubr.bf16.mxu1 %v20327_v13  ;;  %10897 = vmatprep.mubr.bf16.mxu0 %v20327_v13  ;;  %v10476_v53 = vadd.f32 %v19120_v43, %v19129_v17 }
 0x82f   :  { %v13289_v4 = vpop.f32.mrb[148].mxu0 }
 0x830   :  { %v13290_v21 = vpop.f32.mrb[149].mxu0 }
 0x831   :  { %v13291_v44 = vadd.f32 %v13290_v21, %v13289_v4  ;;  %v13292_v52 = vpop.f32.mrb[150].mxu0  ;;  %v20332_v4 = vld [vmem:[#allocation102_spill] sm:$0xff] }
 0x832   :  { %v13293_v12 = vpop.f32.mrb[151].mxu0 }
 0x833   :  { %v19293_v32 = vadd.f32 %v13291_v44, %v10457_v31  ;;  %v13294_v11 = vadd.f32 %v13293_v12, %v13292_v52  ;;  %v20333_v31 = vld [vmem:[#allocation105_spill] sm:$0xff] }
 0x834   :  { %10238 = vmatmul.mubr.bf16.gmra.mrb[64].mxu1 %v20328_v15  ;;  %10898 = vmatmul.mubr.bf16.gmra.mrb[0].mxu0 %v20328_v15 }
 0x835   :  { %v19297_v33 = vadd.f32 %v13294_v11, %v10460_v5  ;;  %10247 = vmatprep.mubr.bf16.mxu1 %v20329_v37  ;;  %10905 = vmatprep.mubr.bf16.mxu0 %v20329_v37  ;;  %v20334_v11 = vld [vmem:[#allocation104_spill] sm:$0xff]  ;;  %v20335_v37 = vld [vmem:[#allocation109_spill] sm:$0xff] }
 0x837   :  { %v13295_v23 = vpop.f32.mrb[152].mxu0 }
 0x838   :  { %v13296_v46 = vpop.f32.mrb[153].mxu0 }
 0x839   :  { %v13297_v34 = vadd.f32 %v13296_v46, %v13295_v23  ;;  %v13298_v29 = vpop.f32.mrb[154].mxu0 }
 0x83a   :  { %v13299_v62 = vpop.f32.mrb[155].mxu0 }
 0x83b   :  { %v19305_v10 = vadd.f32 %v13297_v34, %v10465_v58  ;;  %v13300_v26 = vadd.f32 %v13299_v62, %v13298_v29 }
 0x83c   :  { %10248 = vmatmul.mubr.bf16.gmra.mrb[68].mxu1 %v20330_v49  ;;  %10906 = vmatmul.mubr.bf16.gmra.mrb[4].mxu0 %v20330_v49 }
 0x83d   :  { %v19309_v54 = vadd.f32 %v13300_v26, %v10468_v60  ;;  %10257 = vmatprep.mubr.bf16.mxu1 %v20331_v57  ;;  %10913 = vmatprep.mubr.bf16.mxu0 %v20331_v57  ;;  %v20336_v60 = vld [vmem:[#allocation107_spill] sm:$0xff]  ;;  %v20337_v26 = vld [vmem:[#allocation113_spill] sm:$0xff] }
 0x83f   :  { %v13301_v47 = vpop.f32.mrb[156].mxu0 }
 0x840   :  { %v13302_v25 = vpop.f32.mrb[157].mxu0 }
 0x841   :  { %v13303_v27 = vadd.f32 %v13302_v25, %v13301_v47  ;;  %v13304_v18 = vpop.f32.mrb[158].mxu0 }
 0x842   :  { %v13305_v56 = vpop.f32.mrb[159].mxu0 }
 0x843   :  { %v19317_v19 = vadd.f32 %v13303_v27, %v10473_v16  ;;  %v13306_v13 = vadd.f32 %v13305_v56, %v13304_v18  ;;  %v20338_v18 = vld [vmem:[#allocation111_spill] sm:$0xff]  ;;  %v20339_v56 = vld [vmem:[#allocation117_spill] sm:$0xff] }
 0x844   :  { %10258 = vmatmul.mubr.bf16.gmra.mrb[72].mxu1 %v20332_v4  ;;  %10914 = vmatmul.mubr.bf16.gmra.mrb[8].mxu0 %v20332_v4 }
 0x845   :  { %v19321_v21 = vadd.f32 %v13306_v13, %v10476_v53  ;;  %10267 = vmatprep.mubr.bf16.mxu1 %v20333_v31  ;;  %10921 = vmatprep.mubr.bf16.mxu0 %v20333_v31 }
 0x847   :  { %v13323_v41 = vpop.f32.mrb[160].mxu0 }
 0x848   :  { %v13324_v44 = vpop.f32.mrb[161].mxu0 }
 0x849   :  { %v13325_v52 = vadd.f32 %v13324_v44, %v13323_v41  ;;  %v13326_v12 = vpop.f32.mrb[162].mxu0 }
 0x84a   :  { %v13327_v5 = vpop.f32.mrb[163].mxu0 }
 0x84b   :  { %v19326_v43 = vadd.f32 %v13325_v52, %v19137_v59  ;;  %v13328_v17 = vadd.f32 %v13327_v5, %v13326_v12  ;;  %v20340_v52 = vld [vmem:[#allocation115_spill] sm:$0xff] }
 0x84c   :  { %10268 = vmatmul.mubr.bf16.gmra.mrb[76].mxu1 %v20334_v11  ;;  %10922 = vmatmul.mubr.bf16.gmra.mrb[12].mxu0 %v20334_v11  ;;  %v20341_v12 = vld [vmem:[#allocation119_spill] sm:$0xff] }
 0x84d   :  { %v19331_v15 = vadd.f32 %v13328_v17, %v19141_v51  ;;  %10277 = vmatprep.mubr.bf16.mxu1 %v20335_v37  ;;  %10929 = vmatprep.mubr.bf16.mxu0 %v20335_v37 }
 0x84f   :  { %v13329_v23 = vpop.f32.mrb[164].mxu0 }
 0x850   :  { %v13330_v46 = vpop.f32.mrb[165].mxu0 }
 0x851   :  { %v13331_v58 = vadd.f32 %v13330_v46, %v13329_v23  ;;  %v13332_v34 = vpop.f32.mrb[166].mxu0 }
 0x852   :  { %v13333_v29 = vpop.f32.mrb[167].mxu0 }
 0x853   :  { %v19336_v59 = vadd.f32 %v13331_v58, %v19149_v35  ;;  %v13334_v62 = vadd.f32 %v13333_v29, %v13332_v34  ;;  %v20342_v58 = vld [vmem:[#allocation72_spill] sm:$0xff] }
 0x854   :  { %10278 = vmatmul.mubr.bf16.gmra.mrb[80].mxu1 %v20336_v60  ;;  %10930 = vmatmul.mubr.bf16.gmra.mrb[16].mxu0 %v20336_v60 }
 0x855   :  { %v19341_v51 = vadd.f32 %v13334_v62, %v19153_v38  ;;  %10287 = vmatprep.mubr.bf16.mxu1 %v20337_v26  ;;  %10937 = vmatprep.mubr.bf16.mxu0 %v20337_v26 }
 0x857   :  { %v13335_v49 = vpop.f32.mrb[168].mxu0 }
 0x858   :  { %v13336_v57 = vpop.f32.mrb[169].mxu0 }
 0x859   :  { %v13337_v47 = vadd.f32 %v13336_v57, %v13335_v49  ;;  %v13338_v25 = vpop.f32.mrb[170].mxu0 }
 0x85a   :  { %v13339_v16 = vpop.f32.mrb[171].mxu0 }
 0x85b   :  { %v19346_v35 = vadd.f32 %v13337_v47, %v19161_v50  ;;  %v13340_v27 = vadd.f32 %v13339_v16, %v13338_v25 }
 0x85c   :  { %10288 = vmatmul.mubr.bf16.gmra.mrb[84].mxu1 %v20338_v18  ;;  %10938 = vmatmul.mubr.bf16.gmra.mrb[20].mxu0 %v20338_v18 }
 0x85d   :  { %v19351_v38 = vadd.f32 %v13340_v27, %v19165_v14  ;;  %10297 = vmatprep.mubr.bf16.mxu1 %v20339_v56  ;;  %10945 = vmatprep.mubr.bf16.mxu0 %v20339_v56 }
 0x85f   :  { %v13341_v53 = vpop.f32.mrb[172].mxu0 }
 0x860   :  { %v13342_v13 = vpop.f32.mrb[173].mxu0 }
 0x861   :  { %v13343_v4 = vadd.f32 %v13342_v13, %v13341_v53  ;;  %v13344_v31 = vpop.f32.mrb[174].mxu0 }
 0x862   :  { %v13345_v41 = vpop.f32.mrb[175].mxu0 }
 0x863   :  { %v19356_v50 = vadd.f32 %v13343_v4, %v19173_v55  ;;  %v13346_v44 = vadd.f32 %v13345_v41, %v13344_v31 }
 0x864   :  { %10298 = vmatmul.mubr.bf16.gmra.mrb[88].mxu1 %v20340_v52  ;;  %10946 = vmatmul.mubr.bf16.gmra.mrb[24].mxu0 %v20340_v52 }
 0x865   :  { %v19361_v14 = vadd.f32 %v13346_v44, %v19177_v0  ;;  %10307 = vmatprep.mubr.bf16.mxu1 %v20341_v12  ;;  %10953 = vmatprep.mubr.bf16.mxu0 %v20341_v12 }
 0x867   :  { %v13347_v5 = vpop.f32.mrb[176].mxu0 }
 0x868   :  { %v13348_v17 = vpop.f32.mrb[177].mxu0 }
 0x869   :  { %v13349_v11 = vadd.f32 %v13348_v17, %v13347_v5  ;;  %v13350_v37 = vpop.f32.mrb[178].mxu0 }
 0x86a   :  { %v13351_v23 = vpop.f32.mrb[179].mxu0 }
 0x86b   :  { %v19366_v55 = vadd.f32 %v13349_v11, %v19185_v2  ;;  %v13352_v46 = vadd.f32 %v13351_v23, %v13350_v37 }
 0x86c   :  { %10308 = vmatmul.mubr.bf16.gmra.mrb[92].mxu1 %v20342_v58  ;;  %10954 = vmatmul.mubr.bf16.gmra.mrb[28].mxu0 %v20342_v58 }
 0x86d   :  { %v19371_v0 = vadd.f32 %v13352_v46, %v19189_v6 }
 0x86f   :  { %v13353_v34 = vpop.f32.mrb[180].mxu0 }
 0x870   :  { %v13354_v29 = vpop.f32.mrb[181].mxu0 }
 0x871   :  { %v13355_v62 = vadd.f32 %v13354_v29, %v13353_v34  ;;  %v13356_v60 = vpop.f32.mrb[182].mxu0 }
 0x872   :  { %v13357_v26 = vpop.f32.mrb[183].mxu0 }
 0x873   :  { %v19374_v49 = vadd.f32 %v13355_v62, %v19197_v61  ;;  %v13358_v57 = vadd.f32 %v13357_v26, %v13356_v60 }
 0x875   :  { %v19377_v2 = vadd.f32 %v13358_v57, %v19201_v22 }
 0x877   :  { %v13359_v47 = vpop.f32.mrb[184].mxu0 }
 0x878   :  { %v13360_v25 = vpop.f32.mrb[185].mxu0 }
 0x879   :  { %v13361_v16 = vadd.f32 %v13360_v25, %v13359_v47  ;;  %v13362_v27 = vpop.f32.mrb[186].mxu0 }
 0x87a   :  { %v13363_v18 = vpop.f32.mrb[187].mxu0 }
 0x87b   :  { %v19380_v6 = vadd.f32 %v13361_v16, %v19209_v8  ;;  %v13364_v56 = vadd.f32 %v13363_v18, %v13362_v27 }
 0x87d   :  { %v19383_v53 = vadd.f32 %v13364_v56, %v19213_v9 }
 0x87f   :  { %v13365_v13 = vpop.f32.mrb[188].mxu0 }
 0x880   :  { %v13366_v4 = vpop.f32.mrb[189].mxu0 }
 0x881   :  { %v13367_v61 = vadd.f32 %v13366_v4, %v13365_v13  ;;  %v13368_v31 = vpop.f32.mrb[190].mxu0 }
 0x882   :  { %v13369_v41 = vpop.f32.mrb[191].mxu0 }
 0x883   :  { %v19386_v22 = vadd.f32 %v13367_v61, %v19221_v39  ;;  %v13370_v44 = vadd.f32 %v13369_v41, %v13368_v31 }
 0x885   :  { %v19389_v52 = vadd.f32 %v13370_v44, %v19225_v1 }
 0x887   :  { %v13371_v12 = vpop.f32.mrb[192].mxu0 }
 0x888   :  { %v13372_v5 = vpop.f32.mrb[193].mxu0 }
 0x889   :  { %v13373_v8 = vadd.f32 %v13372_v5, %v13371_v12  ;;  %v13374_v17 = vpop.f32.mrb[194].mxu0 }
 0x88a   :  { %v13375_v11 = vpop.f32.mrb[195].mxu0 }
 0x88b   :  { %v19392_v9 = vadd.f32 %v13373_v8, %v19233_v7  ;;  %v13376_v37 = vadd.f32 %v13375_v11, %v13374_v17 }
 0x88d   :  { %v19395_v23 = vadd.f32 %v13376_v37, %v19237_v30 }
 0x88f   :  { %v13377_v46 = vpop.f32.mrb[196].mxu0 }
 0x890   :  { %v13378_v58 = vpop.f32.mrb[197].mxu0 }
 0x891   :  { %v13379_v39 = vadd.f32 %v13378_v58, %v13377_v46  ;;  %v13380_v34 = vpop.f32.mrb[198].mxu0 }
 0x892   :  { %v13381_v29 = vpop.f32.mrb[199].mxu0 }
 0x893   :  { %v19398_v1 = vadd.f32 %v13379_v39, %v19245_v45  ;;  %v13382_v62 = vadd.f32 %v13381_v29, %v13380_v34 }
 0x895   :  { %v19401_v60 = vadd.f32 %v13382_v62, %v19249_v28 }
 0x897   :  { %v13383_v26 = vpop.f32.mrb[200].mxu0 }
 0x898   :  { %v13384_v57 = vpop.f32.mrb[201].mxu0 }
 0x899   :  { %v13385_v7 = vadd.f32 %v13384_v57, %v13383_v26  ;;  %v13386_v47 = vpop.f32.mrb[202].mxu0 }
 0x89a   :  { %v13387_v25 = vpop.f32.mrb[203].mxu0 }
 0x89b   :  { %v19404_v30 = vadd.f32 %v13385_v7, %v19257_v3  ;;  %v13388_v16 = vadd.f32 %v13387_v25, %v13386_v47 }
 0x89d   :  { %v19407_v27 = vadd.f32 %v13388_v16, %v19261_v24 }
 0x89f   :  { %v13389_v18 = vpop.f32.mrb[204].mxu0 }
 0x8a0   :  { %v13390_v56 = vpop.f32.mrb[205].mxu0 }
 0x8a1   :  { %v13391_v45 = vadd.f32 %v13390_v56, %v13389_v18  ;;  %v13392_v13 = vpop.f32.mrb[206].mxu0 }
 0x8a2   :  { %v13393_v4 = vpop.f32.mrb[207].mxu0 }
 0x8a3   :  { %v19410_v28 = vadd.f32 %v13391_v45, %v19269_v63  ;;  %v13394_v61 = vadd.f32 %v13393_v4, %v13392_v13  ;;  %v20343_v13 = vsub.s32 4, %v20301_v42 }
 0x8a5   :  { %v19413_v31 = vadd.f32 %v13394_v61, %v19273_v48  ;;  %v19439_v4 = vrot.slane %v19124_v36, %v20343_v13 }
 0x8a7   :  { %v13395_v41 = vpop.f32.mrb[208].mxu0 }
 0x8a8   :  { %v13396_v44 = vpop.f32.mrb[209].mxu0 }
 0x8a9   :  { %v13397_v3 = vadd.f32 %v13396_v44, %v13395_v41  ;;  %v13398_v12 = vpop.f32.mrb[210].mxu0 }
 0x8aa   :  { %v13399_v5 = vpop.f32.mrb[211].mxu0 }
 0x8ab   :  { %v19416_v24 = vadd.f32 %v13397_v3, %v19281_v20  ;;  %v13400_v8 = vadd.f32 %v13399_v5, %v13398_v12 }
 0x8ad   :  { %v19419_v17 = vadd.f32 %v13400_v8, %v19285_v40 }
 0x8af   :  { %v13401_v11 = vpop.f32.mrb[212].mxu0 }
 0x8b0   :  { %v13402_v37 = vpop.f32.mrb[213].mxu0 }
 0x8b1   :  { %v13403_v63 = vadd.f32 %v13402_v37, %v13401_v11  ;;  %v13404_v46 = vpop.f32.mrb[214].mxu0 }
 0x8b2   :  { %v13405_v58 = vpop.f32.mrb[215].mxu0 }
 0x8b3   :  { %v19422_v48 = vadd.f32 %v13403_v63, %v19293_v32  ;;  %v13406_v39 = vadd.f32 %v13405_v58, %v13404_v46 }
 0x8b5   :  { %v19425_v34 = vadd.f32 %v13406_v39, %v19297_v33 }
 0x8b7   :  { %v13407_v29 = vpop.f32.mrb[216].mxu0 }
 0x8b8   :  { %v13408_v62 = vpop.f32.mrb[217].mxu0 }
 0x8b9   :  { %v13409_v20 = vadd.f32 %v13408_v62, %v13407_v29  ;;  %v13410_v26 = vpop.f32.mrb[218].mxu0 }
 0x8ba   :  { %v13411_v57 = vpop.f32.mrb[219].mxu0 }
 0x8bb   :  { %v19428_v40 = vadd.f32 %v13409_v20, %v19305_v10  ;;  %v13412_v7 = vadd.f32 %v13411_v57, %v13410_v26 }
 0x8bd   :  { %v19431_v47 = vadd.f32 %v13412_v7, %v19309_v54  ;;  %v20344_v54 = vsub.s32 5, %v20301_v42 }
 0x8bf   :  { %v13413_v25 = vpop.f32.mrb[220].mxu0  ;;  %v19447_v61 = vrot.slane %v19124_v36, %v20344_v54 }
 0x8c0   :  { %v13414_v16 = vpop.f32.mrb[221].mxu0 }
 0x8c1   :  { %v13415_v32 = vadd.f32 %v13414_v16, %v13413_v25  ;;  %v13416_v18 = vpop.f32.mrb[222].mxu0 }
 0x8c2   :  { %v13417_v56 = vpop.f32.mrb[223].mxu0 }
 0x8c3   :  { %v19434_v33 = vadd.f32 %v13415_v32, %v19317_v19  ;;  %v13418_v45 = vadd.f32 %v13417_v56, %v13416_v18 }
 0x8c5   :  { %v19442_v10 = vadd.f32 %v13418_v45, %v19321_v21 }
 0x8c7   :  { %v10159_v41 = vpop.f32.mrb[32].mxu1  ;;  %v13435_v44 = vpop.f32.mrb[224].mxu0 }
 0x8c8   :  { %v13931_v3 = vadd.f32 %v10159_v41, %v19439_v4  ;;  %v10161_v19 = vpop.f32.mrb[33].mxu1  ;;  %v13436_v12 = vpop.f32.mrb[225].mxu0 }
 0x8c9   :  { %v13932_v5 = vadd.f32 %v10161_v19, %v19447_v61  ;;  %v13437_v8 = vadd.f32 %v13436_v12, %v13435_v44  ;;  %v10163_v11 = vpop.f32.mrb[34].mxu1  ;;  %v13438_v37 = vpop.f32.mrb[226].mxu0 }
 0x8ca   :  { %15876 = vtanh.f32 %v13931_v3  ;;  %v13933_v21 = vadd.f32 %v10163_v11, %v19439_v4  ;;  %v10165_v63 = vpop.f32.mrb[35].mxu1  ;;  %v13439_v46 = vpop.f32.mrb[227].mxu0 }
 0x8cb   :  { %15878 = vtanh.f32 %v13932_v5  ;;  %v10836_v36 = vadd.f32 %v13437_v8, %v19326_v43  ;;  %v13934_v42 = vadd.f32 %v10165_v63, %v19447_v61  ;;  %v13440_v58 = vadd.f32 %v13439_v46, %v13438_v37 }
 0x8cc   :  { %15880 = vtanh.f32 %v13933_v21 }
 0x8cd   :  { %15882 = vtanh.f32 %v10836_v36  ;;  %v10839_v39 = vadd.f32 %v13440_v58, %v19331_v15 }
 0x8ce   :  { %15884 = vtanh.f32 %v13934_v42 }
 0x8cf   :  { %15886 = vtanh.f32 %v10839_v39  ;;  %v10169_v29 = vpop.f32.mrb[36].mxu1  ;;  %v13441_v62 = vpop.f32.mrb[228].mxu0 }
 0x8d0   :  { %v13935_v20 = vadd.f32 %v10169_v29, %v19439_v4  ;;  %v10171_v26 = vpop.f32.mrb[37].mxu1  ;;  %v13442_v57 = vpop.f32.mrb[229].mxu0 }
 0x8d1   :  { %v13936_v7 = vadd.f32 %v10171_v26, %v19447_v61  ;;  %v13443_v25 = vadd.f32 %v13442_v57, %v13441_v62  ;;  %v10173_v16 = vpop.f32.mrb[38].mxu1  ;;  %v13444_v43 = vpop.f32.mrb[230].mxu0 }
 0x8d2   :  { %15888 = vtanh.f32 %v13935_v20  ;;  %v13937_v32 = vadd.f32 %v10173_v16, %v19439_v4  ;;  %v10175_v18 = vpop.f32.mrb[39].mxu1  ;;  %v13445_v56 = vpop.f32.mrb[231].mxu0 }
 0x8d3   :  { %15890 = vtanh.f32 %v13936_v7  ;;  %v10844_v15 = vadd.f32 %v13443_v25, %v19336_v59  ;;  %v13938_v45 = vadd.f32 %v10175_v18, %v19447_v61  ;;  %v13446_v13 = vadd.f32 %v13445_v56, %v13444_v43 }
 0x8d4   :  { %v15877_v54 = vpop.eup %15876  ;;  %15892 = vtanh.f32 %v13937_v32 }
 0x8d5   :  { %v15879_v41 = vpop.eup %15878  ;;  %15894 = vtanh.f32 %v10844_v15  ;;  %v10847_v44 = vadd.f32 %v13446_v13, %v19341_v51 }
 0x8d6   :  { %v15881_v3 = vpop.eup %15880  ;;  %v12957_v19 = vpack.c.bf16 %v15879_v41, %v15877_v54  ;;  %15896 = vtanh.f32 %v13938_v45 }
 0x8d7   :  { %v15883_v12 = vpop.eup %15882  ;;  %15898 = vtanh.f32 %v10847_v44  ;;  %v10179_v5 = vpop.f32.mrb[40].mxu1 }
 0x8d8   :  { %v13447_v8 = vpop.f32.mrb[232].mxu0  ;;  %v15885_v11 = vpop.eup %15884  ;;  %11892 = vst [vmem:[%s19746_s9 + $0x10] sm:$0xff] %v12957_v19  ;;  %v12958_v59 = vpack.c.bf16 %v15883_v12, %v15883_v12  ;;  %v13939_v37 = vadd.f32 %v10179_v5, %v19439_v4 }
 0x8d9   :  { %v10181_v21 = vpop.f32.mrb[41].mxu1  ;;  %v13448_v63 = vpop.f32.mrb[233].mxu0  ;;  %v12961_v36 = vpack.c.bf16 %v15885_v11, %v15881_v3 }
 0x8da   :  { %v15887_v46 = vpop.eup %15886  ;;  %v13940_v51 = vadd.f32 %v10181_v21, %v19447_v61  ;;  %v13449_v42 = vadd.f32 %v13448_v63, %v13447_v8  ;;  %v10183_v58 = vpop.f32.mrb[42].mxu1  ;;  %11893 = vst [vmem:[%s19746_s9 + $0x18] sm:$0xf] %v12958_v59  ;;  %15900 = vtanh.f32 %v13939_v37 }
 0x8db   :  { %v13450_v39 = vpop.f32.mrb[234].mxu0  ;;  %v12962_v29 = vpack.c.bf16 %v15887_v46, %v15887_v46  ;;  %v13941_v62 = vadd.f32 %v10183_v58, %v19439_v4  ;;  %v10185_v20 = vpop.f32.mrb[43].mxu1  ;;  %11896 = vst [vmem:[%s19746_s9 + $0x2c] sm:$0xff] %v12961_v36 }
 0x8dc   :  { %v13451_v26 = vpop.f32.mrb[235].mxu0  ;;  %15902 = vtanh.f32 %v13940_v51  ;;  %v10852_v57 = vadd.f32 %v13449_v42, %v19346_v35  ;;  %v13942_v7 = vadd.f32 %v10185_v20, %v19447_v61  ;;  %v15889_v16 = vpop.eup %15888 }
 0x8dd   :  { %v13452_v25 = vadd.f32 %v13451_v26, %v13450_v39  ;;  %11897 = vst [vmem:[%s19746_s9 + $0x34] sm:$0xf] %v12962_v29  ;;  %15904 = vtanh.f32 %v13941_v62  ;;  %v15891_v43 = vpop.eup %15890 }
 0x8de   :  { %15906 = vtanh.f32 %v10852_v57  ;;  %v15893_v18 = vpop.eup %15892  ;;  %v12965_v56 = vpack.c.bf16 %v15891_v43, %v15889_v16 }
 0x8df   :  { %v10855_v32 = vadd.f32 %v13452_v25, %v19351_v38  ;;  %15908 = vtanh.f32 %v13942_v7  ;;  %v15895_v15 = vpop.eup %15894  ;;  %v10189_v45 = vpop.f32.mrb[44].mxu1 }
 0x8e0   :  { %v13453_v35 = vpop.f32.mrb[236].mxu0  ;;  %v15897_v13 = vpop.eup %15896  ;;  %11900 = vst [vmem:[%s19746_s9 + $0x48] sm:$0xff] %v12965_v56  ;;  %v12966_v54 = vpack.c.bf16 %v15895_v15, %v15895_v15  ;;  %v13943_v41 = vadd.f32 %v10189_v45, %v19439_v4 }
 0x8e1   :  { %15910 = vtanh.f32 %v10855_v32  ;;  %v10191_v44 = vpop.f32.mrb[45].mxu1  ;;  %v13454_v3 = vpop.f32.mrb[237].mxu0  ;;  %v12969_v12 = vpack.c.bf16 %v15897_v13, %v15893_v18 }
 0x8e2   :  { %v15899_v19 = vpop.eup %15898  ;;  %v13944_v38 = vadd.f32 %v10191_v44, %v19447_v61  ;;  %v13455_v5 = vadd.f32 %v13454_v3, %v13453_v35  ;;  %v10193_v8 = vpop.f32.mrb[46].mxu1  ;;  %11901 = vst [vmem:[%s19746_s9 + $0x50] sm:$0xf] %v12966_v54  ;;  %15912 = vtanh.f32 %v13943_v41 }
 0x8e3   :  { %v13456_v11 = vpop.f32.mrb[238].mxu0  ;;  %v12970_v59 = vpack.c.bf16 %v15899_v19, %v15899_v19  ;;  %v13945_v37 = vadd.f32 %v10193_v8, %v19439_v4  ;;  %v10195_v21 = vpop.f32.mrb[47].mxu1  ;;  %11904 = vst [vmem:[%s19746_s9 + $0x64] sm:$0xff] %v12969_v12 }
 0x8e4   :  { %v13457_v63 = vpop.f32.mrb[239].mxu0  ;;  %15914 = vtanh.f32 %v13944_v38  ;;  %v10860_v46 = vadd.f32 %v13455_v5, %v19356_v50  ;;  %v13946_v36 = vadd.f32 %v10195_v21, %v19447_v61  ;;  %v15901_v42 = vpop.eup %15900 }
 0x8e5   :  { %v13458_v51 = vadd.f32 %v13457_v63, %v13456_v11  ;;  %11905 = vst [vmem:[%s19746_s9 + $0x6c] sm:$0xf] %v12970_v59  ;;  %15916 = vtanh.f32 %v13945_v37 }
 0x8e6   :  { %v15903_v58 = vpop.eup %15902  ;;  %15918 = vtanh.f32 %v10860_v46 }
 0x8e7   :  { %v10863_v39 = vadd.f32 %v13458_v51, %v19361_v14  ;;  %v15905_v29 = vpop.eup %15904  ;;  %v12973_v62 = vpack.c.bf16 %v15903_v58, %v15901_v42  ;;  %15920 = vtanh.f32 %v13946_v36  ;;  %v10199_v26 = vpop.f32.mrb[48].mxu1 }
 0x8e8   :  { %v15907_v20 = vpop.eup %15906  ;;  %v13459_v50 = vpop.f32.mrb[240].mxu0  ;;  %v13947_v25 = vadd.f32 %v10199_v26, %v19439_v4 }
 0x8e9   :  { %15922 = vtanh.f32 %v10863_v39  ;;  %v15909_v57 = vpop.eup %15908  ;;  %11908 = vst [vmem:[%s19746_s9 + $0x80] sm:$0xff] %v12973_v62  ;;  %v12974_v7 = vpack.c.bf16 %v15907_v20, %v15907_v20  ;;  %v10201_v16 = vpop.f32.mrb[49].mxu1 }
 0x8ea   :  { %v13460_v43 = vpop.f32.mrb[241].mxu0  ;;  %v12977_v18 = vpack.c.bf16 %v15909_v57, %v15905_v29  ;;  %v13948_v14 = vadd.f32 %v10201_v16, %v19447_v61  ;;  %v10203_v15 = vpop.f32.mrb[50].mxu1  ;;  %15924 = vtanh.f32 %v13947_v25 }
 0x8eb   :  { %v15911_v32 = vpop.eup %15910  ;;  %v13461_v56 = vadd.f32 %v13460_v43, %v13459_v50  ;;  %v13462_v45 = vpop.f32.mrb[242].mxu0  ;;  %11909 = vst [vmem:[%s19746_s9 + $0x88] sm:$0xf] %v12974_v7  ;;  %v13949_v13 = vadd.f32 %v10203_v15, %v19439_v4 }
 0x8ec   :  { %v12978_v35 = vpack.c.bf16 %v15911_v32, %v15911_v32  ;;  %v10205_v54 = vpop.f32.mrb[51].mxu1  ;;  %v13463_v41 = vpop.f32.mrb[243].mxu0  ;;  %11912 = vst [vmem:[%s19746_s9 + $0x9c] sm:$0xff] %v12977_v18  ;;  %15926 = vtanh.f32 %v13948_v14 }
 0x8ed   :  { %v10868_v44 = vadd.f32 %v13461_v56, %v19366_v55  ;;  %v13950_v3 = vadd.f32 %v10205_v54, %v19447_v61  ;;  %v13464_v19 = vadd.f32 %v13463_v41, %v13462_v45  ;;  %v15913_v12 = vpop.eup %15912  ;;  %15928 = vtanh.f32 %v13949_v13 }
 0x8ee   :  { %11913 = vst [vmem:[%s19746_s9 + $0xa4] sm:$0xf] %v12978_v35  ;;  %v15915_v38 = vpop.eup %15914 }
 0x8ef   :  { %15930 = vtanh.f32 %v10868_v44  ;;  %v10871_v5 = vadd.f32 %v13464_v19, %v19371_v0  ;;  %v15917_v8 = vpop.eup %15916  ;;  %v12981_v11 = vpack.c.bf16 %v15915_v38, %v15913_v12  ;;  %v10209_v37 = vpop.f32.mrb[52].mxu1 }
 0x8f0   :  { %15932 = vtanh.f32 %v13950_v3  ;;  %v15919_v59 = vpop.eup %15918  ;;  %v13465_v55 = vpop.f32.mrb[244].mxu0  ;;  %v13951_v46 = vadd.f32 %v10209_v37, %v19439_v4 }
 0x8f1   :  { %15934 = vtanh.f32 %v10871_v5  ;;  %v15921_v21 = vpop.eup %15920  ;;  %11916 = vst [vmem:[%s19746_s9 + $0xb8] sm:$0xff] %v12981_v11  ;;  %v12982_v63 = vpack.c.bf16 %v15919_v59, %v15919_v59  ;;  %v10211_v36 = vpop.f32.mrb[53].mxu1 }
 0x8f2   :  { %v13466_v51 = vpop.f32.mrb[245].mxu0  ;;  %v12985_v58 = vpack.c.bf16 %v15921_v21, %v15917_v8  ;;  %v13952_v0 = vadd.f32 %v10211_v36, %v19447_v61  ;;  %v10213_v29 = vpop.f32.mrb[54].mxu1  ;;  %15936 = vtanh.f32 %v13951_v46 }
 0x8f3   :  { %v15923_v42 = vpop.eup %15922  ;;  %v13467_v39 = vadd.f32 %v13466_v51, %v13465_v55  ;;  %v13468_v62 = vpop.f32.mrb[246].mxu0  ;;  %11917 = vst [vmem:[%s19746_s9 + $0xc0] sm:$0xf] %v12982_v63  ;;  %v13953_v26 = vadd.f32 %v10213_v29, %v19439_v4 }
 0x8f4   :  { %v12986_v20 = vpack.c.bf16 %v15923_v42, %v15923_v42  ;;  %v10215_v50 = vpop.f32.mrb[55].mxu1  ;;  %v13469_v57 = vpop.f32.mrb[247].mxu0  ;;  %11920 = vst [vmem:[%s19746_s9 + $0xd4] sm:$0xff] %v12985_v58  ;;  %15938 = vtanh.f32 %v13952_v0 }
 0x8f5   :  { %v10876_v7 = vadd.f32 %v13467_v39, %v19374_v49  ;;  %v13954_v25 = vadd.f32 %v10215_v50, %v19447_v61  ;;  %v13470_v16 = vadd.f32 %v13469_v57, %v13468_v62  ;;  %v15925_v43 = vpop.eup %15924  ;;  %15940 = vtanh.f32 %v13953_v26 }
 0x8f6   :  { %11921 = vst [vmem:[%s19746_s9 + $0xdc] sm:$0xf] %v12986_v20  ;;  %v15927_v32 = vpop.eup %15926 }
 0x8f7   :  { %15942 = vtanh.f32 %v10876_v7  ;;  %v10879_v18 = vadd.f32 %v13470_v16, %v19377_v2  ;;  %v15929_v14 = vpop.eup %15928  ;;  %v12989_v56 = vpack.c.bf16 %v15927_v32, %v15925_v43  ;;  %v10219_v45 = vpop.f32.mrb[56].mxu1 }
 0x8f8   :  { %15944 = vtanh.f32 %v13954_v25  ;;  %v13471_v49 = vpop.f32.mrb[248].mxu0  ;;  %v13955_v54 = vadd.f32 %v10219_v45, %v19439_v4  ;;  %v10221_v41 = vpop.f32.mrb[57].mxu1 }
 0x8f9   :  { %v15931_v15 = vpop.eup %15930  ;;  %15946 = vtanh.f32 %v10879_v18  ;;  %11924 = vst [vmem:[%s19746_s9 + $0xf0] sm:$0xff] %v12989_v56  ;;  %v13472_v44 = vpop.f32.mrb[249].mxu0  ;;  %v13956_v2 = vadd.f32 %v10221_v41, %v19447_v61 }
 0x8fa   :  { %v15933_v35 = vpop.eup %15932  ;;  %v12990_v13 = vpack.c.bf16 %v15931_v15, %v15931_v15  ;;  %v13473_v12 = vadd.f32 %v13472_v44, %v13471_v49  ;;  %v10223_v38 = vpop.f32.mrb[58].mxu1  ;;  %15948 = vtanh.f32 %v13955_v54 }
 0x8fb   :  { %v15935_v3 = vpop.eup %15934  ;;  %v12993_v19 = vpack.c.bf16 %v15933_v35, %v15929_v14  ;;  %v13474_v5 = vpop.f32.mrb[250].mxu0  ;;  %v13957_v11 = vadd.f32 %v10223_v38, %v19439_v4  ;;  %15950 = vtanh.f32 %v13956_v2 }
 0x8fc   :  { %11925 = vst [vmem:[%s19746_s9 + $0xf8] sm:$0xf] %v12990_v13  ;;  %v12994_v8 = vpack.c.bf16 %v15935_v3, %v15935_v3  ;;  %v10225_v59 = vpop.f32.mrb[59].mxu1  ;;  %v13475_v37 = vpop.f32.mrb[251].mxu0  ;;  %v10884_v55 = vadd.f32 %v13473_v12, %v19380_v6 }
 0x8fd   :  { %11928 = vst [vmem:[%s19746_s9 + $0x10c] sm:$0xff] %v12993_v19  ;;  %v13958_v21 = vadd.f32 %v10225_v59, %v19447_v61  ;;  %v13476_v63 = vadd.f32 %v13475_v37, %v13474_v5  ;;  %v15937_v46 = vpop.eup %15936  ;;  %15952 = vtanh.f32 %v13957_v11 }
 0x8fe   :  { %11929 = vst [vmem:[%s19746_s9 + $0x114] sm:$0xf] %v12994_v8  ;;  %v15939_v36 = vpop.eup %15938  ;;  %15954 = vtanh.f32 %v10884_v55 }
 0x8ff   :  { %v10887_v51 = vadd.f32 %v13476_v63, %v19383_v53  ;;  %v15941_v42 = vpop.eup %15940  ;;  %v12997_v58 = vpack.c.bf16 %v15939_v36, %v15937_v46  ;;  %15956 = vtanh.f32 %v13958_v21  ;;  %v10229_v39 = vpop.f32.mrb[60].mxu1 }
 0x900   :  { %v13477_v6 = vpop.f32.mrb[252].mxu0  ;;  %v13959_v20 = vadd.f32 %v10229_v39, %v19439_v4  ;;  %v10231_v26 = vpop.f32.mrb[61].mxu1 }
 0x901   :  { %v15943_v0 = vpop.eup %15942  ;;  %15958 = vtanh.f32 %v10887_v51  ;;  %11932 = vst [vmem:[%s19746_s9 + $0x128] sm:$0xff] %v12997_v58  ;;  %v13478_v50 = vpop.f32.mrb[253].mxu0  ;;  %v13960_v53 = vadd.f32 %v10231_v26, %v19447_v61 }
 0x902   :  { %v15945_v29 = vpop.eup %15944  ;;  %v12998_v62 = vpack.c.bf16 %v15943_v0, %v15943_v0  ;;  %v13479_v25 = vadd.f32 %v13478_v50, %v13477_v6  ;;  %v10233_v16 = vpop.f32.mrb[62].mxu1  ;;  %15960 = vtanh.f32 %v13959_v20 }
 0x903   :  { %v15947_v57 = vpop.eup %15946  ;;  %v13001_v7 = vpack.c.bf16 %v15945_v29, %v15941_v42  ;;  %v13480_v43 = vpop.f32.mrb[254].mxu0  ;;  %v13961_v18 = vadd.f32 %v10233_v16, %v19439_v4  ;;  %15962 = vtanh.f32 %v13960_v53 }
 0x904   :  { %11933 = vst [vmem:[%s19746_s9 + $0x130] sm:$0xf] %v12998_v62  ;;  %v13002_v32 = vpack.c.bf16 %v15947_v57, %v15947_v57  ;;  %v10235_v14 = vpop.f32.mrb[63].mxu1  ;;  %v13481_v56 = vpop.f32.mrb[255].mxu0  ;;  %v10892_v15 = vadd.f32 %v13479_v25, %v19386_v22 }
 0x905   :  { %11936 = vst [vmem:[%s19746_s9 + $0x144] sm:$0xff] %v13001_v7  ;;  %v13962_v45 = vadd.f32 %v10235_v14, %v19447_v61  ;;  %v13482_v49 = vadd.f32 %v13481_v56, %v13480_v43  ;;  %v15949_v35 = vpop.eup %15948  ;;  %15964 = vtanh.f32 %v13961_v18 }
 0x906   :  { %11937 = vst [vmem:[%s19746_s9 + $0x14c] sm:$0xf] %v13002_v32  ;;  %v15951_v13 = vpop.eup %15950  ;;  %15966 = vtanh.f32 %v10892_v15 }
 0x907   :  { %v10895_v54 = vadd.f32 %v13482_v49, %v19389_v52  ;;  %v15953_v41 = vpop.eup %15952  ;;  %v13005_v44 = vpack.c.bf16 %v15951_v13, %v15949_v35  ;;  %15968 = vtanh.f32 %v13962_v45  ;;  %v10239_v19 = vpop.f32.mrb[64].mxu1 }
 0x908   :  { %v15955_v3 = vpop.eup %15954  ;;  %v13483_v22 = vpop.f32.mrb[0].mxu0  ;;  %v13963_v38 = vadd.f32 %v10239_v19, %v19439_v4 }
 0x909   :  { %15970 = vtanh.f32 %v10895_v54  ;;  %v15957_v2 = vpop.eup %15956  ;;  %11940 = vst [vmem:[%s19746_s9 + $0x160] sm:$0xff] %v13005_v44  ;;  %v13006_v12 = vpack.c.bf16 %v15955_v3, %v15955_v3  ;;  %v10241_v5 = vpop.f32.mrb[65].mxu1 }
 0x90a   :  { %v13484_v8 = vpop.f32.mrb[1].mxu0  ;;  %v13009_v59 = vpack.c.bf16 %v15957_v2, %v15953_v41  ;;  %v13964_v52 = vadd.f32 %v10241_v5, %v19447_v61  ;;  %v10243_v55 = vpop.f32.mrb[66].mxu1  ;;  %15972 = vtanh.f32 %v13963_v38 }
 0x90b   :  { %v15959_v11 = vpop.eup %15958  ;;  %v13485_v37 = vadd.f32 %v13484_v8, %v13483_v22  ;;  %v13486_v21 = vpop.f32.mrb[2].mxu0  ;;  %11941 = vst [vmem:[%s19746_s9 + $0x168] sm:$0xf] %v13006_v12  ;;  %v13965_v46 = vadd.f32 %v10243_v55, %v19439_v4 }
 0x90c   :  { %v13010_v63 = vpack.c.bf16 %v15959_v11, %v15959_v11  ;;  %v10245_v36 = vpop.f32.mrb[67].mxu1  ;;  %v13487_v51 = vpop.f32.mrb[3].mxu0  ;;  %11944 = vst [vmem:[%s19746_s9 + $0x17c] sm:$0xff] %v13009_v59  ;;  %15974 = vtanh.f32 %v13964_v52 }
 0x90d   :  { %v10900_v42 = vadd.f32 %v13485_v37, %v19392_v9  ;;  %v13966_v58 = vadd.f32 %v10245_v36, %v19447_v61  ;;  %v13488_v0 = vadd.f32 %v13487_v51, %v13486_v21  ;;  %v15961_v39 = vpop.eup %15960  ;;  %15976 = vtanh.f32 %v13965_v46 }
 0x90e   :  { %11945 = vst [vmem:[%s19746_s9 + $0x184] sm:$0xf] %v13010_v63  ;;  %v15963_v6 = vpop.eup %15962 }
 0x90f   :  { %15978 = vtanh.f32 %v10900_v42  ;;  %v10903_v29 = vadd.f32 %v13488_v0, %v19395_v23  ;;  %v15965_v62 = vpop.eup %15964  ;;  %v13013_v20 = vpack.c.bf16 %v15963_v6, %v15961_v39  ;;  %v10249_v50 = vpop.f32.mrb[68].mxu1 }
 0x910   :  { %15980 = vtanh.f32 %v13966_v58  ;;  %v15967_v26 = vpop.eup %15966  ;;  %v13489_v9 = vpop.f32.mrb[4].mxu0  ;;  %v13967_v53 = vadd.f32 %v10249_v50, %v19439_v4 }
 0x911   :  { %15982 = vtanh.f32 %v10903_v29  ;;  %v15969_v57 = vpop.eup %15968  ;;  %11948 = vst [vmem:[%s19746_s9 + $0x198] sm:$0xff] %v13013_v20  ;;  %v13014_v7 = vpack.c.bf16 %v15967_v26, %v15967_v26  ;;  %v10251_v25 = vpop.f32.mrb[69].mxu1 }
 0x912   :  { %v13490_v16 = vpop.f32.mrb[5].mxu0  ;;  %v13017_v32 = vpack.c.bf16 %v15969_v57, %v15965_v62  ;;  %v13968_v23 = vadd.f32 %v10251_v25, %v19447_v61  ;;  %v10253_v14 = vpop.f32.mrb[70].mxu1  ;;  %15984 = vtanh.f32 %v13967_v53 }
 0x913   :  { %v15971_v43 = vpop.eup %15970  ;;  %v13491_v18 = vadd.f32 %v13490_v16, %v13489_v9  ;;  %v13492_v56 = vpop.f32.mrb[6].mxu0  ;;  %11949 = vst [vmem:[%s19746_s9 + $0x1a0] sm:$0xf] %v13014_v7  ;;  %v13969_v45 = vadd.f32 %v10253_v14, %v19439_v4 }
 0x914   :  { %v13018_v15 = vpack.c.bf16 %v15971_v43, %v15971_v43  ;;  %v10255_v49 = vpop.f32.mrb[71].mxu1  ;;  %v13493_v35 = vpop.f32.mrb[7].mxu0  ;;  %11952 = vst [vmem:[%s19746_s9 + $0x1b4] sm:$0xff] %v13017_v32  ;;  %15986 = vtanh.f32 %v13968_v23 }
 0x915   :  { %v10908_v13 = vadd.f32 %v13491_v18, %v19398_v1  ;;  %v13970_v54 = vadd.f32 %v10255_v49, %v19447_v61  ;;  %v13494_v41 = vadd.f32 %v13493_v35, %v13492_v56  ;;  %v15973_v44 = vpop.eup %15972  ;;  %15988 = vtanh.f32 %v13969_v45 }
 0x916   :  { %11953 = vst [vmem:[%s19746_s9 + $0x1bc] sm:$0xf] %v13018_v15  ;;  %v15975_v3 = vpop.eup %15974 }
 0x917   :  { %15990 = vtanh.f32 %v10908_v13  ;;  %v10911_v19 = vadd.f32 %v13494_v41, %v19401_v60  ;;  %v15977_v22 = vpop.eup %15976  ;;  %v13021_v2 = vpack.c.bf16 %v15975_v3, %v15973_v44  ;;  %v10259_v38 = vpop.f32.mrb[72].mxu1 }
 0x918   :  { %15992 = vtanh.f32 %v13970_v54  ;;  %v13495_v1 = vpop.f32.mrb[8].mxu0  ;;  %v13971_v11 = vadd.f32 %v10259_v38, %v19439_v4  ;;  %v10261_v59 = vpop.f32.mrb[73].mxu1 }
 0x919   :  { %v15979_v12 = vpop.eup %15978  ;;  %15994 = vtanh.f32 %v10911_v19  ;;  %11956 = vst [vmem:[%s19746_s9 + $0x1d0] sm:$0xff] %v13021_v2  ;;  %v13496_v52 = vpop.f32.mrb[9].mxu0  ;;  %v13972_v60 = vadd.f32 %v10261_v59, %v19447_v61 }
 0x91a   :  { %v15981_v5 = vpop.eup %15980  ;;  %v13022_v8 = vpack.c.bf16 %v15979_v12, %v15979_v12  ;;  %v13497_v21 = vadd.f32 %v13496_v52, %v13495_v1  ;;  %v10263_v63 = vpop.f32.mrb[74].mxu1  ;;  %15996 = vtanh.f32 %v13971_v11 }
 0x91b   :  { %v15983_v37 = vpop.eup %15982  ;;  %v13025_v55 = vpack.c.bf16 %v15981_v5, %v15977_v22  ;;  %v13498_v46 = vpop.f32.mrb[10].mxu0  ;;  %v13973_v51 = vadd.f32 %v10263_v63, %v19439_v4  ;;  %15998 = vtanh.f32 %v13972_v60 }
 0x91c   :  { %11957 = vst [vmem:[%s19746_s9 + $0x1d8] sm:$0xf] %v13022_v8  ;;  %v13026_v36 = vpack.c.bf16 %v15983_v37, %v15983_v37  ;;  %v10265_v42 = vpop.f32.mrb[75].mxu1  ;;  %v13499_v58 = vpop.f32.mrb[11].mxu0  ;;  %v10916_v0 = vadd.f32 %v13497_v21, %v19404_v30 }
 0x91d   :  { %11960 = vst [vmem:[%s19746_s9 + $0x1ec] sm:$0xff] %v13025_v55  ;;  %v13974_v39 = vadd.f32 %v10265_v42, %v19447_v61  ;;  %v13500_v6 = vadd.f32 %v13499_v58, %v13498_v46  ;;  %v15985_v29 = vpop.eup %15984  ;;  %16000 = vtanh.f32 %v13973_v51 }
 0x91e   :  { %11961 = vst [vmem:[%s19746_s9 + $0x1f4] sm:$0xf] %v13026_v36  ;;  %v15987_v62 = vpop.eup %15986  ;;  %16002 = vtanh.f32 %v10916_v0 }
 0x91f   :  { %v10919_v20 = vadd.f32 %v13500_v6, %v19407_v27  ;;  %v15989_v26 = vpop.eup %15988  ;;  %v13029_v50 = vpack.c.bf16 %v15987_v62, %v15985_v29  ;;  %16004 = vtanh.f32 %v13974_v39  ;;  %v10269_v57 = vpop.f32.mrb[76].mxu1 }
 0x920   :  { %v13501_v30 = vpop.f32.mrb[12].mxu0  ;;  %v13975_v25 = vadd.f32 %v10269_v57, %v19439_v4  ;;  %v10271_v16 = vpop.f32.mrb[77].mxu1 }
 0x921   :  { %v15991_v9 = vpop.eup %15990  ;;  %16006 = vtanh.f32 %v10919_v20  ;;  %11964 = vst [vmem:[%s19746_s9 + $0x208] sm:$0xff] %v13029_v50  ;;  %v13502_v43 = vpop.f32.mrb[13].mxu0  ;;  %v13976_v27 = vadd.f32 %v10271_v16, %v19447_v61 }
 0x922   :  { %v15993_v7 = vpop.eup %15992  ;;  %v13030_v53 = vpack.c.bf16 %v15991_v9, %v15991_v9  ;;  %v13503_v18 = vadd.f32 %v13502_v43, %v13501_v30  ;;  %v10273_v14 = vpop.f32.mrb[78].mxu1  ;;  %16008 = vtanh.f32 %v13975_v25 }
 0x923   :  { %v15995_v32 = vpop.eup %15994  ;;  %v13033_v23 = vpack.c.bf16 %v15993_v7, %v15989_v26  ;;  %v13504_v56 = vpop.f32.mrb[14].mxu0  ;;  %v13977_v45 = vadd.f32 %v10273_v14, %v19439_v4  ;;  %16010 = vtanh.f32 %v13976_v27 }
 0x924   :  { %11965 = vst [vmem:[%s19746_s9 + $0x210] sm:$0xf] %v13030_v53  ;;  %v13034_v15 = vpack.c.bf16 %v15995_v32, %v15995_v32  ;;  %v10275_v49 = vpop.f32.mrb[79].mxu1  ;;  %v13505_v35 = vpop.f32.mrb[15].mxu0  ;;  %v10924_v13 = vadd.f32 %v13503_v18, %v19410_v28 }
 0x925   :  { %11968 = vst [vmem:[%s19746_s9 + $0x224] sm:$0xff] %v13033_v23  ;;  %v13978_v54 = vadd.f32 %v10275_v49, %v19447_v61  ;;  %v13506_v41 = vadd.f32 %v13505_v35, %v13504_v56  ;;  %v15997_v44 = vpop.eup %15996  ;;  %16012 = vtanh.f32 %v13977_v45 }
 0x926   :  { %11969 = vst [vmem:[%s19746_s9 + $0x22c] sm:$0xf] %v13034_v15  ;;  %v15999_v3 = vpop.eup %15998  ;;  %16014 = vtanh.f32 %v10924_v13 }
 0x927   :  { %v10927_v19 = vadd.f32 %v13506_v41, %v19413_v31  ;;  %v16001_v22 = vpop.eup %16000  ;;  %v13037_v2 = vpack.c.bf16 %v15999_v3, %v15997_v44  ;;  %16016 = vtanh.f32 %v13978_v54  ;;  %v10279_v38 = vpop.f32.mrb[80].mxu1 }
 0x928   :  { %v16003_v12 = vpop.eup %16002  ;;  %v13507_v28 = vpop.f32.mrb[16].mxu0  ;;  %v13979_v8 = vadd.f32 %v10279_v38, %v19439_v4 }
 0x929   :  { %16018 = vtanh.f32 %v10927_v19  ;;  %v16005_v1 = vpop.eup %16004  ;;  %11972 = vst [vmem:[%s19746_s9 + $0x240] sm:$0xff] %v13037_v2  ;;  %v13038_v5 = vpack.c.bf16 %v16003_v12, %v16003_v12  ;;  %v10281_v11 = vpop.f32.mrb[81].mxu1 }
 0x92a   :  { %v13508_v59 = vpop.f32.mrb[17].mxu0  ;;  %v13041_v37 = vpack.c.bf16 %v16005_v1, %v16001_v22  ;;  %v13980_v31 = vadd.f32 %v10281_v11, %v19447_v61  ;;  %v10283_v60 = vpop.f32.mrb[82].mxu1  ;;  %16020 = vtanh.f32 %v13979_v8 }
 0x92b   :  { %v16007_v52 = vpop.eup %16006  ;;  %v13509_v55 = vadd.f32 %v13508_v59, %v13507_v28  ;;  %v13510_v21 = vpop.f32.mrb[18].mxu0  ;;  %11973 = vst [vmem:[%s19746_s9 + $0x248] sm:$0xf] %v13038_v5  ;;  %v13981_v46 = vadd.f32 %v10283_v60, %v19439_v4 }
 0x92c   :  { %v13042_v63 = vpack.c.bf16 %v16007_v52, %v16007_v52  ;;  %v10285_v36 = vpop.f32.mrb[83].mxu1  ;;  %v13511_v51 = vpop.f32.mrb[19].mxu0  ;;  %11976 = vst [vmem:[%s19746_s9 + $0x25c] sm:$0xff] %v13041_v37  ;;  %16022 = vtanh.f32 %v13980_v31 }
 0x92d   :  { %v10932_v42 = vadd.f32 %v13509_v55, %v19416_v24  ;;  %v13982_v58 = vadd.f32 %v10285_v36, %v19447_v61  ;;  %v13512_v0 = vadd.f32 %v13511_v51, %v13510_v21  ;;  %v16009_v39 = vpop.eup %16008  ;;  %16024 = vtanh.f32 %v13981_v46 }
 0x92e   :  { %11977 = vst [vmem:[%s19746_s9 + $0x264] sm:$0xf] %v13042_v63  ;;  %v16011_v6 = vpop.eup %16010 }
 0x92f   :  { %16026 = vtanh.f32 %v10932_v42  ;;  %v10935_v29 = vadd.f32 %v13512_v0, %v19419_v17  ;;  %v16013_v62 = vpop.eup %16012  ;;  %v13045_v20 = vpack.c.bf16 %v16011_v6, %v16009_v39  ;;  %v10289_v50 = vpop.f32.mrb[84].mxu1 }
 0x930   :  { %16028 = vtanh.f32 %v13982_v58  ;;  %v16015_v26 = vpop.eup %16014  ;;  %v13513_v24 = vpop.f32.mrb[20].mxu0  ;;  %v13983_v30 = vadd.f32 %v10289_v50, %v19439_v4 }
 0x931   :  { %16030 = vtanh.f32 %v10935_v29  ;;  %v16017_v9 = vpop.eup %16016  ;;  %11980 = vst [vmem:[%s19746_s9 + $0x278] sm:$0xff] %v13045_v20  ;;  %v13046_v57 = vpack.c.bf16 %v16015_v26, %v16015_v26  ;;  %v10291_v7 = vpop.f32.mrb[85].mxu1 }
 0x932   :  { %v13514_v53 = vpop.f32.mrb[21].mxu0  ;;  %v13049_v16 = vpack.c.bf16 %v16017_v9, %v16013_v62  ;;  %v13984_v17 = vadd.f32 %v10291_v7, %v19447_v61  ;;  %v10293_v32 = vpop.f32.mrb[86].mxu1  ;;  %16032 = vtanh.f32 %v13983_v30 }
 0x933   :  { %v16019_v25 = vpop.eup %16018  ;;  %v13515_v43 = vadd.f32 %v13514_v53, %v13513_v24  ;;  %v13516_v23 = vpop.f32.mrb[22].mxu0  ;;  %11981 = vst [vmem:[%s19746_s9 + $0x280] sm:$0xf] %v13046_v57  ;;  %v13985_v18 = vadd.f32 %v10293_v32, %v19439_v4 }
 0x934   :  { %v13050_v27 = vpack.c.bf16 %v16019_v25, %v16019_v25  ;;  %v10295_v14 = vpop.f32.mrb[87].mxu1  ;;  %v13517_v56 = vpop.f32.mrb[23].mxu0  ;;  %11984 = vst [vmem:[%s19746_s9 + $0x294] sm:$0xff] %v13049_v16  ;;  %16034 = vtanh.f32 %v13984_v17 }
 0x935   :  { %v10940_v15 = vadd.f32 %v13515_v43, %v19422_v48  ;;  %v13986_v45 = vadd.f32 %v10295_v14, %v19447_v61  ;;  %v13518_v49 = vadd.f32 %v13517_v56, %v13516_v23  ;;  %v16021_v35 = vpop.eup %16020  ;;  %16036 = vtanh.f32 %v13985_v18 }
 0x936   :  { %11985 = vst [vmem:[%s19746_s9 + $0x29c] sm:$0xf] %v13050_v27  ;;  %v16023_v13 = vpop.eup %16022 }
 0x937   :  { %16038 = vtanh.f32 %v10940_v15  ;;  %v10943_v54 = vadd.f32 %v13518_v49, %v19425_v34  ;;  %v16025_v41 = vpop.eup %16024  ;;  %v13053_v44 = vpack.c.bf16 %v16023_v13, %v16021_v35  ;;  %v10299_v19 = vpop.f32.mrb[88].mxu1 }
 0x938   :  { %16040 = vtanh.f32 %v13986_v45  ;;  %v13519_v48 = vpop.f32.mrb[24].mxu0  ;;  %v13987_v12 = vadd.f32 %v10299_v19, %v19439_v4  ;;  %v10301_v38 = vpop.f32.mrb[89].mxu1 }
 0x939   :  { %v16027_v3 = vpop.eup %16026  ;;  %16042 = vtanh.f32 %v10943_v54  ;;  %11988 = vst [vmem:[%s19746_s9 + $0x2b0] sm:$0xff] %v13053_v44  ;;  %v13520_v28 = vpop.f32.mrb[25].mxu0  ;;  %v13988_v34 = vadd.f32 %v10301_v38, %v19447_v61 }
 0x93a   :  { %v16029_v22 = vpop.eup %16028  ;;  %v13054_v2 = vpack.c.bf16 %v16027_v3, %v16027_v3  ;;  %v13521_v8 = vadd.f32 %v13520_v28, %v13519_v48  ;;  %v10303_v11 = vpop.f32.mrb[90].mxu1  ;;  %16044 = vtanh.f32 %v13987_v12 }
 0x93b   :  { %v16031_v1 = vpop.eup %16030  ;;  %v13057_v5 = vpack.c.bf16 %v16029_v22, %v16025_v41  ;;  %v13522_v59 = vpop.f32.mrb[26].mxu0  ;;  %v13989_v37 = vadd.f32 %v10303_v11, %v19439_v4  ;;  %16046 = vtanh.f32 %v13988_v34 }
 0x93c   :  { %11989 = vst [vmem:[%s19746_s9 + $0x2b8] sm:$0xf] %v13054_v2  ;;  %v13058_v52 = vpack.c.bf16 %v16031_v1, %v16031_v1  ;;  %v10305_v31 = vpop.f32.mrb[91].mxu1  ;;  %v13523_v55 = vpop.f32.mrb[27].mxu0  ;;  %v10948_v60 = vadd.f32 %v13521_v8, %v19428_v40 }
 0x93d   :  { %11992 = vst [vmem:[%s19746_s9 + $0x2cc] sm:$0xff] %v13057_v5  ;;  %v13990_v21 = vadd.f32 %v10305_v31, %v19447_v61  ;;  %v13524_v63 = vadd.f32 %v13523_v55, %v13522_v59  ;;  %v16033_v46 = vpop.eup %16032  ;;  %16048 = vtanh.f32 %v13989_v37 }
 0x93e   :  { %11993 = vst [vmem:[%s19746_s9 + $0x2d4] sm:$0xf] %v13058_v52  ;;  %v16035_v36 = vpop.eup %16034  ;;  %16050 = vtanh.f32 %v10948_v60 }
 0x93f   :  { %v10951_v51 = vadd.f32 %v13524_v63, %v19431_v47  ;;  %v16037_v42 = vpop.eup %16036  ;;  %v13061_v58 = vpack.c.bf16 %v16035_v36, %v16033_v46  ;;  %16052 = vtanh.f32 %v13990_v21  ;;  %v10309_v39 = vpop.f32.mrb[92].mxu1 }
 0x940   :  { %v13525_v40 = vpop.f32.mrb[28].mxu0  ;;  %v13991_v62 = vadd.f32 %v10309_v39, %v19439_v4  ;;  %v10311_v20 = vpop.f32.mrb[93].mxu1 }
 0x941   :  { %v16039_v0 = vpop.eup %16038  ;;  %16054 = vtanh.f32 %v10951_v51  ;;  %11996 = vst [vmem:[%s19746_s9 + $0x2e8] sm:$0xff] %v13061_v58  ;;  %v13526_v26 = vpop.f32.mrb[29].mxu0  ;;  %v13992_v47 = vadd.f32 %v10311_v20, %v19447_v61 }
 0x942   :  { %v16041_v6 = vpop.eup %16040  ;;  %v13062_v29 = vpack.c.bf16 %v16039_v0, %v16039_v0  ;;  %v13527_v9 = vadd.f32 %v13526_v26, %v13525_v40  ;;  %v10313_v57 = vpop.f32.mrb[94].mxu1  ;;  %16056 = vtanh.f32 %v13991_v62 }
 0x943   :  { %v16043_v50 = vpop.eup %16042  ;;  %v13065_v24 = vpack.c.bf16 %v16041_v6, %v16037_v42  ;;  %v13528_v30 = vpop.f32.mrb[30].mxu0  ;;  %v13993_v53 = vadd.f32 %v10313_v57, %v19439_v4  ;;  %16058 = vtanh.f32 %v13992_v47 }
 0x944   :  { %11997 = vst [vmem:[%s19746_s9 + $0x2f0] sm:$0xf] %v13062_v29  ;;  %v13066_v7 = vpack.c.bf16 %v16043_v50, %v16043_v50  ;;  %v10315_v25 = vpop.f32.mrb[95].mxu1  ;;  %v13529_v16 = vpop.f32.mrb[31].mxu0  ;;  %v10956_v17 = vadd.f32 %v13527_v9, %v19434_v33 }
 0x945   :  { %12000 = vst [vmem:[%s19746_s9 + $0x304] sm:$0xff] %v13065_v24  ;;  %v13994_v43 = vadd.f32 %v10315_v25, %v19447_v61  ;;  %v13530_v32 = vadd.f32 %v13529_v16, %v13528_v30  ;;  %v16045_v23 = vpop.eup %16044  ;;  %16060 = vtanh.f32 %v13993_v53 }
 0x946   :  { %12001 = vst [vmem:[%s19746_s9 + $0x30c] sm:$0xf] %v13066_v7  ;;  %v16047_v27 = vpop.eup %16046  ;;  %16062 = vtanh.f32 %v10956_v17 }
 0x947   :  { %v10959_v4 = vadd.f32 %v13530_v32, %v19442_v10  ;;  %v16049_v18 = vpop.eup %16048  ;;  %v13069_v14 = vpack.c.bf16 %v16047_v27, %v16045_v23  ;;  %16064 = vtanh.f32 %v13994_v43 }
 0x948   :  { %v16051_v56 = vpop.eup %16050 }
 0x949   :  { %16066 = vtanh.f32 %v10959_v4  ;;  %v16053_v15 = vpop.eup %16052  ;;  %12004 = vst [vmem:[%s19746_s9 + $0x320] sm:$0xff] %v13069_v14  ;;  %v13070_v33 = vpack.c.bf16 %v16051_v56, %v16051_v56 }
 0x94a   :  { %v13073_v45 = vpack.c.bf16 %v16053_v15, %v16049_v18 }
 0x94b   :  { %v16055_v61 = vpop.eup %16054  ;;  %12005 = vst [vmem:[%s19746_s9 + $0x328] sm:$0xf] %v13070_v33 }
 0x94c   :  { %v13074_v49 = vpack.c.bf16 %v16055_v61, %v16055_v61  ;;  %12008 = vst [vmem:[%s19746_s9 + $0x33c] sm:$0xff] %v13073_v45  ;;  %v16057_v10 = vpop.eup %16056 }
 0x94d   :  { %v16059_v35 = vpop.eup %16058 }
 0x94e   :  { %12009 = vst [vmem:[%s19746_s9 + $0x344] sm:$0xf] %v13074_v49  ;;  %v13077_v54 = vpack.c.bf16 %v16059_v35, %v16057_v10 }
 0x94f   :  { %v16061_v13 = vpop.eup %16060 }
 0x950   :  { %v16063_v41 = vpop.eup %16062  ;;  %12012 = vst [vmem:[%s19746_s9 + $0x358] sm:$0xff] %v13077_v54 }
 0x951   :  { %v16065_v44 = vpop.eup %16064  ;;  %v13078_v3 = vpack.c.bf16 %v16063_v41, %v16063_v41 }
 0x952   :  { %v13081_v48 = vpack.c.bf16 %v16065_v44, %v16061_v13 }
 0x953   :  { %v16067_v19 = vpop.eup %16066  ;;  %12013 = vst [vmem:[%s19746_s9 + $0x360] sm:$0xf] %v13078_v3 }
 0x954   :  { %v13082_v22 = vpack.c.bf16 %v16067_v19, %v16067_v19  ;;  %12016 = vst [vmem:[%s19746_s9 + $0x374] sm:$0xff] %v13081_v48 }
 0x956   :  { %12017 = vst [vmem:[%s19746_s9 + $0x37c] sm:$0xf] %v13082_v22 }
 0x957   :  { %12022 = vsyncpa [#allocation3], 1 }
 0x958   :  { %12023 = vsyncpa [#allocation5], 1 }
 0x959   :  { %12024 = vsyncpa [#allocation8], 1 }
 0x95a   :  { %12025 = vsyncpa [#allocation11], 1 }
 0x95b   :  { %12026 = vsyncpa [#allocation14], 1 }

</bundles_post_ra>
